<compile_context>
chip_gen: v5e
topology: v5e:2x2
jax: 0.10.0
libtpu: 0.0.40
codegen_flags: <defaults>
</compile_context>

<pallas_src>
import functools

import jax
import jax.numpy as jnp
import numpy as np
from jax.experimental import pallas as pl
from jax.experimental.pallas import tpu as pltpu

VISUAL = 1        # BasicRFB `visual`
RES_SCALE = 0.1   # BasicRFB `scale`
_VMEM_LIMIT = 32 * 1024 * 1024  # safe on v5e/v6e/v7x


# ----------------------------------------------------------------------------
# Pallas kernels
# ----------------------------------------------------------------------------
def _branch_heads_kernel(x_ref, w_ref, shift_ref, o0_ref, o1_ref, o2_ref,
                         *, c0, c1, c2):
    """Fused 1x1+BN+ReLU heads of the three branches.

    x_ref: (1, TH, W, Cin)  w_ref: (Cin, c0+c1+c2) bf16 (BN scale folded)
    shift_ref: (1, c0+c1+c2) f32  o*_ref: (1, TH, W, c*)"""
    _, th, w, cin = x_ref.shape
    x = x_ref[0].reshape(th * w, cin).astype(jnp.bfloat16)
    y = jnp.dot(x, w_ref[...], preferred_element_type=jnp.float32)
    y = jnp.maximum(y + shift_ref[0], 0.0)
    o0_ref[...] = y[:, :c0].reshape(1, th, w, c0).astype(o0_ref.dtype)
    o1_ref[...] = y[:, c0:c0 + c1].reshape(1, th, w, c1).astype(o1_ref.dtype)
    o2_ref[...] = y[:, c0 + c1:c0 + c1 + c2].reshape(1, th, w, c2).astype(
        o2_ref.dtype)


def _conv3x3_kernel(x_ref, w_ref, shift_ref, o_ref, *, th, dil, apply_relu):
    """'same' 3x3 conv with dilation `dil` on one (batch, row-tile) block.

    x_ref: full padded image for this batch element, (1, H+2d, W+2d, Cin),
           resident in VMEM across the row-tile grid axis.
    w_ref: (3, 3, Cin, Cout) bf16 (BN scale folded)
    o_ref: (1, TH, W, Cout) for row band j."""
    cin = x_ref.shape[3]
    w = o_ref.shape[2]
    cout = o_ref.shape[3]
    row0 = pl.multiple_of(pl.program_id(1) * th, th)

    # One VMEM load per row tile; every (kh, kw) tap slices the loaded band.
    band = x_ref[0, pl.ds(row0, th + 2 * dil), :, :]

    acc = jnp.zeros((th * w, cout), jnp.float32)
    for kh in range(3):
        for kw in range(3):
            patch = band[kh * dil:kh * dil + th, kw * dil:kw * dil + w, :]
            patch = patch.astype(jnp.bfloat16).reshape(th * w, cin)
            acc = acc + jnp.dot(patch, w_ref[kh, kw],
                                preferred_element_type=jnp.float32)

    y = acc + shift_ref[0]
    if apply_relu:
        y = jnp.maximum(y, 0.0)
    o_ref[...] = y.reshape(1, th, w, cout).astype(o_ref.dtype)


def _rfb_tail_kernel(x0_ref, x1_ref, x2_ref, x_ref,
                     w0_ref, w1_ref, w2_ref, wsc_ref,
                     shift_lin_ref, shift_sc_ref, o_ref):
    """Fused tail: ConvLinear(concat(x0,x1,x2)) [residual scale pre-folded]
       + shortcut(x) + ReLU.  The concat is implicit (3 partial matmuls)."""
    _, th, w, _ = x0_ref.shape
    cout = o_ref.shape[3]

    def mm(a_ref, wr):
        a = a_ref[0].reshape(th * w, a_ref.shape[3]).astype(jnp.bfloat16)
        return jnp.dot(a, wr[...], preferred_element_type=jnp.float32)

    lin = mm(x0_ref, w0_ref) + mm(x1_ref, w1_ref) + mm(x2_ref, w2_ref)
    lin = lin + shift_lin_ref[0]
    short = mm(x_ref, wsc_ref) + shift_sc_ref[0]
    y = jnp.maximum(lin + short, 0.0)
    o_ref[...] = y.reshape(1, th, w, cout).astype(o_ref.dtype)


# ----------------------------------------------------------------------------
# Wrappers (grid = (batch, row_tiles))
# ----------------------------------------------------------------------------
def _row_tile(h):
    return 8 if h % 8 == 0 else h


def _cparams():
    return pltpu.CompilerParams(
        dimension_semantics=("parallel", "parallel"),
        vmem_limit_bytes=_VMEM_LIMIT)


def branch_heads(x, p0, p1, p2):
    """Fused 1x1+BN+ReLU heads of all three branches (x read once)."""
    n, h, w, cin = x.shape
    c0, c1, c2 = p0["w"].shape[-1], p1["w"].shape[-1], p2["w"].shape[-1]
    th = _row_tile(h)
    w_cat = jnp.concatenate([p0["w"], p1["w"], p2["w"]], axis=-1)
    s_cat = jnp.concatenate([p0["shift"], p1["shift"], p2["shift"]], axis=-1)
    ctot = c0 + c1 + c2

    def oblk(c):
        return pl.BlockSpec((1, th, w, c), lambda i, j: (i, j, 0, 0))

    kern = functools.partial(_branch_heads_kernel, c0=c0, c1=c1, c2=c2)
    return pl.pallas_call(
        kern,
        out_shape=(jax.ShapeDtypeStruct((n, h, w, c0), jnp.bfloat16),
                   jax.ShapeDtypeStruct((n, h, w, c1), jnp.bfloat16),
                   jax.ShapeDtypeStruct((n, h, w, c2), jnp.bfloat16)),
        grid_spec=pltpu.PrefetchScalarGridSpec(
            num_scalar_prefetch=0,
            grid=(n, h // th),
            in_specs=[
                pl.BlockSpec((1, th, w, cin), lambda i, j: (i, j, 0, 0)),
                pl.BlockSpec((cin, ctot), lambda i, j: (0, 0)),
                pl.BlockSpec((1, ctot), lambda i, j: (0, 0)),
            ],
            out_specs=[oblk(c0), oblk(c1), oblk(c2)],
        ),
        compiler_params=_cparams(),
    )(x, w_cat, s_cat)


def conv3x3_bn_act(x, p, *, dil, relu):
    n, h, w, cin = x.shape
    cout = p["w"].shape[-1]
    th = _row_tile(h)
    x_pad = jnp.pad(x, ((0, 0), (dil, dil), (dil, dil), (0, 0)))
    hp, wp = h + 2 * dil, w + 2 * dil
    kern = functools.partial(_conv3x3_kernel, th=th, dil=dil, apply_relu=relu)
    return pl.pallas_call(
        kern,
        out_shape=jax.ShapeDtypeStruct((n, h, w, cout), jnp.bfloat16),
        grid_spec=pltpu.PrefetchScalarGridSpec(
            num_scalar_prefetch=0,
            grid=(n, h // th),
            in_specs=[
                # full padded image per batch element; block index constant
                # across the row-tile axis -> stays resident in VMEM.
                pl.BlockSpec((1, hp, wp, cin), lambda i, j: (i, 0, 0, 0)),
                pl.BlockSpec((3, 3, cin, cout), lambda i, j: (0, 0, 0, 0)),
                pl.BlockSpec((1, cout), lambda i, j: (0, 0)),
            ],
            out_specs=pl.BlockSpec((1, th, w, cout), lambda i, j: (i, j, 0, 0)),
        ),
        compiler_params=_cparams(),
    )(x_pad, p["w"], p["shift"])


def rfb_tail(b0, b1, b2, x, p_lin, p_sc):
    n, h, w, cbr = b0.shape
    cin = x.shape[-1]
    cout = p_lin["w"].shape[-1]
    th = _row_tile(h)
    w_lin = p_lin["w"]
    w0, w1, w2 = w_lin[:cbr], w_lin[cbr:2 * cbr], w_lin[2 * cbr:3 * cbr]

    def blk(c):
        return pl.BlockSpec((1, th, w, c), lambda i, j: (i, j, 0, 0))

    def wspec(ci):
        return pl.BlockSpec((ci, cout), lambda i, j: (0, 0))

    sspec = pl.BlockSpec((1, cout), lambda i, j: (0, 0))

    return pl.pallas_call(
        _rfb_tail_kernel,
        out_shape=jax.ShapeDtypeStruct((n, h, w, cout), jnp.float32),
        grid_spec=pltpu.PrefetchScalarGridSpec(
            num_scalar_prefetch=0,
            grid=(n, h // th),
            in_specs=[blk(cbr), blk(cbr), blk(cbr), blk(cin),
                      wspec(cbr), wspec(cbr), wspec(cbr), wspec(cin),
                      sspec, sspec],
            out_specs=blk(cout),
        ),
        compiler_params=_cparams(),
    )(b0, b1, b2, x, w0, w1, w2, p_sc["w"], p_lin["shift"], p_sc["shift"])


# ----------------------------------------------------------------------------
# Parameters (deterministic, synthetic; BN folded in eval mode)
# ----------------------------------------------------------------------------
def make_conv_params(key, cin, cout, ksize, post_scale=1.0, eps=1e-5):
    kw_, kg, kb, km, kv = jax.random.split(key, 5)
    if ksize == 3:
        w = 0.1 * jax.random.normal(kw_, (3, 3, cin, cout), jnp.float32)
    else:
        w = 0.1 * jax.random.normal(kw_, (cin, cout), jnp.float32)
    gamma = 1.0 + 0.1 * jax.random.normal(kg, (cout,), jnp.float32)
    beta = 0.1 * jax.random.normal(kb, (cout,), jnp.float32)
    mean = 0.1 * jax.random.normal(km, (cout,), jnp.float32)
    var = jnp.abs(1.0 + 0.1 * jax.random.normal(kv, (cout,), jnp.float32))
    scale = gamma * jax.lax.rsqrt(var + eps)          # BN eval-mode scale
    shift = (beta - mean * scale) * post_scale        # conv bias=False
    w_folded = (w * scale * post_scale).astype(jnp.bfloat16)
    return {"w": w_folded, "shift": shift[None, :].astype(jnp.float32)}


def init_rfb_params(key, in_planes, out_planes):
    inter = in_planes // 8
    keys = jax.random.split(key, 11)
    return {
        "b0_0": make_conv_params(keys[0], in_planes, 2 * inter, 1),
        "b0_1": make_conv_params(keys[1], 2 * inter, 2 * inter, 3),
        "b1_0": make_conv_params(keys[2], in_planes, inter, 1),
        "b1_1": make_conv_params(keys[3], inter, 2 * inter, 3),
        "b1_2": make_conv_params(keys[4], 2 * inter, 2 * inter, 3),
        "b2_0": make_conv_params(keys[5], in_planes, inter, 1),
        "b2_1": make_conv_params(keys[6], inter, (inter // 2) * 3, 3),
        "b2_2": make_conv_params(keys[7], (inter // 2) * 3, 2 * inter, 3),
        "b2_3": make_conv_params(keys[8], 2 * inter, 2 * inter, 3),
        # residual scale folded into ConvLinear's weight + shift
        "conv_linear": make_conv_params(keys[9], 6 * inter, out_planes, 1,
                                        post_scale=RES_SCALE),
        "shortcut": make_conv_params(keys[10], in_planes, out_planes, 1),
    }


# ----------------------------------------------------------------------------
# BasicRFB forward (Pallas)
# ----------------------------------------------------------------------------
@jax.jit
def basic_rfb_forward(params, x_nchw):
    x = jnp.transpose(x_nchw, (0, 2, 3, 1)).astype(jnp.float32)  # NCHW -> NHWC

    # fused heads: per-branch 1x1+BN+ReLU (x read once)
    h0, h1, h2 = branch_heads(x, params["b0_0"], params["b1_0"],
                              params["b2_0"])

    # branch0: 3x3 dil=visual (no relu)
    b0 = conv3x3_bn_act(h0, params["b0_1"], dil=VISUAL, relu=False)

    # branch1: 3x3 pad=1 (relu) -> 3x3 dil=visual+1 (no relu)
    b1 = conv3x3_bn_act(h1, params["b1_1"], dil=1, relu=True)
    b1 = conv3x3_bn_act(b1, params["b1_2"], dil=VISUAL + 1, relu=False)

    # branch2: 3x3 (relu) -> 3x3 (relu) -> 3x3 dil=2v+1 (no relu)
    b2 = conv3x3_bn_act(h2, params["b2_1"], dil=1, relu=True)
    b2 = conv3x3_bn_act(b2, params["b2_2"], dil=1, relu=True)
    b2 = conv3x3_bn_act(b2, params["b2_3"], dil=2 * VISUAL + 1, relu=False)

    # fused: ConvLinear(cat) * scale + shortcut(x), ReLU
    out = rfb_tail(b0, b1, b2, x, params["conv_linear"], params["shortcut"])
    return jnp.transpose(out, (0, 3, 1, 2))  # back to NCHW


# ----------------------------------------------------------------------------
# Pure-JAX reference (same folded bf16 weights / f32 accumulation)
# ----------------------------------------------------------------------------
def _ref_conv(x, p, ksize, dil, relu):
    xb = x.astype(jnp.bfloat16)
    w = p["w"]
    if ksize == 1:
        w = w[None, None, :, :]
        pad, rhs_dil = [(0, 0), (0, 0)], (1, 1)
    else:
        pad, rhs_dil = [(dil, dil), (dil, dil)], (dil, dil)
    y = jax.lax.conv_general_dilated(
        xb, w, window_strides=(1, 1), padding=pad, rhs_dilation=rhs_dil,
        dimension_numbers=("NHWC", "HWIO", "NHWC"),
        preferred_element_type=jnp.float32)
    y = y + p["shift"][0]
    return jnp.maximum(y, 0.0) if relu else y


def basic_rfb_reference(params, x_nchw):
    x = jnp.transpose(x_nchw, (0, 2, 3, 1)).astype(jnp.float32)
    b0 = _ref_conv(x, params["b0_0"], 1, 1, True)
    b0 = _ref_conv(b0, params["b0_1"], 3, VISUAL, False)
    b1 = _ref_conv(x, params["b1_0"], 1, 1, True)
    b1 = _ref_conv(b1, params["b1_1"], 3, 1, True)
    b1 = _ref_conv(b1, params["b1_2"], 3, VISUAL + 1, False)
    b2 = _ref_conv(x, params["b2_0"], 1, 1, True)
    b2 = _ref_conv(b2, params["b2_1"], 3, 1, True)
    b2 = _ref_conv(b2, params["b2_2"], 3, 1, True)
    b2 = _ref_conv(b2, params["b2_3"], 3, 2 * VISUAL + 1, False)
    cat = jnp.concatenate([b0, b1, b2], axis=-1)
    lin = _ref_conv(cat, params["conv_linear"], 1, 1, False)   # scale folded
    short = _ref_conv(x, params["shortcut"], 1, 1, False)
    out = jnp.maximum(lin + short, 0.0)
    return jnp.transpose(out, (0, 3, 1, 2))


# ----------------------------------------------------------------------------
if __name__ == "__main__":
    key = jax.random.PRNGKey(0)
    k_param, k_x = jax.random.split(key)

    in_planes, out_planes = 64, 64     # inter_planes = 8
    N, H, W = 2, 16, 16

    params = init_rfb_params(k_param, in_planes, out_planes)
    x = jax.random.normal(k_x, (N, in_planes, H, W), jnp.float32)

    out = basic_rfb_forward(params, x)
    jax.block_until_ready(out)

    out_ref = basic_rfb_reference(params, x)
    assert out.shape == (N, out_planes, H, W)
    # bf16 MXU operands + bf16 intermediate stores in both paths; tolerance
    # relaxed accordingly.
    np.testing.assert_allclose(np.asarray(out), np.asarray(out_ref),
                               rtol=2e-2, atol=2e-2)

    print("KERNEL_OK")
</pallas_src>

<mosaic_0001>
module attributes {stable_mosaic.version = 11 : i64} {
  func.func @_branch_heads_kernel(%arg0: i32, %arg1: i32, %arg2: memref<1x8x16x64xf32, #tpu.memory_space<vmem>>, %arg3: memref<64x32xbf16, #tpu.memory_space<vmem>>, %arg4: memref<1x32xf32, #tpu.memory_space<vmem>>, %arg5: memref<1x8x16x16xbf16, #tpu.memory_space<vmem>>, %arg6: memref<1x8x16x8xbf16, #tpu.memory_space<vmem>>, %arg7: memref<1x8x16x8xbf16, #tpu.memory_space<vmem>>) attributes {dimension_semantics = [#tpu.dimension_semantics<parallel>, #tpu.dimension_semantics<parallel>], iteration_bounds = array<i64: 2, 2>, scalar_prefetch = 0 : i64, scratch_operands = 0 : i64, tpu.core_type = #tpu.core_type<tc>, window_params = [{transform_indices = @transform_0, window_bounds = array<i64: 1, 8, 16, 64>}, {pipeline_mode = #tpu.pipeline_mode<synchronous>, transform_indices = @transform_1, window_bounds = array<i64: 64, 32>}, {pipeline_mode = #tpu.pipeline_mode<synchronous>, transform_indices = @transform_2, window_bounds = array<i64: 1, 32>}, {transform_indices = @transform_3, window_bounds = array<i64: 1, 8, 16, 16>}, {transform_indices = @transform_4, window_bounds = array<i64: 1, 8, 16, 8>}, {transform_indices = @transform_5, window_bounds = array<i64: 1, 8, 16, 8>}]} {
    %c0 = arith.constant 0 : index
    %c0_0 = arith.constant 0 : index
    %c0_1 = arith.constant 0 : index
    %c0_2 = arith.constant 0 : index
    %0 = vector.load %arg2[%c0, %c0_0, %c0_1, %c0_2] : memref<1x8x16x64xf32, #tpu.memory_space<vmem>>, vector<1x8x16x64xf32>
    %1 = vector.shape_cast %0 : vector<1x8x16x64xf32> to vector<8x16x64xf32>
    %2 = vector.shape_cast %1 : vector<8x16x64xf32> to vector<128x64xf32>
    %3 = arith.truncf %2 : vector<128x64xf32> to vector<128x64xbf16>
    %c0_3 = arith.constant 0 : index
    %c0_4 = arith.constant 0 : index
    %4 = vector.load %arg3[%c0_3, %c0_4] : memref<64x32xbf16, #tpu.memory_space<vmem>>, vector<64x32xbf16>
    %cst = arith.constant dense<0.000000e+00> : vector<128x32xf32>
    %5 = tpu.matmul %3, %4, %cst {dimension_numbers = #tpu.dot_dimension_numbers<[1], [0], [0], [1], [0, 0, 1, 1], [], []>} : vector<128x64xbf16>, vector<64x32xbf16>, vector<128x32xf32> -> vector<128x32xf32>
    %c0_5 = arith.constant 0 : index
    %c0_6 = arith.constant 0 : index
    %6 = vector.load %arg4[%c0_5, %c0_6] : memref<1x32xf32, #tpu.memory_space<vmem>>, vector<1x32xf32>
    %7 = vector.shape_cast %6 : vector<1x32xf32> to vector<32xf32>
    %8 = vector.shape_cast %7 : vector<32xf32> to vector<1x32xf32>
    %9 = vector.broadcast %8 : vector<1x32xf32> to vector<128x32xf32>
    %10 = arith.addf %5, %9 : vector<128x32xf32>
    %cst_7 = arith.constant 0.000000e+00 : f32
    %11 = vector.broadcast %cst_7 : f32 to vector<128x32xf32>
    %12 = arith.maximumf %10, %11 : vector<128x32xf32>
    %13 = vector.extract_strided_slice %12 {offsets = [0, 0], sizes = [128, 16], strides = [1, 1]} : vector<128x32xf32> to vector<128x16xf32>
    %14 = vector.shape_cast %13 : vector<128x16xf32> to vector<1x8x16x16xf32>
    %15 = arith.truncf %14 : vector<1x8x16x16xf32> to vector<1x8x16x16xbf16>
    %c0_8 = arith.constant 0 : index
    %c0_9 = arith.constant 0 : index
    %c0_10 = arith.constant 0 : index
    %c0_11 = arith.constant 0 : index
    %16 = vector.load %arg5[%c0_8, %c0_9, %c0_10, %c0_11] : memref<1x8x16x16xbf16, #tpu.memory_space<vmem>>, vector<1x8x16x16xbf16>
    tpu.vector_store %arg5[%c0_8, %c0_9, %c0_10, %c0_11], %15 {strides = array<i32>} : memref<1x8x16x16xbf16, #tpu.memory_space<vmem>>, vector<1x8x16x16xbf16>,
    %17 = vector.extract_strided_slice %12 {offsets = [0, 16], sizes = [128, 8], strides = [1, 1]} : vector<128x32xf32> to vector<128x8xf32>
    %18 = vector.shape_cast %17 : vector<128x8xf32> to vector<1x8x16x8xf32>
    %19 = arith.truncf %18 : vector<1x8x16x8xf32> to vector<1x8x16x8xbf16>
    %c0_12 = arith.constant 0 : index
    %c0_13 = arith.constant 0 : index
    %c0_14 = arith.constant 0 : index
    %c0_15 = arith.constant 0 : index
    %20 = vector.load %arg6[%c0_12, %c0_13, %c0_14, %c0_15] : memref<1x8x16x8xbf16, #tpu.memory_space<vmem>>, vector<1x8x16x8xbf16>
    tpu.vector_store %arg6[%c0_12, %c0_13, %c0_14, %c0_15], %19 {strides = array<i32>} : memref<1x8x16x8xbf16, #tpu.memory_space<vmem>>, vector<1x8x16x8xbf16>,
    %21 = vector.extract_strided_slice %12 {offsets = [0, 24], sizes = [128, 8], strides = [1, 1]} : vector<128x32xf32> to vector<128x8xf32>
    %22 = vector.shape_cast %21 : vector<128x8xf32> to vector<1x8x16x8xf32>
    %23 = arith.truncf %22 : vector<1x8x16x8xf32> to vector<1x8x16x8xbf16>
    %c0_16 = arith.constant 0 : index
    %c0_17 = arith.constant 0 : index
    %c0_18 = arith.constant 0 : index
    %c0_19 = arith.constant 0 : index
    %24 = vector.load %arg7[%c0_16, %c0_17, %c0_18, %c0_19] : memref<1x8x16x8xbf16, #tpu.memory_space<vmem>>, vector<1x8x16x8xbf16>
    tpu.vector_store %arg7[%c0_16, %c0_17, %c0_18, %c0_19], %23 {strides = array<i32>} : memref<1x8x16x8xbf16, #tpu.memory_space<vmem>>, vector<1x8x16x8xbf16>,
    return
  }
  func.func @transform_0(%arg0: i32, %arg1: i32) -> (i32, i32, i32, i32) {
    %c0_i32 = arith.constant 0 : i32
    %c0_i32_0 = arith.constant 0 : i32
    %c0_i32_1 = arith.constant 0 : i32
    return %arg0, %arg1, %c0_i32, %c0_i32_0 : i32, i32, i32, i32
  }
  func.func @transform_1(%arg0: i32, %arg1: i32) -> (i32, i32) {
    %c0_i32 = arith.constant 0 : i32
    %c0_i32_0 = arith.constant 0 : i32
    %c0_i32_1 = arith.constant 0 : i32
    return %c0_i32, %c0_i32_0 : i32, i32
  }
  func.func @transform_2(%arg0: i32, %arg1: i32) -> (i32, i32) {
    %c0_i32 = arith.constant 0 : i32
    %c0_i32_0 = arith.constant 0 : i32
    %c0_i32_1 = arith.constant 0 : i32
    return %c0_i32, %c0_i32_0 : i32, i32
  }
  func.func @transform_3(%arg0: i32, %arg1: i32) -> (i32, i32, i32, i32) {
    %c0_i32 = arith.constant 0 : i32
    %c0_i32_0 = arith.constant 0 : i32
    %c0_i32_1 = arith.constant 0 : i32
    return %arg0, %arg1, %c0_i32, %c0_i32_0 : i32, i32, i32, i32
  }
  func.func @transform_4(%arg0: i32, %arg1: i32) -> (i32, i32, i32, i32) {
    %c0_i32 = arith.constant 0 : i32
    %c0_i32_0 = arith.constant 0 : i32
    %c0_i32_1 = arith.constant 0 : i32
    return %arg0, %arg1, %c0_i32, %c0_i32_0 : i32, i32, i32, i32
  }
  func.func @transform_5(%arg0: i32, %arg1: i32) -> (i32, i32, i32, i32) {
    %c0_i32 = arith.constant 0 : i32
    %c0_i32_0 = arith.constant 0 : i32
    %c0_i32_1 = arith.constant 0 : i32
    return %arg0, %arg1, %c0_i32, %c0_i32_0 : i32, i32, i32, i32
  }
}

module attributes {stable_mosaic.version = 11 : i64} {
  func.func @_conv3x3_kernel(%arg0: i32, %arg1: i32, %arg2: memref<1x18x18x8xbf16, #tpu.memory_space<vmem>>, %arg3: memref<3x3x8x12xbf16, #tpu.memory_space<vmem>>, %arg4: memref<1x12xf32, #tpu.memory_space<vmem>>, %arg5: memref<1x8x16x12xbf16, #tpu.memory_space<vmem>>) attributes {dimension_semantics = [#tpu.dimension_semantics<parallel>, #tpu.dimension_semantics<parallel>], iteration_bounds = array<i64: 2, 2>, scalar_prefetch = 0 : i64, scratch_operands = 0 : i64, tpu.core_type = #tpu.core_type<tc>, window_params = [{transform_indices = @transform_0, window_bounds = array<i64: 1, 18, 18, 8>}, {pipeline_mode = #tpu.pipeline_mode<synchronous>, transform_indices = @transform_1, window_bounds = array<i64: 3, 3, 8, 12>}, {pipeline_mode = #tpu.pipeline_mode<synchronous>, transform_indices = @transform_2, window_bounds = array<i64: 1, 12>}, {transform_indices = @transform_3, window_bounds = array<i64: 1, 8, 16, 12>}]} {
    %c8_i32 = arith.constant 8 : i32
    %0 = arith.muli %arg1, %c8_i32 : i32
    %1 = tpu.assume_multiple %0, 8 : i32
    %c0 = arith.constant 0 : index
    %2 = arith.index_cast %1 : i32 to index
    %c0_0 = arith.constant 0 : index
    %c0_1 = arith.constant 0 : index
    %3 = vector.load %arg2[%c0, %2, %c0_0, %c0_1] : memref<1x18x18x8xbf16, #tpu.memory_space<vmem>>, vector<1x10x18x8xbf16>
    %4 = vector.shape_cast %3 : vector<1x10x18x8xbf16> to vector<10x18x8xbf16>
    %cst = arith.constant 0.000000e+00 : f32
    %5 = vector.broadcast %cst : f32 to vector<128x12xf32>
    %6 = vector.extract_strided_slice %4 {offsets = [0, 0, 0], sizes = [8, 16, 8], strides = [1, 1, 1]} : vector<10x18x8xbf16> to vector<8x16x8xbf16>
    %7 = vector.shape_cast %6 : vector<8x16x8xbf16> to vector<128x8xbf16>
    %c0_2 = arith.constant 0 : index
    %c0_3 = arith.constant 0 : index
    %c0_4 = arith.constant 0 : index
    %c0_5 = arith.constant 0 : index
    %8 = vector.load %arg3[%c0_2, %c0_3, %c0_4, %c0_5] : memref<3x3x8x12xbf16, #tpu.memory_space<vmem>>, vector<1x1x8x12xbf16>
    %9 = vector.shape_cast %8 : vector<1x1x8x12xbf16> to vector<8x12xbf16>
    %cst_6 = arith.constant dense<0.000000e+00> : vector<128x12xf32>
    %10 = tpu.matmul %7, %9, %cst_6 {dimension_numbers = #tpu.dot_dimension_numbers<[1], [0], [0], [1], [0, 0, 1, 1], [], []>} : vector<128x8xbf16>, vector<8x12xbf16>, vector<128x12xf32> -> vector<128x12xf32>
    %11 = arith.addf %5, %10 : vector<128x12xf32>
    %12 = vector.extract_strided_slice %4 {offsets = [0, 1, 0], sizes = [8, 16, 8], strides = [1, 1, 1]} : vector<10x18x8xbf16> to vector<8x16x8xbf16>
    %13 = vector.shape_cast %12 : vector<8x16x8xbf16> to vector<128x8xbf16>
    %c0_7 = arith.constant 0 : index
    %c1 = arith.constant 1 : index
    %c0_8 = arith.constant 0 : index
    %c0_9 = arith.constant 0 : index
    %14 = vector.load %arg3[%c0_7, %c1, %c0_8, %c0_9] : memref<3x3x8x12xbf16, #tpu.memory_space<vmem>>, vector<1x1x8x12xbf16>
    %15 = vector.shape_cast %14 : vector<1x1x8x12xbf16> to vector<8x12xbf16>
    %cst_10 = arith.constant dense<0.000000e+00> : vector<128x12xf32>
    %16 = tpu.matmul %13, %15, %cst_10 {dimension_numbers = #tpu.dot_dimension_numbers<[1], [0], [0], [1], [0, 0, 1, 1], [], []>} : vector<128x8xbf16>, vector<8x12xbf16>, vector<128x12xf32> -> vector<128x12xf32>
    %17 = arith.addf %11, %16 : vector<128x12xf32>
    %18 = vector.extract_strided_slice %4 {offsets = [0, 2, 0], sizes = [8, 16, 8], strides = [1, 1, 1]} : vector<10x18x8xbf16> to vector<8x16x8xbf16>
    %19 = vector.shape_cast %18 : vector<8x16x8xbf16> to vector<128x8xbf16>
    %c0_11 = arith.constant 0 : index
    %c2 = arith.constant 2 : index
    %c0_12 = arith.constant 0 : index
    %c0_13 = arith.constant 0 : index
    %20 = vector.load %arg3[%c0_11, %c2, %c0_12, %c0_13] : memref<3x3x8x12xbf16, #tpu.memory_space<vmem>>, vector<1x1x8x12xbf16>
    %21 = vector.shape_cast %20 : vector<1x1x8x12xbf16> to vector<8x12xbf16>
    %cst_14 = arith.constant dense<0.000000e+00> : vector<128x12xf32>
    %22 = tpu.matmul %19, %21, %cst_14 {dimension_numbers = #tpu.dot_dimension_numbers<[1], [0], [0], [1], [0, 0, 1, 1], [], []>} : vector<128x8xbf16>, vector<8x12xbf16>, vector<128x12xf32> -> vector<128x12xf32>
    %23 = arith.addf %17, %22 : vector<128x12xf32>
    %24 = vector.extract_strided_slice %4 {offsets = [1, 0, 0], sizes = [8, 16, 8], strides = [1, 1, 1]} : vector<10x18x8xbf16> to vector<8x16x8xbf16>
    %25 = vector.shape_cast %24 : vector<8x16x8xbf16> to vector<128x8xbf16>
    %c1_15 = arith.constant 1 : index
    %c0_16 = arith.constant 0 : index
    %c0_17 = arith.constant 0 : index
    %c0_18 = arith.constant 0 : index
    %26 = vector.load %arg3[%c1_15, %c0_16, %c0_17, %c0_18] : memref<3x3x8x12xbf16, #tpu.memory_space<vmem>>, vector<1x1x8x12xbf16>
    %27 = vector.shape_cast %26 : vector<1x1x8x12xbf16> to vector<8x12xbf16>
    %cst_19 = arith.constant dense<0.000000e+00> : vector<128x12xf32>
    %28 = tpu.matmul %25, %27, %cst_19 {dimension_numbers = #tpu.dot_dimension_numbers<[1], [0], [0], [1], [0, 0, 1, 1], [], []>} : vector<128x8xbf16>, vector<8x12xbf16>, vector<128x12xf32> -> vector<128x12xf32>
    %29 = arith.addf %23, %28 : vector<128x12xf32>
    %30 = vector.extract_strided_slice %4 {offsets = [1, 1, 0], sizes = [8, 16, 8], strides = [1, 1, 1]} : vector<10x18x8xbf16> to vector<8x16x8xbf16>
    %31 = vector.shape_cast %30 : vector<8x16x8xbf16> to vector<128x8xbf16>
    %c1_20 = arith.constant 1 : index
    %c1_21 = arith.constant 1 : index
    %c0_22 = arith.constant 0 : index
    %c0_23 = arith.constant 0 : index
    %32 = vector.load %arg3[%c1_20, %c1_21, %c0_22, %c0_23] : memref<3x3x8x12xbf16, #tpu.memory_space<vmem>>, vector<1x1x8x12xbf16>
    %33 = vector.shape_cast %32 : vector<1x1x8x12xbf16> to vector<8x12xbf16>
    %cst_24 = arith.constant dense<0.000000e+00> : vector<128x12xf32>
    %34 = tpu.matmul %31, %33, %cst_24 {dimension_numbers = #tpu.dot_dimension_numbers<[1], [0], [0], [1], [0, 0, 1, 1], [], []>} : vector<128x8xbf16>, vector<8x12xbf16>, vector<128x12xf32> -> vector<128x12xf32>
    %35 = arith.addf %29, %34 : vector<128x12xf32>
    %36 = vector.extract_strided_slice %4 {offsets = [1, 2, 0], sizes = [8, 16, 8], strides = [1, 1, 1]} : vector<10x18x8xbf16> to vector<8x16x8xbf16>
    %37 = vector.shape_cast %36 : vector<8x16x8xbf16> to vector<128x8xbf16>
    %c1_25 = arith.constant 1 : index
    %c2_26 = arith.constant 2 : index
    %c0_27 = arith.constant 0 : index
    %c0_28 = arith.constant 0 : index
    %38 = vector.load %arg3[%c1_25, %c2_26, %c0_27, %c0_28] : memref<3x3x8x12xbf16, #tpu.memory_space<vmem>>, vector<1x1x8x12xbf16>
    %39 = vector.shape_cast %38 : vector<1x1x8x12xbf16> to vector<8x12xbf16>
    %cst_29 = arith.constant dense<0.000000e+00> : vector<128x12xf32>
    %40 = tpu.matmul %37, %39, %cst_29 {dimension_numbers = #tpu.dot_dimension_numbers<[1], [0], [0], [1], [0, 0, 1, 1], [], []>} : vector<128x8xbf16>, vector<8x12xbf16>, vector<128x12xf32> -> vector<128x12xf32>
    %41 = arith.addf %35, %40 : vector<128x12xf32>
    %42 = vector.extract_strided_slice %4 {offsets = [2, 0, 0], sizes = [8, 16, 8], strides = [1, 1, 1]} : vector<10x18x8xbf16> to vector<8x16x8xbf16>
    %43 = vector.shape_cast %42 : vector<8x16x8xbf16> to vector<128x8xbf16>
    %c2_30 = arith.constant 2 : index
    %c0_31 = arith.constant 0 : index
    %c0_32 = arith.constant 0 : index
    %c0_33 = arith.constant 0 : index
    %44 = vector.load %arg3[%c2_30, %c0_31, %c0_32, %c0_33] : memref<3x3x8x12xbf16, #tpu.memory_space<vmem>>, vector<1x1x8x12xbf16>
    %45 = vector.shape_cast %44 : vector<1x1x8x12xbf16> to vector<8x12xbf16>
    %cst_34 = arith.constant dense<0.000000e+00> : vector<128x12xf32>
    %46 = tpu.matmul %43, %45, %cst_34 {dimension_numbers = #tpu.dot_dimension_numbers<[1], [0], [0], [1], [0, 0, 1, 1], [], []>} : vector<128x8xbf16>, vector<8x12xbf16>, vector<128x12xf32> -> vector<128x12xf32>
    %47 = arith.addf %41, %46 : vector<128x12xf32>
    %48 = vector.extract_strided_slice %4 {offsets = [2, 1, 0], sizes = [8, 16, 8], strides = [1, 1, 1]} : vector<10x18x8xbf16> to vector<8x16x8xbf16>
    %49 = vector.shape_cast %48 : vector<8x16x8xbf16> to vector<128x8xbf16>
    %c2_35 = arith.constant 2 : index
    %c1_36 = arith.constant 1 : index
    %c0_37 = arith.constant 0 : index
    %c0_38 = arith.constant 0 : index
    %50 = vector.load %arg3[%c2_35, %c1_36, %c0_37, %c0_38] : memref<3x3x8x12xbf16, #tpu.memory_space<vmem>>, vector<1x1x8x12xbf16>
    %51 = vector.shape_cast %50 : vector<1x1x8x12xbf16> to vector<8x12xbf16>
    %cst_39 = arith.constant dense<0.000000e+00> : vector<128x12xf32>
    %52 = tpu.matmul %49, %51, %cst_39 {dimension_numbers = #tpu.dot_dimension_numbers<[1], [0], [0], [1], [0, 0, 1, 1], [], []>} : vector<128x8xbf16>, vector<8x12xbf16>, vector<128x12xf32> -> vector<128x12xf32>
    %53 = arith.addf %47, %52 : vector<128x12xf32>
    %54 = vector.extract_strided_slice %4 {offsets = [2, 2, 0], sizes = [8, 16, 8], strides = [1, 1, 1]} : vector<10x18x8xbf16> to vector<8x16x8xbf16>
    %55 = vector.shape_cast %54 : vector<8x16x8xbf16> to vector<128x8xbf16>
    %c2_40 = arith.constant 2 : index
    %c2_41 = arith.constant 2 : index
    %c0_42 = arith.constant 0 : index
    %c0_43 = arith.constant 0 : index
    %56 = vector.load %arg3[%c2_40, %c2_41, %c0_42, %c0_43] : memref<3x3x8x12xbf16, #tpu.memory_space<vmem>>, vector<1x1x8x12xbf16>
    %57 = vector.shape_cast %56 : vector<1x1x8x12xbf16> to vector<8x12xbf16>
    %cst_44 = arith.constant dense<0.000000e+00> : vector<128x12xf32>
    %58 = tpu.matmul %55, %57, %cst_44 {dimension_numbers = #tpu.dot_dimension_numbers<[1], [0], [0], [1], [0, 0, 1, 1], [], []>} : vector<128x8xbf16>, vector<8x12xbf16>, vector<128x12xf32> -> vector<128x12xf32>
    %59 = arith.addf %53, %58 : vector<128x12xf32>
    %c0_45 = arith.constant 0 : index
    %c0_46 = arith.constant 0 : index
    %60 = vector.load %arg4[%c0_45, %c0_46] : memref<1x12xf32, #tpu.memory_space<vmem>>, vector<1x12xf32>
    %61 = vector.shape_cast %60 : vector<1x12xf32> to vector<12xf32>
    %62 = vector.shape_cast %61 : vector<12xf32> to vector<1x12xf32>
    %63 = vector.broadcast %62 : vector<1x12xf32> to vector<128x12xf32>
    %64 = arith.addf %59, %63 : vector<128x12xf32>
    %cst_47 = arith.constant 0.000000e+00 : f32
    %65 = vector.broadcast %cst_47 : f32 to vector<128x12xf32>
    %66 = arith.maximumf %64, %65 : vector<128x12xf32>
    %67 = vector.shape_cast %66 : vector<128x12xf32> to vector<1x8x16x12xf32>
    %68 = arith.truncf %67 : vector<1x8x16x12xf32> to vector<1x8x16x12xbf16>
    %c0_48 = arith.constant 0 : index
    %c0_49 = arith.constant 0 : index
    %c0_50 = arith.constant 0 : index
    %c0_51 = arith.constant 0 : index
    %69 = vector.load %arg5[%c0_48, %c0_49, %c0_50, %c0_51] : memref<1x8x16x12xbf16, #tpu.memory_space<vmem>>, vector<1x8x16x12xbf16>
    tpu.vector_store %arg5[%c0_48, %c0_49, %c0_50, %c0_51], %68 {strides = array<i32>} : memref<1x8x16x12xbf16, #tpu.memory_space<vmem>>, vector<1x8x16x12xbf16>,
    return
  }
  func.func @transform_0(%arg0: i32, %arg1: i32) -> (i32, i32, i32, i32) {
    %c0_i32 = arith.constant 0 : i32
    %c0_i32_0 = arith.constant 0 : i32
    %c0_i32_1 = arith.constant 0 : i32
    %c0_i32_2 = arith.constant 0 : i32
    return %arg0, %c0_i32, %c0_i32_0, %c0_i32_1 : i32, i32, i32, i32
  }
  func.func @transform_1(%arg0: i32, %arg1: i32) -> (i32, i32, i32, i32) {
    %c0_i32 = arith.constant 0 : i32
    %c0_i32_0 = arith.constant 0 : i32
    %c0_i32_1 = arith.constant 0 : i32
    %c0_i32_2 = arith.constant 0 : i32
    %c0_i32_3 = arith.constant 0 : i32
    return %c0_i32, %c0_i32_0, %c0_i32_1, %c0_i32_2 : i32, i32, i32, i32
  }
  func.func @transform_2(%arg0: i32, %arg1: i32) -> (i32, i32) {
    %c0_i32 = arith.constant 0 : i32
    %c0_i32_0 = arith.constant 0 : i32
    %c0_i32_1 = arith.constant 0 : i32
    return %c0_i32, %c0_i32_0 : i32, i32
  }
  func.func @transform_3(%arg0: i32, %arg1: i32) -> (i32, i32, i32, i32) {
    %c0_i32 = arith.constant 0 : i32
    %c0_i32_0 = arith.constant 0 : i32
    %c0_i32_1 = arith.constant 0 : i32
    return %arg0, %arg1, %c0_i32, %c0_i32_0 : i32, i32, i32, i32
  }
}

module attributes {stable_mosaic.version = 11 : i64} {
  func.func @_conv3x3_kernel(%arg0: i32, %arg1: i32, %arg2: memref<1x18x18x12xbf16, #tpu.memory_space<vmem>>, %arg3: memref<3x3x12x16xbf16, #tpu.memory_space<vmem>>, %arg4: memref<1x16xf32, #tpu.memory_space<vmem>>, %arg5: memref<1x8x16x16xbf16, #tpu.memory_space<vmem>>) attributes {dimension_semantics = [#tpu.dimension_semantics<parallel>, #tpu.dimension_semantics<parallel>], iteration_bounds = array<i64: 2, 2>, scalar_prefetch = 0 : i64, scratch_operands = 0 : i64, tpu.core_type = #tpu.core_type<tc>, window_params = [{transform_indices = @transform_0, window_bounds = array<i64: 1, 18, 18, 12>}, {pipeline_mode = #tpu.pipeline_mode<synchronous>, transform_indices = @transform_1, window_bounds = array<i64: 3, 3, 12, 16>}, {pipeline_mode = #tpu.pipeline_mode<synchronous>, transform_indices = @transform_2, window_bounds = array<i64: 1, 16>}, {transform_indices = @transform_3, window_bounds = array<i64: 1, 8, 16, 16>}]} {
    %c8_i32 = arith.constant 8 : i32
    %0 = arith.muli %arg1, %c8_i32 : i32
    %1 = tpu.assume_multiple %0, 8 : i32
    %c0 = arith.constant 0 : index
    %2 = arith.index_cast %1 : i32 to index
    %c0_0 = arith.constant 0 : index
    %c0_1 = arith.constant 0 : index
    %3 = vector.load %arg2[%c0, %2, %c0_0, %c0_1] : memref<1x18x18x12xbf16, #tpu.memory_space<vmem>>, vector<1x10x18x12xbf16>
    %4 = vector.shape_cast %3 : vector<1x10x18x12xbf16> to vector<10x18x12xbf16>
    %cst = arith.constant 0.000000e+00 : f32
    %5 = vector.broadcast %cst : f32 to vector<128x16xf32>
    %6 = vector.extract_strided_slice %4 {offsets = [0, 0, 0], sizes = [8, 16, 12], strides = [1, 1, 1]} : vector<10x18x12xbf16> to vector<8x16x12xbf16>
    %7 = vector.shape_cast %6 : vector<8x16x12xbf16> to vector<128x12xbf16>
    %c0_2 = arith.constant 0 : index
    %c0_3 = arith.constant 0 : index
    %c0_4 = arith.constant 0 : index
    %c0_5 = arith.constant 0 : index
    %8 = vector.load %arg3[%c0_2, %c0_3, %c0_4, %c0_5] : memref<3x3x12x16xbf16, #tpu.memory_space<vmem>>, vector<1x1x12x16xbf16>
    %9 = vector.shape_cast %8 : vector<1x1x12x16xbf16> to vector<12x16xbf16>
    %cst_6 = arith.constant dense<0.000000e+00> : vector<128x16xf32>
    %10 = tpu.matmul %7, %9, %cst_6 {dimension_numbers = #tpu.dot_dimension_numbers<[1], [0], [0], [1], [0, 0, 1, 1], [], []>} : vector<128x12xbf16>, vector<12x16xbf16>, vector<128x16xf32> -> vector<128x16xf32>
    %11 = arith.addf %5, %10 : vector<128x16xf32>
    %12 = vector.extract_strided_slice %4 {offsets = [0, 1, 0], sizes = [8, 16, 12], strides = [1, 1, 1]} : vector<10x18x12xbf16> to vector<8x16x12xbf16>
    %13 = vector.shape_cast %12 : vector<8x16x12xbf16> to vector<128x12xbf16>
    %c0_7 = arith.constant 0 : index
    %c1 = arith.constant 1 : index
    %c0_8 = arith.constant 0 : index
    %c0_9 = arith.constant 0 : index
    %14 = vector.load %arg3[%c0_7, %c1, %c0_8, %c0_9] : memref<3x3x12x16xbf16, #tpu.memory_space<vmem>>, vector<1x1x12x16xbf16>
    %15 = vector.shape_cast %14 : vector<1x1x12x16xbf16> to vector<12x16xbf16>
    %cst_10 = arith.constant dense<0.000000e+00> : vector<128x16xf32>
    %16 = tpu.matmul %13, %15, %cst_10 {dimension_numbers = #tpu.dot_dimension_numbers<[1], [0], [0], [1], [0, 0, 1, 1], [], []>} : vector<128x12xbf16>, vector<12x16xbf16>, vector<128x16xf32> -> vector<128x16xf32>
    %17 = arith.addf %11, %16 : vector<128x16xf32>
    %18 = vector.extract_strided_slice %4 {offsets = [0, 2, 0], sizes = [8, 16, 12], strides = [1, 1, 1]} : vector<10x18x12xbf16> to vector<8x16x12xbf16>
    %19 = vector.shape_cast %18 : vector<8x16x12xbf16> to vector<128x12xbf16>
    %c0_11 = arith.constant 0 : index
    %c2 = arith.constant 2 : index
    %c0_12 = arith.constant 0 : index
    %c0_13 = arith.constant 0 : index
    %20 = vector.load %arg3[%c0_11, %c2, %c0_12, %c0_13] : memref<3x3x12x16xbf16, #tpu.memory_space<vmem>>, vector<1x1x12x16xbf16>
    %21 = vector.shape_cast %20 : vector<1x1x12x16xbf16> to vector<12x16xbf16>
    %cst_14 = arith.constant dense<0.000000e+00> : vector<128x16xf32>
    %22 = tpu.matmul %19, %21, %cst_14 {dimension_numbers = #tpu.dot_dimension_numbers<[1], [0], [0], [1], [0, 0, 1, 1], [], []>} : vector<128x12xbf16>, vector<12x16xbf16>, vector<128x16xf32> -> vector<128x16xf32>
    %23 = arith.addf %17, %22 : vector<128x16xf32>
    %24 = vector.extract_strided_slice %4 {offsets = [1, 0, 0], sizes = [8, 16, 12], strides = [1, 1, 1]} : vector<10x18x12xbf16> to vector<8x16x12xbf16>
    %25 = vector.shape_cast %24 : vector<8x16x12xbf16> to vector<128x12xbf16>
    %c1_15 = arith.constant 1 : index
    %c0_16 = arith.constant 0 : index
    %c0_17 = arith.constant 0 : index
    %c0_18 = arith.constant 0 : index
    %26 = vector.load %arg3[%c1_15, %c0_16, %c0_17, %c0_18] : memref<3x3x12x16xbf16, #tpu.memory_space<vmem>>, vector<1x1x12x16xbf16>
    %27 = vector.shape_cast %26 : vector<1x1x12x16xbf16> to vector<12x16xbf16>
    %cst_19 = arith.constant dense<0.000000e+00> : vector<128x16xf32>
    %28 = tpu.matmul %25, %27, %cst_19 {dimension_numbers = #tpu.dot_dimension_numbers<[1], [0], [0], [1], [0, 0, 1, 1], [], []>} : vector<128x12xbf16>, vector<12x16xbf16>, vector<128x16xf32> -> vector<128x16xf32>
    %29 = arith.addf %23, %28 : vector<128x16xf32>
    %30 = vector.extract_strided_slice %4 {offsets = [1, 1, 0], sizes = [8, 16, 12], strides = [1, 1, 1]} : vector<10x18x12xbf16> to vector<8x16x12xbf16>
    %31 = vector.shape_cast %30 : vector<8x16x12xbf16> to vector<128x12xbf16>
    %c1_20 = arith.constant 1 : index
    %c1_21 = arith.constant 1 : index
    %c0_22 = arith.constant 0 : index
    %c0_23 = arith.constant 0 : index
    %32 = vector.load %arg3[%c1_20, %c1_21, %c0_22, %c0_23] : memref<3x3x12x16xbf16, #tpu.memory_space<vmem>>, vector<1x1x12x16xbf16>
    %33 = vector.shape_cast %32 : vector<1x1x12x16xbf16> to vector<12x16xbf16>
    %cst_24 = arith.constant dense<0.000000e+00> : vector<128x16xf32>
    %34 = tpu.matmul %31, %33, %cst_24 {dimension_numbers = #tpu.dot_dimension_numbers<[1], [0], [0], [1], [0, 0, 1, 1], [], []>} : vector<128x12xbf16>, vector<12x16xbf16>, vector<128x16xf32> -> vector<128x16xf32>
    %35 = arith.addf %29, %34 : vector<128x16xf32>
    %36 = vector.extract_strided_slice %4 {offsets = [1, 2, 0], sizes = [8, 16, 12], strides = [1, 1, 1]} : vector<10x18x12xbf16> to vector<8x16x12xbf16>
    %37 = vector.shape_cast %36 : vector<8x16x12xbf16> to vector<128x12xbf16>
    %c1_25 = arith.constant 1 : index
    %c2_26 = arith.constant 2 : index
    %c0_27 = arith.constant 0 : index
    %c0_28 = arith.constant 0 : index
    %38 = vector.load %arg3[%c1_25, %c2_26, %c0_27, %c0_28] : memref<3x3x12x16xbf16, #tpu.memory_space<vmem>>, vector<1x1x12x16xbf16>
    %39 = vector.shape_cast %38 : vector<1x1x12x16xbf16> to vector<12x16xbf16>
    %cst_29 = arith.constant dense<0.000000e+00> : vector<128x16xf32>
    %40 = tpu.matmul %37, %39, %cst_29 {dimension_numbers = #tpu.dot_dimension_numbers<[1], [0], [0], [1], [0, 0, 1, 1], [], []>} : vector<128x12xbf16>, vector<12x16xbf16>, vector<128x16xf32> -> vector<128x16xf32>
    %41 = arith.addf %35, %40 : vector<128x16xf32>
    %42 = vector.extract_strided_slice %4 {offsets = [2, 0, 0], sizes = [8, 16, 12], strides = [1, 1, 1]} : vector<10x18x12xbf16> to vector<8x16x12xbf16>
    %43 = vector.shape_cast %42 : vector<8x16x12xbf16> to vector<128x12xbf16>
    %c2_30 = arith.constant 2 : index
    %c0_31 = arith.constant 0 : index
    %c0_32 = arith.constant 0 : index
    %c0_33 = arith.constant 0 : index
    %44 = vector.load %arg3[%c2_30, %c0_31, %c0_32, %c0_33] : memref<3x3x12x16xbf16, #tpu.memory_space<vmem>>, vector<1x1x12x16xbf16>
    %45 = vector.shape_cast %44 : vector<1x1x12x16xbf16> to vector<12x16xbf16>
    %cst_34 = arith.constant dense<0.000000e+00> : vector<128x16xf32>
    %46 = tpu.matmul %43, %45, %cst_34 {dimension_numbers = #tpu.dot_dimension_numbers<[1], [0], [0], [1], [0, 0, 1, 1], [], []>} : vector<128x12xbf16>, vector<12x16xbf16>, vector<128x16xf32> -> vector<128x16xf32>
    %47 = arith.addf %41, %46 : vector<128x16xf32>
    %48 = vector.extract_strided_slice %4 {offsets = [2, 1, 0], sizes = [8, 16, 12], strides = [1, 1, 1]} : vector<10x18x12xbf16> to vector<8x16x12xbf16>
    %49 = vector.shape_cast %48 : vector<8x16x12xbf16> to vector<128x12xbf16>
    %c2_35 = arith.constant 2 : index
    %c1_36 = arith.constant 1 : index
    %c0_37 = arith.constant 0 : index
    %c0_38 = arith.constant 0 : index
    %50 = vector.load %arg3[%c2_35, %c1_36, %c0_37, %c0_38] : memref<3x3x12x16xbf16, #tpu.memory_space<vmem>>, vector<1x1x12x16xbf16>
    %51 = vector.shape_cast %50 : vector<1x1x12x16xbf16> to vector<12x16xbf16>
    %cst_39 = arith.constant dense<0.000000e+00> : vector<128x16xf32>
    %52 = tpu.matmul %49, %51, %cst_39 {dimension_numbers = #tpu.dot_dimension_numbers<[1], [0], [0], [1], [0, 0, 1, 1], [], []>} : vector<128x12xbf16>, vector<12x16xbf16>, vector<128x16xf32> -> vector<128x16xf32>
    %53 = arith.addf %47, %52 : vector<128x16xf32>
    %54 = vector.extract_strided_slice %4 {offsets = [2, 2, 0], sizes = [8, 16, 12], strides = [1, 1, 1]} : vector<10x18x12xbf16> to vector<8x16x12xbf16>
    %55 = vector.shape_cast %54 : vector<8x16x12xbf16> to vector<128x12xbf16>
    %c2_40 = arith.constant 2 : index
    %c2_41 = arith.constant 2 : index
    %c0_42 = arith.constant 0 : index
    %c0_43 = arith.constant 0 : index
    %56 = vector.load %arg3[%c2_40, %c2_41, %c0_42, %c0_43] : memref<3x3x12x16xbf16, #tpu.memory_space<vmem>>, vector<1x1x12x16xbf16>
    %57 = vector.shape_cast %56 : vector<1x1x12x16xbf16> to vector<12x16xbf16>
    %cst_44 = arith.constant dense<0.000000e+00> : vector<128x16xf32>
    %58 = tpu.matmul %55, %57, %cst_44 {dimension_numbers = #tpu.dot_dimension_numbers<[1], [0], [0], [1], [0, 0, 1, 1], [], []>} : vector<128x12xbf16>, vector<12x16xbf16>, vector<128x16xf32> -> vector<128x16xf32>
    %59 = arith.addf %53, %58 : vector<128x16xf32>
    %c0_45 = arith.constant 0 : index
    %c0_46 = arith.constant 0 : index
    %60 = vector.load %arg4[%c0_45, %c0_46] : memref<1x16xf32, #tpu.memory_space<vmem>>, vector<1x16xf32>
    %61 = vector.shape_cast %60 : vector<1x16xf32> to vector<16xf32>
    %62 = vector.shape_cast %61 : vector<16xf32> to vector<1x16xf32>
    %63 = vector.broadcast %62 : vector<1x16xf32> to vector<128x16xf32>
    %64 = arith.addf %59, %63 : vector<128x16xf32>
    %cst_47 = arith.constant 0.000000e+00 : f32
    %65 = vector.broadcast %cst_47 : f32 to vector<128x16xf32>
    %66 = arith.maximumf %64, %65 : vector<128x16xf32>
    %67 = vector.shape_cast %66 : vector<128x16xf32> to vector<1x8x16x16xf32>
    %68 = arith.truncf %67 : vector<1x8x16x16xf32> to vector<1x8x16x16xbf16>
    %c0_48 = arith.constant 0 : index
    %c0_49 = arith.constant 0 : index
    %c0_50 = arith.constant 0 : index
    %c0_51 = arith.constant 0 : index
    %69 = vector.load %arg5[%c0_48, %c0_49, %c0_50, %c0_51] : memref<1x8x16x16xbf16, #tpu.memory_space<vmem>>, vector<1x8x16x16xbf16>
    tpu.vector_store %arg5[%c0_48, %c0_49, %c0_50, %c0_51], %68 {strides = array<i32>} : memref<1x8x16x16xbf16, #tpu.memory_space<vmem>>, vector<1x8x16x16xbf16>,
    return
  }
  func.func @transform_0(%arg0: i32, %arg1: i32) -> (i32, i32, i32, i32) {
    %c0_i32 = arith.constant 0 : i32
    %c0_i32_0 = arith.constant 0 : i32
    %c0_i32_1 = arith.constant 0 : i32
    %c0_i32_2 = arith.constant 0 : i32
    return %arg0, %c0_i32, %c0_i32_0, %c0_i32_1 : i32, i32, i32, i32
  }
  func.func @transform_1(%arg0: i32, %arg1: i32) -> (i32, i32, i32, i32) {
    %c0_i32 = arith.constant 0 : i32
    %c0_i32_0 = arith.constant 0 : i32
    %c0_i32_1 = arith.constant 0 : i32
    %c0_i32_2 = arith.constant 0 : i32
    %c0_i32_3 = arith.constant 0 : i32
    return %c0_i32, %c0_i32_0, %c0_i32_1, %c0_i32_2 : i32, i32, i32, i32
  }
  func.func @transform_2(%arg0: i32, %arg1: i32) -> (i32, i32) {
    %c0_i32 = arith.constant 0 : i32
    %c0_i32_0 = arith.constant 0 : i32
    %c0_i32_1 = arith.constant 0 : i32
    return %c0_i32, %c0_i32_0 : i32, i32
  }
  func.func @transform_3(%arg0: i32, %arg1: i32) -> (i32, i32, i32, i32) {
    %c0_i32 = arith.constant 0 : i32
    %c0_i32_0 = arith.constant 0 : i32
    %c0_i32_1 = arith.constant 0 : i32
    return %arg0, %arg1, %c0_i32, %c0_i32_0 : i32, i32, i32, i32
  }
}

module attributes {stable_mosaic.version = 11 : i64} {
  func.func @_conv3x3_kernel(%arg0: i32, %arg1: i32, %arg2: memref<1x22x22x16xbf16, #tpu.memory_space<vmem>>, %arg3: memref<3x3x16x16xbf16, #tpu.memory_space<vmem>>, %arg4: memref<1x16xf32, #tpu.memory_space<vmem>>, %arg5: memref<1x8x16x16xbf16, #tpu.memory_space<vmem>>) attributes {dimension_semantics = [#tpu.dimension_semantics<parallel>, #tpu.dimension_semantics<parallel>], iteration_bounds = array<i64: 2, 2>, scalar_prefetch = 0 : i64, scratch_operands = 0 : i64, tpu.core_type = #tpu.core_type<tc>, window_params = [{transform_indices = @transform_0, window_bounds = array<i64: 1, 22, 22, 16>}, {pipeline_mode = #tpu.pipeline_mode<synchronous>, transform_indices = @transform_1, window_bounds = array<i64: 3, 3, 16, 16>}, {pipeline_mode = #tpu.pipeline_mode<synchronous>, transform_indices = @transform_2, window_bounds = array<i64: 1, 16>}, {transform_indices = @transform_3, window_bounds = array<i64: 1, 8, 16, 16>}]} {
    %c8_i32 = arith.constant 8 : i32
    %0 = arith.muli %arg1, %c8_i32 : i32
    %1 = tpu.assume_multiple %0, 8 : i32
    %c0 = arith.constant 0 : index
    %2 = arith.index_cast %1 : i32 to index
    %c0_0 = arith.constant 0 : index
    %c0_1 = arith.constant 0 : index
    %3 = vector.load %arg2[%c0, %2, %c0_0, %c0_1] : memref<1x22x22x16xbf16, #tpu.memory_space<vmem>>, vector<1x14x22x16xbf16>
    %4 = vector.shape_cast %3 : vector<1x14x22x16xbf16> to vector<14x22x16xbf16>
    %cst = arith.constant 0.000000e+00 : f32
    %5 = vector.broadcast %cst : f32 to vector<128x16xf32>
    %6 = vector.extract_strided_slice %4 {offsets = [0, 0, 0], sizes = [8, 16, 16], strides = [1, 1, 1]} : vector<14x22x16xbf16> to vector<8x16x16xbf16>
    %7 = vector.shape_cast %6 : vector<8x16x16xbf16> to vector<128x16xbf16>
    %c0_2 = arith.constant 0 : index
    %c0_3 = arith.constant 0 : index
    %c0_4 = arith.constant 0 : index
    %c0_5 = arith.constant 0 : index
    %8 = vector.load %arg3[%c0_2, %c0_3, %c0_4, %c0_5] : memref<3x3x16x16xbf16, #tpu.memory_space<vmem>>, vector<1x1x16x16xbf16>
    %9 = vector.shape_cast %8 : vector<1x1x16x16xbf16> to vector<16x16xbf16>
    %cst_6 = arith.constant dense<0.000000e+00> : vector<128x16xf32>
    %10 = tpu.matmul %7, %9, %cst_6 {dimension_numbers = #tpu.dot_dimension_numbers<[1], [0], [0], [1], [0, 0, 1, 1], [], []>} : vector<128x16xbf16>, vector<16x16xbf16>, vector<128x16xf32> -> vector<128x16xf32>
    %11 = arith.addf %5, %10 : vector<128x16xf32>
    %12 = vector.extract_strided_slice %4 {offsets = [0, 3, 0], sizes = [8, 16, 16], strides = [1, 1, 1]} : vector<14x22x16xbf16> to vector<8x16x16xbf16>
    %13 = vector.shape_cast %12 : vector<8x16x16xbf16> to vector<128x16xbf16>
    %c0_7 = arith.constant 0 : index
    %c1 = arith.constant 1 : index
    %c0_8 = arith.constant 0 : index
    %c0_9 = arith.constant 0 : index
    %14 = vector.load %arg3[%c0_7, %c1, %c0_8, %c0_9] : memref<3x3x16x16xbf16, #tpu.memory_space<vmem>>, vector<1x1x16x16xbf16>
    %15 = vector.shape_cast %14 : vector<1x1x16x16xbf16> to vector<16x16xbf16>
    %cst_10 = arith.constant dense<0.000000e+00> : vector<128x16xf32>
    %16 = tpu.matmul %13, %15, %cst_10 {dimension_numbers = #tpu.dot_dimension_numbers<[1], [0], [0], [1], [0, 0, 1, 1], [], []>} : vector<128x16xbf16>, vector<16x16xbf16>, vector<128x16xf32> -> vector<128x16xf32>
    %17 = arith.addf %11, %16 : vector<128x16xf32>
    %18 = vector.extract_strided_slice %4 {offsets = [0, 6, 0], sizes = [8, 16, 16], strides = [1, 1, 1]} : vector<14x22x16xbf16> to vector<8x16x16xbf16>
    %19 = vector.shape_cast %18 : vector<8x16x16xbf16> to vector<128x16xbf16>
    %c0_11 = arith.constant 0 : index
    %c2 = arith.constant 2 : index
    %c0_12 = arith.constant 0 : index
    %c0_13 = arith.constant 0 : index
    %20 = vector.load %arg3[%c0_11, %c2, %c0_12, %c0_13] : memref<3x3x16x16xbf16, #tpu.memory_space<vmem>>, vector<1x1x16x16xbf16>
    %21 = vector.shape_cast %20 : vector<1x1x16x16xbf16> to vector<16x16xbf16>
    %cst_14 = arith.constant dense<0.000000e+00> : vector<128x16xf32>
    %22 = tpu.matmul %19, %21, %cst_14 {dimension_numbers = #tpu.dot_dimension_numbers<[1], [0], [0], [1], [0, 0, 1, 1], [], []>} : vector<128x16xbf16>, vector<16x16xbf16>, vector<128x16xf32> -> vector<128x16xf32>
    %23 = arith.addf %17, %22 : vector<128x16xf32>
    %24 = vector.extract_strided_slice %4 {offsets = [3, 0, 0], sizes = [8, 16, 16], strides = [1, 1, 1]} : vector<14x22x16xbf16> to vector<8x16x16xbf16>
    %25 = vector.shape_cast %24 : vector<8x16x16xbf16> to vector<128x16xbf16>
    %c1_15 = arith.constant 1 : index
    %c0_16 = arith.constant 0 : index
    %c0_17 = arith.constant 0 : index
    %c0_18 = arith.constant 0 : index
    %26 = vector.load %arg3[%c1_15, %c0_16, %c0_17, %c0_18] : memref<3x3x16x16xbf16, #tpu.memory_space<vmem>>, vector<1x1x16x16xbf16>
    %27 = vector.shape_cast %26 : vector<1x1x16x16xbf16> to vector<16x16xbf16>
    %cst_19 = arith.constant dense<0.000000e+00> : vector<128x16xf32>
    %28 = tpu.matmul %25, %27, %cst_19 {dimension_numbers = #tpu.dot_dimension_numbers<[1], [0], [0], [1], [0, 0, 1, 1], [], []>} : vector<128x16xbf16>, vector<16x16xbf16>, vector<128x16xf32> -> vector<128x16xf32>
    %29 = arith.addf %23, %28 : vector<128x16xf32>
    %30 = vector.extract_strided_slice %4 {offsets = [3, 3, 0], sizes = [8, 16, 16], strides = [1, 1, 1]} : vector<14x22x16xbf16> to vector<8x16x16xbf16>
    %31 = vector.shape_cast %30 : vector<8x16x16xbf16> to vector<128x16xbf16>
    %c1_20 = arith.constant 1 : index
    %c1_21 = arith.constant 1 : index
    %c0_22 = arith.constant 0 : index
    %c0_23 = arith.constant 0 : index
    %32 = vector.load %arg3[%c1_20, %c1_21, %c0_22, %c0_23] : memref<3x3x16x16xbf16, #tpu.memory_space<vmem>>, vector<1x1x16x16xbf16>
    %33 = vector.shape_cast %32 : vector<1x1x16x16xbf16> to vector<16x16xbf16>
    %cst_24 = arith.constant dense<0.000000e+00> : vector<128x16xf32>
    %34 = tpu.matmul %31, %33, %cst_24 {dimension_numbers = #tpu.dot_dimension_numbers<[1], [0], [0], [1], [0, 0, 1, 1], [], []>} : vector<128x16xbf16>, vector<16x16xbf16>, vector<128x16xf32> -> vector<128x16xf32>
    %35 = arith.addf %29, %34 : vector<128x16xf32>
    %36 = vector.extract_strided_slice %4 {offsets = [3, 6, 0], sizes = [8, 16, 16], strides = [1, 1, 1]} : vector<14x22x16xbf16> to vector<8x16x16xbf16>
    %37 = vector.shape_cast %36 : vector<8x16x16xbf16> to vector<128x16xbf16>
    %c1_25 = arith.constant 1 : index
    %c2_26 = arith.constant 2 : index
    %c0_27 = arith.constant 0 : index
    %c0_28 = arith.constant 0 : index
    %38 = vector.load %arg3[%c1_25, %c2_26, %c0_27, %c0_28] : memref<3x3x16x16xbf16, #tpu.memory_space<vmem>>, vector<1x1x16x16xbf16>
    %39 = vector.shape_cast %38 : vector<1x1x16x16xbf16> to vector<16x16xbf16>
    %cst_29 = arith.constant dense<0.000000e+00> : vector<128x16xf32>
    %40 = tpu.matmul %37, %39, %cst_29 {dimension_numbers = #tpu.dot_dimension_numbers<[1], [0], [0], [1], [0, 0, 1, 1], [], []>} : vector<128x16xbf16>, vector<16x16xbf16>, vector<128x16xf32> -> vector<128x16xf32>
    %41 = arith.addf %35, %40 : vector<128x16xf32>
    %42 = vector.extract_strided_slice %4 {offsets = [6, 0, 0], sizes = [8, 16, 16], strides = [1, 1, 1]} : vector<14x22x16xbf16> to vector<8x16x16xbf16>
    %43 = vector.shape_cast %42 : vector<8x16x16xbf16> to vector<128x16xbf16>
    %c2_30 = arith.constant 2 : index
    %c0_31 = arith.constant 0 : index
    %c0_32 = arith.constant 0 : index
    %c0_33 = arith.constant 0 : index
    %44 = vector.load %arg3[%c2_30, %c0_31, %c0_32, %c0_33] : memref<3x3x16x16xbf16, #tpu.memory_space<vmem>>, vector<1x1x16x16xbf16>
    %45 = vector.shape_cast %44 : vector<1x1x16x16xbf16> to vector<16x16xbf16>
    %cst_34 = arith.constant dense<0.000000e+00> : vector<128x16xf32>
    %46 = tpu.matmul %43, %45, %cst_34 {dimension_numbers = #tpu.dot_dimension_numbers<[1], [0], [0], [1], [0, 0, 1, 1], [], []>} : vector<128x16xbf16>, vector<16x16xbf16>, vector<128x16xf32> -> vector<128x16xf32>
    %47 = arith.addf %41, %46 : vector<128x16xf32>
    %48 = vector.extract_strided_slice %4 {offsets = [6, 3, 0], sizes = [8, 16, 16], strides = [1, 1, 1]} : vector<14x22x16xbf16> to vector<8x16x16xbf16>
    %49 = vector.shape_cast %48 : vector<8x16x16xbf16> to vector<128x16xbf16>
    %c2_35 = arith.constant 2 : index
    %c1_36 = arith.constant 1 : index
    %c0_37 = arith.constant 0 : index
    %c0_38 = arith.constant 0 : index
    %50 = vector.load %arg3[%c2_35, %c1_36, %c0_37, %c0_38] : memref<3x3x16x16xbf16, #tpu.memory_space<vmem>>, vector<1x1x16x16xbf16>
    %51 = vector.shape_cast %50 : vector<1x1x16x16xbf16> to vector<16x16xbf16>
    %cst_39 = arith.constant dense<0.000000e+00> : vector<128x16xf32>
    %52 = tpu.matmul %49, %51, %cst_39 {dimension_numbers = #tpu.dot_dimension_numbers<[1], [0], [0], [1], [0, 0, 1, 1], [], []>} : vector<128x16xbf16>, vector<16x16xbf16>, vector<128x16xf32> -> vector<128x16xf32>
    %53 = arith.addf %47, %52 : vector<128x16xf32>
    %54 = vector.extract_strided_slice %4 {offsets = [6, 6, 0], sizes = [8, 16, 16], strides = [1, 1, 1]} : vector<14x22x16xbf16> to vector<8x16x16xbf16>
    %55 = vector.shape_cast %54 : vector<8x16x16xbf16> to vector<128x16xbf16>
    %c2_40 = arith.constant 2 : index
    %c2_41 = arith.constant 2 : index
    %c0_42 = arith.constant 0 : index
    %c0_43 = arith.constant 0 : index
    %56 = vector.load %arg3[%c2_40, %c2_41, %c0_42, %c0_43] : memref<3x3x16x16xbf16, #tpu.memory_space<vmem>>, vector<1x1x16x16xbf16>
    %57 = vector.shape_cast %56 : vector<1x1x16x16xbf16> to vector<16x16xbf16>
    %cst_44 = arith.constant dense<0.000000e+00> : vector<128x16xf32>
    %58 = tpu.matmul %55, %57, %cst_44 {dimension_numbers = #tpu.dot_dimension_numbers<[1], [0], [0], [1], [0, 0, 1, 1], [], []>} : vector<128x16xbf16>, vector<16x16xbf16>, vector<128x16xf32> -> vector<128x16xf32>
    %59 = arith.addf %53, %58 : vector<128x16xf32>
    %c0_45 = arith.constant 0 : index
    %c0_46 = arith.constant 0 : index
    %60 = vector.load %arg4[%c0_45, %c0_46] : memref<1x16xf32, #tpu.memory_space<vmem>>, vector<1x16xf32>
    %61 = vector.shape_cast %60 : vector<1x16xf32> to vector<16xf32>
    %62 = vector.shape_cast %61 : vector<16xf32> to vector<1x16xf32>
    %63 = vector.broadcast %62 : vector<1x16xf32> to vector<128x16xf32>
    %64 = arith.addf %59, %63 : vector<128x16xf32>
    %65 = vector.shape_cast %64 : vector<128x16xf32> to vector<1x8x16x16xf32>
    %66 = arith.truncf %65 : vector<1x8x16x16xf32> to vector<1x8x16x16xbf16>
    %c0_47 = arith.constant 0 : index
    %c0_48 = arith.constant 0 : index
    %c0_49 = arith.constant 0 : index
    %c0_50 = arith.constant 0 : index
    %67 = vector.load %arg5[%c0_47, %c0_48, %c0_49, %c0_50] : memref<1x8x16x16xbf16, #tpu.memory_space<vmem>>, vector<1x8x16x16xbf16>
    tpu.vector_store %arg5[%c0_47, %c0_48, %c0_49, %c0_50], %66 {strides = array<i32>} : memref<1x8x16x16xbf16, #tpu.memory_space<vmem>>, vector<1x8x16x16xbf16>,
    return
  }
  func.func @transform_0(%arg0: i32, %arg1: i32) -> (i32, i32, i32, i32) {
    %c0_i32 = arith.constant 0 : i32
    %c0_i32_0 = arith.constant 0 : i32
    %c0_i32_1 = arith.constant 0 : i32
    %c0_i32_2 = arith.constant 0 : i32
    return %arg0, %c0_i32, %c0_i32_0, %c0_i32_1 : i32, i32, i32, i32
  }
  func.func @transform_1(%arg0: i32, %arg1: i32) -> (i32, i32, i32, i32) {
    %c0_i32 = arith.constant 0 : i32
    %c0_i32_0 = arith.constant 0 : i32
    %c0_i32_1 = arith.constant 0 : i32
    %c0_i32_2 = arith.constant 0 : i32
    %c0_i32_3 = arith.constant 0 : i32
    return %c0_i32, %c0_i32_0, %c0_i32_1, %c0_i32_2 : i32, i32, i32, i32
  }
  func.func @transform_2(%arg0: i32, %arg1: i32) -> (i32, i32) {
    %c0_i32 = arith.constant 0 : i32
    %c0_i32_0 = arith.constant 0 : i32
    %c0_i32_1 = arith.constant 0 : i32
    return %c0_i32, %c0_i32_0 : i32, i32
  }
  func.func @transform_3(%arg0: i32, %arg1: i32) -> (i32, i32, i32, i32) {
    %c0_i32 = arith.constant 0 : i32
    %c0_i32_0 = arith.constant 0 : i32
    %c0_i32_1 = arith.constant 0 : i32
    return %arg0, %arg1, %c0_i32, %c0_i32_0 : i32, i32, i32, i32
  }
}

module attributes {stable_mosaic.version = 11 : i64} {
  func.func @_conv3x3_kernel(%arg0: i32, %arg1: i32, %arg2: memref<1x18x18x8xbf16, #tpu.memory_space<vmem>>, %arg3: memref<3x3x8x16xbf16, #tpu.memory_space<vmem>>, %arg4: memref<1x16xf32, #tpu.memory_space<vmem>>, %arg5: memref<1x8x16x16xbf16, #tpu.memory_space<vmem>>) attributes {dimension_semantics = [#tpu.dimension_semantics<parallel>, #tpu.dimension_semantics<parallel>], iteration_bounds = array<i64: 2, 2>, scalar_prefetch = 0 : i64, scratch_operands = 0 : i64, tpu.core_type = #tpu.core_type<tc>, window_params = [{transform_indices = @transform_0, window_bounds = array<i64: 1, 18, 18, 8>}, {pipeline_mode = #tpu.pipeline_mode<synchronous>, transform_indices = @transform_1, window_bounds = array<i64: 3, 3, 8, 16>}, {pipeline_mode = #tpu.pipeline_mode<synchronous>, transform_indices = @transform_2, window_bounds = array<i64: 1, 16>}, {transform_indices = @transform_3, window_bounds = array<i64: 1, 8, 16, 16>}]} {
    %c8_i32 = arith.constant 8 : i32
    %0 = arith.muli %arg1, %c8_i32 : i32
    %1 = tpu.assume_multiple %0, 8 : i32
    %c0 = arith.constant 0 : index
    %2 = arith.index_cast %1 : i32 to index
    %c0_0 = arith.constant 0 : index
    %c0_1 = arith.constant 0 : index
    %3 = vector.load %arg2[%c0, %2, %c0_0, %c0_1] : memref<1x18x18x8xbf16, #tpu.memory_space<vmem>>, vector<1x10x18x8xbf16>
    %4 = vector.shape_cast %3 : vector<1x10x18x8xbf16> to vector<10x18x8xbf16>
    %cst = arith.constant 0.000000e+00 : f32
    %5 = vector.broadcast %cst : f32 to vector<128x16xf32>
    %6 = vector.extract_strided_slice %4 {offsets = [0, 0, 0], sizes = [8, 16, 8], strides = [1, 1, 1]} : vector<10x18x8xbf16> to vector<8x16x8xbf16>
    %7 = vector.shape_cast %6 : vector<8x16x8xbf16> to vector<128x8xbf16>
    %c0_2 = arith.constant 0 : index
    %c0_3 = arith.constant 0 : index
    %c0_4 = arith.constant 0 : index
    %c0_5 = arith.constant 0 : index
    %8 = vector.load %arg3[%c0_2, %c0_3, %c0_4, %c0_5] : memref<3x3x8x16xbf16, #tpu.memory_space<vmem>>, vector<1x1x8x16xbf16>
    %9 = vector.shape_cast %8 : vector<1x1x8x16xbf16> to vector<8x16xbf16>
    %cst_6 = arith.constant dense<0.000000e+00> : vector<128x16xf32>
    %10 = tpu.matmul %7, %9, %cst_6 {dimension_numbers = #tpu.dot_dimension_numbers<[1], [0], [0], [1], [0, 0, 1, 1], [], []>} : vector<128x8xbf16>, vector<8x16xbf16>, vector<128x16xf32> -> vector<128x16xf32>
    %11 = arith.addf %5, %10 : vector<128x16xf32>
    %12 = vector.extract_strided_slice %4 {offsets = [0, 1, 0], sizes = [8, 16, 8], strides = [1, 1, 1]} : vector<10x18x8xbf16> to vector<8x16x8xbf16>
    %13 = vector.shape_cast %12 : vector<8x16x8xbf16> to vector<128x8xbf16>
    %c0_7 = arith.constant 0 : index
    %c1 = arith.constant 1 : index
    %c0_8 = arith.constant 0 : index
    %c0_9 = arith.constant 0 : index
    %14 = vector.load %arg3[%c0_7, %c1, %c0_8, %c0_9] : memref<3x3x8x16xbf16, #tpu.memory_space<vmem>>, vector<1x1x8x16xbf16>
    %15 = vector.shape_cast %14 : vector<1x1x8x16xbf16> to vector<8x16xbf16>
    %cst_10 = arith.constant dense<0.000000e+00> : vector<128x16xf32>
    %16 = tpu.matmul %13, %15, %cst_10 {dimension_numbers = #tpu.dot_dimension_numbers<[1], [0], [0], [1], [0, 0, 1, 1], [], []>} : vector<128x8xbf16>, vector<8x16xbf16>, vector<128x16xf32> -> vector<128x16xf32>
    %17 = arith.addf %11, %16 : vector<128x16xf32>
    %18 = vector.extract_strided_slice %4 {offsets = [0, 2, 0], sizes = [8, 16, 8], strides = [1, 1, 1]} : vector<10x18x8xbf16> to vector<8x16x8xbf16>
    %19 = vector.shape_cast %18 : vector<8x16x8xbf16> to vector<128x8xbf16>
    %c0_11 = arith.constant 0 : index
    %c2 = arith.constant 2 : index
    %c0_12 = arith.constant 0 : index
    %c0_13 = arith.constant 0 : index
    %20 = vector.load %arg3[%c0_11, %c2, %c0_12, %c0_13] : memref<3x3x8x16xbf16, #tpu.memory_space<vmem>>, vector<1x1x8x16xbf16>
    %21 = vector.shape_cast %20 : vector<1x1x8x16xbf16> to vector<8x16xbf16>
    %cst_14 = arith.constant dense<0.000000e+00> : vector<128x16xf32>
    %22 = tpu.matmul %19, %21, %cst_14 {dimension_numbers = #tpu.dot_dimension_numbers<[1], [0], [0], [1], [0, 0, 1, 1], [], []>} : vector<128x8xbf16>, vector<8x16xbf16>, vector<128x16xf32> -> vector<128x16xf32>
    %23 = arith.addf %17, %22 : vector<128x16xf32>
    %24 = vector.extract_strided_slice %4 {offsets = [1, 0, 0], sizes = [8, 16, 8], strides = [1, 1, 1]} : vector<10x18x8xbf16> to vector<8x16x8xbf16>
    %25 = vector.shape_cast %24 : vector<8x16x8xbf16> to vector<128x8xbf16>
    %c1_15 = arith.constant 1 : index
    %c0_16 = arith.constant 0 : index
    %c0_17 = arith.constant 0 : index
    %c0_18 = arith.constant 0 : index
    %26 = vector.load %arg3[%c1_15, %c0_16, %c0_17, %c0_18] : memref<3x3x8x16xbf16, #tpu.memory_space<vmem>>, vector<1x1x8x16xbf16>
    %27 = vector.shape_cast %26 : vector<1x1x8x16xbf16> to vector<8x16xbf16>
    %cst_19 = arith.constant dense<0.000000e+00> : vector<128x16xf32>
    %28 = tpu.matmul %25, %27, %cst_19 {dimension_numbers = #tpu.dot_dimension_numbers<[1], [0], [0], [1], [0, 0, 1, 1], [], []>} : vector<128x8xbf16>, vector<8x16xbf16>, vector<128x16xf32> -> vector<128x16xf32>
    %29 = arith.addf %23, %28 : vector<128x16xf32>
    %30 = vector.extract_strided_slice %4 {offsets = [1, 1, 0], sizes = [8, 16, 8], strides = [1, 1, 1]} : vector<10x18x8xbf16> to vector<8x16x8xbf16>
    %31 = vector.shape_cast %30 : vector<8x16x8xbf16> to vector<128x8xbf16>
    %c1_20 = arith.constant 1 : index
    %c1_21 = arith.constant 1 : index
    %c0_22 = arith.constant 0 : index
    %c0_23 = arith.constant 0 : index
    %32 = vector.load %arg3[%c1_20, %c1_21, %c0_22, %c0_23] : memref<3x3x8x16xbf16, #tpu.memory_space<vmem>>, vector<1x1x8x16xbf16>
    %33 = vector.shape_cast %32 : vector<1x1x8x16xbf16> to vector<8x16xbf16>
    %cst_24 = arith.constant dense<0.000000e+00> : vector<128x16xf32>
    %34 = tpu.matmul %31, %33, %cst_24 {dimension_numbers = #tpu.dot_dimension_numbers<[1], [0], [0], [1], [0, 0, 1, 1], [], []>} : vector<128x8xbf16>, vector<8x16xbf16>, vector<128x16xf32> -> vector<128x16xf32>
    %35 = arith.addf %29, %34 : vector<128x16xf32>
    %36 = vector.extract_strided_slice %4 {offsets = [1, 2, 0], sizes = [8, 16, 8], strides = [1, 1, 1]} : vector<10x18x8xbf16> to vector<8x16x8xbf16>
    %37 = vector.shape_cast %36 : vector<8x16x8xbf16> to vector<128x8xbf16>
    %c1_25 = arith.constant 1 : index
    %c2_26 = arith.constant 2 : index
    %c0_27 = arith.constant 0 : index
    %c0_28 = arith.constant 0 : index
    %38 = vector.load %arg3[%c1_25, %c2_26, %c0_27, %c0_28] : memref<3x3x8x16xbf16, #tpu.memory_space<vmem>>, vector<1x1x8x16xbf16>
    %39 = vector.shape_cast %38 : vector<1x1x8x16xbf16> to vector<8x16xbf16>
    %cst_29 = arith.constant dense<0.000000e+00> : vector<128x16xf32>
    %40 = tpu.matmul %37, %39, %cst_29 {dimension_numbers = #tpu.dot_dimension_numbers<[1], [0], [0], [1], [0, 0, 1, 1], [], []>} : vector<128x8xbf16>, vector<8x16xbf16>, vector<128x16xf32> -> vector<128x16xf32>
    %41 = arith.addf %35, %40 : vector<128x16xf32>
    %42 = vector.extract_strided_slice %4 {offsets = [2, 0, 0], sizes = [8, 16, 8], strides = [1, 1, 1]} : vector<10x18x8xbf16> to vector<8x16x8xbf16>
    %43 = vector.shape_cast %42 : vector<8x16x8xbf16> to vector<128x8xbf16>
    %c2_30 = arith.constant 2 : index
    %c0_31 = arith.constant 0 : index
    %c0_32 = arith.constant 0 : index
    %c0_33 = arith.constant 0 : index
    %44 = vector.load %arg3[%c2_30, %c0_31, %c0_32, %c0_33] : memref<3x3x8x16xbf16, #tpu.memory_space<vmem>>, vector<1x1x8x16xbf16>
    %45 = vector.shape_cast %44 : vector<1x1x8x16xbf16> to vector<8x16xbf16>
    %cst_34 = arith.constant dense<0.000000e+00> : vector<128x16xf32>
    %46 = tpu.matmul %43, %45, %cst_34 {dimension_numbers = #tpu.dot_dimension_numbers<[1], [0], [0], [1], [0, 0, 1, 1], [], []>} : vector<128x8xbf16>, vector<8x16xbf16>, vector<128x16xf32> -> vector<128x16xf32>
    %47 = arith.addf %41, %46 : vector<128x16xf32>
    %48 = vector.extract_strided_slice %4 {offsets = [2, 1, 0], sizes = [8, 16, 8], strides = [1, 1, 1]} : vector<10x18x8xbf16> to vector<8x16x8xbf16>
    %49 = vector.shape_cast %48 : vector<8x16x8xbf16> to vector<128x8xbf16>
    %c2_35 = arith.constant 2 : index
    %c1_36 = arith.constant 1 : index
    %c0_37 = arith.constant 0 : index
    %c0_38 = arith.constant 0 : index
    %50 = vector.load %arg3[%c2_35, %c1_36, %c0_37, %c0_38] : memref<3x3x8x16xbf16, #tpu.memory_space<vmem>>, vector<1x1x8x16xbf16>
    %51 = vector.shape_cast %50 : vector<1x1x8x16xbf16> to vector<8x16xbf16>
    %cst_39 = arith.constant dense<0.000000e+00> : vector<128x16xf32>
    %52 = tpu.matmul %49, %51, %cst_39 {dimension_numbers = #tpu.dot_dimension_numbers<[1], [0], [0], [1], [0, 0, 1, 1], [], []>} : vector<128x8xbf16>, vector<8x16xbf16>, vector<128x16xf32> -> vector<128x16xf32>
    %53 = arith.addf %47, %52 : vector<128x16xf32>
    %54 = vector.extract_strided_slice %4 {offsets = [2, 2, 0], sizes = [8, 16, 8], strides = [1, 1, 1]} : vector<10x18x8xbf16> to vector<8x16x8xbf16>
    %55 = vector.shape_cast %54 : vector<8x16x8xbf16> to vector<128x8xbf16>
    %c2_40 = arith.constant 2 : index
    %c2_41 = arith.constant 2 : index
    %c0_42 = arith.constant 0 : index
    %c0_43 = arith.constant 0 : index
    %56 = vector.load %arg3[%c2_40, %c2_41, %c0_42, %c0_43] : memref<3x3x8x16xbf16, #tpu.memory_space<vmem>>, vector<1x1x8x16xbf16>
    %57 = vector.shape_cast %56 : vector<1x1x8x16xbf16> to vector<8x16xbf16>
    %cst_44 = arith.constant dense<0.000000e+00> : vector<128x16xf32>
    %58 = tpu.matmul %55, %57, %cst_44 {dimension_numbers = #tpu.dot_dimension_numbers<[1], [0], [0], [1], [0, 0, 1, 1], [], []>} : vector<128x8xbf16>, vector<8x16xbf16>, vector<128x16xf32> -> vector<128x16xf32>
    %59 = arith.addf %53, %58 : vector<128x16xf32>
    %c0_45 = arith.constant 0 : index
    %c0_46 = arith.constant 0 : index
    %60 = vector.load %arg4[%c0_45, %c0_46] : memref<1x16xf32, #tpu.memory_space<vmem>>, vector<1x16xf32>
    %61 = vector.shape_cast %60 : vector<1x16xf32> to vector<16xf32>
    %62 = vector.shape_cast %61 : vector<16xf32> to vector<1x16xf32>
    %63 = vector.broadcast %62 : vector<1x16xf32> to vector<128x16xf32>
    %64 = arith.addf %59, %63 : vector<128x16xf32>
    %cst_47 = arith.constant 0.000000e+00 : f32
    %65 = vector.broadcast %cst_47 : f32 to vector<128x16xf32>
    %66 = arith.maximumf %64, %65 : vector<128x16xf32>
    %67 = vector.shape_cast %66 : vector<128x16xf32> to vector<1x8x16x16xf32>
    %68 = arith.truncf %67 : vector<1x8x16x16xf32> to vector<1x8x16x16xbf16>
    %c0_48 = arith.constant 0 : index
    %c0_49 = arith.constant 0 : index
    %c0_50 = arith.constant 0 : index
    %c0_51 = arith.constant 0 : index
    %69 = vector.load %arg5[%c0_48, %c0_49, %c0_50, %c0_51] : memref<1x8x16x16xbf16, #tpu.memory_space<vmem>>, vector<1x8x16x16xbf16>
    tpu.vector_store %arg5[%c0_48, %c0_49, %c0_50, %c0_51], %68 {strides = array<i32>} : memref<1x8x16x16xbf16, #tpu.memory_space<vmem>>, vector<1x8x16x16xbf16>,
    return
  }
  func.func @transform_0(%arg0: i32, %arg1: i32) -> (i32, i32, i32, i32) {
    %c0_i32 = arith.constant 0 : i32
    %c0_i32_0 = arith.constant 0 : i32
    %c0_i32_1 = arith.constant 0 : i32
    %c0_i32_2 = arith.constant 0 : i32
    return %arg0, %c0_i32, %c0_i32_0, %c0_i32_1 : i32, i32, i32, i32
  }
  func.func @transform_1(%arg0: i32, %arg1: i32) -> (i32, i32, i32, i32) {
    %c0_i32 = arith.constant 0 : i32
    %c0_i32_0 = arith.constant 0 : i32
    %c0_i32_1 = arith.constant 0 : i32
    %c0_i32_2 = arith.constant 0 : i32
    %c0_i32_3 = arith.constant 0 : i32
    return %c0_i32, %c0_i32_0, %c0_i32_1, %c0_i32_2 : i32, i32, i32, i32
  }
  func.func @transform_2(%arg0: i32, %arg1: i32) -> (i32, i32) {
    %c0_i32 = arith.constant 0 : i32
    %c0_i32_0 = arith.constant 0 : i32
    %c0_i32_1 = arith.constant 0 : i32
    return %c0_i32, %c0_i32_0 : i32, i32
  }
  func.func @transform_3(%arg0: i32, %arg1: i32) -> (i32, i32, i32, i32) {
    %c0_i32 = arith.constant 0 : i32
    %c0_i32_0 = arith.constant 0 : i32
    %c0_i32_1 = arith.constant 0 : i32
    return %arg0, %arg1, %c0_i32, %c0_i32_0 : i32, i32, i32, i32
  }
}

module attributes {stable_mosaic.version = 11 : i64} {
  func.func @_conv3x3_kernel(%arg0: i32, %arg1: i32, %arg2: memref<1x20x20x16xbf16, #tpu.memory_space<vmem>>, %arg3: memref<3x3x16x16xbf16, #tpu.memory_space<vmem>>, %arg4: memref<1x16xf32, #tpu.memory_space<vmem>>, %arg5: memref<1x8x16x16xbf16, #tpu.memory_space<vmem>>) attributes {dimension_semantics = [#tpu.dimension_semantics<parallel>, #tpu.dimension_semantics<parallel>], iteration_bounds = array<i64: 2, 2>, scalar_prefetch = 0 : i64, scratch_operands = 0 : i64, tpu.core_type = #tpu.core_type<tc>, window_params = [{transform_indices = @transform_0, window_bounds = array<i64: 1, 20, 20, 16>}, {pipeline_mode = #tpu.pipeline_mode<synchronous>, transform_indices = @transform_1, window_bounds = array<i64: 3, 3, 16, 16>}, {pipeline_mode = #tpu.pipeline_mode<synchronous>, transform_indices = @transform_2, window_bounds = array<i64: 1, 16>}, {transform_indices = @transform_3, window_bounds = array<i64: 1, 8, 16, 16>}]} {
    %c8_i32 = arith.constant 8 : i32
    %0 = arith.muli %arg1, %c8_i32 : i32
    %1 = tpu.assume_multiple %0, 8 : i32
    %c0 = arith.constant 0 : index
    %2 = arith.index_cast %1 : i32 to index
    %c0_0 = arith.constant 0 : index
    %c0_1 = arith.constant 0 : index
    %3 = vector.load %arg2[%c0, %2, %c0_0, %c0_1] : memref<1x20x20x16xbf16, #tpu.memory_space<vmem>>, vector<1x12x20x16xbf16>
    %4 = vector.shape_cast %3 : vector<1x12x20x16xbf16> to vector<12x20x16xbf16>
    %cst = arith.constant 0.000000e+00 : f32
    %5 = vector.broadcast %cst : f32 to vector<128x16xf32>
    %6 = vector.extract_strided_slice %4 {offsets = [0, 0, 0], sizes = [8, 16, 16], strides = [1, 1, 1]} : vector<12x20x16xbf16> to vector<8x16x16xbf16>
    %7 = vector.shape_cast %6 : vector<8x16x16xbf16> to vector<128x16xbf16>
    %c0_2 = arith.constant 0 : index
    %c0_3 = arith.constant 0 : index
    %c0_4 = arith.constant 0 : index
    %c0_5 = arith.constant 0 : index
    %8 = vector.load %arg3[%c0_2, %c0_3, %c0_4, %c0_5] : memref<3x3x16x16xbf16, #tpu.memory_space<vmem>>, vector<1x1x16x16xbf16>
    %9 = vector.shape_cast %8 : vector<1x1x16x16xbf16> to vector<16x16xbf16>
    %cst_6 = arith.constant dense<0.000000e+00> : vector<128x16xf32>
    %10 = tpu.matmul %7, %9, %cst_6 {dimension_numbers = #tpu.dot_dimension_numbers<[1], [0], [0], [1], [0, 0, 1, 1], [], []>} : vector<128x16xbf16>, vector<16x16xbf16>, vector<128x16xf32> -> vector<128x16xf32>
    %11 = arith.addf %5, %10 : vector<128x16xf32>
    %12 = vector.extract_strided_slice %4 {offsets = [0, 2, 0], sizes = [8, 16, 16], strides = [1, 1, 1]} : vector<12x20x16xbf16> to vector<8x16x16xbf16>
    %13 = vector.shape_cast %12 : vector<8x16x16xbf16> to vector<128x16xbf16>
    %c0_7 = arith.constant 0 : index
    %c1 = arith.constant 1 : index
    %c0_8 = arith.constant 0 : index
    %c0_9 = arith.constant 0 : index
    %14 = vector.load %arg3[%c0_7, %c1, %c0_8, %c0_9] : memref<3x3x16x16xbf16, #tpu.memory_space<vmem>>, vector<1x1x16x16xbf16>
    %15 = vector.shape_cast %14 : vector<1x1x16x16xbf16> to vector<16x16xbf16>
    %cst_10 = arith.constant dense<0.000000e+00> : vector<128x16xf32>
    %16 = tpu.matmul %13, %15, %cst_10 {dimension_numbers = #tpu.dot_dimension_numbers<[1], [0], [0], [1], [0, 0, 1, 1], [], []>} : vector<128x16xbf16>, vector<16x16xbf16>, vector<128x16xf32> -> vector<128x16xf32>
    %17 = arith.addf %11, %16 : vector<128x16xf32>
    %18 = vector.extract_strided_slice %4 {offsets = [0, 4, 0], sizes = [8, 16, 16], strides = [1, 1, 1]} : vector<12x20x16xbf16> to vector<8x16x16xbf16>
    %19 = vector.shape_cast %18 : vector<8x16x16xbf16> to vector<128x16xbf16>
    %c0_11 = arith.constant 0 : index
    %c2 = arith.constant 2 : index
    %c0_12 = arith.constant 0 : index
    %c0_13 = arith.constant 0 : index
    %20 = vector.load %arg3[%c0_11, %c2, %c0_12, %c0_13] : memref<3x3x16x16xbf16, #tpu.memory_space<vmem>>, vector<1x1x16x16xbf16>
    %21 = vector.shape_cast %20 : vector<1x1x16x16xbf16> to vector<16x16xbf16>
    %cst_14 = arith.constant dense<0.000000e+00> : vector<128x16xf32>
    %22 = tpu.matmul %19, %21, %cst_14 {dimension_numbers = #tpu.dot_dimension_numbers<[1], [0], [0], [1], [0, 0, 1, 1], [], []>} : vector<128x16xbf16>, vector<16x16xbf16>, vector<128x16xf32> -> vector<128x16xf32>
    %23 = arith.addf %17, %22 : vector<128x16xf32>
    %24 = vector.extract_strided_slice %4 {offsets = [2, 0, 0], sizes = [8, 16, 16], strides = [1, 1, 1]} : vector<12x20x16xbf16> to vector<8x16x16xbf16>
    %25 = vector.shape_cast %24 : vector<8x16x16xbf16> to vector<128x16xbf16>
    %c1_15 = arith.constant 1 : index
    %c0_16 = arith.constant 0 : index
    %c0_17 = arith.constant 0 : index
    %c0_18 = arith.constant 0 : index
    %26 = vector.load %arg3[%c1_15, %c0_16, %c0_17, %c0_18] : memref<3x3x16x16xbf16, #tpu.memory_space<vmem>>, vector<1x1x16x16xbf16>
    %27 = vector.shape_cast %26 : vector<1x1x16x16xbf16> to vector<16x16xbf16>
    %cst_19 = arith.constant dense<0.000000e+00> : vector<128x16xf32>
    %28 = tpu.matmul %25, %27, %cst_19 {dimension_numbers = #tpu.dot_dimension_numbers<[1], [0], [0], [1], [0, 0, 1, 1], [], []>} : vector<128x16xbf16>, vector<16x16xbf16>, vector<128x16xf32> -> vector<128x16xf32>
    %29 = arith.addf %23, %28 : vector<128x16xf32>
    %30 = vector.extract_strided_slice %4 {offsets = [2, 2, 0], sizes = [8, 16, 16], strides = [1, 1, 1]} : vector<12x20x16xbf16> to vector<8x16x16xbf16>
    %31 = vector.shape_cast %30 : vector<8x16x16xbf16> to vector<128x16xbf16>
    %c1_20 = arith.constant 1 : index
    %c1_21 = arith.constant 1 : index
    %c0_22 = arith.constant 0 : index
    %c0_23 = arith.constant 0 : index
    %32 = vector.load %arg3[%c1_20, %c1_21, %c0_22, %c0_23] : memref<3x3x16x16xbf16, #tpu.memory_space<vmem>>, vector<1x1x16x16xbf16>
    %33 = vector.shape_cast %32 : vector<1x1x16x16xbf16> to vector<16x16xbf16>
    %cst_24 = arith.constant dense<0.000000e+00> : vector<128x16xf32>
    %34 = tpu.matmul %31, %33, %cst_24 {dimension_numbers = #tpu.dot_dimension_numbers<[1], [0], [0], [1], [0, 0, 1, 1], [], []>} : vector<128x16xbf16>, vector<16x16xbf16>, vector<128x16xf32> -> vector<128x16xf32>
    %35 = arith.addf %29, %34 : vector<128x16xf32>
    %36 = vector.extract_strided_slice %4 {offsets = [2, 4, 0], sizes = [8, 16, 16], strides = [1, 1, 1]} : vector<12x20x16xbf16> to vector<8x16x16xbf16>
    %37 = vector.shape_cast %36 : vector<8x16x16xbf16> to vector<128x16xbf16>
    %c1_25 = arith.constant 1 : index
    %c2_26 = arith.constant 2 : index
    %c0_27 = arith.constant 0 : index
    %c0_28 = arith.constant 0 : index
    %38 = vector.load %arg3[%c1_25, %c2_26, %c0_27, %c0_28] : memref<3x3x16x16xbf16, #tpu.memory_space<vmem>>, vector<1x1x16x16xbf16>
    %39 = vector.shape_cast %38 : vector<1x1x16x16xbf16> to vector<16x16xbf16>
    %cst_29 = arith.constant dense<0.000000e+00> : vector<128x16xf32>
    %40 = tpu.matmul %37, %39, %cst_29 {dimension_numbers = #tpu.dot_dimension_numbers<[1], [0], [0], [1], [0, 0, 1, 1], [], []>} : vector<128x16xbf16>, vector<16x16xbf16>, vector<128x16xf32> -> vector<128x16xf32>
    %41 = arith.addf %35, %40 : vector<128x16xf32>
    %42 = vector.extract_strided_slice %4 {offsets = [4, 0, 0], sizes = [8, 16, 16], strides = [1, 1, 1]} : vector<12x20x16xbf16> to vector<8x16x16xbf16>
    %43 = vector.shape_cast %42 : vector<8x16x16xbf16> to vector<128x16xbf16>
    %c2_30 = arith.constant 2 : index
    %c0_31 = arith.constant 0 : index
    %c0_32 = arith.constant 0 : index
    %c0_33 = arith.constant 0 : index
    %44 = vector.load %arg3[%c2_30, %c0_31, %c0_32, %c0_33] : memref<3x3x16x16xbf16, #tpu.memory_space<vmem>>, vector<1x1x16x16xbf16>
    %45 = vector.shape_cast %44 : vector<1x1x16x16xbf16> to vector<16x16xbf16>
    %cst_34 = arith.constant dense<0.000000e+00> : vector<128x16xf32>
    %46 = tpu.matmul %43, %45, %cst_34 {dimension_numbers = #tpu.dot_dimension_numbers<[1], [0], [0], [1], [0, 0, 1, 1], [], []>} : vector<128x16xbf16>, vector<16x16xbf16>, vector<128x16xf32> -> vector<128x16xf32>
    %47 = arith.addf %41, %46 : vector<128x16xf32>
    %48 = vector.extract_strided_slice %4 {offsets = [4, 2, 0], sizes = [8, 16, 16], strides = [1, 1, 1]} : vector<12x20x16xbf16> to vector<8x16x16xbf16>
    %49 = vector.shape_cast %48 : vector<8x16x16xbf16> to vector<128x16xbf16>
    %c2_35 = arith.constant 2 : index
    %c1_36 = arith.constant 1 : index
    %c0_37 = arith.constant 0 : index
    %c0_38 = arith.constant 0 : index
    %50 = vector.load %arg3[%c2_35, %c1_36, %c0_37, %c0_38] : memref<3x3x16x16xbf16, #tpu.memory_space<vmem>>, vector<1x1x16x16xbf16>
    %51 = vector.shape_cast %50 : vector<1x1x16x16xbf16> to vector<16x16xbf16>
    %cst_39 = arith.constant dense<0.000000e+00> : vector<128x16xf32>
    %52 = tpu.matmul %49, %51, %cst_39 {dimension_numbers = #tpu.dot_dimension_numbers<[1], [0], [0], [1], [0, 0, 1, 1], [], []>} : vector<128x16xbf16>, vector<16x16xbf16>, vector<128x16xf32> -> vector<128x16xf32>
    %53 = arith.addf %47, %52 : vector<128x16xf32>
    %54 = vector.extract_strided_slice %4 {offsets = [4, 4, 0], sizes = [8, 16, 16], strides = [1, 1, 1]} : vector<12x20x16xbf16> to vector<8x16x16xbf16>
    %55 = vector.shape_cast %54 : vector<8x16x16xbf16> to vector<128x16xbf16>
    %c2_40 = arith.constant 2 : index
    %c2_41 = arith.constant 2 : index
    %c0_42 = arith.constant 0 : index
    %c0_43 = arith.constant 0 : index
    %56 = vector.load %arg3[%c2_40, %c2_41, %c0_42, %c0_43] : memref<3x3x16x16xbf16, #tpu.memory_space<vmem>>, vector<1x1x16x16xbf16>
    %57 = vector.shape_cast %56 : vector<1x1x16x16xbf16> to vector<16x16xbf16>
    %cst_44 = arith.constant dense<0.000000e+00> : vector<128x16xf32>
    %58 = tpu.matmul %55, %57, %cst_44 {dimension_numbers = #tpu.dot_dimension_numbers<[1], [0], [0], [1], [0, 0, 1, 1], [], []>} : vector<128x16xbf16>, vector<16x16xbf16>, vector<128x16xf32> -> vector<128x16xf32>
    %59 = arith.addf %53, %58 : vector<128x16xf32>
    %c0_45 = arith.constant 0 : index
    %c0_46 = arith.constant 0 : index
    %60 = vector.load %arg4[%c0_45, %c0_46] : memref<1x16xf32, #tpu.memory_space<vmem>>, vector<1x16xf32>
    %61 = vector.shape_cast %60 : vector<1x16xf32> to vector<16xf32>
    %62 = vector.shape_cast %61 : vector<16xf32> to vector<1x16xf32>
    %63 = vector.broadcast %62 : vector<1x16xf32> to vector<128x16xf32>
    %64 = arith.addf %59, %63 : vector<128x16xf32>
    %65 = vector.shape_cast %64 : vector<128x16xf32> to vector<1x8x16x16xf32>
    %66 = arith.truncf %65 : vector<1x8x16x16xf32> to vector<1x8x16x16xbf16>
    %c0_47 = arith.constant 0 : index
    %c0_48 = arith.constant 0 : index
    %c0_49 = arith.constant 0 : index
    %c0_50 = arith.constant 0 : index
    %67 = vector.load %arg5[%c0_47, %c0_48, %c0_49, %c0_50] : memref<1x8x16x16xbf16, #tpu.memory_space<vmem>>, vector<1x8x16x16xbf16>
    tpu.vector_store %arg5[%c0_47, %c0_48, %c0_49, %c0_50], %66 {strides = array<i32>} : memref<1x8x16x16xbf16, #tpu.memory_space<vmem>>, vector<1x8x16x16xbf16>,
    return
  }
  func.func @transform_0(%arg0: i32, %arg1: i32) -> (i32, i32, i32, i32) {
    %c0_i32 = arith.constant 0 : i32
    %c0_i32_0 = arith.constant 0 : i32
    %c0_i32_1 = arith.constant 0 : i32
    %c0_i32_2 = arith.constant 0 : i32
    return %arg0, %c0_i32, %c0_i32_0, %c0_i32_1 : i32, i32, i32, i32
  }
  func.func @transform_1(%arg0: i32, %arg1: i32) -> (i32, i32, i32, i32) {
    %c0_i32 = arith.constant 0 : i32
    %c0_i32_0 = arith.constant 0 : i32
    %c0_i32_1 = arith.constant 0 : i32
    %c0_i32_2 = arith.constant 0 : i32
    %c0_i32_3 = arith.constant 0 : i32
    return %c0_i32, %c0_i32_0, %c0_i32_1, %c0_i32_2 : i32, i32, i32, i32
  }
  func.func @transform_2(%arg0: i32, %arg1: i32) -> (i32, i32) {
    %c0_i32 = arith.constant 0 : i32
    %c0_i32_0 = arith.constant 0 : i32
    %c0_i32_1 = arith.constant 0 : i32
    return %c0_i32, %c0_i32_0 : i32, i32
  }
  func.func @transform_3(%arg0: i32, %arg1: i32) -> (i32, i32, i32, i32) {
    %c0_i32 = arith.constant 0 : i32
    %c0_i32_0 = arith.constant 0 : i32
    %c0_i32_1 = arith.constant 0 : i32
    return %arg0, %arg1, %c0_i32, %c0_i32_0 : i32, i32, i32, i32
  }
}

module attributes {stable_mosaic.version = 11 : i64} {
  func.func @_conv3x3_kernel(%arg0: i32, %arg1: i32, %arg2: memref<1x18x18x16xbf16, #tpu.memory_space<vmem>>, %arg3: memref<3x3x16x16xbf16, #tpu.memory_space<vmem>>, %arg4: memref<1x16xf32, #tpu.memory_space<vmem>>, %arg5: memref<1x8x16x16xbf16, #tpu.memory_space<vmem>>) attributes {dimension_semantics = [#tpu.dimension_semantics<parallel>, #tpu.dimension_semantics<parallel>], iteration_bounds = array<i64: 2, 2>, scalar_prefetch = 0 : i64, scratch_operands = 0 : i64, tpu.core_type = #tpu.core_type<tc>, window_params = [{transform_indices = @transform_0, window_bounds = array<i64: 1, 18, 18, 16>}, {pipeline_mode = #tpu.pipeline_mode<synchronous>, transform_indices = @transform_1, window_bounds = array<i64: 3, 3, 16, 16>}, {pipeline_mode = #tpu.pipeline_mode<synchronous>, transform_indices = @transform_2, window_bounds = array<i64: 1, 16>}, {transform_indices = @transform_3, window_bounds = array<i64: 1, 8, 16, 16>}]} {
    %c8_i32 = arith.constant 8 : i32
    %0 = arith.muli %arg1, %c8_i32 : i32
    %1 = tpu.assume_multiple %0, 8 : i32
    %c0 = arith.constant 0 : index
    %2 = arith.index_cast %1 : i32 to index
    %c0_0 = arith.constant 0 : index
    %c0_1 = arith.constant 0 : index
    %3 = vector.load %arg2[%c0, %2, %c0_0, %c0_1] : memref<1x18x18x16xbf16, #tpu.memory_space<vmem>>, vector<1x10x18x16xbf16>
    %4 = vector.shape_cast %3 : vector<1x10x18x16xbf16> to vector<10x18x16xbf16>
    %cst = arith.constant 0.000000e+00 : f32
    %5 = vector.broadcast %cst : f32 to vector<128x16xf32>
    %6 = vector.extract_strided_slice %4 {offsets = [0, 0, 0], sizes = [8, 16, 16], strides = [1, 1, 1]} : vector<10x18x16xbf16> to vector<8x16x16xbf16>
    %7 = vector.shape_cast %6 : vector<8x16x16xbf16> to vector<128x16xbf16>
    %c0_2 = arith.constant 0 : index
    %c0_3 = arith.constant 0 : index
    %c0_4 = arith.constant 0 : index
    %c0_5 = arith.constant 0 : index
    %8 = vector.load %arg3[%c0_2, %c0_3, %c0_4, %c0_5] : memref<3x3x16x16xbf16, #tpu.memory_space<vmem>>, vector<1x1x16x16xbf16>
    %9 = vector.shape_cast %8 : vector<1x1x16x16xbf16> to vector<16x16xbf16>
    %cst_6 = arith.constant dense<0.000000e+00> : vector<128x16xf32>
    %10 = tpu.matmul %7, %9, %cst_6 {dimension_numbers = #tpu.dot_dimension_numbers<[1], [0], [0], [1], [0, 0, 1, 1], [], []>} : vector<128x16xbf16>, vector<16x16xbf16>, vector<128x16xf32> -> vector<128x16xf32>
    %11 = arith.addf %5, %10 : vector<128x16xf32>
    %12 = vector.extract_strided_slice %4 {offsets = [0, 1, 0], sizes = [8, 16, 16], strides = [1, 1, 1]} : vector<10x18x16xbf16> to vector<8x16x16xbf16>
    %13 = vector.shape_cast %12 : vector<8x16x16xbf16> to vector<128x16xbf16>
    %c0_7 = arith.constant 0 : index
    %c1 = arith.constant 1 : index
    %c0_8 = arith.constant 0 : index
    %c0_9 = arith.constant 0 : index
    %14 = vector.load %arg3[%c0_7, %c1, %c0_8, %c0_9] : memref<3x3x16x16xbf16, #tpu.memory_space<vmem>>, vector<1x1x16x16xbf16>
    %15 = vector.shape_cast %14 : vector<1x1x16x16xbf16> to vector<16x16xbf16>
    %cst_10 = arith.constant dense<0.000000e+00> : vector<128x16xf32>
    %16 = tpu.matmul %13, %15, %cst_10 {dimension_numbers = #tpu.dot_dimension_numbers<[1], [0], [0], [1], [0, 0, 1, 1], [], []>} : vector<128x16xbf16>, vector<16x16xbf16>, vector<128x16xf32> -> vector<128x16xf32>
    %17 = arith.addf %11, %16 : vector<128x16xf32>
    %18 = vector.extract_strided_slice %4 {offsets = [0, 2, 0], sizes = [8, 16, 16], strides = [1, 1, 1]} : vector<10x18x16xbf16> to vector<8x16x16xbf16>
    %19 = vector.shape_cast %18 : vector<8x16x16xbf16> to vector<128x16xbf16>
    %c0_11 = arith.constant 0 : index
    %c2 = arith.constant 2 : index
    %c0_12 = arith.constant 0 : index
    %c0_13 = arith.constant 0 : index
    %20 = vector.load %arg3[%c0_11, %c2, %c0_12, %c0_13] : memref<3x3x16x16xbf16, #tpu.memory_space<vmem>>, vector<1x1x16x16xbf16>
    %21 = vector.shape_cast %20 : vector<1x1x16x16xbf16> to vector<16x16xbf16>
    %cst_14 = arith.constant dense<0.000000e+00> : vector<128x16xf32>
    %22 = tpu.matmul %19, %21, %cst_14 {dimension_numbers = #tpu.dot_dimension_numbers<[1], [0], [0], [1], [0, 0, 1, 1], [], []>} : vector<128x16xbf16>, vector<16x16xbf16>, vector<128x16xf32> -> vector<128x16xf32>
    %23 = arith.addf %17, %22 : vector<128x16xf32>
    %24 = vector.extract_strided_slice %4 {offsets = [1, 0, 0], sizes = [8, 16, 16], strides = [1, 1, 1]} : vector<10x18x16xbf16> to vector<8x16x16xbf16>
    %25 = vector.shape_cast %24 : vector<8x16x16xbf16> to vector<128x16xbf16>
    %c1_15 = arith.constant 1 : index
    %c0_16 = arith.constant 0 : index
    %c0_17 = arith.constant 0 : index
    %c0_18 = arith.constant 0 : index
    %26 = vector.load %arg3[%c1_15, %c0_16, %c0_17, %c0_18] : memref<3x3x16x16xbf16, #tpu.memory_space<vmem>>, vector<1x1x16x16xbf16>
    %27 = vector.shape_cast %26 : vector<1x1x16x16xbf16> to vector<16x16xbf16>
    %cst_19 = arith.constant dense<0.000000e+00> : vector<128x16xf32>
    %28 = tpu.matmul %25, %27, %cst_19 {dimension_numbers = #tpu.dot_dimension_numbers<[1], [0], [0], [1], [0, 0, 1, 1], [], []>} : vector<128x16xbf16>, vector<16x16xbf16>, vector<128x16xf32> -> vector<128x16xf32>
    %29 = arith.addf %23, %28 : vector<128x16xf32>
    %30 = vector.extract_strided_slice %4 {offsets = [1, 1, 0], sizes = [8, 16, 16], strides = [1, 1, 1]} : vector<10x18x16xbf16> to vector<8x16x16xbf16>
    %31 = vector.shape_cast %30 : vector<8x16x16xbf16> to vector<128x16xbf16>
    %c1_20 = arith.constant 1 : index
    %c1_21 = arith.constant 1 : index
    %c0_22 = arith.constant 0 : index
    %c0_23 = arith.constant 0 : index
    %32 = vector.load %arg3[%c1_20, %c1_21, %c0_22, %c0_23] : memref<3x3x16x16xbf16, #tpu.memory_space<vmem>>, vector<1x1x16x16xbf16>
    %33 = vector.shape_cast %32 : vector<1x1x16x16xbf16> to vector<16x16xbf16>
    %cst_24 = arith.constant dense<0.000000e+00> : vector<128x16xf32>
    %34 = tpu.matmul %31, %33, %cst_24 {dimension_numbers = #tpu.dot_dimension_numbers<[1], [0], [0], [1], [0, 0, 1, 1], [], []>} : vector<128x16xbf16>, vector<16x16xbf16>, vector<128x16xf32> -> vector<128x16xf32>
    %35 = arith.addf %29, %34 : vector<128x16xf32>
    %36 = vector.extract_strided_slice %4 {offsets = [1, 2, 0], sizes = [8, 16, 16], strides = [1, 1, 1]} : vector<10x18x16xbf16> to vector<8x16x16xbf16>
    %37 = vector.shape_cast %36 : vector<8x16x16xbf16> to vector<128x16xbf16>
    %c1_25 = arith.constant 1 : index
    %c2_26 = arith.constant 2 : index
    %c0_27 = arith.constant 0 : index
    %c0_28 = arith.constant 0 : index
    %38 = vector.load %arg3[%c1_25, %c2_26, %c0_27, %c0_28] : memref<3x3x16x16xbf16, #tpu.memory_space<vmem>>, vector<1x1x16x16xbf16>
    %39 = vector.shape_cast %38 : vector<1x1x16x16xbf16> to vector<16x16xbf16>
    %cst_29 = arith.constant dense<0.000000e+00> : vector<128x16xf32>
    %40 = tpu.matmul %37, %39, %cst_29 {dimension_numbers = #tpu.dot_dimension_numbers<[1], [0], [0], [1], [0, 0, 1, 1], [], []>} : vector<128x16xbf16>, vector<16x16xbf16>, vector<128x16xf32> -> vector<128x16xf32>
    %41 = arith.addf %35, %40 : vector<128x16xf32>
    %42 = vector.extract_strided_slice %4 {offsets = [2, 0, 0], sizes = [8, 16, 16], strides = [1, 1, 1]} : vector<10x18x16xbf16> to vector<8x16x16xbf16>
    %43 = vector.shape_cast %42 : vector<8x16x16xbf16> to vector<128x16xbf16>
    %c2_30 = arith.constant 2 : index
    %c0_31 = arith.constant 0 : index
    %c0_32 = arith.constant 0 : index
    %c0_33 = arith.constant 0 : index
    %44 = vector.load %arg3[%c2_30, %c0_31, %c0_32, %c0_33] : memref<3x3x16x16xbf16, #tpu.memory_space<vmem>>, vector<1x1x16x16xbf16>
    %45 = vector.shape_cast %44 : vector<1x1x16x16xbf16> to vector<16x16xbf16>
    %cst_34 = arith.constant dense<0.000000e+00> : vector<128x16xf32>
    %46 = tpu.matmul %43, %45, %cst_34 {dimension_numbers = #tpu.dot_dimension_numbers<[1], [0], [0], [1], [0, 0, 1, 1], [], []>} : vector<128x16xbf16>, vector<16x16xbf16>, vector<128x16xf32> -> vector<128x16xf32>
    %47 = arith.addf %41, %46 : vector<128x16xf32>
    %48 = vector.extract_strided_slice %4 {offsets = [2, 1, 0], sizes = [8, 16, 16], strides = [1, 1, 1]} : vector<10x18x16xbf16> to vector<8x16x16xbf16>
    %49 = vector.shape_cast %48 : vector<8x16x16xbf16> to vector<128x16xbf16>
    %c2_35 = arith.constant 2 : index
    %c1_36 = arith.constant 1 : index
    %c0_37 = arith.constant 0 : index
    %c0_38 = arith.constant 0 : index
    %50 = vector.load %arg3[%c2_35, %c1_36, %c0_37, %c0_38] : memref<3x3x16x16xbf16, #tpu.memory_space<vmem>>, vector<1x1x16x16xbf16>
    %51 = vector.shape_cast %50 : vector<1x1x16x16xbf16> to vector<16x16xbf16>
    %cst_39 = arith.constant dense<0.000000e+00> : vector<128x16xf32>
    %52 = tpu.matmul %49, %51, %cst_39 {dimension_numbers = #tpu.dot_dimension_numbers<[1], [0], [0], [1], [0, 0, 1, 1], [], []>} : vector<128x16xbf16>, vector<16x16xbf16>, vector<128x16xf32> -> vector<128x16xf32>
    %53 = arith.addf %47, %52 : vector<128x16xf32>
    %54 = vector.extract_strided_slice %4 {offsets = [2, 2, 0], sizes = [8, 16, 16], strides = [1, 1, 1]} : vector<10x18x16xbf16> to vector<8x16x16xbf16>
    %55 = vector.shape_cast %54 : vector<8x16x16xbf16> to vector<128x16xbf16>
    %c2_40 = arith.constant 2 : index
    %c2_41 = arith.constant 2 : index
    %c0_42 = arith.constant 0 : index
    %c0_43 = arith.constant 0 : index
    %56 = vector.load %arg3[%c2_40, %c2_41, %c0_42, %c0_43] : memref<3x3x16x16xbf16, #tpu.memory_space<vmem>>, vector<1x1x16x16xbf16>
    %57 = vector.shape_cast %56 : vector<1x1x16x16xbf16> to vector<16x16xbf16>
    %cst_44 = arith.constant dense<0.000000e+00> : vector<128x16xf32>
    %58 = tpu.matmul %55, %57, %cst_44 {dimension_numbers = #tpu.dot_dimension_numbers<[1], [0], [0], [1], [0, 0, 1, 1], [], []>} : vector<128x16xbf16>, vector<16x16xbf16>, vector<128x16xf32> -> vector<128x16xf32>
    %59 = arith.addf %53, %58 : vector<128x16xf32>
    %c0_45 = arith.constant 0 : index
    %c0_46 = arith.constant 0 : index
    %60 = vector.load %arg4[%c0_45, %c0_46] : memref<1x16xf32, #tpu.memory_space<vmem>>, vector<1x16xf32>
    %61 = vector.shape_cast %60 : vector<1x16xf32> to vector<16xf32>
    %62 = vector.shape_cast %61 : vector<16xf32> to vector<1x16xf32>
    %63 = vector.broadcast %62 : vector<1x16xf32> to vector<128x16xf32>
    %64 = arith.addf %59, %63 : vector<128x16xf32>
    %65 = vector.shape_cast %64 : vector<128x16xf32> to vector<1x8x16x16xf32>
    %66 = arith.truncf %65 : vector<1x8x16x16xf32> to vector<1x8x16x16xbf16>
    %c0_47 = arith.constant 0 : index
    %c0_48 = arith.constant 0 : index
    %c0_49 = arith.constant 0 : index
    %c0_50 = arith.constant 0 : index
    %67 = vector.load %arg5[%c0_47, %c0_48, %c0_49, %c0_50] : memref<1x8x16x16xbf16, #tpu.memory_space<vmem>>, vector<1x8x16x16xbf16>
    tpu.vector_store %arg5[%c0_47, %c0_48, %c0_49, %c0_50], %66 {strides = array<i32>} : memref<1x8x16x16xbf16, #tpu.memory_space<vmem>>, vector<1x8x16x16xbf16>,
    return
  }
  func.func @transform_0(%arg0: i32, %arg1: i32) -> (i32, i32, i32, i32) {
    %c0_i32 = arith.constant 0 : i32
    %c0_i32_0 = arith.constant 0 : i32
    %c0_i32_1 = arith.constant 0 : i32
    %c0_i32_2 = arith.constant 0 : i32
    return %arg0, %c0_i32, %c0_i32_0, %c0_i32_1 : i32, i32, i32, i32
  }
  func.func @transform_1(%arg0: i32, %arg1: i32) -> (i32, i32, i32, i32) {
    %c0_i32 = arith.constant 0 : i32
    %c0_i32_0 = arith.constant 0 : i32
    %c0_i32_1 = arith.constant 0 : i32
    %c0_i32_2 = arith.constant 0 : i32
    %c0_i32_3 = arith.constant 0 : i32
    return %c0_i32, %c0_i32_0, %c0_i32_1, %c0_i32_2 : i32, i32, i32, i32
  }
  func.func @transform_2(%arg0: i32, %arg1: i32) -> (i32, i32) {
    %c0_i32 = arith.constant 0 : i32
    %c0_i32_0 = arith.constant 0 : i32
    %c0_i32_1 = arith.constant 0 : i32
    return %c0_i32, %c0_i32_0 : i32, i32
  }
  func.func @transform_3(%arg0: i32, %arg1: i32) -> (i32, i32, i32, i32) {
    %c0_i32 = arith.constant 0 : i32
    %c0_i32_0 = arith.constant 0 : i32
    %c0_i32_1 = arith.constant 0 : i32
    return %arg0, %arg1, %c0_i32, %c0_i32_0 : i32, i32, i32, i32
  }
}

module attributes {stable_mosaic.version = 11 : i64} {
  func.func @_rfb_tail_kernel(%arg0: i32, %arg1: i32, %arg2: memref<1x8x16x16xbf16, #tpu.memory_space<vmem>>, %arg3: memref<1x8x16x16xbf16, #tpu.memory_space<vmem>>, %arg4: memref<1x8x16x16xbf16, #tpu.memory_space<vmem>>, %arg5: memref<1x8x16x64xf32, #tpu.memory_space<vmem>>, %arg6: memref<16x64xbf16, #tpu.memory_space<vmem>>, %arg7: memref<16x64xbf16, #tpu.memory_space<vmem>>, %arg8: memref<16x64xbf16, #tpu.memory_space<vmem>>, %arg9: memref<64x64xbf16, #tpu.memory_space<vmem>>, %arg10: memref<1x64xf32, #tpu.memory_space<vmem>>, %arg11: memref<1x64xf32, #tpu.memory_space<vmem>>, %arg12: memref<1x8x16x64xf32, #tpu.memory_space<vmem>>) attributes {dimension_semantics = [#tpu.dimension_semantics<parallel>, #tpu.dimension_semantics<parallel>], iteration_bounds = array<i64: 2, 2>, scalar_prefetch = 0 : i64, scratch_operands = 0 : i64, tpu.core_type = #tpu.core_type<tc>, window_params = [{transform_indices = @transform_0, window_bounds = array<i64: 1, 8, 16, 16>}, {transform_indices = @transform_1, window_bounds = array<i64: 1, 8, 16, 16>}, {transform_indices = @transform_2, window_bounds = array<i64: 1, 8, 16, 16>}, {transform_indices = @transform_3, window_bounds = array<i64: 1, 8, 16, 64>}, {pipeline_mode = #tpu.pipeline_mode<synchronous>, transform_indices = @transform_4, window_bounds = array<i64: 16, 64>}, {pipeline_mode = #tpu.pipeline_mode<synchronous>, transform_indices = @transform_5, window_bounds = array<i64: 16, 64>}, {pipeline_mode = #tpu.pipeline_mode<synchronous>, transform_indices = @transform_6, window_bounds = array<i64: 16, 64>}, {pipeline_mode = #tpu.pipeline_mode<synchronous>, transform_indices = @transform_7, window_bounds = array<i64: 64, 64>}, {pipeline_mode = #tpu.pipeline_mode<synchronous>, transform_indices = @transform_8, window_bounds = array<i64: 1, 64>}, {pipeline_mode = #tpu.pipeline_mode<synchronous>, transform_indices = @transform_9, window_bounds = array<i64: 1, 64>}, {transform_indices = @transform_10, window_bounds = array<i64: 1, 8, 16, 64>}]} {
    %c0 = arith.constant 0 : index
    %c0_0 = arith.constant 0 : index
    %c0_1 = arith.constant 0 : index
    %c0_2 = arith.constant 0 : index
    %0 = vector.load %arg2[%c0, %c0_0, %c0_1, %c0_2] : memref<1x8x16x16xbf16, #tpu.memory_space<vmem>>, vector<1x8x16x16xbf16>
    %1 = vector.shape_cast %0 : vector<1x8x16x16xbf16> to vector<8x16x16xbf16>
    %2 = vector.shape_cast %1 : vector<8x16x16xbf16> to vector<128x16xbf16>
    %c0_3 = arith.constant 0 : index
    %c0_4 = arith.constant 0 : index
    %3 = vector.load %arg6[%c0_3, %c0_4] : memref<16x64xbf16, #tpu.memory_space<vmem>>, vector<16x64xbf16>
    %cst = arith.constant dense<0.000000e+00> : vector<128x64xf32>
    %4 = tpu.matmul %2, %3, %cst {dimension_numbers = #tpu.dot_dimension_numbers<[1], [0], [0], [1], [0, 0, 1, 1], [], []>} : vector<128x16xbf16>, vector<16x64xbf16>, vector<128x64xf32> -> vector<128x64xf32>
    %c0_5 = arith.constant 0 : index
    %c0_6 = arith.constant 0 : index
    %c0_7 = arith.constant 0 : index
    %c0_8 = arith.constant 0 : index
    %5 = vector.load %arg3[%c0_5, %c0_6, %c0_7, %c0_8] : memref<1x8x16x16xbf16, #tpu.memory_space<vmem>>, vector<1x8x16x16xbf16>
    %6 = vector.shape_cast %5 : vector<1x8x16x16xbf16> to vector<8x16x16xbf16>
    %7 = vector.shape_cast %6 : vector<8x16x16xbf16> to vector<128x16xbf16>
    %c0_9 = arith.constant 0 : index
    %c0_10 = arith.constant 0 : index
    %8 = vector.load %arg7[%c0_9, %c0_10] : memref<16x64xbf16, #tpu.memory_space<vmem>>, vector<16x64xbf16>
    %cst_11 = arith.constant dense<0.000000e+00> : vector<128x64xf32>
    %9 = tpu.matmul %7, %8, %cst_11 {dimension_numbers = #tpu.dot_dimension_numbers<[1], [0], [0], [1], [0, 0, 1, 1], [], []>} : vector<128x16xbf16>, vector<16x64xbf16>, vector<128x64xf32> -> vector<128x64xf32>
    %10 = arith.addf %4, %9 : vector<128x64xf32>
    %c0_12 = arith.constant 0 : index
    %c0_13 = arith.constant 0 : index
    %c0_14 = arith.constant 0 : index
    %c0_15 = arith.constant 0 : index
    %11 = vector.load %arg4[%c0_12, %c0_13, %c0_14, %c0_15] : memref<1x8x16x16xbf16, #tpu.memory_space<vmem>>, vector<1x8x16x16xbf16>
    %12 = vector.shape_cast %11 : vector<1x8x16x16xbf16> to vector<8x16x16xbf16>
    %13 = vector.shape_cast %12 : vector<8x16x16xbf16> to vector<128x16xbf16>
    %c0_16 = arith.constant 0 : index
    %c0_17 = arith.constant 0 : index
    %14 = vector.load %arg8[%c0_16, %c0_17] : memref<16x64xbf16, #tpu.memory_space<vmem>>, vector<16x64xbf16>
    %cst_18 = arith.constant dense<0.000000e+00> : vector<128x64xf32>
    %15 = tpu.matmul %13, %14, %cst_18 {dimension_numbers = #tpu.dot_dimension_numbers<[1], [0], [0], [1], [0, 0, 1, 1], [], []>} : vector<128x16xbf16>, vector<16x64xbf16>, vector<128x64xf32> -> vector<128x64xf32>
    %16 = arith.addf %10, %15 : vector<128x64xf32>
    %c0_19 = arith.constant 0 : index
    %c0_20 = arith.constant 0 : index
    %17 = vector.load %arg10[%c0_19, %c0_20] : memref<1x64xf32, #tpu.memory_space<vmem>>, vector<1x64xf32>
    %18 = vector.shape_cast %17 : vector<1x64xf32> to vector<64xf32>
    %19 = vector.shape_cast %18 : vector<64xf32> to vector<1x64xf32>
    %20 = vector.broadcast %19 : vector<1x64xf32> to vector<128x64xf32>
    %21 = arith.addf %16, %20 : vector<128x64xf32>
    %c0_21 = arith.constant 0 : index
    %c0_22 = arith.constant 0 : index
    %c0_23 = arith.constant 0 : index
    %c0_24 = arith.constant 0 : index
    %22 = vector.load %arg5[%c0_21, %c0_22, %c0_23, %c0_24] : memref<1x8x16x64xf32, #tpu.memory_space<vmem>>, vector<1x8x16x64xf32>
    %23 = vector.shape_cast %22 : vector<1x8x16x64xf32> to vector<8x16x64xf32>
    %24 = vector.shape_cast %23 : vector<8x16x64xf32> to vector<128x64xf32>
    %25 = arith.truncf %24 : vector<128x64xf32> to vector<128x64xbf16>
    %c0_25 = arith.constant 0 : index
    %c0_26 = arith.constant 0 : index
    %26 = vector.load %arg9[%c0_25, %c0_26] : memref<64x64xbf16, #tpu.memory_space<vmem>>, vector<64x64xbf16>
    %cst_27 = arith.constant dense<0.000000e+00> : vector<128x64xf32>
    %27 = tpu.matmul %25, %26, %cst_27 {dimension_numbers = #tpu.dot_dimension_numbers<[1], [0], [0], [1], [0, 0, 1, 1], [], []>} : vector<128x64xbf16>, vector<64x64xbf16>, vector<128x64xf32> -> vector<128x64xf32>
    %c0_28 = arith.constant 0 : index
    %c0_29 = arith.constant 0 : index
    %28 = vector.load %arg11[%c0_28, %c0_29] : memref<1x64xf32, #tpu.memory_space<vmem>>, vector<1x64xf32>
    %29 = vector.shape_cast %28 : vector<1x64xf32> to vector<64xf32>
    %30 = vector.shape_cast %29 : vector<64xf32> to vector<1x64xf32>
    %31 = vector.broadcast %30 : vector<1x64xf32> to vector<128x64xf32>
    %32 = arith.addf %27, %31 : vector<128x64xf32>
    %33 = arith.addf %21, %32 : vector<128x64xf32>
    %cst_30 = arith.constant 0.000000e+00 : f32
    %34 = vector.broadcast %cst_30 : f32 to vector<128x64xf32>
    %35 = arith.maximumf %33, %34 : vector<128x64xf32>
    %36 = vector.shape_cast %35 : vector<128x64xf32> to vector<1x8x16x64xf32>
    %c0_31 = arith.constant 0 : index
    %c0_32 = arith.constant 0 : index
    %c0_33 = arith.constant 0 : index
    %c0_34 = arith.constant 0 : index
    %37 = vector.load %arg12[%c0_31, %c0_32, %c0_33, %c0_34] : memref<1x8x16x64xf32, #tpu.memory_space<vmem>>, vector<1x8x16x64xf32>
    tpu.vector_store %arg12[%c0_31, %c0_32, %c0_33, %c0_34], %36 {strides = array<i32>} : memref<1x8x16x64xf32, #tpu.memory_space<vmem>>, vector<1x8x16x64xf32>,
    return
  }
  func.func @transform_0(%arg0: i32, %arg1: i32) -> (i32, i32, i32, i32) {
    %c0_i32 = arith.constant 0 : i32
    %c0_i32_0 = arith.constant 0 : i32
    %c0_i32_1 = arith.constant 0 : i32
    return %arg0, %arg1, %c0_i32, %c0_i32_0 : i32, i32, i32, i32
  }
  func.func @transform_1(%arg0: i32, %arg1: i32) -> (i32, i32, i32, i32) {
    %c0_i32 = arith.constant 0 : i32
    %c0_i32_0 = arith.constant 0 : i32
    %c0_i32_1 = arith.constant 0 : i32
    return %arg0, %arg1, %c0_i32, %c0_i32_0 : i32, i32, i32, i32
  }
  func.func @transform_2(%arg0: i32, %arg1: i32) -> (i32, i32, i32, i32) {
    %c0_i32 = arith.constant 0 : i32
    %c0_i32_0 = arith.constant 0 : i32
    %c0_i32_1 = arith.constant 0 : i32
    return %arg0, %arg1, %c0_i32, %c0_i32_0 : i32, i32, i32, i32
  }
  func.func @transform_3(%arg0: i32, %arg1: i32) -> (i32, i32, i32, i32) {
    %c0_i32 = arith.constant 0 : i32
    %c0_i32_0 = arith.constant 0 : i32
    %c0_i32_1 = arith.constant 0 : i32
    return %arg0, %arg1, %c0_i32, %c0_i32_0 : i32, i32, i32, i32
  }
  func.func @transform_4(%arg0: i32, %arg1: i32) -> (i32, i32) {
    %c0_i32 = arith.constant 0 : i32
    %c0_i32_0 = arith.constant 0 : i32
    %c0_i32_1 = arith.constant 0 : i32
    return %c0_i32, %c0_i32_0 : i32, i32
  }
  func.func @transform_5(%arg0: i32, %arg1: i32) -> (i32, i32) {
    %c0_i32 = arith.constant 0 : i32
    %c0_i32_0 = arith.constant 0 : i32
    %c0_i32_1 = arith.constant 0 : i32
    return %c0_i32, %c0_i32_0 : i32, i32
  }
  func.func @transform_6(%arg0: i32, %arg1: i32) -> (i32, i32) {
    %c0_i32 = arith.constant 0 : i32
    %c0_i32_0 = arith.constant 0 : i32
    %c0_i32_1 = arith.constant 0 : i32
    return %c0_i32, %c0_i32_0 : i32, i32
  }
  func.func @transform_7(%arg0: i32, %arg1: i32) -> (i32, i32) {
    %c0_i32 = arith.constant 0 : i32
    %c0_i32_0 = arith.constant 0 : i32
    %c0_i32_1 = arith.constant 0 : i32
    return %c0_i32, %c0_i32_0 : i32, i32
  }
  func.func @transform_8(%arg0: i32, %arg1: i32) -> (i32, i32) {
    %c0_i32 = arith.constant 0 : i32
    %c0_i32_0 = arith.constant 0 : i32
    %c0_i32_1 = arith.constant 0 : i32
    return %c0_i32, %c0_i32_0 : i32, i32
  }
  func.func @transform_9(%arg0: i32, %arg1: i32) -> (i32, i32) {
    %c0_i32 = arith.constant 0 : i32
    %c0_i32_0 = arith.constant 0 : i32
    %c0_i32_1 = arith.constant 0 : i32
    return %c0_i32, %c0_i32_0 : i32, i32
  }
  func.func @transform_10(%arg0: i32, %arg1: i32) -> (i32, i32, i32, i32) {
    %c0_i32 = arith.constant 0 : i32
    %c0_i32_0 = arith.constant 0 : i32
    %c0_i32_1 = arith.constant 0 : i32
    return %arg0, %arg1, %c0_i32, %c0_i32_0 : i32, i32, i32, i32
  }
}

</mosaic_0001>

<bundles_post_ra>
// kernel: basic_rfb_forward.8
= control target key start
LH: loop header
LB: loop body
LE: loop exit
PB: predicated region body
PF: predicated region fallthrough
CT: control target
= control target key end

     0   :  { %11 = vsyncpa [#allocation3], 0  ;;  %s1476_s0 = inlined_call_operand.hbm [shape: f32[2,16,16,64], index: 0, kind: input, shape index: {}]   ;;  %s1477_s1 = inlined_call_operand.vmem [shape: bf16[64,32], index: 1, kind: input, shape index: {}]   ;;  %s1478_s2 = inlined_call_operand.vmem [shape: f32[1,32], index: 2, kind: input, shape index: {}]   ;;  %s1479_s3 = inlined_call_operand.vmem [shape: bf16[2,16,16,16], index: 3, kind: output, shape index: {0}]   ;;  %s1480_s4 = inlined_call_operand.vmem [shape: bf16[2,16,16,8], index: 4, kind: output, shape index: {1}]   ;;  %s1481_s5 = inlined_call_operand.vmem [shape: bf16[2,16,16,8], index: 5, kind: output, shape index: {2}]  }
   0x1   :  { %13 = vsyncpa [#allocation3 + $0x1], 0  ;;  %s1148_s18 = smov 0   ;;  %s1150_s19 = smov 0  }
   0x2   :  { %s1152_s20 = smov 0   ;;  %s1154_s21 = smov 0  }
   0x3   :  { %s1156_s22 = smov 0   ;;  %s1158_s23 = smov 0  }
   0x4   :  { %s1160_s24 = smov 0   ;;  %s1162_s25 = smov 0  }
   0x5 LB: > { %s874_s26 = sadd.s32 4294967295, %s1112_s25   ;;  %s28_s27 = sadd.s32 1, %s1104_s23  ;;  %s1112_s25 = sphi %s1162_s25, %s19_s25   ;;  %s1108_s24 = sphi %s1160_s24, %s1496_s24   ;;  %s1104_s23 = sphi %s1158_s23, %s1495_s23   ;;  %s1100_s22 = sphi %s1156_s22, %s1494_s22   ;;  %s1096_s21 = sphi %s1154_s21, %s1493_s21   ;;  %s1092_s20 = sphi %s1152_s20, %s1492_s20   ;;  %s1088_s19 = sphi %s1150_s19, %s1491_s19   ;;  %s1084_s18 = sphi %s1148_s18, %s1490_s18  }
   0x6   : > { %p29_p0 = scmp.ge.s32.totalorder %s28_s27, 2  ;;  %s31_s28 = sadd.s32 1, %s1108_s24 }
   0x7   : > { %s40_s29 = sadd.s32 1, %s1092_s20  ;;  %p47_p1 = scmp.ne.s32.totalorder %s1092_s20, %s1088_s19 }
   0x8   : > { %s1498_s27 = smov (%p29_p0, %s28_s27), 0  ;;  %s1500_s28 = smov (!%p29_p0, %s31_s28), %s1108_s24 }
   0x9   : > { %1484 = sst [smem:[#allocation5_spill]] %s1498_s27  ;;  %s36_s30 = ssub.s32 %s1104_s23, %s1498_s27 }
   0xa   : > { %p48_p2 = scmp.eq.s32.totalorder %s1112_s25, 0  ;;  %p33_p3 = scmp.ge.s32.totalorder %s1500_s28, 2 }
   0xb   : > { %p53_p4 = scmp.ne.s32.totalorder %s1088_s19, %s1084_s18  ;;  %p54_p6 = scmp.eq.s32.totalorder %s874_s26, 0 }
   0xc   : > { %p1199_p5 = por %p48_p2, %p47_p1  ;;  %s1502_s28 = smov (%p33_p3, %s1500_s28), 0 }
   0xd   : > { %1486 = sst [smem:[#allocation6_spill]] %s1502_s28  ;;  %p1205_p7 = por %p54_p6, %p53_p4 }
   0xe   : > { %s35_s8 = ssub.s32 %s1108_s24, %s1502_s28  ;;  %p946_p8 = scmp.lt.s32.totalorder %s1112_s25, 4 }
   0xf   : > { %s37_s9 = sor.u32 %s36_s30, %s35_s8  ;;  %s209_s10 = sand.u32 1, %s1092_s20  }
  0x10   : > { %p38_p9 = scmp.eq.s32.totalorder %s37_s9, 0  ;;  %s878_s11 = sshll.u32 %s209_s10, 7 }
  0x11   : > { %s923_s12 = sshll.u32 %s1104_s23, 4  ;;  %s881_s14 = sshll.u32 %s1108_s24, 5 }
  0x12   : > { %s1215_s13 = scalar_select %p38_p9, %s1092_s20, %s40_s29  }
  0x13   : > { %s219_s15 = sadd.s32 %s923_s12, %s881_s14  ;;  %s213_s16 = scalar_lea.vmem [#allocation2], %s878_s11 }
  0x14   : > { %s224_s17 = sshll.u32 %s213_s16, 4  ;;  %s882_s18 = sshll.u32 %s219_s15, 3  ;;  %s225_s17 = int_to_ptr.vmem [resolvable:$true] %s224_s17 }
  0x15   : > { %s221_s28 = scalar_lea.hbm %s1476_s0, %s882_s18  ;;  %p943_p10 = pnand %p946_p8, %p1199_p5 }
  0x16   : > { %s222_s30 = sshll.u32 %s221_s28, 4  ;;  %p883_p11 = scmp.ge.s32.totalorder %s1112_s25, 1  ;;  %s223_s30 = int_to_ptr.hbm [resolvable:$true] %s222_s30 }
  0x17   : > { %s210_s8 = scalar_lea.sflag [#allocation3], %s209_s10  ;;  %s1114_s29 = smov 128  }
  0x18   : > { %s1115_s9 = smov 8   ;;  %p232_p12 = scmp.lt.s32.totalorder %s1112_s25, 5 }
  0x19   : > { %945 = dma.hbm_to_vmem [thread:$0]  (!%p943_p10), %s223_s30, 2048, %s225_s17, %s210_s8, %s1114_s29, %s1114_s29, %s1115_s9  }
  0x1a   : > { %p233_p13 = pnand %p883_p11, %p232_p12 }
  0x1b   : > { %s238_s11 = sand.u32 (!%p233_p13), 1, %s1088_s19  }
  0x1c   : > { %236 = sbr.rel (%p233_p13) target bundleno = 379 (0x17b), region = 32  ;;  %s884_s12 = sshll.u32 (!%p233_p13), %s238_s11, 7 }
  0x1d   : > { %s239_s14 = scalar_lea.sflag (!%p233_p13), [#allocation3], %s238_s11  ;;  %s1228_s27 = scalar_lea.vmem (!%p233_p13), [#allocation2], %s884_s12 }
  0x21   : > { %1079 = dma.done.wait (%p1205_p7), %s239_s14, 2048  }
  0x22   : > { %1081 = vsyncadd (%p1205_p7), %s239_s14, 4294965248  ;;  %v927_v0 = vld [vmem:[%s1477_s1 + $0x18] sm:$0xff]  ;;  %v926_v1 = vld [vmem:[%s1477_s1 + $0x10] sm:$0xff]  ;;  %vm390_vm0 = vcmask 523264   ;;  %s885_s26 = sshll.u32 %s1096_s21, 3  ;;  %p297_p0 = scmp.lt.s32.totalorder %s1100_s22, 1 }
  0x23   : > { %419 = vmatpush.bf16.msra.mxu0 %v927_v0  ;;  %928 = vmatpush.bf16.msra.mxu1 %v927_v0  ;;  %v925_v2 = vld [vmem:[%s1477_s1 + $0x8] sm:$0xff]  ;;  %v924_v3 = vld [vmem:[%s1477_s1] sm:$0xff]  ;;  %v332_v16 = vld [vmem:[%s1228_s27 + $0x10] sm:$0xff]  ;;  %p299_p1 = scmp.lt.s32.totalorder %s885_s26, 15  ;;  %vm496_vm1 = vcmask 125952   ;;  %s1117_s28 = smov 104  }
  0x24   : > { %930 = vmatpush.bf16.msra.mxu3 %v927_v0  ;;  %929 = vmatpush.bf16.msra.mxu2 %v927_v0  ;;  %v330_v4 = vld [vmem:[%s1228_s27] sm:$0xff]  ;;  %v331_v5 = vld [vmem:[%s1228_s27 + $0x8] sm:$0xff]  ;;  %v333_v17 = vld [vmem:[%s1228_s27 + $0x18] sm:$0xff]  ;;  %s1504_s22 = smov (!%p297_p0, %s1100_s22), 1  ;;  %vm577_vm2 = vcmask 60416  }
  0x25   : > { %v334_v6 = vld [vmem:[%s1228_s27 + $0x20] sm:$0xff]  ;;  %v335_v7 = vld [vmem:[%s1228_s27 + $0x28] sm:$0xff]  ;;  %v346_v12 = vpack.c.bf16 %v331_v5, %v330_v4  ;;  %v336_v18 = vld [vmem:[%s1228_s27 + $0x30] sm:$0xff]  ;;  %v347_v24 = vpack.c.bf16 %v333_v17, %v332_v16  ;;  %s1506_s26 = smov (!%p299_p1, %s885_s26), 15  ;;  %s887_s8 = sshll.u32 %s1504_s22, 5 }
  0x26   : > { %v342_v8 = vld [vmem:[%s1228_s27 + $0x60] sm:$0xff]  ;;  %v343_v9 = vld [vmem:[%s1228_s27 + $0x68] sm:$0xff]  ;;  %v348_v13 = vpack.c.bf16 %v335_v7, %v334_v6  ;;  %v337_v19 = vld [vmem:[%s1228_s27 + $0x38] sm:$0xff]  ;;  %s886_s30 = sshll.u32 %s1506_s26, 1  ;;  %s1116_s22 = smov 112  }
  0x27   : > { %420 = vmatpush.bf16.msra.mxu0 %v926_v1  ;;  %931 = vmatpush.bf16.msra.mxu1 %v926_v1  ;;  %v338_v10 = vld [vmem:[%s1228_s27 + $0x40] sm:$0xff]  ;;  %v339_v11 = vld [vmem:[%s1228_s27 + $0x48] sm:$0xff]  ;;  %v352_v14 = vpack.c.bf16 %v343_v9, %v342_v8  ;;  %v340_v20 = vld [vmem:[%s1228_s27 + $0x50] sm:$0xff]  ;;  %v349_v25 = vpack.c.bf16 %v337_v19, %v336_v18  ;;  %s303_s29 = sadd.s32 %s887_s8, %s886_s30 }
  0x28   : > { %933 = vmatpush.bf16.msra.mxu3 %v926_v1  ;;  %932 = vmatpush.bf16.msra.mxu2 %v926_v1  ;;  %v350_v15 = vpack.c.bf16 %v339_v11, %v338_v10  ;;  %v341_v21 = vld [vmem:[%s1228_s27 + $0x58] sm:$0xff]  ;;  %v344_v22 = vld [vmem:[%s1228_s27 + $0x70] sm:$0xff]  ;;  %v1276_v28 = vld [vmem:[%s1478_s2] ss:$0 sm:$0xff]  ;;  %s1278_s12 = sshll.u32 %s303_s29, 2 }
  0x29   : > { %v345_v23 = vld [vmem:[%s1228_s27 + $0x78] sm:$0xff]  ;;  %v351_v26 = vpack.c.bf16 %v341_v21, %v340_v20  ;;  %s1286_s27 = scalar_lea.vmem %s1479_s3, %s1278_s12  ;;  %s1380_s15 = scalar_lea.vmem %s1480_s4, %s1278_s12 }
  0x2a   : > { %v353_v27 = vpack.c.bf16 %v345_v23, %v344_v22  ;;  %s1388_s17 = scalar_lea.vmem %s1481_s5, %s1278_s12 }
  0x2b   : > { %421 = vmatpush.bf16.msra.mxu0 %v925_v2  ;;  %934 = vmatpush.bf16.msra.mxu1 %v925_v2 }
  0x2c   : > { %936 = vmatpush.bf16.msra.mxu3 %v925_v2  ;;  %935 = vmatpush.bf16.msra.mxu2 %v925_v2 }
  0x2f   : > { %422 = vmatpush.bf16.msra.mxu0 %v924_v3  ;;  %937 = vmatpush.bf16.msra.mxu1 %v924_v3 }
  0x30   : > { %939 = vmatpush.bf16.msra.mxu3 %v924_v3  ;;  %938 = vmatpush.bf16.msra.mxu2 %v924_v3 }
  0x32   : > { %913 = vmatmul.msk.bf16.vlgmr.msra.gmra.mxu0 %vm390_vm0, %v346_v12  ;;  %915 = vmatmul.msk.bf16.vlgmr.msra.gmra.mxu1 %vm390_vm0, %v348_v13 }
  0x33   : > { %919 = vmatmul.msk.bf16.vlgmr.msra.gmra.mxu3 %vm390_vm0, %v352_v14  ;;  %917 = vmatmul.msk.bf16.vlgmr.msra.gmra.mxu2 %vm390_vm0, %v350_v15 }
  0x42   : > { %914 = vmatmul.msk.bf16.gmra.mxu0 %vm390_vm0, %v347_v24  ;;  %916 = vmatmul.msk.bf16.gmra.mxu1 %vm390_vm0, %v349_v25 }
  0x43   : > { %918 = vmatmul.msk.bf16.gmra.mxu2 %vm390_vm0, %v351_v26  ;;  %920 = vmatmul.msk.bf16.gmra.mxu3 %vm390_vm0, %v353_v27 }
  0xaf   : > { %v424_v29 = vpop.f32.mrf.mxu0  ;;  %v434_v30 = vpop.f32.mrf.mxu1 }
  0xb0   : > { %v425_v31 = vadd.f32 %v1276_v28, %v424_v29  ;;  %v435_v32 = vadd.f32 %v1276_v28, %v434_v30 }
  0xb2   : > { %v464_v33 = vmax.f32 %v425_v31, 0.0  ;;  %v468_v34 = vmax.f32 %v435_v32, 0.0 }
  0xb4   : > { %v480_v35 = vpack.c.bf16 %v464_v33, %v464_v33  ;;  %v484_v36 = vpack.c.bf16 %v468_v34, %v468_v34 }
  0xb6   : > { %497 = vst.msk [vmem:[%s1286_s27] sm:$0xf] %vm496_vm1, %v480_v35  ;;  %v454_v37 = vpop.f32.mrf.mxu3  ;;  %537 = vrot.lane.b32.xlu2 %v484_v36, %s1116_s22  ;;  %594 = vrot.lane.b32.xlu1 %v480_v35, %s1117_s28  ;;  %v444_v38 = vpop.f32.mrf.mxu2 }
  0xb7   : > { %501 = vst.msk [vmem:[%s1286_s27 + $0x10] sm:$0xf] %vm496_vm1, %v484_v36  ;;  %v455_v39 = vadd.f32 %v1276_v28, %v454_v37  ;;  %529 = vrot.lane.b32.xlu0 %v480_v35, %s1116_s22  ;;  %v426_v40 = vpop.f32.mrf.mxu0  ;;  %v445_v41 = vadd.f32 %v1276_v28, %v444_v38  ;;  %v436_v42 = vpop.f32.mrf.mxu1 }
  0xb8   : > { %v427_v43 = vadd.f32 %v1276_v28, %v426_v40  ;;  %v437_v44 = vadd.f32 %v1276_v28, %v436_v42 }
  0xb9   : > { %v476_v45 = vmax.f32 %v455_v39, 0.0  ;;  %v472_v46 = vmax.f32 %v445_v41, 0.0 }
  0xba   : > { %v465_v47 = vmax.f32 %v427_v43, 0.0  ;;  %v469_v48 = vmax.f32 %v437_v44, 0.0 }
  0xbb   : > { %v492_v49 = vpack.c.bf16 %v476_v45, %v476_v45  ;;  %v488_v50 = vpack.c.bf16 %v472_v46, %v472_v46 }
  0xbc   : > { %v1299_v51 = vpack.c.bf16 %v465_v47, %v465_v47  ;;  %v1301_v52 = vpack.c.bf16 %v469_v48, %v469_v48 }
  0xbd   : > { %509 = vst.msk [vmem:[%s1286_s27 + $0x30] sm:$0xf] %vm496_vm1, %v492_v49 }
  0xbe   : > { %498 = vst.msk [vmem:[%s1286_s27 + $0x4] sm:$0xf] %vm496_vm1, %v1299_v51  ;;  %v456_v53 = vpop.f32.mrf.mxu3  ;;  %602 = vrot.lane.b32.xlu2 %v484_v36, %s1117_s28  ;;  %618 = vrot.lane.b32.xlu1 %v492_v49, %s1117_s28  ;;  %v446_v54 = vpop.f32.mrf.mxu2 }
  0xbf   : > { %505 = vst.msk [vmem:[%s1286_s27 + $0x20] sm:$0xf] %vm496_vm1, %v488_v50  ;;  %v457_v55 = vadd.f32 %v1276_v28, %v456_v53  ;;  %553 = vrot.lane.b32.xlu0 %v492_v49, %s1116_s22  ;;  %v447_v56 = vadd.f32 %v1276_v28, %v446_v54  ;;  %v429_v57 = vpop.f32.mrf.mxu0  ;;  %v439_v58 = vpop.f32.mrf.mxu1 }
  0xc0   : > { %v430_v59 = vadd.f32 %v1276_v28, %v429_v57  ;;  %502 = vst.msk [vmem:[%s1286_s27 + $0x14] sm:$0xf] %vm496_vm1, %v1301_v52  ;;  %v440_v60 = vadd.f32 %v1276_v28, %v439_v58 }
  0xc1   : > { %v477_v61 = vmax.f32 %v457_v55, 0.0  ;;  %v473_v62 = vmax.f32 %v447_v56, 0.0 }
  0xc2   : > { %v466_v63 = vmax.f32 %v430_v59, 0.0  ;;  %v470_v0 = vmax.f32 %v440_v60, 0.0 }
  0xc3   : > { %v493_v1 = vpack.c.bf16 %v477_v61, %v477_v61  ;;  %v489_v2 = vpack.c.bf16 %v473_v62, %v473_v62 }
  0xc4   : > { %v482_v3 = vpack.c.bf16 %v466_v63, %v466_v63  ;;  %v486_v4 = vpack.c.bf16 %v470_v0, %v470_v0 }
  0xc5   : > { %510 = vst.msk [vmem:[%s1286_s27 + $0x34] sm:$0xf] %vm496_vm1, %v493_v1 }
  0xc6   : > { %506 = vst.msk [vmem:[%s1286_s27 + $0x24] sm:$0xf] %vm496_vm1, %v489_v2  ;;  %545 = vrot.lane.b32.xlu2 %v488_v50, %s1116_s22  ;;  %555 = vrot.lane.b32.xlu1 %v493_v1, %s1116_s22  ;;  %v449_v5 = vpop.f32.mrf.mxu2  ;;  %v459_v6 = vpop.f32.mrf.mxu3 }
  0xc7   : > { %610 = vrot.lane.b32.xlu0 %v488_v50, %s1117_s28  ;;  %499 = vst.msk [vmem:[%s1286_s27 + $0x8] sm:$0xf] %vm496_vm1, %v482_v3  ;;  %v431_v7 = vpop.f32.mrf.mxu0  ;;  %v441_v8 = vpop.f32.mrf.mxu1  ;;  %v450_v9 = vadd.f32 %v1276_v28, %v449_v5  ;;  %v460_v10 = vadd.f32 %v1276_v28, %v459_v6 }
  0xc8   : > { %v432_v11 = vadd.f32 %v1276_v28, %v431_v7  ;;  %503 = vst.msk [vmem:[%s1286_s27 + $0x18] sm:$0xf] %vm496_vm1, %v486_v4  ;;  %v442_v12 = vadd.f32 %v1276_v28, %v441_v8 }
  0xc9   : > { %v474_v13 = vmax.f32 %v450_v9, 0.0  ;;  %v478_v16 = vmax.f32 %v460_v10, 0.0 }
  0xca   : > { %v467_v14 = vmax.f32 %v432_v11, 0.0  ;;  %v471_v15 = vmax.f32 %v442_v12, 0.0 }
  0xcb   : > { %v490_v17 = vpack.c.bf16 %v474_v13, %v474_v13  ;;  %v494_v20 = vpack.c.bf16 %v478_v16, %v478_v16 }
  0xcc   : > { %v483_v18 = vpack.c.bf16 %v467_v14, %v467_v14  ;;  %v487_v19 = vpack.c.bf16 %v471_v15, %v471_v15 }
  0xcd   : > { %507 = vst.msk [vmem:[%s1286_s27 + $0x28] sm:$0xf] %vm496_vm1, %v490_v17 }
  0xce   : > { %539 = vrot.lane.b32.xlu2 %v1301_v52, %s1116_s22  ;;  %612 = vrot.lane.b32.xlu1 %v489_v2, %s1117_s28  ;;  %500 = vst.msk [vmem:[%s1286_s27 + $0xc] sm:$0xf] %vm496_vm1, %v483_v18  ;;  %v451_v21 = vpop.f32.mrf.mxu2  ;;  %v461_v22 = vpop.f32.mrf.mxu3 }
  0xcf   : > { %531 = vrot.lane.b32.xlu0 %v1299_v51, %s1116_s22  ;;  %504 = vst.msk [vmem:[%s1286_s27 + $0x1c] sm:$0xf] %vm496_vm1, %v487_v19  ;;  %v452_v23 = vadd.f32 %v1276_v28, %v451_v21  ;;  %v462_v24 = vadd.f32 %v1276_v28, %v461_v22 }
  0xd0   : > { %511 = vst.msk [vmem:[%s1286_s27 + $0x38] sm:$0xf] %vm496_vm1, %v494_v20 }
  0xd1   : > { %v475_v25 = vmax.f32 %v452_v23, 0.0  ;;  %v479_v26 = vmax.f32 %v462_v24, 0.0 }
  0xd3   : > { %v491_v27 = vpack.c.bf16 %v475_v25, %v475_v25  ;;  %v495_v29 = vpack.c.bf16 %v479_v26, %v479_v26 }
  0xd5   : > { %508 = vst.msk [vmem:[%s1286_s27 + $0x2c] sm:$0xf] %vm496_vm1, %v491_v27 }
  0xd6   : > { %596 = vrot.lane.b32.xlu2 %v1299_v51, %s1117_s28  ;;  %533 = vrot.lane.b32.xlu1 %v482_v3, %s1116_s22  ;;  %512 = vst.msk [vmem:[%s1286_s27 + $0x3c] sm:$0xf] %vm496_vm1, %v495_v29 }
  0xd7   : > { %604 = vrot.lane.b32.xlu0 %v1301_v52, %s1117_s28 }
  0xde   : > { %557 = vrot.lane.b32.xlu2 %v494_v20, %s1116_s22  ;;  %606 = vrot.lane.b32.xlu1 %v486_v4, %s1117_s28 }
  0xdf   : > { %547 = vrot.lane.b32.xlu0 %v489_v2, %s1116_s22 }
  0xe6   : > { %614 = vrot.lane.b32.xlu2 %v490_v17, %s1117_s28  ;;  %549 = vrot.lane.b32.xlu1 %v490_v17, %s1116_s22 }
  0xe7   : > { %541 = vrot.lane.b32.xlu0 %v486_v4, %s1116_s22 }
  0xee   : > { %608 = vrot.lane.b32.xlu2 %v487_v19, %s1117_s28  ;;  %535 = vrot.lane.b32.xlu1 %v483_v18, %s1116_s22 }
  0xef   : > { %598 = vrot.lane.b32.xlu0 %v482_v3, %s1117_s28 }
  0xf6   : > { %551 = vrot.lane.b32.xlu2 %v491_v27, %s1116_s22  ;;  %543 = vrot.lane.b32.xlu1 %v487_v19, %s1116_s22 }
  0xf7   : > { %559 = vrot.lane.b32.xlu0 %v495_v29, %s1116_s22 }
  0xfe   : > { %620 = vrot.lane.b32.xlu2 %v493_v1, %s1117_s28  ;;  %600 = vrot.lane.b32.xlu1 %v483_v18, %s1117_s28 }
  0xff   : > { %616 = vrot.lane.b32.xlu0 %v491_v27, %s1117_s28 }
 0x106   : > { %624 = vrot.lane.b32.xlu1 %v495_v29, %s1117_s28 }
 0x107   : > { %622 = vrot.lane.b32.xlu0 %v494_v20, %s1117_s28 }
 0x110   : > { %v538_v28 = vpop.permute.xlu2 %537 }
 0x111   : > { %582 = vst.msk [vmem:[%s1380_s15 + $0x10] sm:$0xf] %vm577_vm2, %v538_v28 }
 0x118   : > { %v603_v30 = vpop.permute.xlu2 %602 }
 0x119   : > { %646 = vst.msk [vmem:[%s1388_s17 + $0x10] sm:$0xf] %vm577_vm2, %v603_v30 }
 0x120   : > { %v546_v31 = vpop.permute.xlu2 %545 }
 0x121   : > { %586 = vst.msk [vmem:[%s1380_s15 + $0x20] sm:$0xf] %vm577_vm2, %v546_v31 }
 0x128   : > { %v540_v32 = vpop.permute.xlu2 %539  ;;  %v595_v33 = vpop.permute.xlu1 %594 }
 0x129   : > { %583 = vst.msk [vmem:[%s1380_s15 + $0x14] sm:$0xf] %vm577_vm2, %v540_v32  ;;  %v530_v34 = vpop.permute.xlu0 %529 }
 0x12a   : > { %642 = vst.msk [vmem:[%s1388_s17] sm:$0xf] %vm577_vm2, %v595_v33 }
 0x12b   : > { %578 = vst.msk [vmem:[%s1380_s15] sm:$0xf] %vm577_vm2, %v530_v34 }
 0x130   : > { %v597_v35 = vpop.permute.xlu2 %596  ;;  %v619_v36 = vpop.permute.xlu1 %618 }
 0x131   : > { %643 = vst.msk [vmem:[%s1388_s17 + $0x4] sm:$0xf] %vm577_vm2, %v597_v35  ;;  %v554_v37 = vpop.permute.xlu0 %553 }
 0x132   : > { %654 = vst.msk [vmem:[%s1388_s17 + $0x30] sm:$0xf] %vm577_vm2, %v619_v36 }
 0x133   : > { %590 = vst.msk [vmem:[%s1380_s15 + $0x30] sm:$0xf] %vm577_vm2, %v554_v37 }
 0x138   : > { %v558_v38 = vpop.permute.xlu2 %557  ;;  %v556_v39 = vpop.permute.xlu1 %555 }
 0x139   : > { %592 = vst.msk [vmem:[%s1380_s15 + $0x38] sm:$0xf] %vm577_vm2, %v558_v38  ;;  %v611_v40 = vpop.permute.xlu0 %610 }
 0x13a   : > { %591 = vst.msk [vmem:[%s1380_s15 + $0x34] sm:$0xf] %vm577_vm2, %v556_v39 }
 0x13b   : > { %650 = vst.msk [vmem:[%s1388_s17 + $0x20] sm:$0xf] %vm577_vm2, %v611_v40 }
 0x140   : > { %v615_v41 = vpop.permute.xlu2 %614  ;;  %v613_v42 = vpop.permute.xlu1 %612 }
 0x141   : > { %652 = vst.msk [vmem:[%s1388_s17 + $0x28] sm:$0xf] %vm577_vm2, %v615_v41  ;;  %v532_v43 = vpop.permute.xlu0 %531 }
 0x142   : > { %651 = vst.msk [vmem:[%s1388_s17 + $0x24] sm:$0xf] %vm577_vm2, %v613_v42 }
 0x143   : > { %579 = vst.msk [vmem:[%s1380_s15 + $0x4] sm:$0xf] %vm577_vm2, %v532_v43 }
 0x148   : > { %v609_v44 = vpop.permute.xlu2 %608  ;;  %v534_v45 = vpop.permute.xlu1 %533 }
 0x149   : > { %649 = vst.msk [vmem:[%s1388_s17 + $0x1c] sm:$0xf] %vm577_vm2, %v609_v44  ;;  %v605_v46 = vpop.permute.xlu0 %604 }
 0x14a   : > { %580 = vst.msk [vmem:[%s1380_s15 + $0x8] sm:$0xf] %vm577_vm2, %v534_v45 }
 0x14b   : > { %647 = vst.msk [vmem:[%s1388_s17 + $0x14] sm:$0xf] %vm577_vm2, %v605_v46 }
 0x150   : > { %v552_v47 = vpop.permute.xlu2 %551  ;;  %v607_v48 = vpop.permute.xlu1 %606 }
 0x151   : > { %589 = vst.msk [vmem:[%s1380_s15 + $0x2c] sm:$0xf] %vm577_vm2, %v552_v47  ;;  %v548_v49 = vpop.permute.xlu0 %547 }
 0x152   : > { %648 = vst.msk [vmem:[%s1388_s17 + $0x18] sm:$0xf] %vm577_vm2, %v607_v48 }
 0x153   : > { %587 = vst.msk [vmem:[%s1380_s15 + $0x24] sm:$0xf] %vm577_vm2, %v548_v49 }
 0x158   : > { %v621_v50 = vpop.permute.xlu2 %620  ;;  %v550_v51 = vpop.permute.xlu1 %549 }
 0x159   : > { %655 = vst.msk [vmem:[%s1388_s17 + $0x34] sm:$0xf] %vm577_vm2, %v621_v50  ;;  %v542_v52 = vpop.permute.xlu0 %541 }
 0x15a   : > { %588 = vst.msk [vmem:[%s1380_s15 + $0x28] sm:$0xf] %vm577_vm2, %v550_v51 }
 0x15b   : > { %584 = vst.msk [vmem:[%s1380_s15 + $0x18] sm:$0xf] %vm577_vm2, %v542_v52 }
 0x160   : > { %v536_v53 = vpop.permute.xlu1 %535 }
 0x161   : > { %581 = vst.msk [vmem:[%s1380_s15 + $0xc] sm:$0xf] %vm577_vm2, %v536_v53  ;;  %v599_v54 = vpop.permute.xlu0 %598 }
 0x162   : > { %644 = vst.msk [vmem:[%s1388_s17 + $0x8] sm:$0xf] %vm577_vm2, %v599_v54 }
 0x168   : > { %v544_v55 = vpop.permute.xlu1 %543 }
 0x169   : > { %585 = vst.msk [vmem:[%s1380_s15 + $0x1c] sm:$0xf] %vm577_vm2, %v544_v55  ;;  %v560_v56 = vpop.permute.xlu0 %559 }
 0x16a   : > { %593 = vst.msk [vmem:[%s1380_s15 + $0x3c] sm:$0xf] %vm577_vm2, %v560_v56 }
 0x170   : > { %v601_v57 = vpop.permute.xlu1 %600 }
 0x171   : > { %645 = vst.msk [vmem:[%s1388_s17 + $0xc] sm:$0xf] %vm577_vm2, %v601_v57  ;;  %v617_v58 = vpop.permute.xlu0 %616 }
 0x172   : > { %653 = vst.msk [vmem:[%s1388_s17 + $0x2c] sm:$0xf] %vm577_vm2, %v617_v58 }
 0x178   : > { %v625_v59 = vpop.permute.xlu1 %624 }
 0x179   : > { %657 = vst.msk [vmem:[%s1388_s17 + $0x3c] sm:$0xf] %vm577_vm2, %v625_v59  ;;  %v623_v60 = vpop.permute.xlu0 %622 }
 0x17a   : > { %656 = vst.msk [vmem:[%s1388_s17 + $0x38] sm:$0xf] %vm577_vm2, %v623_v60 }
 0x17b PF: > { %s19_s25 = sadd.s32 1, %s1112_s25   ;;  %s1488_s26 = sld [smem:[#allocation5_spill]] }
 0x17c   : > { %p16_p2 = scmp.ge.s32.totalorder %s19_s25, 6   ;;  %s1489_s30 = sld [smem:[#allocation6_spill]] }
 0x17d   : > { %s1490_s18 = smov %s1088_s19  ;;  %s1491_s19 = smov %s1092_s20 }
 0x17e   : > { %s1492_s20 = smov %s1215_s13  ;;  %s1493_s21 = smov %s1104_s23 }
 0x17f   : > { %s1494_s22 = smov %s1108_s24  ;;  %18 = sbr.rel (!%p16_p2) target bundleno = 5 (0x5), region = 96 }
 0x181   : > { %s1495_s23 = smov %s1488_s26 }
 0x182   : > { %s1496_s24 = smov %s1489_s30 }
 0x184   :  { %744 = vsyncpa [#allocation3], 1 }
 0x185   :  { %746 = vsyncpa [#allocation3 + $0x1], 1 }

// kernel: basic_rfb_forward.12
= control target key start
LH: loop header
LB: loop body
LE: loop exit
PB: predicated region body
PF: predicated region fallthrough
CT: control target
= control target key end

     0   :  { %s1778_s12 = smov 0   ;;  %s1780_s13 = smov 0   ;;  %s2457_s0 = inlined_call_operand.vmem [shape: bf16[2,18,18,8], index: 0, kind: input, shape index: {}]   ;;  %s2458_s1 = inlined_call_operand.vmem [shape: bf16[3,3,8,12], index: 1, kind: input, shape index: {}]   ;;  %s2459_s2 = inlined_call_operand.vmem [shape: f32[1,12], index: 2, kind: input, shape index: {}]   ;;  %s2460_s3 = inlined_call_operand.vmem [shape: bf16[2,16,16,12], index: 3, kind: output, shape index: {}]  }
   0x1   :  { %s1782_s14 = smov 0   ;;  %s1784_s15 = smov 0  }
   0x2   :  { %s1786_s16 = smov 0  }
   0x3 LB: > { %s22_s17 = sadd.s32 1, %s1748_s14  ;;  %s25_s18 = sadd.s32 1, %s1752_s15  ;;  %s1756_s16 = sphi %s1786_s16, %s13_s16   ;;  %s1752_s15 = sphi %s1784_s15, %s2468_s15   ;;  %s1748_s14 = sphi %s1782_s14, %s2467_s14   ;;  %s1744_s13 = sphi %s1780_s13, %s2466_s13   ;;  %s1740_s12 = sphi %s1778_s12, %s2465_s12  }
   0x4   : > { %p23_p0 = scmp.ge.s32.totalorder %s22_s17, 2  ;;  %p1521_p1 = scmp.ge.s32.totalorder %s1756_s16, 1 }
   0x5   : > { %p151_p2 = scmp.lt.s32.totalorder %s1756_s16, 5 }
   0x6   : > { %s2470_s17 = smov (%p23_p0, %s22_s17), 0  ;;  %s2472_s18 = smov (!%p23_p0, %s25_s18), %s1752_s15 }
   0x7   : > { %p152_p3 = pnand %p1521_p1, %p151_p2  ;;  %p27_p4 = scmp.ge.s32.totalorder %s2472_s18, 2 }
   0x8   : > { %p180_p5 = scmp.lt.s32.totalorder (!%p152_p3), %s1744_s13, 1  ;;  %s1662_s23 = smul.u32 (!%p152_p3), 96, %s1740_s12 }
   0x9   : > { %s2474_s18 = smov (%p27_p4, %s2472_s18), 0  ;;  %155 = sbr.rel (%p152_p3) target bundleno = 468 (0x1d4), region = 32 }
   0xe   : > { %v1530_v0 = vld [vmem:[%s2458_s1 + $0x4] sm:$0xf]  ;;  %vm478_vm0 = vcmask 1043456   ;;  %s2476_s13 = smov (!%p180_p5, %s1744_s13), 1  ;;  %v1587_v2 = vld [vmem:[%s2458_s1 + $0x8] sm:$0xf] }
   0xf   : > { %v480_v1 = vsel %vm478_vm0, %v1530_v0, 0  ;;  %v765_v3 = vsel %vm478_vm0, %v1587_v2, 0  ;;  %s1676_s24 = smul.u32 216, %s2476_s13  ;;  %v1596_v4 = vld [vmem:[%s2458_s1 + $0xc] sm:$0xf]  ;;  %vm453_vm3 = vcmask 64512  }
  0x10   : > { %1673 = vmatpush.bf16.msra.mxu1 %v480_v1  ;;  %1674 = vmatpush.bf16.msra.mxu2 %v480_v1  ;;  %v231_v5 = vld [vmem:[%s2458_s1] sm:$0xf]  ;;  %v843_v6 = vsel %vm478_vm0, %v1596_v4, 0  ;;  %v1609_v8 = vld [vmem:[%s2458_s1 + $0x10] sm:$0xf]  ;;  %vm655_vm5 = vcmask 1042432  }
  0x11   : > { %1675 = vmatpush.bf16.msra.mxu3 %v480_v1  ;;  %489 = vmatpush.bf16.msra.mxu0 %v480_v1  ;;  %v596_v7 = vsel %vm478_vm0, %v231_v5, 0  ;;  %s184_s6 = scalar_lea.vmem %s2457_s0, %s1676_s24  ;;  %v943_v9 = vsel %vm478_vm0, %v1609_v8, 0  ;;  %vm232_vm1 = vsmask.f32 3328  ;;  %vm233_vm2 = vsmask.f32 7440 }
  0x12   : > { %s1837_s7 = scalar_lea.vmem %s184_s6, %s1662_s23  ;;  %vm1875_vm4 = vmor %vm232_vm1, %vm233_vm2  ;;  %vm656_vm6 = vcmask 1046532   ;;  %s1523_s23 = sshll.u32 %s1740_s12, 3  ;;  %vm1408_vm8 = vcmask 93184  }
  0x13   : > { %v1840_v10 = vld [vmem:[%s1837_s7 + $0x18] sm:$0xf]  ;;  %v1843_v11 = vld [vmem:[%s1837_s7 + $0x1c] sm:$0xf]  ;;  %v1846_v12 = vld [vmem:[%s1837_s7 + $0x20] sm:$0x1] }
  0x14   : > { %774 = vmatpush.bf16.msrb.mxu2 %v765_v3  ;;  %605 = vmatpush.bf16.msrb.mxu1 %v596_v7  ;;  %v284_v13 = vshrl.u32 %v1840_v10, 16  ;;  %v287_v14 = vshll.u32 %v1840_v10, 16  ;;  %v293_v15 = vshll.u32 %v1843_v11, 16  ;;  %v297_v16 = vshrl.u32 %v1843_v11, 16  ;;  %v1853_v17 = vld [vmem:[%s1837_s7 + $0x30] sm:$0xf]  ;;  %vm2029_vm7 = vmor %vm655_vm5, %vm656_vm6 }
  0x15   : > { %852 = vmatpush.bf16.msrb.mxu3 %v843_v6  ;;  %952 = vmatpush.bf16.msrb.mxu0 %v943_v9  ;;  %v303_v18 = vshll.u32 %v1846_v12, 16  ;;  %v1857_v19 = vld [vmem:[%s1837_s7 + $0x34] sm:$0xf]  ;;  %v1860_v20 = vld [vmem:[%s1837_s7 + $0x38] sm:$0x1]  ;;  %v332_v21 = vshrl.u32 %v1853_v17, 16 }
  0x16   : > { %v286_v22 = vrot.slane %v284_v13, 4  ;;  %v289_v23 = vrot.slane %v287_v14, 5  ;;  %v295_v24 = vrot.slane %v293_v15, 5  ;;  %v299_v25 = vrot.slane %v297_v16, 4  ;;  %v1864_v26 = vld [vmem:[%s1837_s7 + $0x48] sm:$0xf] }
  0x17   : > { %v305_v27 = vrot.slane %v303_v18, 5  ;;  %v334_v28 = vrot.slane %v332_v21, 4  ;;  %v335_v29 = vshll.u32 %v1853_v17, 16  ;;  %v341_v30 = vshll.u32 %v1857_v19, 16  ;;  %v1871_v35 = vld [vmem:[%s1837_s7 + $0x4c] sm:$0xf] }
  0x18   : > { %v290_v31 = vor.u32 %v289_v23, %v286_v22  ;;  %v300_v32 = vor.u32 %v299_v25, %v295_v24  ;;  %v345_v33 = vshrl.u32 %v1857_v19, 16  ;;  %v351_v34 = vshll.u32 %v1860_v20, 16  ;;  %v1882_v46 = vld [vmem:[%s1837_s7 + $0x50] sm:$0x1]  ;;  %v1891_v54 = vld [vmem:[%s1837_s7] sm:$0xf] }
  0x19   : > { %v337_v37 = vrot.slane %v335_v29, 5  ;;  %v343_v38 = vrot.slane %v341_v30, 5  ;;  %v380_v39 = vshrl.u32 %v1864_v26, 16  ;;  %v383_v40 = vshll.u32 %v1864_v26, 16  ;;  %v1899_v2 = vld [vmem:[%s1837_s7 + $0x4] sm:$0xf] }
  0x1a   : > { %v291_v41 = vrot.slane %v290_v31, 4  ;;  %v301_v42 = vrot.slane %v300_v32, 4  ;;  %v347_v43 = vrot.slane %v345_v33, 4  ;;  %v353_v44 = vrot.slane %v351_v34, 5  ;;  %v1905_v8 = vld [vmem:[%s1837_s7 + $0x8] sm:$0x1] }
  0x1b   : > { %v338_v45 = vor.u32 %v337_v37, %v334_v28  ;;  %v382_v47 = vrot.slane %v380_v39, 4  ;;  %v385_v48 = vrot.slane %v383_v40, 5  ;;  %v389_v49 = vshll.u32 %v1871_v35, 16  ;;  %v1913_v16 = vld [vmem:[%s1837_s7 + $0x24] sm:$0xf]  ;;  %p188_p6 = scmp.lt.s32.totalorder %s1523_s23, 15 }
  0x1c   : > { %v296_v50 = vsel %vm1875_vm4, %v291_v41, %v295_v24  ;;  %v306_v51 = vsel %vm1875_vm4, %v301_v42, %v305_v27  ;;  %v348_v52 = vor.u32 %v347_v43, %v343_v38  ;;  %v393_v53 = vshrl.u32 %v1871_v35, 16  ;;  %v1922_v29 = vld [vmem:[%s1837_s7 + $0x28] sm:$0xf]  ;;  %v1927_v33 = vld [vmem:[%s1837_s7 + $0x2c] sm:$0x1]  ;;  %s1525_s25 = sshll.u32 %s2476_s13, 5 }
  0x1d   : > { %v433_v55 = vunpack.c.l.b16 %v296_v50  ;;  %v434_v56 = vunpack.c.l.b16 %v306_v51  ;;  %v339_v57 = vrot.slane %v338_v45, 4  ;;  %v386_v58 = vor.u32 %v385_v48, %v382_v47  ;;  %v1934_v41 = vld [vmem:[%s1837_s7 + $0x3c] sm:$0xf]  ;;  %s2478_s23 = smov (!%p188_p6, %s1523_s23), 15 }
  0x1e   : > { %v349_v59 = vrot.slane %v348_v52, 4  ;;  %v391_v60 = vrot.slane %v389_v49, 5  ;;  %v395_v61 = vrot.slane %v393_v53, 4  ;;  %v399_v62 = vshll.u32 %v1882_v46, 16  ;;  %s1524_s24 = sshll.u32 %s2478_s23, 1 }
  0x1f   : > { %v1894_v63 = vpack.c.b16 %v434_v56, %v433_v55  ;;  %v344_v0 = vsel %vm1875_vm4, %v339_v57, %v343_v38  ;;  %v387_v1 = vrot.slane %v386_v58, 4  ;;  %v236_v3 = vshrl.u32 %v1891_v54, 16  ;;  %v1942_v55 = vld [vmem:[%s1837_s7 + $0x40] sm:$0xf]  ;;  %s192_s27 = sadd.s32 %s1525_s25, %s1524_s24 }
  0x20   : > { %v354_v4 = vsel %vm1875_vm4, %v349_v59, %v353_v44  ;;  %v437_v5 = vunpack.c.l.b16 %v344_v0  ;;  %v396_v6 = vor.u32 %v395_v61, %v391_v60  ;;  %v401_v7 = vrot.slane %v399_v62, 5  ;;  %v1954_v62 = vld [vmem:[%s1837_s7 + $0x54] sm:$0xf]  ;;  %s1526_s28 = sshll.u32 %s192_s27, 2 }
  0x21   : > { %1533 = vmatmul.msk.bf16.vlgmr.msra.gmra.mxu1 %vm453_vm3, %v1894_v63  ;;  %v438_v9 = vunpack.c.l.b16 %v354_v4  ;;  %v392_v13 = vsel %vm1875_vm4, %v387_v1, %v391_v60  ;;  %v238_v14 = vrot.slane %v236_v3, 4  ;;  %v239_v15 = vshll.u32 %v1891_v54, 16  ;;  %v1950_v60 = vld [vmem:[%s1837_s7 + $0x44] sm:$0x1]  ;;  %s2379_s30 = scalar_lea.vmem %s2460_s3, %s1526_s28 }
  0x22   : > { %v397_v18 = vrot.slane %v396_v6, 4  ;;  %v441_v21 = vunpack.c.l.b16 %v392_v13  ;;  %v245_v22 = vshll.u32 %v1899_v2, 16  ;;  %v249_v23 = vshrl.u32 %v1899_v2, 16 }
  0x23   : > { %v1917_v24 = vpack.c.b16 %v438_v9, %v437_v5  ;;  %v241_v25 = vrot.slane %v239_v15, 5  ;;  %v255_v27 = vshll.u32 %v1905_v8, 16  ;;  %v663_v28 = vrot.slane %v1905_v8, 5 }
  0x24   : > { %v402_v30 = vsel %vm1875_vm4, %v397_v18, %v401_v7  ;;  %v247_v31 = vrot.slane %v245_v22, 5  ;;  %v251_v32 = vrot.slane %v249_v23, 4  ;;  %v308_v34 = vshrl.u32 %v1913_v16, 16 }
  0x25   : > { %1535 = vmatmul.msk.bf16.vlgmr.msra.gmra.mxu2 %vm453_vm3, %v1917_v24  ;;  %v442_v37 = vunpack.c.l.b16 %v402_v30  ;;  %v242_v38 = vor.u32 %v241_v25, %v238_v14  ;;  %v257_v39 = vrot.slane %v255_v27, 5  ;;  %v311_v40 = vshll.u32 %v1913_v16, 16  ;;  %v1965_v27 = vld [vmem:[%s1837_s7 + $0x58] sm:$0xf]  ;;  %v1968_v30 = vld [vmem:[%s1837_s7 + $0x5c] sm:$0x1] }
  0x26   : > { %v252_v42 = vor.u32 %v251_v32, %v247_v31  ;;  %v310_v43 = vrot.slane %v308_v34, 4  ;;  %v317_v44 = vshll.u32 %v1922_v29, 16  ;;  %v321_v45 = vshrl.u32 %v1922_v29, 16 }
  0x27   : > { %v1938_v47 = vpack.c.b16 %v442_v37, %v441_v21  ;;  %v243_v48 = vrot.slane %v242_v38, 4  ;;  %v313_v49 = vrot.slane %v311_v40, 5  ;;  %v327_v50 = vshll.u32 %v1927_v33, 16  ;;  %v1973_v38 = vld [vmem:[%s1837_s7 + $0xc] sm:$0xf] }
  0x28   : > { %v253_v51 = vrot.slane %v252_v42, 4  ;;  %v319_v52 = vrot.slane %v317_v44, 5  ;;  %v323_v53 = vrot.slane %v321_v45, 4  ;;  %v356_v56 = vshrl.u32 %v1934_v41, 16 }
  0x29   : > { %1537 = vmatmul.msk.bf16.vlgmr.msra.gmra.mxu3 %vm453_vm3, %v1938_v47  ;;  %v248_v57 = vsel %vm1875_vm4, %v243_v48, %v247_v31  ;;  %v314_v58 = vor.u32 %v313_v49, %v310_v43  ;;  %v329_v59 = vrot.slane %v327_v50, 5  ;;  %v359_v61 = vshll.u32 %v1934_v41, 16 }
  0x2a   : > { %v258_v0 = vsel %vm1875_vm4, %v253_v51, %v257_v39  ;;  %v429_v1 = vunpack.c.l.b16 %v248_v57  ;;  %v324_v3 = vor.u32 %v323_v53, %v319_v52  ;;  %v358_v4 = vrot.slane %v356_v56, 4  ;;  %v1985_v53 = vld [vmem:[%s1837_s7 + $0x10] sm:$0xf] }
  0x2b   : > { %v430_v5 = vunpack.c.l.b16 %v258_v0  ;;  %v315_v6 = vrot.slane %v314_v58, 4  ;;  %v361_v7 = vrot.slane %v359_v61, 5  ;;  %v365_v9 = vshll.u32 %v1942_v55, 16  ;;  %v1989_v0 = vld [vmem:[%s1837_s7 + $0x14] sm:$0x1] }
  0x2c   : > { %v325_v13 = vrot.slane %v324_v3, 4  ;;  %v369_v14 = vshrl.u32 %v1942_v55, 16  ;;  %v375_v15 = vshll.u32 %v1950_v60, 16  ;;  %v404_v18 = vshrl.u32 %v1954_v62, 16 }
  0x2d   : > { %v445_v21 = vpack.c.b16 %v430_v5, %v429_v1  ;;  %v320_v22 = vsel %vm1875_vm4, %v315_v6, %v319_v52  ;;  %v362_v23 = vor.u32 %v361_v7, %v358_v4  ;;  %v367_v25 = vrot.slane %v365_v9, 5 }
  0x2e   : > { %v330_v31 = vsel %vm1875_vm4, %v325_v13, %v329_v59  ;;  %v435_v32 = vunpack.c.l.b16 %v320_v22  ;;  %v371_v34 = vrot.slane %v369_v14, 4  ;;  %v377_v37 = vrot.slane %v375_v15, 5 }
  0x2f   : > { %1531 = vmatmul.msk.bf16.vlgmr.msra.gmra.mxu0 %vm453_vm3, %v445_v21  ;;  %v436_v39 = vunpack.c.l.b16 %v330_v31  ;;  %v363_v40 = vrot.slane %v362_v23, 4  ;;  %v406_v42 = vrot.slane %v404_v18, 4  ;;  %v407_v43 = vshll.u32 %v1954_v62, 16  ;;  %v1628_v31 = vld [vmem:[%s2458_s1 + $0x18] sm:$0xf] }
  0x30   : > { %v372_v44 = vor.u32 %v371_v34, %v367_v25  ;;  %v413_v45 = vshll.u32 %v1965_v27, 16  ;;  %v417_v48 = vshrl.u32 %v1965_v27, 16  ;;  %v423_v49 = vshll.u32 %v1968_v30, 16 }
  0x31   : > { %v1980_v50 = vpack.c.b16 %v436_v39, %v435_v32  ;;  %v368_v51 = vsel %vm1875_vm4, %v363_v40, %v367_v25  ;;  %v409_v52 = vrot.slane %v407_v43, 5  ;;  %v260_v56 = vshrl.u32 %v1973_v38, 16  ;;  %v1641_v40 = vld [vmem:[%s2458_s1 + $0x1c] sm:$0xf] }
  0x32   : > { %v373_v57 = vrot.slane %v372_v44, 4  ;;  %v439_v58 = vunpack.c.l.b16 %v368_v51  ;;  %v415_v59 = vrot.slane %v413_v45, 5  ;;  %v419_v61 = vrot.slane %v417_v48, 4 }
  0x33   : > { %1534 = vmatmul.msk.bf16.gmra.mxu1 %vm453_vm3, %v1980_v50  ;;  %v410_v1 = vor.u32 %v409_v52, %v406_v42  ;;  %v425_v3 = vrot.slane %v423_v49, 5  ;;  %v262_v4 = vrot.slane %v260_v56, 4  ;;  %v263_v5 = vshll.u32 %v1973_v38, 16  ;;  %v1619_v42 = vld [vmem:[%s2458_s1 + $0x14] sm:$0xf] }
  0x34   : > { %v378_v6 = vsel %vm1875_vm4, %v373_v57, %v377_v37  ;;  %v420_v7 = vor.u32 %v419_v61, %v415_v59  ;;  %v269_v9 = vshll.u32 %v1985_v53, 16  ;;  %v273_v13 = vshrl.u32 %v1985_v53, 16  ;;  %v1651_v56 = vld [vmem:[%s2458_s1 + $0x20] sm:$0xf] }
  0x35   : > { %v440_v14 = vunpack.c.l.b16 %v378_v6  ;;  %v411_v15 = vrot.slane %v410_v1, 4  ;;  %v265_v18 = vrot.slane %v263_v5, 5  ;;  %v279_v21 = vshll.u32 %v1989_v0, 16 }
  0x36   : > { %v421_v22 = vrot.slane %v420_v7, 4  ;;  %v271_v23 = vrot.slane %v269_v9, 5  ;;  %v275_v25 = vrot.slane %v273_v13, 4  ;;  %v1579_v51 = vrot.slane %v1891_v54, 9 }
  0x37   : > { %v2002_v32 = vpack.c.b16 %v440_v14, %v439_v58  ;;  %v416_v34 = vsel %vm1875_vm4, %v411_v15, %v415_v59  ;;  %v266_v37 = vor.u32 %v265_v18, %v262_v4  ;;  %v281_v39 = vrot.slane %v279_v21, 5  ;;  %v1663_v15 = vld [vmem:[%s1837_s7] sm:$0xff] }
  0x38   : > { %v426_v43 = vsel %vm1875_vm4, %v421_v22, %v425_v3  ;;  %v443_v44 = vunpack.c.l.b16 %v416_v34  ;;  %v276_v45 = vor.u32 %v275_v25, %v271_v23  ;;  %v660_v52 = vrot.slane %v1899_v2, 5 }
  0x39   : > { %1536 = vmatmul.msk.bf16.gmra.mxu2 %vm453_vm3, %v2002_v32  ;;  %v444_v48 = vunpack.c.l.b16 %v426_v43  ;;  %v267_v49 = vrot.slane %v266_v37, 4  ;;  %v1105_v58 = vsel %vm478_vm0, %v1628_v31, 0  ;;  %v1205_v59 = vsel %vm478_vm0, %v1641_v40, 0 }
  0x3a   : > { %v277_v57 = vrot.slane %v276_v45, 4  ;;  %v1027_v61 = vsel %vm478_vm0, %v1619_v42, 0  ;;  %v662_v2 = vrot.slane %v660_v52, 4  ;;  %1114 = vmatpush.bf16.msra.mxu2 %v1105_v58  ;;  %1214 = vmatpush.bf16.msra.mxu3 %v1205_v59  ;;  %v1289_v6 = vsel %vm478_vm0, %v1651_v56, 0  ;;  %v1664_v42 = vld [vmem:[%s1837_s7 + $0xc] sm:$0xff] }
  0x3b   : > { %v2024_v1 = vpack.c.b16 %v444_v48, %v443_v44  ;;  %v272_v3 = vsel %vm1875_vm4, %v267_v49, %v271_v23  ;;  %1036 = vmatpush.bf16.msra.mxu1 %v1027_v61  ;;  %1298 = vmatpush.bf16.msra.mxu0 %v1289_v6  ;;  %v661_v9 = vsel %vm2029_vm7, %v1579_v51, %v660_v52  ;;  %v1581_v22 = vrot.slane %v1840_v10, 9 }
  0x3c   : > { %v282_v4 = vsel %vm1875_vm4, %v277_v57, %v281_v39  ;;  %v431_v5 = vunpack.c.l.b16 %v272_v3  ;;  %v664_v13 = vsel %vm2029_vm7, %v662_v2, %v663_v28  ;;  %v716_v18 = vunpack.c.l.b16 %v661_v9  ;;  %v2105_v3 = vld [vmem:[%s1837_s7 + $0x30] sm:$0xff] }
  0x3d   : > { %1538 = vmatmul.msk.bf16.gmra.mxu3 %vm453_vm3, %v2024_v1  ;;  %v432_v7 = vunpack.c.l.b16 %v282_v4  ;;  %v717_v21 = vunpack.c.l.b16 %v664_v13  ;;  %v674_v23 = vrot.slane %v1843_v11, 5  ;;  %v677_v25 = vrot.slane %v1846_v12, 5  ;;  %v2125_v13 = vld [vmem:[%s1837_s7 + $0x3c] sm:$0xff] }
  0x3e   : > { %v667_v34 = vrot.slane %v1985_v53, 5  ;;  %v1580_v10 = vrot.slane %v1973_v38, 9  ;;  %v670_v12 = vrot.slane %v1989_v0, 5  ;;  %v1582_v38 = vrot.slane %v1913_v16, 9  ;;  %v2080_v16 = vld [vmem:[%s1837_s7 + $0x18] sm:$0xff] }
  0x3f   : > { %v446_v14 = vpack.c.b16 %v432_v7, %v431_v5  ;;  %v732_v31 = vpack.c.b16 %v717_v21, %v716_v18  ;;  %v675_v8 = vsel %vm2029_vm7, %v1581_v22, %v674_v23  ;;  %v676_v28 = vrot.slane %v674_v23, 4 }
  0x40   : > { %v720_v37 = vunpack.c.l.b16 %v675_v8  ;;  %v669_v11 = vrot.slane %v667_v34, 4  ;;  %v668_v53 = vsel %vm2029_vm7, %v1580_v10, %v667_v34  ;;  %v681_v0 = vrot.slane %v1922_v29, 5 }
  0x41   : > { %1532 = vmatmul.msk.bf16.gmra.mxu0 %vm453_vm3, %v446_v14  ;;  %v678_v39 = vsel %vm2029_vm7, %v676_v28, %v677_v25  ;;  %v718_v45 = vunpack.c.l.b16 %v668_v53  ;;  %v684_v49 = vrot.slane %v1927_v33, 5  ;;  %v2093_v33 = vld [vmem:[%s1837_s7 + $0x24] sm:$0xff]  ;;  %v688_v61 = vrot.slane %v1857_v19, 5 }
  0x42   : > { %v721_v40 = vunpack.c.l.b16 %v678_v39  ;;  %v671_v44 = vsel %vm2029_vm7, %v669_v11, %v670_v12  ;;  %v682_v52 = vsel %vm2029_vm7, %v1582_v38, %v681_v0  ;;  %v683_v56 = vrot.slane %v681_v0, 4  ;;  %v2145_v25 = vld [vmem:[%s1837_s7 + $0x48] sm:$0xff]  ;;  %v2181_v38 = vld [vmem:[%s1837_s7 + $0x54] sm:$0xff] }
  0x43   : > { %1571 = vmatmul.msk.bf16.vlgmr.msrb.gmra.mxu1 %vm453_vm3, %v1663_v15  ;;  %v719_v48 = vunpack.c.l.b16 %v671_v44  ;;  %v722_v57 = vunpack.c.l.b16 %v682_v52  ;;  %v1583_v2 = vrot.slane %v1853_v17, 9  ;;  %v690_v4 = vrot.slane %v688_v61, 4 }
  0x44   : > { %v2059_v43 = vpack.c.b16 %v721_v40, %v720_v37  ;;  %v685_v58 = vsel %vm2029_vm7, %v683_v56, %v684_v49  ;;  %v691_v5 = vrot.slane %v1860_v20, 5  ;;  %v695_v20 = vrot.slane %v1942_v55, 5  ;;  %v2160_v40 = vld [vmem:[%s1837_s7 + $0x60] sm:$0xf] }
  0x45   : > { %v2071_v51 = vpack.c.b16 %v719_v48, %v718_v45  ;;  %v723_v59 = vunpack.c.l.b16 %v685_v58  ;;  %v689_v6 = vsel %vm2029_vm7, %v1583_v2, %v688_v61  ;;  %v698_v18 = vrot.slane %v1950_v60, 5  ;;  %v2186_v61 = vld [vmem:[%s1837_s7 + $0x68] sm:$0x1] }
  0x46   : > { %v692_v19 = vsel %vm2029_vm7, %v690_v4, %v691_v5  ;;  %v724_v7 = vunpack.c.l.b16 %v689_v6  ;;  %v697_v15 = vrot.slane %v695_v20, 4  ;;  %v702_v60 = vrot.slane %v1871_v35, 5 }
  0x47   : > { %v2082_v29 = vpack.c.b16 %v723_v59, %v722_v57  ;;  %v725_v9 = vunpack.c.l.b16 %v692_v19  ;;  %v705_v28 = vrot.slane %v1882_v46, 5  ;;  %v2163_v46 = vld [vmem:[%s1837_s7 + $0x64] sm:$0xf]  ;;  %v911_v10 = vshrl.u32 %v2160_v40, 16 }
  0x48   : > { %v699_v55 = vsel %vm2029_vm7, %v697_v15, %v698_v18  ;;  %v704_v8 = vrot.slane %v702_v60, 4  ;;  %v914_v11 = vshll.u32 %v2160_v40, 16  ;;  %v920_v12 = vshll.u32 %v2163_v46, 16 }
  0x49   : > { %1588 = vmatmul.msk.bf16.vlgmr.msrb.gmra.mxu2 %vm453_vm3, %v732_v31  ;;  %v2119_v17 = vpack.c.b16 %v725_v9, %v724_v7  ;;  %v727_v23 = vunpack.c.l.b16 %v699_v55  ;;  %v1585_v31 = vrot.slane %v1864_v26, 9  ;;  %v709_v44 = vrot.slane %v1965_v27, 5 }
  0x4a   : > { %v706_v35 = vsel %vm2029_vm7, %v704_v8, %v705_v28  ;;  %v924_v45 = vshrl.u32 %v2163_v46, 16  ;;  %v913_v0 = vrot.slane %v911_v10, 4  ;;  %v916_v49 = vrot.slane %v914_v11, 5  ;;  %v2218_v8 = vld [vmem:[%s1837_s7 + $0x60] sm:$0xff] }
  0x4b   : > { %v703_v37 = vsel %vm2029_vm7, %v1585_v31, %v702_v60  ;;  %v729_v26 = vunpack.c.l.b16 %v706_v35  ;;  %v922_v52 = vrot.slane %v920_v12, 5  ;;  %v1586_v56 = vrot.slane %v1954_v62, 9 }
  0x4c   : > { %v728_v39 = vunpack.c.l.b16 %v703_v37  ;;  %v711_v57 = vrot.slane %v709_v44, 4  ;;  %v712_v58 = vrot.slane %v1968_v30, 5  ;;  %v926_v59 = vrot.slane %v924_v45, 4 }
  0x4d   : > { %1601 = vmatmul.msk.bf16.vlgmr.msrb.gmra.mxu3 %vm453_vm3, %v1664_v42  ;;  %v917_v4 = vor.u32 %v916_v49, %v913_v0  ;;  %v710_v5 = vsel %vm2029_vm7, %v1586_v56, %v709_v44  ;;  %v930_v19 = vshll.u32 %v2186_v61, 16 }
  0x4e   : > { %v713_v6 = vsel %vm2029_vm7, %v711_v57, %v712_v58  ;;  %v927_v62 = vor.u32 %v926_v59, %v922_v52  ;;  %v730_v7 = vunpack.c.l.b16 %v710_v5 }
  0x4f   : > { %v731_v9 = vunpack.c.l.b16 %v713_v6  ;;  %v932_v18 = vrot.slane %v930_v19, 5 }
  0x50   : > { %v928_v15 = vrot.slane %v927_v62, 4 }
  0x51   : > { %1610 = vmatmul.msk.bf16.vlgmr.msrb.gmra.mxu0 %vm453_vm3, %v446_v14  ;;  %v1584_v14 = vrot.slane %v1934_v41, 9  ;;  %v2205_v55 = vpack.c.b16 %v731_v9, %v730_v7 }
  0x52   : > { %v933_v60 = vsel %vm1875_vm4, %v928_v15, %v932_v18 }
  0x53   : > { %1572 = vmatmul.msk.bf16.gmra.mxu1 %vm453_vm3, %v1664_v42  ;;  %v696_v21 = vsel %vm2029_vm7, %v1584_v14, %v695_v20  ;;  %v2167_v42 = vpack.c.b16 %v729_v26, %v728_v39  ;;  %v918_v14 = vrot.slane %v917_v4, 4  ;;  %v937_v37 = vunpack.c.l.b16 %v933_v60 }
  0x54   : > { %v726_v22 = vunpack.c.l.b16 %v696_v21 }
  0x56   : > { %v2139_v41 = vpack.c.b16 %v727_v23, %v726_v22  ;;  %v923_v23 = vsel %vm1875_vm4, %v918_v14, %v922_v52 }
  0x57   : > { %v936_v28 = vunpack.c.l.b16 %v923_v23 }
  0x59   : > { %1589 = vmatmul.msk.bf16.gmra.mxu2 %vm453_vm3, %v2071_v51  ;;  %v2224_v39 = vpack.c.b16 %v937_v37, %v936_v28 }
  0x5d   : > { %1602 = vmatmul.msk.bf16.gmra.mxu3 %vm453_vm3, %v2080_v16 }
  0x61   : > { %1611 = vmatmul.msk.bf16.gmra.mxu0 %vm453_vm3, %v1894_v63 }
  0x63   : > { %1573 = vmatmul.msk.bf16.gmra.mxu1 %vm453_vm3, %v2080_v16 }
  0x69   : > { %1590 = vmatmul.msk.bf16.gmra.mxu2 %vm453_vm3, %v2059_v43 }
  0x6d   : > { %1603 = vmatmul.msk.bf16.gmra.mxu3 %vm453_vm3, %v2093_v33 }
  0x71   : > { %1612 = vmatmul.msk.bf16.gmra.mxu0 %vm453_vm3, %v1980_v50 }
  0x73   : > { %1574 = vmatmul.msk.bf16.gmra.mxu1 %vm453_vm3, %v2093_v33 }
  0x79   : > { %1591 = vmatmul.msk.bf16.gmra.mxu2 %vm453_vm3, %v2082_v29 }
  0x7d   : > { %1604 = vmatmul.msk.bf16.gmra.mxu3 %vm453_vm3, %v2105_v3 }
  0x81   : > { %1613 = vmatmul.msk.bf16.gmra.mxu0 %vm453_vm3, %v1917_v24 }
  0x83   : > { %1575 = vmatmul.msk.bf16.gmra.mxu1 %vm453_vm3, %v2105_v3 }
  0x89   : > { %1592 = vmatmul.msk.bf16.gmra.mxu2 %vm453_vm3, %v2119_v17 }
  0x8d   : > { %1605 = vmatmul.msk.bf16.gmra.mxu3 %vm453_vm3, %v2125_v13 }
  0x91   : > { %1614 = vmatmul.msk.bf16.gmra.mxu0 %vm453_vm3, %v2002_v32 }
  0x93   : > { %1576 = vmatmul.msk.bf16.gmra.mxu1 %vm453_vm3, %v2125_v13 }
  0x99   : > { %1593 = vmatmul.msk.bf16.gmra.mxu2 %vm453_vm3, %v2139_v41 }
  0x9d   : > { %1606 = vmatmul.msk.bf16.gmra.mxu3 %vm453_vm3, %v2145_v25 }
  0x9e   : > { %v2151_v34 = vpop.f32.mrf.mxu1 }
  0xa1   : > { %1615 = vmatmul.msk.bf16.gmra.mxu0 %vm453_vm3, %v1938_v47 }
  0xa3   : > { %1577 = vmatmul.msk.bf16.gmra.mxu1 %vm453_vm3, %v2145_v25 }
  0xa6   : > { %v2172_v53 = vpop.f32.mrf.mxu1 }
  0xa8   : > { %v2176_v48 = vpop.f32.mrf.mxu2 }
  0xa9   : > { %1594 = vmatmul.msk.bf16.gmra.mxu2 %vm453_vm3, %v2167_v42 }
  0xac   : > { %v491_v27 = vpop.f32.mrf.mxu0  ;;  %v2188_v2 = vpop.f32.mrf.mxu3 }
  0xad   : > { %1607 = vmatmul.msk.bf16.gmra.mxu3 %vm453_vm3, %v2181_v38 }
  0xb0   : > { %v2197_v30 = vpop.f32.mrf.mxu1  ;;  %v2201_v20 = vpop.f32.mrf.mxu2 }
  0xb1   : > { %1616 = vmatmul.msk.bf16.gmra.mxu0 %vm453_vm3, %v2024_v1 }
  0xb3   : > { %1578 = vmatmul.msk.bf16.gmra.mxu1 %vm453_vm3, %v2181_v38 }
  0xb4   : > { %v493_v21 = vpop.f32.mrf.mxu0  ;;  %v2207_v22 = vpop.f32.mrf.mxu3 }
  0xb8   : > { %v2213_v31 = vpop.f32.mrf.mxu1 }
  0xb9   : > { %1595 = vmatmul.msk.bf16.gmra.mxu2 %vm453_vm3, %v2205_v55 }
  0xbc   : > { %v2220_v35 = vpop.f32.mrf.mxu2 }
  0xbd   : > { %1608 = vmatmul.msk.bf16.gmra.mxu3 %vm453_vm3, %v2218_v8 }
  0xbe   : > { %v496_v26 = vpop.f32.mrf.mxu0 }
  0xc0   : > { %v2226_v10 = vpop.f32.mrf.mxu3  ;;  %v607_v11 = vpop.f32.mrf.mxu1 }
  0xc1   : > { %1617 = vmatmul.msk.bf16.gmra.mxu0 %vm453_vm3, %v2224_v39  ;;  %v608_v12 = vadd.f32 %v607_v11, %v491_v27 }
  0xc3   : > { %1620 = vmatmul.msk.bf16.vlgmr.msra.gmra.mxu1 %vm453_vm3, %v2071_v51 }
  0xc4   : > { %v2232_v44 = vpop.f32.mrf.mxu2 }
  0xc6   : > { %v498_v45 = vpop.f32.mrf.mxu0 }
  0xc8   : > { %v2234_v0 = vpop.f32.mrf.mxu3  ;;  %v609_v49 = vpop.f32.mrf.mxu1 }
  0xc9   : > { %1633 = vmatmul.msk.bf16.vlgmr.msra.gmra.mxu2 %vm453_vm3, %v2080_v16  ;;  %v610_v52 = vadd.f32 %v609_v49, %v493_v21 }
  0xcc   : > { %v776_v56 = vpop.f32.mrf.mxu2 }
  0xcd   : > { %1642 = vmatmul.msk.bf16.vlgmr.msra.gmra.mxu3 %vm453_vm3, %v1894_v63  ;;  %v816_v57 = vadd.f32 %v776_v56, %v608_v12 }
  0xce   : > { %v954_v58 = vpop.f32.mrf.mxu0 }
  0xd0   : > { %v854_v59 = vpop.f32.mrf.mxu3  ;;  %v612_v27 = vpop.f32.mrf.mxu1 }
  0xd1   : > { %1652 = vmatmul.msk.bf16.vlgmr.msra.gmra.mxu0 %vm453_vm3, %v2059_v43  ;;  %v894_v51 = vadd.f32 %v854_v59, %v816_v57  ;;  %v613_v4 = vadd.f32 %v612_v27, %v496_v26 }
  0xd3   : > { %1621 = vmatmul.msk.bf16.gmra.mxu1 %vm453_vm3, %v2059_v43  ;;  %v2244_v5 = vadd.f32 %v954_v58, %v894_v51 }
  0xd4   : > { %v778_v16 = vpop.f32.mrf.mxu2 }
  0xd5   : > { %v817_v6 = vadd.f32 %v778_v16, %v610_v52 }
  0xd6   : > { %v956_v62 = vpop.f32.mrf.mxu0 }
  0xd8   : > { %v856_v19 = vpop.f32.mrf.mxu3  ;;  %v614_v7 = vpop.f32.mrf.mxu1 }
  0xd9   : > { %v895_v63 = vadd.f32 %v856_v19, %v817_v6  ;;  %1634 = vmatmul.msk.bf16.gmra.mxu2 %vm453_vm3, %v2093_v33  ;;  %v615_v9 = vadd.f32 %v614_v7, %v498_v45 }
  0xdb   : > { %v2248_v14 = vadd.f32 %v956_v62, %v895_v63 }
  0xdc   : > { %v781_v15 = vpop.f32.mrf.mxu2 }
  0xdd   : > { %1643 = vmatmul.msk.bf16.gmra.mxu3 %vm453_vm3, %v1980_v50  ;;  %v818_v18 = vadd.f32 %v781_v15, %v613_v4 }
  0xde   : > { %v959_v43 = vpop.f32.mrf.mxu0 }
  0xe0   : > { %v859_v21 = vpop.f32.mrf.mxu3  ;;  %v617_v23 = vpop.f32.mrf.mxu1 }
  0xe1   : > { %1653 = vmatmul.msk.bf16.gmra.mxu0 %vm453_vm3, %v2082_v29  ;;  %v896_v60 = vadd.f32 %v859_v21, %v818_v18  ;;  %v618_v28 = vadd.f32 %v617_v23, %v2151_v34 }
  0xe3   : > { %1622 = vmatmul.msk.bf16.gmra.mxu1 %vm453_vm3, %v2082_v29  ;;  %v2257_v33 = vadd.f32 %v959_v43, %v896_v60 }
  0xe4   : > { %v783_v37 = vpop.f32.mrf.mxu2 }
  0xe5   : > { %v819_v26 = vadd.f32 %v783_v37, %v615_v9 }
  0xe6   : > { %v961_v11 = vpop.f32.mrf.mxu0 }
  0xe8   : > { %v861_v12 = vpop.f32.mrf.mxu3  ;;  %v619_v50 = vpop.f32.mrf.mxu1 }
  0xe9   : > { %v897_v45 = vadd.f32 %v861_v12, %v819_v26  ;;  %1635 = vmatmul.msk.bf16.gmra.mxu2 %vm453_vm3, %v2105_v3  ;;  %v620_v49 = vadd.f32 %v619_v50, %v2172_v53 }
  0xeb   : > { %v2262_v52 = vadd.f32 %v961_v11, %v897_v45 }
  0xec   : > { %v786_v56 = vpop.f32.mrf.mxu2 }
  0xed   : > { %1644 = vmatmul.msk.bf16.gmra.mxu3 %vm453_vm3, %v1917_v24  ;;  %v820_v29 = vadd.f32 %v786_v56, %v618_v28 }
  0xee   : > { %v964_v34 = vpop.f32.mrf.mxu0 }
  0xf0   : > { %v864_v57 = vpop.f32.mrf.mxu3  ;;  %v622_v58 = vpop.f32.mrf.mxu1 }
  0xf1   : > { %1654 = vmatmul.msk.bf16.gmra.mxu0 %vm453_vm3, %v2119_v17  ;;  %v898_v59 = vadd.f32 %v864_v57, %v820_v29  ;;  %v623_v27 = vadd.f32 %v622_v58, %v2197_v30 }
  0xf3   : > { %1623 = vmatmul.msk.bf16.gmra.mxu1 %vm453_vm3, %v2119_v17  ;;  %v2271_v3 = vadd.f32 %v964_v34, %v898_v59 }
  0xf4   : > { %v788_v53 = vpop.f32.mrf.mxu2 }
  0xf5   : > { %v821_v51 = vadd.f32 %v788_v53, %v620_v49  ;;  %v2309_v53 = vld [vmem:[%s1837_s7 + $0x6c] sm:$0xf] }
  0xf6   : > { %v966_v4 = vpop.f32.mrf.mxu0 }
  0xf8   : > { %v866_v16 = vpop.f32.mrf.mxu3  ;;  %v624_v24 = vpop.f32.mrf.mxu1 }
  0xf9   : > { %v899_v6 = vadd.f32 %v866_v16, %v821_v51  ;;  %1636 = vmatmul.msk.bf16.gmra.mxu2 %vm453_vm3, %v2125_v13  ;;  %v625_v62 = vadd.f32 %v624_v24, %v2213_v31  ;;  %v2312_v51 = vld [vmem:[%s1837_s7 + $0x70] sm:$0xf]  ;;  %v1173_v24 = vshrl.u32 %v2309_v53, 16 }
  0xfb   : > { %v2276_v19 = vadd.f32 %v966_v4, %v899_v6  ;;  %v1618_v6 = vrot.slane %v2160_v40, 9 }
  0xfc   : > { %v791_v7 = vpop.f32.mrf.mxu2 }
  0xfd   : > { %1645 = vmatmul.msk.bf16.gmra.mxu3 %vm453_vm3, %v2002_v32  ;;  %v822_v17 = vadd.f32 %v791_v7, %v623_v27  ;;  %v1013_v27 = vrot.slane %v2163_v46, 5  ;;  %v1186_v7 = vshrl.u32 %v2312_v51, 16 }
  0xfe   : > { %v969_v30 = vpop.f32.mrf.mxu0 }
  0xff   : > { %v1015_v46 = vrot.slane %v1013_v27, 4  ;;  %v1014_v40 = vsel %vm2029_vm7, %v1618_v6, %v1013_v27 }
 0x100   : > { %v869_v63 = vpop.f32.mrf.mxu3  ;;  %v627_v9 = vpop.f32.mrf.mxu1 }
 0x101   : > { %1655 = vmatmul.msk.bf16.gmra.mxu0 %vm453_vm3, %v2139_v41  ;;  %v900_v15 = vadd.f32 %v869_v63, %v822_v17  ;;  %v628_v32 = vadd.f32 %v627_v9, %v2176_v48  ;;  %v1175_v9 = vrot.slane %v1173_v24, 4  ;;  %v1672_v24 = vld [vmem:[%s1837_s7 + $0x6c] sm:$0xff] }
 0x103   : > { %1624 = vmatmul.msk.bf16.gmra.mxu1 %vm453_vm3, %v2139_v41  ;;  %v2284_v13 = vadd.f32 %v969_v30, %v900_v15 }
 0x104   : > { %v793_v31 = vpop.f32.mrf.mxu2 }
 0x105   : > { %v823_v18 = vadd.f32 %v793_v31, %v625_v62  ;;  %v1182_v62 = vshll.u32 %v2312_v51, 16 }
 0x106   : > { %v971_v43 = vpop.f32.mrf.mxu0 }
 0x108   : > { %v871_v21 = vpop.f32.mrf.mxu3  ;;  %v629_v23 = vpop.f32.mrf.mxu1 }
 0x109   : > { %v901_v60 = vadd.f32 %v871_v21, %v823_v18  ;;  %1637 = vmatmul.msk.bf16.gmra.mxu2 %vm453_vm3, %v2145_v25  ;;  %v630_v45 = vadd.f32 %v629_v23, %v2201_v20  ;;  %v1188_v21 = vrot.slane %v1186_v7, 4  ;;  %v230_v23 = vld [vmem:[%s1837_s7 + $0x74] sm:$0x1] }
 0x10b   : > { %v2289_v28 = vadd.f32 %v971_v43, %v901_v60  ;;  %v1184_v43 = vrot.slane %v1182_v62, 5 }
 0x10c   : > { %v796_v37 = vpop.f32.mrf.mxu2 }
 0x10d   : > { %1646 = vmatmul.msk.bf16.gmra.mxu3 %vm453_vm3, %v1938_v47  ;;  %v824_v41 = vadd.f32 %v796_v37, %v628_v32 }
 0x10e   : > { %v974_v26 = vpop.f32.mrf.mxu0 }
 0x110   : > { %v874_v11 = vpop.f32.mrf.mxu3  ;;  %v632_v12 = vpop.f32.mrf.mxu1 }
 0x111   : > { %1656 = vmatmul.msk.bf16.gmra.mxu0 %vm453_vm3, %v2167_v42  ;;  %v902_v50 = vadd.f32 %v874_v11, %v824_v41  ;;  %v633_v57 = vadd.f32 %v632_v12, %v2220_v35  ;;  %v1192_v11 = vshll.u32 %v230_v23, 16 }
 0x113   : > { %1625 = vmatmul.msk.bf16.gmra.mxu1 %vm453_vm3, %v2167_v42  ;;  %v2298_v25 = vadd.f32 %v974_v26, %v902_v50  ;;  %v1189_v26 = vor.u32 %v1188_v21, %v1184_v43 }
 0x114   : > { %v798_v48 = vpop.f32.mrf.mxu2 }
 0x115   : > { %v825_v49 = vadd.f32 %v798_v48, %v630_v45 }
 0x116   : > { %v976_v47 = vpop.f32.mrf.mxu0 }
 0x118   : > { %v876_v56 = vpop.f32.mrf.mxu3  ;;  %v634_v29 = vpop.f32.mrf.mxu1 }
 0x119   : > { %v903_v34 = vadd.f32 %v876_v56, %v825_v49  ;;  %1638 = vmatmul.msk.bf16.gmra.mxu2 %vm453_vm3, %v2181_v38  ;;  %v1016_v38 = vrot.slane %v2186_v61, 5  ;;  %v635_v17 = vadd.f32 %v634_v29, %v2232_v44  ;;  %v1190_v29 = vrot.slane %v1189_v26, 4 }
 0x11b   : > { %v2303_v58 = vadd.f32 %v976_v47, %v903_v34  ;;  %v1017_v18 = vsel %vm2029_vm7, %v1015_v46, %v1016_v38  ;;  %v1194_v34 = vrot.slane %v1192_v11, 5 }
 0x11c   : > { %v801_v20 = vpop.f32.mrf.mxu2  ;;  %v1021_v37 = vunpack.c.l.b16 %v1017_v18 }
 0x11d   : > { %1647 = vmatmul.msk.bf16.gmra.mxu3 %vm453_vm3, %v2024_v1  ;;  %v826_v42 = vadd.f32 %v801_v20, %v633_v57  ;;  %v1176_v1 = vshll.u32 %v2309_v53, 16 }
 0x11e   : > { %v979_v59 = vpop.f32.mrf.mxu0 }
 0x11f   : > { %v1178_v15 = vrot.slane %v1176_v1, 5 }
 0x120   : > { %v879_v4 = vpop.f32.mrf.mxu3  ;;  %v637_v16 = vpop.f32.mrf.mxu1 }
 0x121   : > { %1657 = vmatmul.msk.bf16.gmra.mxu0 %vm453_vm3, %v2205_v55  ;;  %v904_v35 = vadd.f32 %v879_v4, %v826_v42  ;;  %v1179_v41 = vor.u32 %v1178_v15, %v1175_v9  ;;  %v638_v12 = vadd.f32 %v637_v16, %v2188_v2  ;;  %v1278_v4 = vrot.slane %v230_v23, 5 }
 0x123   : > { %1626 = vmatmul.msk.bf16.gmra.mxu1 %vm453_vm3, %v2205_v55  ;;  %v2325_v61 = vadd.f32 %v979_v59, %v904_v35  ;;  %v1020_v55 = vunpack.c.l.b16 %v1014_v40  ;;  %v1180_v47 = vrot.slane %v1179_v41, 4  ;;  %v1650_v59 = vrot.slane %v2309_v53, 9 }
 0x124   : > { %v803_v30 = vpop.f32.mrf.mxu2 }
 0x125   : > { %v827_v63 = vadd.f32 %v803_v30, %v635_v17  ;;  %v1022_v48 = vpack.c.b16 %v1021_v37, %v1020_v55  ;;  %v1185_v42 = vsel %vm1875_vm4, %v1180_v47, %v1184_v43 }
 0x126   : > { %v981_v31 = vpop.f32.mrf.mxu0  ;;  %v1198_v1 = vunpack.c.l.b16 %v1185_v42 }
 0x128   : > { %v881_v44 = vpop.f32.mrf.mxu3  ;;  %v639_v60 = vpop.f32.mrf.mxu1 }
 0x129   : > { %v905_v32 = vadd.f32 %v881_v44, %v827_v63  ;;  %1639 = vmatmul.msk.bf16.gmra.mxu2 %vm453_vm3, %v2218_v8  ;;  %v1275_v8 = vrot.slane %v2312_v51, 5  ;;  %v640_v16 = vadd.f32 %v639_v60, %v2207_v22 }
 0x12b   : > { %v2335_v50 = vadd.f32 %v981_v31, %v905_v32  ;;  %v1277_v27 = vrot.slane %v1275_v8, 4  ;;  %v1276_v36 = vsel %vm2029_vm7, %v1650_v59, %v1275_v8 }
 0x12c   : > { %v806_v45 = vpop.f32.mrf.mxu2  ;;  %v1282_v30 = vunpack.c.l.b16 %v1276_v36 }
 0x12d   : > { %1648 = vmatmul.msk.bf16.gmra.mxu3 %vm453_vm3, %v2224_v39  ;;  %v828_v49 = vadd.f32 %v806_v45, %v638_v12  ;;  %v1195_v39 = vsel %vm1875_vm4, %v1190_v29, %v1194_v34  ;;  %v1279_v53 = vsel %vm2029_vm7, %v1277_v27, %v1278_v4  ;;  %v2372_v29 = vld [vmem:[%s2459_s2] ss:$0 sm:$0xff] }
 0x12e   : > { %v984_v56 = vpop.f32.mrf.mxu0  ;;  %v1199_v6 = vunpack.c.l.b16 %v1195_v39  ;;  %v1283_v63 = vunpack.c.l.b16 %v1279_v53 }
 0x130   : > { %v884_v57 = vpop.f32.mrf.mxu3  ;;  %v642_v20 = vpop.f32.mrf.mxu1  ;;  %v1200_v22 = vpack.c.b16 %v1199_v6, %v1198_v1  ;;  %v1284_v40 = vpack.c.b16 %v1283_v63, %v1282_v30 }
 0x131   : > { %1658 = vmatmul.msk.bf16.gmra.mxu0 %vm453_vm3, %v1022_v48  ;;  %v906_v2 = vadd.f32 %v884_v57, %v828_v49  ;;  %v643_v9 = vadd.f32 %v642_v20, %v2226_v10 }
 0x133   : > { %1627 = vmatmul.msk.bf16.gmra.mxu1 %vm453_vm3, %v1022_v48  ;;  %v2348_v51 = vadd.f32 %v984_v56, %v906_v2 }
 0x134   : > { %v808_v38 = vpop.f32.mrf.mxu2 }
 0x135   : > { %v829_v35 = vadd.f32 %v808_v38, %v640_v16 }
 0x136   : > { %v986_v46 = vpop.f32.mrf.mxu0 }
 0x138   : > { %v886_v62 = vpop.f32.mrf.mxu3  ;;  %v644_v7 = vpop.f32.mrf.mxu1 }
 0x139   : > { %v907_v17 = vadd.f32 %v886_v62, %v829_v35  ;;  %1640 = vmatmul.msk.bf16.gmra.mxu2 %vm453_vm3, %v1672_v24  ;;  %v645_v44 = vadd.f32 %v644_v7, %v2234_v0 }
 0x13b   : > { %v2357_v15 = vadd.f32 %v986_v46, %v907_v17 }
 0x13c   : > { %v811_v31 = vpop.f32.mrf.mxu2 }
 0x13d   : > { %1649 = vmatmul.msk.bf16.gmra.mxu3 %vm453_vm3, %v1200_v22  ;;  %v830_v18 = vadd.f32 %v811_v31, %v643_v9 }
 0x13e   : > { %v989_v54 = vpop.f32.mrf.mxu0 }
 0x140   : > { %v889_v43 = vpop.f32.mrf.mxu3  ;;  %v1038_v21 = vpop.f32.mrf.mxu1 }
 0x141   : > { %1659 = vmatmul.msk.bf16.gmra.mxu0 %vm453_vm3, %v1284_v40  ;;  %v908_v23 = vadd.f32 %v889_v43, %v830_v18  ;;  %v1078_v11 = vadd.f32 %v1038_v21, %v2244_v5 }
 0x143   : > { %v2362_v60 = vadd.f32 %v989_v54, %v908_v23 }
 0x144   : > { %v813_v32 = vpop.f32.mrf.mxu2 }
 0x145   : > { %v831_v10 = vadd.f32 %v813_v32, %v645_v44 }
 0x146   : > { %v991_v55 = vpop.f32.mrf.mxu0 }
 0x148   : > { %v891_v37 = vpop.f32.mrf.mxu3  ;;  %v1040_v41 = vpop.f32.mrf.mxu1 }
 0x149   : > { %v909_v26 = vadd.f32 %v891_v37, %v831_v10  ;;  %v1079_v5 = vadd.f32 %v1040_v41, %v2248_v14 }
 0x14b   : > { %v2366_v12 = vadd.f32 %v991_v55, %v909_v26 }
 0x14c   : > { %v1116_v45 = vpop.f32.mrf.mxu2 }
 0x14d   : > { %v1156_v48 = vadd.f32 %v1116_v45, %v1078_v11 }
 0x14e   : > { %v1300_v49 = vpop.f32.mrf.mxu0 }
 0x150   : > { %v1216_v0 = vpop.f32.mrf.mxu3  ;;  %v1043_v47 = vpop.f32.mrf.mxu1 }
 0x151   : > { %v1256_v56 = vadd.f32 %v1216_v0, %v1156_v48  ;;  %v1080_v16 = vadd.f32 %v1043_v47, %v2257_v33 }
 0x153   : > { %v1340_v34 = vadd.f32 %v1300_v49, %v1256_v56 }
 0x154   : > { %v1118_v8 = vpop.f32.mrf.mxu2 }
 0x155   : > { %v1360_v57 = vadd.f32 %v2372_v29, %v1340_v34  ;;  %v1157_v20 = vadd.f32 %v1118_v8, %v1079_v5 }
 0x156   : > { %v1302_v2 = vpop.f32.mrf.mxu0 }
 0x157   : > { %v1376_v42 = vmax.f32 %v1360_v57, 0.0 }
 0x158   : > { %v1218_v39 = vpop.f32.mrf.mxu3  ;;  %v1045_v59 = vpop.f32.mrf.mxu1 }
 0x159   : > { %v1392_v27 = vpack.c.bf16 %v1376_v42, %v1376_v42  ;;  %v1257_v4 = vadd.f32 %v1218_v39, %v1157_v20  ;;  %v1081_v17 = vadd.f32 %v1045_v59, %v2262_v52 }
 0x15b   : > { %1409 = vst.msk [vmem:[%s2379_s30] sm:$0xf] %vm1408_vm8, %v1392_v27  ;;  %v1341_v14 = vadd.f32 %v1302_v2, %v1257_v4 }
 0x15c   : > { %v1121_v38 = vpop.f32.mrf.mxu2 }
 0x15d   : > { %v1361_v35 = vadd.f32 %v2372_v29, %v1341_v14  ;;  %v1158_v24 = vadd.f32 %v1121_v38, %v1080_v16 }
 0x15e   : > { %v1305_v1 = vpop.f32.mrf.mxu0 }
 0x15f   : > { %v1377_v6 = vmax.f32 %v1361_v35, 0.0 }
 0x160   : > { %v1221_v46 = vpop.f32.mrf.mxu3  ;;  %v1048_v36 = vpop.f32.mrf.mxu1 }
 0x161   : > { %v1393_v53 = vpack.c.bf16 %v1377_v6, %v1377_v6  ;;  %v1258_v62 = vadd.f32 %v1221_v46, %v1158_v24  ;;  %v1082_v21 = vadd.f32 %v1048_v36, %v2271_v3 }
 0x163   : > { %1410 = vst.msk [vmem:[%s2379_s30 + $0x4] sm:$0xf] %vm1408_vm8, %v1393_v53  ;;  %v1342_v7 = vadd.f32 %v1305_v1, %v1258_v62 }
 0x164   : > { %v1123_v22 = vpop.f32.mrf.mxu2 }
 0x165   : > { %v1362_v30 = vadd.f32 %v2372_v29, %v1342_v7  ;;  %v1159_v33 = vadd.f32 %v1123_v22, %v1081_v17 }
 0x166   : > { %v1307_v63 = vpop.f32.mrf.mxu0 }
 0x167   : > { %v1378_v9 = vmax.f32 %v1362_v30, 0.0 }
 0x168   : > { %v1223_v31 = vpop.f32.mrf.mxu3  ;;  %v1050_v40 = vpop.f32.mrf.mxu1 }
 0x169   : > { %v1394_v18 = vpack.c.bf16 %v1378_v9, %v1378_v9  ;;  %v1259_v54 = vadd.f32 %v1223_v31, %v1159_v33  ;;  %v1083_v45 = vadd.f32 %v1050_v40, %v2276_v19 }
 0x16b   : > { %1411 = vst.msk [vmem:[%s2379_s30 + $0x8] sm:$0xf] %vm1408_vm8, %v1394_v18  ;;  %v1343_v43 = vadd.f32 %v1307_v63, %v1259_v54 }
 0x16c   : > { %v1126_v23 = vpop.f32.mrf.mxu2 }
 0x16d   : > { %v1363_v44 = vadd.f32 %v2372_v29, %v1343_v43  ;;  %v1160_v52 = vadd.f32 %v1126_v23, %v1082_v21 }
 0x16e   : > { %v1310_v32 = vpop.f32.mrf.mxu0 }
 0x16f   : > { %v1379_v10 = vmax.f32 %v1363_v44, 0.0 }
 0x170   : > { %v1226_v55 = vpop.f32.mrf.mxu3  ;;  %v1053_v37 = vpop.f32.mrf.mxu1 }
 0x171   : > { %v1395_v41 = vpack.c.bf16 %v1379_v10, %v1379_v10  ;;  %v1260_v26 = vadd.f32 %v1226_v55, %v1160_v52  ;;  %v1084_v20 = vadd.f32 %v1053_v37, %v2284_v13 }
 0x173   : > { %1412 = vst.msk [vmem:[%s2379_s30 + $0xc] sm:$0xf] %vm1408_vm8, %v1395_v41  ;;  %v1344_v11 = vadd.f32 %v1310_v32, %v1260_v26 }
 0x174   : > { %v1128_v48 = vpop.f32.mrf.mxu2 }
 0x175   : > { %v1364_v49 = vadd.f32 %v2372_v29, %v1344_v11  ;;  %v1161_v3 = vadd.f32 %v1128_v48, %v1083_v45 }
 0x176   : > { %v1312_v0 = vpop.f32.mrf.mxu0 }
 0x177   : > { %v1380_v47 = vmax.f32 %v1364_v49, 0.0 }
 0x178   : > { %v1228_v56 = vpop.f32.mrf.mxu3  ;;  %v1055_v34 = vpop.f32.mrf.mxu1 }
 0x179   : > { %v1396_v5 = vpack.c.bf16 %v1380_v47, %v1380_v47  ;;  %v1261_v8 = vadd.f32 %v1228_v56, %v1161_v3  ;;  %v1085_v35 = vadd.f32 %v1055_v34, %v2289_v28 }
 0x17b   : > { %1413 = vst.msk [vmem:[%s2379_s30 + $0x10] sm:$0xf] %vm1408_vm8, %v1396_v5  ;;  %v1345_v57 = vadd.f32 %v1312_v0, %v1261_v8 }
 0x17c   : > { %v1131_v2 = vpop.f32.mrf.mxu2 }
 0x17d   : > { %v1365_v42 = vadd.f32 %v2372_v29, %v1345_v57  ;;  %v1162_v19 = vadd.f32 %v1131_v2, %v1084_v20 }
 0x17e   : > { %v1315_v39 = vpop.f32.mrf.mxu0 }
 0x17f   : > { %v1381_v59 = vmax.f32 %v1365_v42, 0.0 }
 0x180   : > { %v1231_v27 = vpop.f32.mrf.mxu3  ;;  %v1058_v4 = vpop.f32.mrf.mxu1 }
 0x181   : > { %v1397_v14 = vpack.c.bf16 %v1381_v59, %v1381_v59  ;;  %v1262_v16 = vadd.f32 %v1231_v27, %v1162_v19  ;;  %v1086_v22 = vadd.f32 %v1058_v4, %v2298_v25 }
 0x183   : > { %1414 = vst.msk [vmem:[%s2379_s30 + $0x14] sm:$0xf] %vm1408_vm8, %v1397_v14  ;;  %v1346_v38 = vadd.f32 %v1315_v39, %v1262_v16 }
 0x184   : > { %v1133_v24 = vpop.f32.mrf.mxu2 }
 0x185   : > { %v1366_v1 = vadd.f32 %v2372_v29, %v1346_v38  ;;  %v1163_v13 = vadd.f32 %v1133_v24, %v1085_v35 }
 0x186   : > { %v1317_v6 = vpop.f32.mrf.mxu0 }
 0x187   : > { %v1382_v46 = vmax.f32 %v1366_v1, 0.0 }
 0x188   : > { %v1233_v36 = vpop.f32.mrf.mxu3  ;;  %v1060_v53 = vpop.f32.mrf.mxu1 }
 0x189   : > { %v1398_v62 = vpack.c.bf16 %v1382_v46, %v1382_v46  ;;  %v1263_v7 = vadd.f32 %v1233_v36, %v1163_v13  ;;  %v1087_v21 = vadd.f32 %v1060_v53, %v2303_v58 }
 0x18b   : > { %1415 = vst.msk [vmem:[%s2379_s30 + $0x18] sm:$0xf] %vm1408_vm8, %v1398_v62  ;;  %v1347_v17 = vadd.f32 %v1317_v6, %v1263_v7 }
 0x18c   : > { %v1136_v30 = vpop.f32.mrf.mxu2 }
 0x18d   : > { %v1367_v33 = vadd.f32 %v2372_v29, %v1347_v17  ;;  %v1164_v28 = vadd.f32 %v1136_v30, %v1086_v22 }
 0x18e   : > { %v1320_v63 = vpop.f32.mrf.mxu0 }
 0x18f   : > { %v1383_v9 = vmax.f32 %v1367_v33, 0.0 }
 0x190   : > { %v1236_v31 = vpop.f32.mrf.mxu3  ;;  %v1063_v40 = vpop.f32.mrf.mxu1 }
 0x191   : > { %v1399_v18 = vpack.c.bf16 %v1383_v9, %v1383_v9  ;;  %v1264_v54 = vadd.f32 %v1236_v31, %v1164_v28  ;;  %v1088_v11 = vadd.f32 %v1063_v40, %v2325_v61 }
 0x193   : > { %1416 = vst.msk [vmem:[%s2379_s30 + $0x1c] sm:$0xf] %vm1408_vm8, %v1399_v18  ;;  %v1348_v43 = vadd.f32 %v1320_v63, %v1264_v54 }
 0x194   : > { %v1138_v23 = vpop.f32.mrf.mxu2 }
 0x195   : > { %v1368_v44 = vadd.f32 %v2372_v29, %v1348_v43  ;;  %v1165_v25 = vadd.f32 %v1138_v23, %v1087_v21 }
 0x196   : > { %v1322_v52 = vpop.f32.mrf.mxu0 }
 0x197   : > { %v1384_v32 = vmax.f32 %v1368_v44, 0.0 }
 0x198   : > { %v1238_v10 = vpop.f32.mrf.mxu3  ;;  %v1065_v55 = vpop.f32.mrf.mxu1 }
 0x199   : > { %v1400_v37 = vpack.c.bf16 %v1384_v32, %v1384_v32  ;;  %v1265_v41 = vadd.f32 %v1238_v10, %v1165_v25  ;;  %v1089_v8 = vadd.f32 %v1065_v55, %v2335_v50 }
 0x19b   : > { %1417 = vst.msk [vmem:[%s2379_s30 + $0x20] sm:$0xf] %vm1408_vm8, %v1400_v37  ;;  %v1349_v26 = vadd.f32 %v1322_v52, %v1265_v41 }
 0x19c   : > { %v1141_v45 = vpop.f32.mrf.mxu2 }
 0x19d   : > { %v1369_v48 = vadd.f32 %v2372_v29, %v1349_v26  ;;  %v1166_v58 = vadd.f32 %v1141_v45, %v1088_v11 }
 0x19e   : > { %v1325_v49 = vpop.f32.mrf.mxu0 }
 0x19f   : > { %v1385_v3 = vmax.f32 %v1369_v48, 0.0 }
 0x1a0   : > { %v1241_v0 = vpop.f32.mrf.mxu3  ;;  %v1068_v34 = vpop.f32.mrf.mxu1 }
 0x1a1   : > { %v1401_v47 = vpack.c.bf16 %v1385_v3, %v1385_v3  ;;  %v1266_v56 = vadd.f32 %v1241_v0, %v1166_v58  ;;  %v1090_v4 = vadd.f32 %v1068_v34, %v2348_v51 }
 0x1a3   : > { %1418 = vst.msk [vmem:[%s2379_s30 + $0x24] sm:$0xf] %vm1408_vm8, %v1401_v47  ;;  %v1350_v5 = vadd.f32 %v1325_v49, %v1266_v56 }
 0x1a4   : > { %v1143_v57 = vpop.f32.mrf.mxu2 }
 0x1a5   : > { %v1370_v20 = vadd.f32 %v2372_v29, %v1350_v5  ;;  %v1167_v61 = vadd.f32 %v1143_v57, %v1089_v8 }
 0x1a6   : > { %v1327_v2 = vpop.f32.mrf.mxu0 }
 0x1a7   : > { %v1386_v42 = vmax.f32 %v1370_v20, 0.0 }
 0x1a8   : > { %v1243_v19 = vpop.f32.mrf.mxu3  ;;  %v1070_v14 = vpop.f32.mrf.mxu1 }
 0x1a9   : > { %v1402_v39 = vpack.c.bf16 %v1386_v42, %v1386_v42  ;;  %v1267_v59 = vadd.f32 %v1243_v19, %v1167_v61  ;;  %v1091_v36 = vadd.f32 %v1070_v14, %v2357_v15 }
 0x1ab   : > { %1419 = vst.msk [vmem:[%s2379_s30 + $0x28] sm:$0xf] %vm1408_vm8, %v1402_v39  ;;  %v1351_v27 = vadd.f32 %v1327_v2, %v1267_v59 }
 0x1ac   : > { %v1146_v16 = vpop.f32.mrf.mxu2 }
 0x1ad   : > { %v1371_v38 = vadd.f32 %v2372_v29, %v1351_v27  ;;  %v1168_v50 = vadd.f32 %v1146_v16, %v1090_v4 }
 0x1ae   : > { %v1330_v35 = vpop.f32.mrf.mxu0 }
 0x1af   : > { %v1387_v24 = vmax.f32 %v1371_v38, 0.0 }
 0x1b0   : > { %v1246_v1 = vpop.f32.mrf.mxu3  ;;  %v1073_v7 = vpop.f32.mrf.mxu1 }
 0x1b1   : > { %v1403_v13 = vpack.c.bf16 %v1387_v24, %v1387_v24  ;;  %v1268_v6 = vadd.f32 %v1246_v1, %v1168_v50  ;;  %v1092_v9 = vadd.f32 %v1073_v7, %v2362_v60 }
 0x1b3   : > { %1420 = vst.msk [vmem:[%s2379_s30 + $0x2c] sm:$0xf] %vm1408_vm8, %v1403_v13  ;;  %v1352_v46 = vadd.f32 %v1330_v35, %v1268_v6 }
 0x1b4   : > { %v1148_v53 = vpop.f32.mrf.mxu2 }
 0x1b5   : > { %v1372_v62 = vadd.f32 %v2372_v29, %v1352_v46  ;;  %v1169_v51 = vadd.f32 %v1148_v53, %v1091_v36 }
 0x1b6   : > { %v1332_v17 = vpop.f32.mrf.mxu0 }
 0x1b7   : > { %v1388_v22 = vmax.f32 %v1372_v62, 0.0 }
 0x1b8   : > { %v1248_v30 = vpop.f32.mrf.mxu3  ;;  %v1075_v54 = vpop.f32.mrf.mxu1 }
 0x1b9   : > { %v1404_v33 = vpack.c.bf16 %v1388_v22, %v1388_v22  ;;  %v1269_v28 = vadd.f32 %v1248_v30, %v1169_v51  ;;  %v1093_v52 = vadd.f32 %v1075_v54, %v2366_v12 }
 0x1bb   : > { %1421 = vst.msk [vmem:[%s2379_s30 + $0x30] sm:$0xf] %vm1408_vm8, %v1404_v33  ;;  %v1353_v63 = vadd.f32 %v1332_v17, %v1269_v28 }
 0x1bc   : > { %v1151_v31 = vpop.f32.mrf.mxu2 }
 0x1bd   : > { %v1373_v40 = vadd.f32 %v2372_v29, %v1353_v63  ;;  %v1170_v15 = vadd.f32 %v1151_v31, %v1092_v9 }
 0x1be   : > { %v1335_v43 = vpop.f32.mrf.mxu0 }
 0x1bf   : > { %v1389_v18 = vmax.f32 %v1373_v40, 0.0 }
 0x1c0   : > { %v1251_v21 = vpop.f32.mrf.mxu3 }
 0x1c1   : > { %v1405_v23 = vpack.c.bf16 %v1389_v18, %v1389_v18  ;;  %v1270_v44 = vadd.f32 %v1251_v21, %v1170_v15 }
 0x1c3   : > { %1422 = vst.msk [vmem:[%s2379_s30 + $0x34] sm:$0xf] %vm1408_vm8, %v1405_v23  ;;  %v1354_v25 = vadd.f32 %v1335_v43, %v1270_v44 }
 0x1c4   : > { %v1153_v32 = vpop.f32.mrf.mxu2 }
 0x1c5   : > { %v1374_v60 = vadd.f32 %v2372_v29, %v1354_v25  ;;  %v1171_v10 = vadd.f32 %v1153_v32, %v1093_v52 }
 0x1c6   : > { %v1337_v11 = vpop.f32.mrf.mxu0 }
 0x1c7   : > { %v1390_v55 = vmax.f32 %v1374_v60, 0.0 }
 0x1c8   : > { %v1253_v37 = vpop.f32.mrf.mxu3 }
 0x1c9   : > { %v1406_v41 = vpack.c.bf16 %v1390_v55, %v1390_v55  ;;  %v1271_v26 = vadd.f32 %v1253_v37, %v1171_v10 }
 0x1cb   : > { %1423 = vst.msk [vmem:[%s2379_s30 + $0x38] sm:$0xf] %vm1408_vm8, %v1406_v41  ;;  %v1355_v45 = vadd.f32 %v1337_v11, %v1271_v26 }
 0x1cd   : > { %v1375_v48 = vadd.f32 %v2372_v29, %v1355_v45 }
 0x1cf   : > { %v1391_v58 = vmax.f32 %v1375_v48, 0.0 }
 0x1d1   : > { %v1407_v49 = vpack.c.bf16 %v1391_v58, %v1391_v58 }
 0x1d3   : > { %1424 = vst.msk [vmem:[%s2379_s30 + $0x3c] sm:$0xf] %vm1408_vm8, %v1407_v49 }
 0x1d4 PF: > { %s13_s16 = sadd.s32 1, %s1756_s16   ;;  %s2465_s12 = smov %s1748_s14 }
 0x1d5   : > { %p10_p7 = scmp.ge.s32.totalorder %s13_s16, 6   ;;  %s2466_s13 = smov %s1752_s15 }
 0x1d6   : > { %s2467_s14 = smov %s2470_s17  ;;  %s2468_s15 = smov %s2474_s18 }
 0x1d7   :  { %12 = sbr.rel (!%p10_p7) target bundleno = 3 (0x3), region = 71 }

// kernel: basic_rfb_forward.13
= control target key start
LH: loop header
LB: loop body
LE: loop exit
PB: predicated region body
PF: predicated region fallthrough
CT: control target
= control target key end

     0   :  { %s1885_s12 = smov 0   ;;  %s1887_s13 = smov 0   ;;  %s2609_s0 = inlined_call_operand.vmem [shape: bf16[2,18,18,12], index: 0, kind: input, shape index: {}]   ;;  %s2610_s1 = inlined_call_operand.vmem [shape: bf16[3,3,12,16], index: 1, kind: input, shape index: {}]   ;;  %s2611_s2 = inlined_call_operand.vmem [shape: f32[1,16], index: 2, kind: input, shape index: {}]   ;;  %s2612_s3 = inlined_call_operand.vmem [shape: bf16[2,16,16,16], index: 3, kind: output, shape index: {}]  }
   0x1   :  { %s1889_s14 = smov 0   ;;  %s1891_s15 = smov 0  }
   0x2   :  { %s1893_s16 = smov 0  }
   0x3 LB: > { %s22_s17 = sadd.s32 1, %s1855_s14  ;;  %s25_s18 = sadd.s32 1, %s1859_s15  ;;  %s1863_s16 = sphi %s1893_s16, %s13_s16   ;;  %s1859_s15 = sphi %s1891_s15, %s2620_s15   ;;  %s1855_s14 = sphi %s1889_s14, %s2619_s14   ;;  %s1851_s13 = sphi %s1887_s13, %s2618_s13   ;;  %s1847_s12 = sphi %s1885_s12, %s2617_s12  }
   0x4   : > { %p23_p0 = scmp.ge.s32.totalorder %s22_s17, 2  ;;  %p1575_p1 = scmp.ge.s32.totalorder %s1863_s16, 1 }
   0x5   : > { %p151_p2 = scmp.lt.s32.totalorder %s1863_s16, 5 }
   0x6   : > { %s2622_s17 = smov (%p23_p0, %s22_s17), 0  ;;  %s2624_s18 = smov (!%p23_p0, %s25_s18), %s1859_s15 }
   0x7   : > { %p152_p3 = pnand %p1575_p1, %p151_p2  ;;  %p27_p4 = scmp.ge.s32.totalorder %s2624_s18, 2 }
   0x8   : > { %p180_p5 = scmp.lt.s32.totalorder (!%p152_p3), %s1851_s13, 1  ;;  %s1760_s27 = smul.u32 (!%p152_p3), 96, %s1847_s12 }
   0x9   : > { %s2626_s18 = smov (%p27_p4, %s2624_s18), 0  ;;  %155 = sbr.rel (%p152_p3) target bundleno = 469 (0x1d5), region = 32 }
   0xe   : > { %v1588_v0 = vld [vmem:[%s2610_s1 + $0x8] sm:$0xf]  ;;  %v1772_v1 = vld [vmem:[%s2610_s1 + $0x8] sm:$0x30]  ;;  %vm485_vm0 = vcmask 1045504   ;;  %s2628_s13 = smov (!%p180_p5, %s1851_s13), 1 }
   0xf   : > { %v1589_v2 = vor.u32 %v1772_v1, %v1588_v0  ;;  %v1654_v3 = vld [vmem:[%s2610_s1 + $0x10] sm:$0xf]  ;;  %v1773_v4 = vld [vmem:[%s2610_s1 + $0x10] sm:$0x30]  ;;  %s1783_s28 = smul.u32 216, %s2628_s13  ;;  %vm460_vm3 = vcmask 97280  }
  0x10   : > { %v1655_v6 = vor.u32 %v1773_v4, %v1654_v3  ;;  %v1672_v7 = vld [vmem:[%s2610_s1 + $0x18] sm:$0xf]  ;;  %v1774_v8 = vld [vmem:[%s2610_s1 + $0x18] sm:$0x30]  ;;  %vm233_vm1 = vsmask.f32 3328 }
  0x11   : > { %v487_v5 = vsel %vm485_vm0, %v1589_v2, 0  ;;  %v1673_v10 = vor.u32 %v1774_v8, %v1672_v7  ;;  %s184_s8 = scalar_lea.vmem %s2609_s0, %s1783_s28  ;;  %vm234_vm2 = vsmask.f32 7440  ;;  %v1947_v11 = vld [vmem:[%s2610_s1] sm:$0xf]  ;;  %vm667_vm5 = vcmask 1042432  }
  0x12   : > { %1780 = vmatpush.bf16.msra.mxu1 %v487_v5  ;;  %1781 = vmatpush.bf16.msra.mxu2 %v487_v5  ;;  %v783_v9 = vsel %vm485_vm0, %v1655_v6, 0  ;;  %v1952_v12 = vld [vmem:[%s2610_s1] sm:$0x30]  ;;  %s1954_s20 = scalar_lea.vmem %s184_s8, %s1760_s27  ;;  %v1960_v14 = vld [vmem:[%s2610_s1 + $0x20] sm:$0xf]  ;;  %vm2007_vm4 = vmor %vm233_vm1, %vm234_vm2  ;;  %vm668_vm6 = vcmask 1046532  }
  0x13   : > { %1782 = vmatpush.bf16.msra.mxu3 %v487_v5  ;;  %496 = vmatpush.bf16.msra.mxu0 %v487_v5  ;;  %v867_v13 = vsel %vm485_vm0, %v1673_v10, 0  ;;  %v1965_v15 = vld [vmem:[%s2610_s1 + $0x20] sm:$0x30]  ;;  %v1968_v16 = vld [vmem:[%s1954_s20 + $0x18] sm:$0xf]  ;;  %v1633_v28 = vor.u32 %v1952_v12, %v1947_v11  ;;  %vm2168_vm7 = vmor %vm667_vm5, %vm668_vm6  ;;  %s1579_s23 = sshll.u32 %s2628_s13, 5 }
  0x14   : > { %v1971_v17 = vld [vmem:[%s1954_s20 + $0x1c] sm:$0xf]  ;;  %v1974_v18 = vld [vmem:[%s1954_s20 + $0x20] sm:$0x1]  ;;  %v285_v19 = vshrl.u32 %v1968_v16, 16  ;;  %v288_v20 = vshll.u32 %v1968_v16, 16  ;;  %v1687_v29 = vor.u32 %v1965_v15, %v1960_v14 }
  0x15   : > { %v294_v21 = vshll.u32 %v1971_v17, 16  ;;  %v298_v22 = vshrl.u32 %v1971_v17, 16  ;;  %v1981_v23 = vld [vmem:[%s1954_s20 + $0x30] sm:$0xf]  ;;  %v304_v24 = vshll.u32 %v1974_v18, 16  ;;  %vm1462_vm8 = vcmask 125952  }
  0x16   : > { %792 = vmatpush.bf16.msrb.mxu2 %v783_v9  ;;  %v1985_v25 = vld [vmem:[%s1954_s20 + $0x34] sm:$0xf]  ;;  %v1988_v26 = vld [vmem:[%s1954_s20 + $0x38] sm:$0x1]  ;;  %v333_v27 = vshrl.u32 %v1981_v23, 16  ;;  %v287_v30 = vrot.slane %v285_v19, 4 }
  0x17   : > { %876 = vmatpush.bf16.msrb.mxu3 %v867_v13  ;;  %v290_v31 = vrot.slane %v288_v20, 5  ;;  %v296_v32 = vrot.slane %v294_v21, 5  ;;  %v300_v33 = vrot.slane %v298_v22, 4  ;;  %v1996_v34 = vld [vmem:[%s1954_s20 + $0x48] sm:$0xf]  ;;  %v306_v35 = vrot.slane %v304_v24, 5 }
  0x18   : > { %v335_v36 = vrot.slane %v333_v27, 4  ;;  %v336_v37 = vshll.u32 %v1981_v23, 16  ;;  %v342_v38 = vshll.u32 %v1985_v25, 16  ;;  %v346_v41 = vshrl.u32 %v1985_v25, 16  ;;  %v2003_v43 = vld [vmem:[%s1954_s20 + $0x4c] sm:$0xf] }
  0x19   : > { %v291_v39 = vor.u32 %v290_v31, %v287_v30  ;;  %v301_v40 = vor.u32 %v300_v33, %v296_v32  ;;  %v352_v42 = vshll.u32 %v1988_v26, 16  ;;  %v381_v47 = vshrl.u32 %v1996_v34, 16  ;;  %v2014_v54 = vld [vmem:[%s1954_s20 + $0x50] sm:$0x1]  ;;  %v2023_v62 = vld [vmem:[%s1954_s20] sm:$0xf] }
  0x1a   : > { %v338_v45 = vrot.slane %v336_v37, 5  ;;  %v344_v46 = vrot.slane %v342_v38, 5  ;;  %v384_v48 = vshll.u32 %v1996_v34, 16  ;;  %v348_v51 = vrot.slane %v346_v41, 4  ;;  %v2031_v10 = vld [vmem:[%s1954_s20 + $0x4] sm:$0xf] }
  0x1b   : > { %v292_v49 = vrot.slane %v291_v39, 4  ;;  %v302_v50 = vrot.slane %v301_v40, 4  ;;  %v354_v52 = vrot.slane %v352_v42, 5  ;;  %v383_v55 = vrot.slane %v381_v47, 4  ;;  %v2037_v24 = vld [vmem:[%s1954_s20 + $0x8] sm:$0x1] }
  0x1c   : > { %v339_v53 = vor.u32 %v338_v45, %v335_v36  ;;  %v386_v56 = vrot.slane %v384_v48, 5  ;;  %v390_v57 = vshll.u32 %v2003_v43, 16  ;;  %v349_v60 = vor.u32 %v348_v51, %v344_v46  ;;  %v2047_v38 = vld [vmem:[%s1954_s20 + $0x24] sm:$0xf]  ;;  %v2054_v45 = vld [vmem:[%s1954_s20 + $0x28] sm:$0xf] }
  0x1d   : > { %v297_v58 = vsel %vm2007_vm4, %v292_v49, %v296_v32  ;;  %v307_v59 = vsel %vm2007_vm4, %v302_v50, %v306_v35  ;;  %v394_v61 = vshrl.u32 %v2003_v43, 16  ;;  %v400_v6 = vshll.u32 %v2014_v54, 16  ;;  %v2063_v50 = vld [vmem:[%s1954_s20 + $0x2c] sm:$0x1] }
  0x1e   : > { %v435_v63 = vunpack.c.l.b16 %v297_v58  ;;  %v436_v0 = vunpack.c.l.b16 %v307_v59  ;;  %v340_v1 = vrot.slane %v339_v53, 4  ;;  %v387_v2 = vor.u32 %v386_v56, %v383_v55 }
  0x1f   : > { %v350_v3 = vrot.slane %v349_v60, 4  ;;  %v392_v4 = vrot.slane %v390_v57, 5  ;;  %v396_v5 = vrot.slane %v394_v61, 4  ;;  %v237_v13 = vshrl.u32 %v2023_v62, 16  ;;  %v2075_v57 = vld [vmem:[%s1954_s20 + $0x3c] sm:$0xf] }
  0x20   : > { %v2026_v7 = vpack.c.b16 %v436_v0, %v435_v63  ;;  %v345_v8 = vsel %vm2007_vm4, %v340_v1, %v344_v46  ;;  %v388_v9 = vrot.slane %v387_v2, 4  ;;  %v402_v22 = vrot.slane %v400_v6, 5  ;;  %v2082_v0 = vld [vmem:[%s1954_s20 + $0x40] sm:$0xf] }
  0x21   : > { %v355_v19 = vsel %vm2007_vm4, %v350_v3, %v354_v52  ;;  %v439_v20 = vunpack.c.l.b16 %v345_v8  ;;  %v397_v21 = vor.u32 %v396_v5, %v392_v4  ;;  %v239_v31 = vrot.slane %v237_v13, 4 }
  0x22   : > { %1592 = vmatmul.msk.bf16.vlgmr.msra.gmra.mxu1 %vm460_vm3, %v2026_v7  ;;  %v440_v27 = vunpack.c.l.b16 %v355_v19  ;;  %v393_v30 = vsel %vm2007_vm4, %v388_v9, %v392_v4  ;;  %v240_v32 = vshll.u32 %v2023_v62, 16  ;;  %v246_v36 = vshll.u32 %v2031_v10, 16  ;;  %v2089_v4 = vld [vmem:[%s1954_s20 + $0x44] sm:$0x1]  ;;  %v2096_v19 = vld [vmem:[%s1954_s20 + $0x54] sm:$0xf] }
  0x23   : > { %v398_v33 = vrot.slane %v397_v21, 4  ;;  %v443_v35 = vunpack.c.l.b16 %v393_v30  ;;  %v250_v37 = vshrl.u32 %v2031_v10, 16  ;;  %v256_v41 = vshll.u32 %v2037_v24, 16 }
  0x24   : > { %v2049_v39 = vpack.c.b16 %v440_v27, %v439_v20  ;;  %v242_v40 = vrot.slane %v240_v32, 5  ;;  %v675_v42 = vrot.slane %v2037_v24, 5  ;;  %v248_v47 = vrot.slane %v246_v36, 5 }
  0x25   : > { %v403_v46 = vsel %vm2007_vm4, %v398_v33, %v402_v22  ;;  %v252_v48 = vrot.slane %v250_v37, 4  ;;  %v608_v49 = vsel %vm485_vm0, %v1633_v28, 0  ;;  %v258_v53 = vrot.slane %v256_v41, 5 }
  0x26   : > { %1594 = vmatmul.msk.bf16.vlgmr.msra.gmra.mxu2 %vm460_vm3, %v2049_v39  ;;  %v444_v51 = vunpack.c.l.b16 %v403_v46  ;;  %v243_v52 = vor.u32 %v242_v40, %v239_v31  ;;  %617 = vmatpush.bf16.msrb.mxu1 %v608_v49  ;;  %v973_v55 = vsel %vm485_vm0, %v1687_v29, 0  ;;  %v309_v11 = vshrl.u32 %v2047_v38, 16  ;;  %v2102_v40 = vld [vmem:[%s1954_s20 + $0x58] sm:$0xf] }
  0x27   : > { %v253_v56 = vor.u32 %v252_v48, %v248_v47  ;;  %982 = vmatpush.bf16.msrb.mxu0 %v973_v55  ;;  %v312_v12 = vshll.u32 %v2047_v38, 16  ;;  %v318_v28 = vshll.u32 %v2054_v45, 16  ;;  %v322_v60 = vshrl.u32 %v2054_v45, 16 }
  0x28   : > { %v2077_v58 = vpack.c.b16 %v444_v51, %v443_v35  ;;  %v244_v59 = vrot.slane %v243_v52, 4  ;;  %v328_v14 = vshll.u32 %v2063_v50, 16  ;;  %v311_v29 = vrot.slane %v309_v11, 4  ;;  %v2108_v51 = vld [vmem:[%s1954_s20 + $0x5c] sm:$0x1] }
  0x29   : > { %v254_v15 = vrot.slane %v253_v56, 4  ;;  %v314_v61 = vrot.slane %v312_v12, 5  ;;  %v320_v63 = vrot.slane %v318_v28, 5  ;;  %v324_v2 = vrot.slane %v322_v60, 4  ;;  %v2111_v52 = vld [vmem:[%s1954_s20 + $0xc] sm:$0xf] }
  0x2a   : > { %1596 = vmatmul.msk.bf16.vlgmr.msra.gmra.mxu3 %vm460_vm3, %v2077_v58  ;;  %v249_v1 = vsel %vm2007_vm4, %v244_v59, %v248_v47  ;;  %v330_v3 = vrot.slane %v328_v14, 5  ;;  %v357_v5 = vshrl.u32 %v2075_v57, 16  ;;  %v360_v13 = vshll.u32 %v2075_v57, 16 }
  0x2b   : > { %v259_v6 = vsel %vm2007_vm4, %v254_v15, %v258_v53  ;;  %v431_v8 = vunpack.c.l.b16 %v249_v1  ;;  %v315_v9 = vor.u32 %v314_v61, %v311_v29  ;;  %v325_v21 = vor.u32 %v324_v2, %v320_v63  ;;  %v2121_v61 = vld [vmem:[%s1954_s20 + $0x10] sm:$0xf] }
  0x2c   : > { %v432_v20 = vunpack.c.l.b16 %v259_v6  ;;  %v359_v22 = vrot.slane %v357_v5, 4  ;;  %v366_v27 = vshll.u32 %v2082_v0, 16  ;;  %v362_v31 = vrot.slane %v360_v13, 5 }
  0x2d   : > { %v316_v30 = vrot.slane %v315_v9, 4  ;;  %v370_v32 = vshrl.u32 %v2082_v0, 16  ;;  %v376_v33 = vshll.u32 %v2089_v4, 16  ;;  %v326_v36 = vrot.slane %v325_v21, 4 }
  0x2e   : > { %v447_v35 = vpack.c.b16 %v432_v20, %v431_v8  ;;  %v368_v37 = vrot.slane %v366_v27, 5  ;;  %v405_v41 = vshrl.u32 %v2096_v19, 16  ;;  %v363_v47 = vor.u32 %v362_v31, %v359_v22  ;;  %v2129_v20 = vld [vmem:[%s1954_s20 + $0x14] sm:$0x1] }
  0x2f   : > { %v321_v46 = vsel %vm2007_vm4, %v316_v30, %v320_v63  ;;  %v372_v48 = vrot.slane %v370_v32, 4  ;;  %v378_v49 = vrot.slane %v376_v33, 5  ;;  %v331_v53 = vsel %vm2007_vm4, %v326_v36, %v330_v3  ;;  %v1719_v36 = vld [vmem:[%s2610_s1 + $0x30] sm:$0xf] }
  0x30   : > { %1590 = vmatmul.msk.bf16.vlgmr.msra.gmra.mxu0 %vm460_vm3, %v447_v35  ;;  %v437_v55 = vunpack.c.l.b16 %v321_v46  ;;  %v407_v56 = vrot.slane %v405_v41, 4  ;;  %v408_v11 = vshll.u32 %v2096_v19, 16  ;;  %v438_v12 = vunpack.c.l.b16 %v331_v53 }
  0x31   : > { %v364_v28 = vrot.slane %v363_v47, 4  ;;  %v373_v59 = vor.u32 %v372_v48, %v368_v37  ;;  %v414_v60 = vshll.u32 %v2102_v40, 16  ;;  %v418_v15 = vshrl.u32 %v2102_v40, 16  ;;  %v1777_v47 = vld [vmem:[%s2610_s1 + $0x30] sm:$0x30] }
  0x32   : > { %v410_v14 = vrot.slane %v408_v11, 5  ;;  %v424_v29 = vshll.u32 %v2108_v51, 16  ;;  %v261_v63 = vshrl.u32 %v2111_v52, 16  ;;  %v2124_v1 = vpack.c.b16 %v438_v12, %v437_v55  ;;  %v1778_v11 = vld [vmem:[%s2610_s1 + $0x38] sm:$0x30] }
  0x33   : > { %v369_v2 = vsel %vm2007_vm4, %v364_v28, %v368_v37  ;;  %v374_v3 = vrot.slane %v373_v59, 4  ;;  %v416_v5 = vrot.slane %v414_v60, 5  ;;  %v420_v9 = vrot.slane %v418_v15, 4  ;;  %v1701_v60 = vld [vmem:[%s2610_s1 + $0x28] sm:$0xf] }
  0x34   : > { %v441_v6 = vunpack.c.l.b16 %v369_v2  ;;  %v411_v8 = vor.u32 %v410_v14, %v407_v56  ;;  %v426_v13 = vrot.slane %v424_v29, 5  ;;  %1593 = vmatmul.msk.bf16.gmra.mxu1 %vm460_vm3, %v2124_v1  ;;  %v263_v22 = vrot.slane %v261_v63, 4  ;;  %v1733_v56 = vld [vmem:[%s2610_s1 + $0x38] sm:$0xf]  ;;  %v1776_v14 = vld [vmem:[%s2610_s1 + $0x28] sm:$0x30] }
  0x35   : > { %v379_v21 = vsel %vm2007_vm4, %v374_v3, %v378_v49  ;;  %v264_v27 = vshll.u32 %v2111_v52, 16  ;;  %v270_v30 = vshll.u32 %v2121_v61, 16  ;;  %v421_v33 = vor.u32 %v420_v9, %v416_v5 }
  0x36   : > { %v442_v31 = vunpack.c.l.b16 %v379_v21  ;;  %v412_v32 = vrot.slane %v411_v8, 4  ;;  %v274_v35 = vshrl.u32 %v2121_v61, 16  ;;  %v280_v46 = vshll.u32 %v2129_v20, 16 }
  0x37   : > { %v266_v37 = vrot.slane %v264_v27, 5  ;;  %v272_v41 = vrot.slane %v270_v30, 5  ;;  %v422_v53 = vrot.slane %v421_v33, 4  ;;  %v1642_v63 = vrot.slane %v2023_v62, 9  ;;  %v1779_v62 = vld [vmem:[%s2610_s1 + $0x40] sm:$0x30] }
  0x38   : > { %v2145_v48 = vpack.c.b16 %v442_v31, %v441_v6  ;;  %v417_v49 = vsel %vm2007_vm4, %v412_v32, %v416_v5  ;;  %v276_v55 = vrot.slane %v274_v35, 4  ;;  %v282_v59 = vrot.slane %v280_v46, 5 }
  0x39   : > { %v445_v12 = vunpack.c.l.b16 %v417_v49  ;;  %v267_v28 = vor.u32 %v266_v37, %v263_v22  ;;  %v427_v15 = vsel %vm2007_vm4, %v422_v53, %v426_v13  ;;  %v672_v2 = vrot.slane %v2031_v10, 5  ;;  %v1748_v13 = vld [vmem:[%s2610_s1 + $0x40] sm:$0xf] }
  0x3a   : > { %1595 = vmatmul.msk.bf16.gmra.mxu2 %vm460_vm3, %v2145_v48  ;;  %v277_v29 = vor.u32 %v276_v55, %v272_v41  ;;  %v446_v3 = vunpack.c.l.b16 %v427_v15  ;;  %v1720_v8 = vor.u32 %v1777_v47, %v1719_v36  ;;  %v1734_v9 = vor.u32 %v1778_v11, %v1733_v56  ;;  %v1761_v53 = vld [vmem:[%s1954_s20] sm:$0xff] }
  0x3b   : > { %v268_v5 = vrot.slane %v267_v28, 4  ;;  %v674_v22 = vrot.slane %v672_v2, 4  ;;  %v1702_v27 = vor.u32 %v1776_v14, %v1701_v60  ;;  %v673_v35 = vsel %vm2168_vm7, %v1642_v63, %v672_v2  ;;  %v1762_v2 = vld [vmem:[%s1954_s20 + $0xc] sm:$0xff] }
  0x3c   : > { %v278_v21 = vrot.slane %v277_v29, 4  ;;  %v2178_v10 = vpack.c.b16 %v446_v3, %v445_v12  ;;  %v1147_v31 = vsel %vm485_vm0, %v1720_v8, 0  ;;  %v1253_v36 = vsel %vm485_vm0, %v1734_v9, 0 }
  0x3d   : > { %v273_v30 = vsel %vm2007_vm4, %v268_v5, %v272_v41  ;;  %1156 = vmatpush.bf16.msra.mxu2 %v1147_v31  ;;  %v676_v41 = vsel %vm2168_vm7, %v674_v22, %v675_v42  ;;  %v1063_v46 = vsel %vm485_vm0, %v1702_v27, 0  ;;  %v1749_v47 = vor.u32 %v1779_v62, %v1748_v13  ;;  %1262 = vmatpush.bf16.msra.mxu3 %v1253_v36  ;;  %v2232_v31 = vld [vmem:[%s1954_s20 + $0x18] sm:$0xff] }
  0x3e   : > { %v283_v32 = vsel %vm2007_vm4, %v278_v21, %v282_v59  ;;  %v433_v33 = vunpack.c.l.b16 %v273_v30  ;;  %1597 = vmatmul.msk.bf16.gmra.mxu3 %vm460_vm3, %v2178_v10  ;;  %1072 = vmatpush.bf16.msra.mxu1 %v1063_v46  ;;  %v729_v56 = vunpack.c.l.b16 %v673_v35  ;;  %v730_v11 = vunpack.c.l.b16 %v676_v41 }
  0x3f   : > { %v434_v37 = vunpack.c.l.b16 %v283_v32  ;;  %v1343_v55 = vsel %vm485_vm0, %v1749_v47, 0  ;;  %v1644_v24 = vrot.slane %v1968_v16, 9  ;;  %v686_v42 = vrot.slane %v1971_v17, 5 }
  0x40   : > { %1352 = vmatpush.bf16.msra.mxu0 %v1343_v55  ;;  %v689_v12 = vrot.slane %v1974_v18, 5  ;;  %v745_v28 = vpack.c.b16 %v730_v11, %v729_v56  ;;  %v679_v59 = vrot.slane %v2121_v61, 5  ;;  %v1643_v16 = vrot.slane %v2111_v52, 9 }
  0x41   : > { %v448_v49 = vpack.c.b16 %v434_v37, %v433_v33  ;;  %v687_v60 = vsel %vm2168_vm7, %v1644_v24, %v686_v42  ;;  %v688_v14 = vrot.slane %v686_v42, 4  ;;  %v682_v18 = vrot.slane %v2129_v20, 5  ;;  %v2257_v33 = vld [vmem:[%s1954_s20 + $0x30] sm:$0xff] }
  0x42   : > { %v733_v15 = vunpack.c.l.b16 %v687_v60  ;;  %v681_v17 = vrot.slane %v679_v59, 4  ;;  %v680_v61 = vsel %vm2168_vm7, %v1643_v16, %v679_v59  ;;  %v1645_v52 = vrot.slane %v2047_v38, 9 }
  0x43   : > { %1591 = vmatmul.msk.bf16.gmra.mxu0 %vm460_vm3, %v448_v49  ;;  %v690_v29 = vsel %vm2168_vm7, %v688_v14, %v689_v12  ;;  %v731_v8 = vunpack.c.l.b16 %v680_v61  ;;  %v693_v20 = vrot.slane %v2054_v45, 5  ;;  %v696_v21 = vrot.slane %v2063_v50, 5  ;;  %v2245_v50 = vld [vmem:[%s1954_s20 + $0x24] sm:$0xff] }
  0x44   : > { %1634 = vmatmul.msk.bf16.vlgmr.msrb.gmra.mxu1 %vm460_vm3, %v1761_v53  ;;  %v734_v63 = vunpack.c.l.b16 %v690_v29  ;;  %v683_v5 = vsel %vm2168_vm7, %v681_v17, %v682_v18  ;;  %v700_v32 = vrot.slane %v1985_v25, 5  ;;  %v1646_v35 = vrot.slane %v1981_v23, 9  ;;  %v2297_v12 = vld [vmem:[%s1954_s20 + $0x48] sm:$0xff] }
  0x45   : > { %v732_v9 = vunpack.c.l.b16 %v683_v5  ;;  %v694_v27 = vsel %vm2168_vm7, %v1645_v52, %v693_v20  ;;  %v695_v13 = vrot.slane %v693_v20, 4  ;;  %v703_v37 = vrot.slane %v1988_v26, 5  ;;  %v2333_v52 = vld [vmem:[%s1954_s20 + $0x54] sm:$0xff] }
  0x46   : > { %v2211_v3 = vpack.c.b16 %v734_v63, %v733_v15  ;;  %v735_v62 = vunpack.c.l.b16 %v694_v27  ;;  %v702_v36 = vrot.slane %v700_v32, 4  ;;  %v701_v41 = vsel %vm2168_vm7, %v1646_v35, %v700_v32  ;;  %v2338_v32 = vld [vmem:[%s1954_s20 + $0x68] sm:$0x1] }
  0x47   : > { %v2223_v22 = vpack.c.b16 %v732_v9, %v731_v8  ;;  %v697_v30 = vsel %vm2168_vm7, %v695_v13, %v696_v21  ;;  %v737_v46 = vunpack.c.l.b16 %v701_v41  ;;  %v707_v26 = vrot.slane %v2082_v0, 5 }
  0x48   : > { %v736_v38 = vunpack.c.l.b16 %v697_v30  ;;  %v704_v25 = vsel %vm2168_vm7, %v702_v36, %v703_v37  ;;  %v1647_v53 = vrot.slane %v2075_v57, 9  ;;  %v710_v56 = vrot.slane %v2089_v4, 5 }
  0x49   : > { %v738_v47 = vunpack.c.l.b16 %v704_v25  ;;  %v709_v55 = vrot.slane %v707_v26, 4  ;;  %v714_v4 = vrot.slane %v2003_v43, 5  ;;  %v717_v60 = vrot.slane %v2014_v54, 5  ;;  %v2317_v54 = vld [vmem:[%s1954_s20 + $0x64] sm:$0xf] }
  0x4a   : > { %1656 = vmatmul.msk.bf16.vlgmr.msrb.gmra.mxu2 %vm460_vm3, %v745_v28  ;;  %v2234_v45 = vpack.c.b16 %v736_v38, %v735_v62  ;;  %v708_v11 = vsel %vm2168_vm7, %v1647_v53, %v707_v26  ;;  %v1648_v28 = vrot.slane %v1996_v34, 9  ;;  %v2314_v34 = vld [vmem:[%s1954_s20 + $0x60] sm:$0xf]  ;;  %v721_v16 = vrot.slane %v2102_v40, 5 }
  0x4b   : > { %v2271_v23 = vpack.c.b16 %v738_v47, %v737_v46  ;;  %v711_v0 = vsel %vm2168_vm7, %v709_v55, %v710_v56  ;;  %v739_v24 = vunpack.c.l.b16 %v708_v11  ;;  %v716_v59 = vrot.slane %v714_v4, 4 }
  0x4c   : > { %v740_v42 = vunpack.c.l.b16 %v711_v0  ;;  %v715_v15 = vsel %vm2168_vm7, %v1648_v28, %v714_v4  ;;  %v935_v18 = vshrl.u32 %v2314_v34, 16  ;;  %v938_v61 = vshll.u32 %v2314_v34, 16 }
  0x4d   : > { %v718_v43 = vsel %vm2168_vm7, %v716_v59, %v717_v60  ;;  %v741_v29 = vunpack.c.l.b16 %v715_v15  ;;  %v944_v5 = vshll.u32 %v2317_v54, 16  ;;  %v948_v8 = vshrl.u32 %v2317_v54, 16  ;;  %v2370_v59 = vld [vmem:[%s1954_s20 + $0x60] sm:$0xff] }
  0x4e   : > { %1674 = vmatmul.msk.bf16.vlgmr.msrb.gmra.mxu3 %vm460_vm3, %v1762_v2  ;;  %v2291_v57 = vpack.c.b16 %v740_v42, %v739_v24  ;;  %v742_v63 = vunpack.c.l.b16 %v718_v43  ;;  %v1649_v40 = vrot.slane %v2096_v19, 9  ;;  %v723_v20 = vrot.slane %v721_v16, 4 }
  0x4f   : > { %v724_v21 = vrot.slane %v2108_v51, 5  ;;  %v937_v27 = vrot.slane %v935_v18, 4  ;;  %v940_v13 = vrot.slane %v938_v61, 5  ;;  %v946_v62 = vrot.slane %v944_v5, 5 }
  0x50   : > { %v950_v30 = vrot.slane %v948_v8, 4  ;;  %v722_v36 = vsel %vm2168_vm7, %v1649_v40, %v721_v16  ;;  %v954_v41 = vshll.u32 %v2338_v32, 16 }
  0x51   : > { %v725_v19 = vsel %vm2168_vm7, %v723_v20, %v724_v21  ;;  %v941_v37 = vor.u32 %v940_v13, %v937_v27  ;;  %v743_v46 = vunpack.c.l.b16 %v722_v36 }
  0x52   : > { %v951_v51 = vor.u32 %v950_v30, %v946_v62  ;;  %v744_v47 = vunpack.c.l.b16 %v725_v19  ;;  %v956_v56 = vrot.slane %v954_v41, 5 }
  0x53   : > { %1688 = vmatmul.msk.bf16.vlgmr.msrb.gmra.mxu0 %vm460_vm3, %v448_v49  ;;  %v2277_v49 = vld [vmem:[%s1954_s20 + $0x3c] sm:$0xff]  ;;  %v942_v53 = vrot.slane %v941_v37, 4 }
  0x54   : > { %1635 = vmatmul.msk.bf16.gmra.mxu1 %vm460_vm3, %v1762_v2  ;;  %v2319_v2 = vpack.c.b16 %v742_v63, %v741_v29  ;;  %v952_v55 = vrot.slane %v951_v51, 4  ;;  %v2357_v0 = vpack.c.b16 %v744_v47, %v743_v46 }
  0x55   : > { %v947_v42 = vsel %vm2007_vm4, %v942_v53, %v946_v62 }
  0x56   : > { %v957_v4 = vsel %vm2007_vm4, %v952_v55, %v956_v56  ;;  %v961_v60 = vunpack.c.l.b16 %v947_v42 }
  0x57   : > { %v962_v15 = vunpack.c.l.b16 %v957_v4 }
  0x59   : > { %v2376_v29 = vpack.c.b16 %v962_v15, %v961_v60 }
  0x5a   : > { %1657 = vmatmul.msk.bf16.gmra.mxu2 %vm460_vm3, %v2223_v22 }
  0x5e   : > { %1675 = vmatmul.msk.bf16.gmra.mxu3 %vm460_vm3, %v2232_v31 }
  0x63   : > { %1689 = vmatmul.msk.bf16.gmra.mxu0 %vm460_vm3, %v2026_v7 }
  0x64   : > { %1636 = vmatmul.msk.bf16.gmra.mxu1 %vm460_vm3, %v2232_v31 }
  0x6a   : > { %1658 = vmatmul.msk.bf16.gmra.mxu2 %vm460_vm3, %v2211_v3 }
  0x6e   : > { %1676 = vmatmul.msk.bf16.gmra.mxu3 %vm460_vm3, %v2245_v50 }
  0x73   : > { %1690 = vmatmul.msk.bf16.gmra.mxu0 %vm460_vm3, %v2124_v1 }
  0x74   : > { %1637 = vmatmul.msk.bf16.gmra.mxu1 %vm460_vm3, %v2245_v50 }
  0x7a   : > { %1659 = vmatmul.msk.bf16.gmra.mxu2 %vm460_vm3, %v2234_v45 }
  0x7e   : > { %1677 = vmatmul.msk.bf16.gmra.mxu3 %vm460_vm3, %v2257_v33 }
  0x83   : > { %1691 = vmatmul.msk.bf16.gmra.mxu0 %vm460_vm3, %v2049_v39 }
  0x84   : > { %1638 = vmatmul.msk.bf16.gmra.mxu1 %vm460_vm3, %v2257_v33 }
  0x8a   : > { %1660 = vmatmul.msk.bf16.gmra.mxu2 %vm460_vm3, %v2271_v23 }
  0x8e   : > { %1678 = vmatmul.msk.bf16.gmra.mxu3 %vm460_vm3, %v2277_v49 }
  0x93   : > { %1692 = vmatmul.msk.bf16.gmra.mxu0 %vm460_vm3, %v2145_v48 }
  0x94   : > { %1639 = vmatmul.msk.bf16.gmra.mxu1 %vm460_vm3, %v2277_v49 }
  0x9a   : > { %1661 = vmatmul.msk.bf16.gmra.mxu2 %vm460_vm3, %v2291_v57 }
  0x9e   : > { %1679 = vmatmul.msk.bf16.gmra.mxu3 %vm460_vm3, %v2297_v12 }
  0x9f   : > { %v2303_v14 = vpop.f32.mrf.mxu1 }
  0xa3   : > { %1693 = vmatmul.msk.bf16.gmra.mxu0 %vm460_vm3, %v2077_v58 }
  0xa4   : > { %1640 = vmatmul.msk.bf16.gmra.mxu1 %vm460_vm3, %v2297_v12 }
  0xa7   : > { %v2322_v17 = vpop.f32.mrf.mxu1 }
  0xa9   : > { %v2328_v9 = vpop.f32.mrf.mxu2 }
  0xaa   : > { %1662 = vmatmul.msk.bf16.gmra.mxu2 %vm460_vm3, %v2319_v2 }
  0xad   : > { %v498_v38 = vpop.f32.mrf.mxu0  ;;  %v2340_v35 = vpop.f32.mrf.mxu3 }
  0xae   : > { %1680 = vmatmul.msk.bf16.gmra.mxu3 %vm460_vm3, %v2333_v52 }
  0xb1   : > { %v2349_v25 = vpop.f32.mrf.mxu1  ;;  %v2353_v26 = vpop.f32.mrf.mxu2 }
  0xb3   : > { %1694 = vmatmul.msk.bf16.gmra.mxu0 %vm460_vm3, %v2178_v10 }
  0xb4   : > { %1641 = vmatmul.msk.bf16.gmra.mxu1 %vm460_vm3, %v2333_v52 }
  0xb5   : > { %v500_v11 = vpop.f32.mrf.mxu0  ;;  %v2359_v24 = vpop.f32.mrf.mxu3 }
  0xb9   : > { %v2367_v28 = vpop.f32.mrf.mxu1 }
  0xba   : > { %1663 = vmatmul.msk.bf16.gmra.mxu2 %vm460_vm3, %v2357_v0 }
  0xbd   : > { %v2372_v43 = vpop.f32.mrf.mxu2 }
  0xbe   : > { %1681 = vmatmul.msk.bf16.gmra.mxu3 %vm460_vm3, %v2370_v59 }
  0xc0   : > { %v503_v63 = vpop.f32.mrf.mxu0 }
  0xc1   : > { %v2378_v16 = vpop.f32.mrf.mxu3  ;;  %v619_v18 = vpop.f32.mrf.mxu1 }
  0xc2   : > { %v620_v61 = vadd.f32 %v619_v18, %v498_v38 }
  0xc3   : > { %1695 = vmatmul.msk.bf16.gmra.mxu0 %vm460_vm3, %v2376_v29 }
  0xc4   : > { %1703 = vmatmul.msk.bf16.vlgmr.msra.gmra.mxu1 %vm460_vm3, %v2223_v22 }
  0xc5   : > { %v2382_v5 = vpop.f32.mrf.mxu2 }
  0xc8   : > { %v505_v8 = vpop.f32.mrf.mxu0 }
  0xc9   : > { %v2386_v40 = vpop.f32.mrf.mxu3  ;;  %v621_v20 = vpop.f32.mrf.mxu1 }
  0xca   : > { %1721 = vmatmul.msk.bf16.vlgmr.msra.gmra.mxu2 %vm460_vm3, %v2232_v31  ;;  %v622_v21 = vadd.f32 %v621_v20, %v500_v11 }
  0xcd   : > { %v794_v27 = vpop.f32.mrf.mxu2 }
  0xce   : > { %v834_v13 = vadd.f32 %v794_v27, %v620_v61  ;;  %1735 = vmatmul.msk.bf16.vlgmr.msra.gmra.mxu3 %vm460_vm3, %v2026_v7 }
  0xd0   : > { %v984_v62 = vpop.f32.mrf.mxu0 }
  0xd1   : > { %v878_v30 = vpop.f32.mrf.mxu3  ;;  %v624_v38 = vpop.f32.mrf.mxu1 }
  0xd2   : > { %v918_v22 = vadd.f32 %v878_v30, %v834_v13  ;;  %v625_v36 = vadd.f32 %v624_v38, %v503_v63 }
  0xd3   : > { %1750 = vmatmul.msk.bf16.vlgmr.msra.gmra.mxu0 %vm460_vm3, %v2211_v3 }
  0xd4   : > { %1704 = vmatmul.msk.bf16.gmra.mxu1 %vm460_vm3, %v2211_v3  ;;  %v2396_v31 = vadd.f32 %v984_v62, %v918_v22 }
  0xd5   : > { %v796_v19 = vpop.f32.mrf.mxu2 }
  0xd6   : > { %v835_v37 = vadd.f32 %v796_v19, %v622_v21 }
  0xd8   : > { %v986_v51 = vpop.f32.mrf.mxu0 }
  0xd9   : > { %v880_v41 = vpop.f32.mrf.mxu3  ;;  %v626_v7 = vpop.f32.mrf.mxu1 }
  0xda   : > { %1722 = vmatmul.msk.bf16.gmra.mxu2 %vm460_vm3, %v2245_v50  ;;  %v919_v46 = vadd.f32 %v880_v41, %v835_v37  ;;  %v627_v47 = vadd.f32 %v626_v7, %v505_v8 }
  0xdc   : > { %v2400_v55 = vadd.f32 %v986_v51, %v919_v46 }
  0xdd   : > { %v799_v53 = vpop.f32.mrf.mxu2 }
  0xde   : > { %v836_v56 = vadd.f32 %v799_v53, %v625_v36  ;;  %1736 = vmatmul.msk.bf16.gmra.mxu3 %vm460_vm3, %v2124_v1 }
  0xe0   : > { %v989_v11 = vpop.f32.mrf.mxu0 }
  0xe1   : > { %v883_v3 = vpop.f32.mrf.mxu3  ;;  %v629_v42 = vpop.f32.mrf.mxu1 }
  0xe2   : > { %v920_v4 = vadd.f32 %v883_v3, %v836_v56  ;;  %v630_v60 = vadd.f32 %v629_v42, %v2303_v14 }
  0xe3   : > { %1751 = vmatmul.msk.bf16.gmra.mxu0 %vm460_vm3, %v2234_v45 }
  0xe4   : > { %1705 = vmatmul.msk.bf16.gmra.mxu1 %vm460_vm3, %v2234_v45  ;;  %v2409_v15 = vadd.f32 %v989_v11, %v920_v4 }
  0xe5   : > { %v801_v50 = vpop.f32.mrf.mxu2 }
  0xe6   : > { %v837_v63 = vadd.f32 %v801_v50, %v627_v47 }
  0xe8   : > { %v991_v18 = vpop.f32.mrf.mxu0 }
  0xe9   : > { %v885_v61 = vpop.f32.mrf.mxu3  ;;  %v631_v1 = vpop.f32.mrf.mxu1 }
  0xea   : > { %1723 = vmatmul.msk.bf16.gmra.mxu2 %vm460_vm3, %v2257_v33  ;;  %v921_v8 = vadd.f32 %v885_v61, %v837_v63  ;;  %v632_v20 = vadd.f32 %v631_v1, %v2322_v17 }
  0xec   : > { %v2414_v27 = vadd.f32 %v991_v18, %v921_v8 }
  0xed   : > { %v804_v21 = vpop.f32.mrf.mxu2 }
  0xee   : > { %v838_v14 = vadd.f32 %v804_v21, %v630_v60  ;;  %1737 = vmatmul.msk.bf16.gmra.mxu3 %vm460_vm3, %v2049_v39 }
  0xf0   : > { %v994_v45 = vpop.f32.mrf.mxu0 }
  0xf1   : > { %v888_v13 = vpop.f32.mrf.mxu3  ;;  %v634_v62 = vpop.f32.mrf.mxu1 }
  0xf2   : > { %v922_v30 = vadd.f32 %v888_v13, %v838_v14  ;;  %v635_v33 = vadd.f32 %v634_v62, %v2349_v25 }
  0xf3   : > { %1752 = vmatmul.msk.bf16.gmra.mxu0 %vm460_vm3, %v2271_v23 }
  0xf4   : > { %1706 = vmatmul.msk.bf16.gmra.mxu1 %vm460_vm3, %v2271_v23  ;;  %v2423_v17 = vadd.f32 %v994_v45, %v922_v30 }
  0xf5   : > { %v806_v38 = vpop.f32.mrf.mxu2 }
  0xf6   : > { %v839_v22 = vadd.f32 %v806_v38, %v632_v20  ;;  %v2461_v38 = vld [vmem:[%s1954_s20 + $0x6c] sm:$0xf] }
  0xf8   : > { %v996_v36 = vpop.f32.mrf.mxu0 }
  0xf9   : > { %v890_v19 = vpop.f32.mrf.mxu3  ;;  %v636_v39 = vpop.f32.mrf.mxu1 }
  0xfa   : > { %1724 = vmatmul.msk.bf16.gmra.mxu2 %vm460_vm3, %v2277_v49  ;;  %v923_v37 = vadd.f32 %v890_v19, %v839_v22  ;;  %v637_v51 = vadd.f32 %v636_v39, %v2367_v28  ;;  %v2464_v22 = vld [vmem:[%s1954_s20 + $0x70] sm:$0xf]  ;;  %v1696_v39 = vrot.slane %v2314_v34, 9 }
  0xfc   : > { %v2428_v7 = vadd.f32 %v996_v36, %v923_v37  ;;  %v1215_v37 = vshrl.u32 %v2461_v38, 16 }
  0xfd   : > { %v809_v41 = vpop.f32.mrf.mxu2 }
  0xfe   : > { %v840_v25 = vadd.f32 %v809_v41, %v635_v33  ;;  %1738 = vmatmul.msk.bf16.gmra.mxu3 %vm460_vm3, %v2145_v48  ;;  %v1043_v33 = vrot.slane %v2317_v54, 5  ;;  %v1224_v41 = vshll.u32 %v2464_v22, 16  ;;  %v1217_v34 = vrot.slane %v1215_v37, 4 }
 0x100   : > { %v999_v23 = vpop.f32.mrf.mxu0 }
 0x101   : > { %v893_v46 = vpop.f32.mrf.mxu3  ;;  %v639_v47 = vpop.f32.mrf.mxu1 }
 0x102   : > { %v924_v53 = vadd.f32 %v893_v46, %v840_v25  ;;  %v640_v4 = vadd.f32 %v639_v47, %v2328_v9 }
 0x103   : > { %1753 = vmatmul.msk.bf16.gmra.mxu0 %vm460_vm3, %v2291_v57 }
 0x104   : > { %1707 = vmatmul.msk.bf16.gmra.mxu1 %vm460_vm3, %v2291_v57  ;;  %v2436_v49 = vadd.f32 %v999_v23, %v924_v53 }
 0x105   : > { %v811_v56 = vpop.f32.mrf.mxu2 }
 0x106   : > { %v841_v28 = vadd.f32 %v811_v56, %v637_v51  ;;  %v1045_v51 = vrot.slane %v1043_v33, 4  ;;  %v1044_v56 = vsel %vm2168_vm7, %v1696_v39, %v1043_v33  ;;  %v1770_v39 = vld [vmem:[%s1954_s20 + $0x6c] sm:$0xff] }
 0x108   : > { %v1001_v11 = vpop.f32.mrf.mxu0 }
 0x109   : > { %v895_v3 = vpop.f32.mrf.mxu3  ;;  %v641_v48 = vpop.f32.mrf.mxu1 }
 0x10a   : > { %1725 = vmatmul.msk.bf16.gmra.mxu2 %vm460_vm3, %v2297_v12  ;;  %v925_v42 = vadd.f32 %v895_v3, %v841_v28  ;;  %v642_v12 = vadd.f32 %v641_v48, %v2353_v26  ;;  %v1226_v28 = vrot.slane %v1224_v41, 5  ;;  %v230_v3 = vld [vmem:[%s1954_s20 + $0x74] sm:$0x1]  ;;  %s1577_s20 = sshll.u32 %s1847_s12, 3 }
 0x10b   : > { %p188_p6 = scmp.lt.s32.totalorder %s1577_s20, 15 }
 0x10c   : > { %v2441_v50 = vadd.f32 %v1001_v11, %v925_v42 }
 0x10d   : > { %v814_v60 = vpop.f32.mrf.mxu2  ;;  %s2630_s20 = smov (!%p188_p6, %s1577_s20), 15 }
 0x10e   : > { %v842_v63 = vadd.f32 %v814_v60, %v640_v4  ;;  %1739 = vmatmul.msk.bf16.gmra.mxu3 %vm460_vm3, %v2077_v58  ;;  %v1051_v4 = vunpack.c.l.b16 %v1044_v56  ;;  %s1578_s22 = sshll.u32 %s2630_s20, 1 }
 0x10f   : > { %s192_s25 = sadd.s32 %s1579_s23, %s1578_s22 }
 0x110   : > { %v1004_v57 = vpop.f32.mrf.mxu0  ;;  %s1580_s26 = sshll.u32 %s192_s25, 2 }
 0x111   : > { %v898_v18 = vpop.f32.mrf.mxu3  ;;  %v644_v61 = vpop.f32.mrf.mxu1  ;;  %s2531_s28 = scalar_lea.vmem %s2612_s3, %s1580_s26 }
 0x112   : > { %v926_v1 = vadd.f32 %v898_v18, %v842_v63  ;;  %v645_v13 = vadd.f32 %v644_v61, %v2372_v43  ;;  %v1234_v61 = vshll.u32 %v230_v3, 16 }
 0x113   : > { %1754 = vmatmul.msk.bf16.gmra.mxu0 %vm460_vm3, %v2319_v2 }
 0x114   : > { %1708 = vmatmul.msk.bf16.gmra.mxu1 %vm460_vm3, %v2319_v2  ;;  %v2450_v9 = vadd.f32 %v1004_v57, %v926_v1 }
 0x115   : > { %v816_v8 = vpop.f32.mrf.mxu2 }
 0x116   : > { %v843_v20 = vadd.f32 %v816_v8, %v642_v12 }
 0x118   : > { %v1006_v21 = vpop.f32.mrf.mxu0 }
 0x119   : > { %v900_v58 = vpop.f32.mrf.mxu3  ;;  %v646_v14 = vpop.f32.mrf.mxu1 }
 0x11a   : > { %1726 = vmatmul.msk.bf16.gmra.mxu2 %vm460_vm3, %v2333_v52  ;;  %v927_v45 = vadd.f32 %v900_v58, %v843_v20  ;;  %v1046_v52 = vrot.slane %v2338_v32, 5  ;;  %v647_v54 = vadd.f32 %v646_v14, %v2382_v5  ;;  %v1228_v32 = vshrl.u32 %v2464_v22, 16 }
 0x11b   : > { %v1236_v14 = vrot.slane %v1234_v61, 5 }
 0x11c   : > { %v2455_v26 = vadd.f32 %v1006_v21, %v927_v45  ;;  %v1047_v5 = vsel %vm2168_vm7, %v1045_v51, %v1046_v52  ;;  %v1230_v11 = vrot.slane %v1228_v32, 4  ;;  %v1323_v45 = vrot.slane %v2464_v22, 5 }
 0x11d   : > { %v819_v62 = vpop.f32.mrf.mxu2  ;;  %v1052_v60 = vunpack.c.l.b16 %v1047_v5 }
 0x11e   : > { %v844_v30 = vadd.f32 %v819_v62, %v645_v13  ;;  %1740 = vmatmul.msk.bf16.gmra.mxu3 %vm460_vm3, %v2178_v10  ;;  %v1218_v10 = vshll.u32 %v2461_v38, 16  ;;  %v1231_v18 = vor.u32 %v1230_v11, %v1226_v28  ;;  %v1325_v52 = vrot.slane %v1323_v45, 4 }
 0x11f   : > { %v1053_v20 = vpack.c.b16 %v1052_v60, %v1051_v4 }
 0x120   : > { %v1009_v2 = vpop.f32.mrf.mxu0  ;;  %v1220_v47 = vrot.slane %v1218_v10, 5 }
 0x121   : > { %v903_v36 = vpop.f32.mrf.mxu3  ;;  %v649_v19 = vpop.f32.mrf.mxu1 }
 0x122   : > { %v928_v43 = vadd.f32 %v903_v36, %v844_v30  ;;  %v1221_v63 = vor.u32 %v1220_v47, %v1217_v34  ;;  %v650_v57 = vadd.f32 %v649_v19, %v2340_v35  ;;  %v1326_v36 = vrot.slane %v230_v3, 5 }
 0x123   : > { %1755 = vmatmul.msk.bf16.gmra.mxu0 %vm460_vm3, %v2357_v0 }
 0x124   : > { %1709 = vmatmul.msk.bf16.gmra.mxu1 %vm460_vm3, %v2357_v0  ;;  %v2477_v23 = vadd.f32 %v1009_v2, %v928_v43  ;;  %v1222_v21 = vrot.slane %v1221_v63, 4  ;;  %v1743_v2 = vrot.slane %v2461_v38, 9 }
 0x125   : > { %v821_v25 = vpop.f32.mrf.mxu2 }
 0x126   : > { %v845_v46 = vadd.f32 %v821_v25, %v647_v54  ;;  %v1227_v30 = vsel %vm2007_vm4, %v1222_v21, %v1226_v28  ;;  %v1324_v38 = vsel %vm2168_vm7, %v1743_v2, %v1323_v45 }
 0x127   : > { %v1241_v37 = vunpack.c.l.b16 %v1227_v30  ;;  %v1331_v25 = vunpack.c.l.b16 %v1324_v38 }
 0x128   : > { %v1011_v53 = vpop.f32.mrf.mxu0 }
 0x129   : > { %v905_v48 = vpop.f32.mrf.mxu3  ;;  %v651_v0 = vpop.f32.mrf.mxu1 }
 0x12a   : > { %1727 = vmatmul.msk.bf16.gmra.mxu2 %vm460_vm3, %v2370_v59  ;;  %v929_v42 = vadd.f32 %v905_v48, %v845_v46  ;;  %v1232_v59 = vrot.slane %v1231_v18, 4 }
 0x12c   : > { %v2487_v12 = vadd.f32 %v1011_v53, %v929_v42  ;;  %v1237_v33 = vsel %vm2007_vm4, %v1232_v59, %v1236_v14  ;;  %v2524_v59 = vld [vmem:[%s2611_s2] ss:$0 sm:$0xff] }
 0x12d   : > { %v824_v1 = vpop.f32.mrf.mxu2  ;;  %v1242_v10 = vunpack.c.l.b16 %v1237_v33 }
 0x12e   : > { %v846_v8 = vadd.f32 %v824_v1, %v650_v57  ;;  %1741 = vmatmul.msk.bf16.gmra.mxu3 %vm460_vm3, %v2376_v29  ;;  %v652_v29 = vadd.f32 %v651_v0, %v2359_v24  ;;  %v1327_v24 = vsel %vm2168_vm7, %v1325_v52, %v1326_v36 }
 0x12f   : > { %v1243_v32 = vpack.c.b16 %v1242_v10, %v1241_v37  ;;  %v1332_v46 = vunpack.c.l.b16 %v1327_v24 }
 0x130   : > { %v1014_v58 = vpop.f32.mrf.mxu0 }
 0x131   : > { %v908_v13 = vpop.f32.mrf.mxu3  ;;  %v654_v62 = vpop.f32.mrf.mxu1  ;;  %v1333_v5 = vpack.c.b16 %v1332_v46, %v1331_v25 }
 0x132   : > { %v930_v35 = vadd.f32 %v908_v13, %v846_v8  ;;  %v655_v34 = vadd.f32 %v654_v62, %v2378_v16 }
 0x133   : > { %1756 = vmatmul.msk.bf16.gmra.mxu0 %vm460_vm3, %v1053_v20 }
 0x134   : > { %1710 = vmatmul.msk.bf16.gmra.mxu1 %vm460_vm3, %v1053_v20  ;;  %v2500_v22 = vadd.f32 %v1014_v58, %v930_v35 }
 0x135   : > { %v826_v19 = vpop.f32.mrf.mxu2 }
 0x136   : > { %v847_v43 = vadd.f32 %v826_v19, %v652_v29 }
 0x138   : > { %v1016_v54 = vpop.f32.mrf.mxu0 }
 0x139   : > { %v910_v44 = vpop.f32.mrf.mxu3  ;;  %v656_v51 = vpop.f32.mrf.mxu1 }
 0x13a   : > { %1728 = vmatmul.msk.bf16.gmra.mxu2 %vm460_vm3, %v1770_v39  ;;  %v931_v41 = vadd.f32 %v910_v44, %v847_v43  ;;  %v657_v48 = vadd.f32 %v656_v51, %v2386_v40 }
 0x13c   : > { %v2509_v53 = vadd.f32 %v1016_v54, %v931_v41 }
 0x13d   : > { %v829_v47 = vpop.f32.mrf.mxu2 }
 0x13e   : > { %v848_v56 = vadd.f32 %v829_v47, %v655_v34  ;;  %1742 = vmatmul.msk.bf16.gmra.mxu3 %vm460_vm3, %v1243_v32 }
 0x140   : > { %v1019_v6 = vpop.f32.mrf.mxu0 }
 0x141   : > { %v913_v28 = vpop.f32.mrf.mxu3  ;;  %v1074_v11 = vpop.f32.mrf.mxu1 }
 0x142   : > { %v932_v3 = vadd.f32 %v913_v28, %v848_v56  ;;  %v1114_v18 = vadd.f32 %v1074_v11, %v2396_v31 }
 0x143   : > { %1757 = vmatmul.msk.bf16.gmra.mxu0 %vm460_vm3, %v1333_v5 }
 0x144   : > { %v2514_v42 = vadd.f32 %v1019_v6, %v932_v3 }
 0x145   : > { %v831_v0 = vpop.f32.mrf.mxu2 }
 0x146   : > { %v849_v16 = vadd.f32 %v831_v0, %v657_v48 }
 0x148   : > { %v1021_v4 = vpop.f32.mrf.mxu0 }
 0x149   : > { %v915_v60 = vpop.f32.mrf.mxu3  ;;  %v1076_v63 = vpop.f32.mrf.mxu1 }
 0x14a   : > { %v933_v57 = vadd.f32 %v915_v60, %v849_v16  ;;  %v1115_v31 = vadd.f32 %v1076_v63, %v2400_v55 }
 0x14c   : > { %v2518_v1 = vadd.f32 %v1021_v4, %v933_v57 }
 0x14d   : > { %v1158_v61 = vpop.f32.mrf.mxu2 }
 0x14e   : > { %v1198_v8 = vadd.f32 %v1158_v61, %v1114_v18 }
 0x150   : > { %v1354_v20 = vpop.f32.mrf.mxu0 }
 0x151   : > { %v1264_v40 = vpop.f32.mrf.mxu3  ;;  %v1079_v21 = vpop.f32.mrf.mxu1 }
 0x152   : > { %v1304_v58 = vadd.f32 %v1264_v40, %v1198_v8  ;;  %v1116_v36 = vadd.f32 %v1079_v21, %v2409_v15 }
 0x154   : > { %v1394_v14 = vadd.f32 %v1354_v20, %v1304_v58 }
 0x155   : > { %v1160_v45 = vpop.f32.mrf.mxu2 }
 0x156   : > { %v1414_v13 = vadd.f32 %v2524_v59, %v1394_v14  ;;  %v1199_v62 = vadd.f32 %v1160_v45, %v1115_v31 }
 0x158   : > { %v1356_v35 = vpop.f32.mrf.mxu0  ;;  %v1430_v30 = vmax.f32 %v1414_v13, 0.0 }
 0x159   : > { %v1266_v2 = vpop.f32.mrf.mxu3  ;;  %v1081_v29 = vpop.f32.mrf.mxu1 }
 0x15a   : > { %v1446_v33 = vpack.c.bf16 %v1430_v30, %v1430_v30  ;;  %v1305_v52 = vadd.f32 %v1266_v2, %v1199_v62  ;;  %v1117_v41 = vadd.f32 %v1081_v29, %v2414_v27 }
 0x15c   : > { %1463 = vst.msk [vmem:[%s2531_s28] sm:$0xf] %vm1462_vm8, %v1446_v33  ;;  %v1395_v55 = vadd.f32 %v1356_v35, %v1305_v52 }
 0x15d   : > { %v1163_v19 = vpop.f32.mrf.mxu2 }
 0x15e   : > { %v1415_v43 = vadd.f32 %v2524_v59, %v1395_v55  ;;  %v1200_v39 = vadd.f32 %v1163_v19, %v1116_v36 }
 0x160   : > { %v1359_v37 = vpop.f32.mrf.mxu0  ;;  %v1431_v10 = vmax.f32 %v1415_v43, 0.0 }
 0x161   : > { %v1269_v54 = vpop.f32.mrf.mxu3  ;;  %v1084_v38 = vpop.f32.mrf.mxu1 }
 0x162   : > { %v1447_v24 = vpack.c.bf16 %v1431_v10, %v1431_v10  ;;  %v1306_v44 = vadd.f32 %v1269_v54, %v1200_v39  ;;  %v1118_v11 = vadd.f32 %v1084_v38, %v2423_v17 }
 0x164   : > { %1464 = vst.msk [vmem:[%s2531_s28 + $0x4] sm:$0xf] %vm1462_vm8, %v1447_v24  ;;  %v1396_v51 = vadd.f32 %v1359_v37, %v1306_v44 }
 0x165   : > { %v1165_v32 = vpop.f32.mrf.mxu2 }
 0x166   : > { %v1416_v25 = vadd.f32 %v2524_v59, %v1396_v51  ;;  %v1201_v15 = vadd.f32 %v1165_v32, %v1117_v41 }
 0x168   : > { %v1361_v46 = vpop.f32.mrf.mxu0  ;;  %v1432_v34 = vmax.f32 %v1416_v25, 0.0 }
 0x169   : > { %v1271_v47 = vpop.f32.mrf.mxu3  ;;  %v1086_v56 = vpop.f32.mrf.mxu1 }
 0x16a   : > { %v1448_v5 = vpack.c.bf16 %v1432_v34, %v1432_v34  ;;  %v1307_v6 = vadd.f32 %v1271_v47, %v1201_v15  ;;  %v1119_v61 = vadd.f32 %v1086_v56, %v2428_v7 }
 0x16c   : > { %1465 = vst.msk [vmem:[%s2531_s28 + $0x8] sm:$0xf] %vm1462_vm8, %v1448_v5  ;;  %v1397_v28 = vadd.f32 %v1361_v46, %v1307_v6 }
 0x16d   : > { %v1168_v3 = vpop.f32.mrf.mxu2 }
 0x16e   : > { %v1417_v48 = vadd.f32 %v2524_v59, %v1397_v28  ;;  %v1202_v27 = vadd.f32 %v1168_v3, %v1118_v11 }
 0x170   : > { %v1364_v0 = vpop.f32.mrf.mxu0  ;;  %v1433_v16 = vmax.f32 %v1417_v48, 0.0 }
 0x171   : > { %v1274_v4 = vpop.f32.mrf.mxu3  ;;  %v1089_v60 = vpop.f32.mrf.mxu1 }
 0x172   : > { %v1449_v63 = vpack.c.bf16 %v1433_v16, %v1433_v16  ;;  %v1308_v57 = vadd.f32 %v1274_v4, %v1202_v27  ;;  %v1120_v62 = vadd.f32 %v1089_v60, %v2436_v49 }
 0x174   : > { %1466 = vst.msk [vmem:[%s2531_s28 + $0xc] sm:$0xf] %vm1462_vm8, %v1449_v63  ;;  %v1398_v18 = vadd.f32 %v1364_v0, %v1308_v57 }
 0x175   : > { %v1170_v8 = vpop.f32.mrf.mxu2 }
 0x176   : > { %v1418_v20 = vadd.f32 %v2524_v59, %v1398_v18  ;;  %v1203_v17 = vadd.f32 %v1170_v8, %v1119_v61 }
 0x178   : > { %v1366_v40 = vpop.f32.mrf.mxu0  ;;  %v1434_v21 = vmax.f32 %v1418_v20, 0.0 }
 0x179   : > { %v1276_v58 = vpop.f32.mrf.mxu3  ;;  %v1091_v14 = vpop.f32.mrf.mxu1 }
 0x17a   : > { %v1450_v31 = vpack.c.bf16 %v1434_v21, %v1434_v21  ;;  %v1309_v45 = vadd.f32 %v1276_v58, %v1203_v17  ;;  %v1121_v43 = vadd.f32 %v1091_v14, %v2441_v50 }
 0x17c   : > { %1467 = vst.msk [vmem:[%s2531_s28 + $0x10] sm:$0xf] %vm1462_vm8, %v1450_v31  ;;  %v1399_v13 = vadd.f32 %v1366_v40, %v1309_v45 }
 0x17d   : > { %v1173_v35 = vpop.f32.mrf.mxu2 }
 0x17e   : > { %v1419_v30 = vadd.f32 %v2524_v59, %v1399_v13  ;;  %v1204_v7 = vadd.f32 %v1173_v35, %v1120_v62 }
 0x180   : > { %v1369_v2 = vpop.f32.mrf.mxu0  ;;  %v1435_v29 = vmax.f32 %v1419_v30, 0.0 }
 0x181   : > { %v1279_v33 = vpop.f32.mrf.mxu3  ;;  %v1094_v52 = vpop.f32.mrf.mxu1 }
 0x182   : > { %v1451_v55 = vpack.c.bf16 %v1435_v29, %v1435_v29  ;;  %v1310_v36 = vadd.f32 %v1279_v33, %v1204_v7  ;;  %v1122_v32 = vadd.f32 %v1094_v52, %v2450_v9 }
 0x184   : > { %1468 = vst.msk [vmem:[%s2531_s28 + $0x14] sm:$0xf] %vm1462_vm8, %v1451_v55  ;;  %v1400_v19 = vadd.f32 %v1369_v2, %v1310_v36 }
 0x185   : > { %v1175_v39 = vpop.f32.mrf.mxu2 }
 0x186   : > { %v1420_v37 = vadd.f32 %v2524_v59, %v1400_v19  ;;  %v1205_v49 = vadd.f32 %v1175_v39, %v1121_v43 }
 0x188   : > { %v1371_v10 = vpop.f32.mrf.mxu0  ;;  %v1436_v54 = vmax.f32 %v1420_v37, 0.0 }
 0x189   : > { %v1281_v38 = vpop.f32.mrf.mxu3  ;;  %v1096_v24 = vpop.f32.mrf.mxu1 }
 0x18a   : > { %v1452_v44 = vpack.c.bf16 %v1436_v54, %v1436_v54  ;;  %v1311_v51 = vadd.f32 %v1281_v38, %v1205_v49  ;;  %v1123_v11 = vadd.f32 %v1096_v24, %v2455_v26 }
 0x18c   : > { %1469 = vst.msk [vmem:[%s2531_s28 + $0x18] sm:$0xf] %vm1462_vm8, %v1452_v44  ;;  %v1401_v41 = vadd.f32 %v1371_v10, %v1311_v51 }
 0x18d   : > { %v1178_v25 = vpop.f32.mrf.mxu2 }
 0x18e   : > { %v1421_v15 = vadd.f32 %v2524_v59, %v1401_v41  ;;  %v1206_v50 = vadd.f32 %v1178_v25, %v1122_v32 }
 0x190   : > { %v1374_v46 = vpop.f32.mrf.mxu0  ;;  %v1437_v34 = vmax.f32 %v1421_v15, 0.0 }
 0x191   : > { %v1284_v47 = vpop.f32.mrf.mxu3  ;;  %v1099_v56 = vpop.f32.mrf.mxu1 }
 0x192   : > { %v1453_v5 = vpack.c.bf16 %v1437_v34, %v1437_v34  ;;  %v1312_v6 = vadd.f32 %v1284_v47, %v1206_v50  ;;  %v1124_v18 = vadd.f32 %v1099_v56, %v2477_v23 }
 0x194   : > { %1470 = vst.msk [vmem:[%s2531_s28 + $0x1c] sm:$0xf] %vm1462_vm8, %v1453_v5  ;;  %v1402_v28 = vadd.f32 %v1374_v46, %v1312_v6 }
 0x195   : > { %v1180_v3 = vpop.f32.mrf.mxu2 }
 0x196   : > { %v1422_v48 = vadd.f32 %v2524_v59, %v1402_v28  ;;  %v1207_v9 = vadd.f32 %v1180_v3, %v1123_v11 }
 0x198   : > { %v1376_v27 = vpop.f32.mrf.mxu0  ;;  %v1438_v0 = vmax.f32 %v1422_v48, 0.0 }
 0x199   : > { %v1286_v16 = vpop.f32.mrf.mxu3  ;;  %v1101_v4 = vpop.f32.mrf.mxu1 }
 0x19a   : > { %v1454_v60 = vpack.c.bf16 %v1438_v0, %v1438_v0  ;;  %v1313_v63 = vadd.f32 %v1286_v16, %v1207_v9  ;;  %v1125_v45 = vadd.f32 %v1101_v4, %v2487_v12 }
 0x19c   : > { %1471 = vst.msk [vmem:[%s2531_s28 + $0x20] sm:$0xf] %vm1462_vm8, %v1454_v60  ;;  %v1403_v57 = vadd.f32 %v1376_v27, %v1313_v63 }
 0x19d   : > { %v1183_v61 = vpop.f32.mrf.mxu2 }
 0x19e   : > { %v1423_v8 = vadd.f32 %v2524_v59, %v1403_v57  ;;  %v1208_v26 = vadd.f32 %v1183_v61, %v1124_v18 }
 0x1a0   : > { %v1379_v20 = vpop.f32.mrf.mxu0  ;;  %v1439_v17 = vmax.f32 %v1423_v8, 0.0 }
 0x1a1   : > { %v1289_v40 = vpop.f32.mrf.mxu3  ;;  %v1104_v14 = vpop.f32.mrf.mxu1 }
 0x1a2   : > { %v1455_v21 = vpack.c.bf16 %v1439_v17, %v1439_v17  ;;  %v1314_v58 = vadd.f32 %v1289_v40, %v1208_v26  ;;  %v1126_v52 = vadd.f32 %v1104_v14, %v2500_v22 }
 0x1a4   : > { %1472 = vst.msk [vmem:[%s2531_s28 + $0x24] sm:$0xf] %vm1462_vm8, %v1455_v21  ;;  %v1404_v31 = vadd.f32 %v1379_v20, %v1314_v58 }
 0x1a5   : > { %v1185_v13 = vpop.f32.mrf.mxu2 }
 0x1a6   : > { %v1424_v62 = vadd.f32 %v2524_v59, %v1404_v31  ;;  %v1209_v23 = vadd.f32 %v1185_v13, %v1125_v45 }
 0x1a8   : > { %v1381_v35 = vpop.f32.mrf.mxu0  ;;  %v1440_v30 = vmax.f32 %v1424_v62, 0.0 }
 0x1a9   : > { %v1291_v7 = vpop.f32.mrf.mxu3  ;;  %v1106_v36 = vpop.f32.mrf.mxu1 }
 0x1aa   : > { %v1456_v2 = vpack.c.bf16 %v1440_v30, %v1440_v30  ;;  %v1315_v29 = vadd.f32 %v1291_v7, %v1209_v23  ;;  %v1127_v38 = vadd.f32 %v1106_v36, %v2509_v53 }
 0x1ac   : > { %1473 = vst.msk [vmem:[%s2531_s28 + $0x28] sm:$0xf] %vm1462_vm8, %v1456_v2  ;;  %v1405_v33 = vadd.f32 %v1381_v35, %v1315_v29 }
 0x1ad   : > { %v1188_v55 = vpop.f32.mrf.mxu2 }
 0x1ae   : > { %v1425_v19 = vadd.f32 %v2524_v59, %v1405_v33  ;;  %v1210_v12 = vadd.f32 %v1188_v55, %v1126_v52 }
 0x1b0   : > { %v1384_v43 = vpop.f32.mrf.mxu0  ;;  %v1441_v39 = vmax.f32 %v1425_v19, 0.0 }
 0x1b1   : > { %v1294_v37 = vpop.f32.mrf.mxu3  ;;  %v1109_v51 = vpop.f32.mrf.mxu1 }
 0x1b2   : > { %v1457_v49 = vpack.c.bf16 %v1441_v39, %v1441_v39  ;;  %v1316_v10 = vadd.f32 %v1294_v37, %v1210_v12  ;;  %v1128_v34 = vadd.f32 %v1109_v51, %v2514_v42 }
 0x1b4   : > { %1474 = vst.msk [vmem:[%s2531_s28 + $0x2c] sm:$0xf] %vm1462_vm8, %v1457_v49  ;;  %v1406_v54 = vadd.f32 %v1384_v43, %v1316_v10 }
 0x1b5   : > { %v1190_v24 = vpop.f32.mrf.mxu2 }
 0x1b6   : > { %v1426_v44 = vadd.f32 %v2524_v59, %v1406_v54  ;;  %v1211_v22 = vadd.f32 %v1190_v24, %v1127_v38 }
 0x1b8   : > { %v1386_v41 = vpop.f32.mrf.mxu0  ;;  %v1442_v32 = vmax.f32 %v1426_v44, 0.0 }
 0x1b9   : > { %v1296_v25 = vpop.f32.mrf.mxu3  ;;  %v1111_v6 = vpop.f32.mrf.mxu1 }
 0x1ba   : > { %v1458_v15 = vpack.c.bf16 %v1442_v32, %v1442_v32  ;;  %v1317_v50 = vadd.f32 %v1296_v25, %v1211_v22  ;;  %v1129_v27 = vadd.f32 %v1111_v6, %v2518_v1 }
 0x1bc   : > { %1475 = vst.msk [vmem:[%s2531_s28 + $0x30] sm:$0xf] %vm1462_vm8, %v1458_v15  ;;  %v1407_v46 = vadd.f32 %v1386_v41, %v1317_v50 }
 0x1bd   : > { %v1193_v47 = vpop.f32.mrf.mxu2 }
 0x1be   : > { %v1427_v56 = vadd.f32 %v2524_v59, %v1407_v46  ;;  %v1212_v53 = vadd.f32 %v1193_v47, %v1128_v34 }
 0x1c0   : > { %v1443_v5 = vmax.f32 %v1427_v56, 0.0  ;;  %v1389_v28 = vpop.f32.mrf.mxu0 }
 0x1c1   : > { %v1299_v11 = vpop.f32.mrf.mxu3 }
 0x1c2   : > { %v1459_v3 = vpack.c.bf16 %v1443_v5, %v1443_v5  ;;  %v1318_v48 = vadd.f32 %v1299_v11, %v1212_v53 }
 0x1c4   : > { %1476 = vst.msk [vmem:[%s2531_s28 + $0x34] sm:$0xf] %vm1462_vm8, %v1459_v3  ;;  %v1408_v9 = vadd.f32 %v1389_v28, %v1318_v48 }
 0x1c5   : > { %v1195_v0 = vpop.f32.mrf.mxu2 }
 0x1c6   : > { %v1428_v42 = vadd.f32 %v2524_v59, %v1408_v9  ;;  %v1213_v16 = vadd.f32 %v1195_v0, %v1129_v27 }
 0x1c8   : > { %v1444_v4 = vmax.f32 %v1428_v42, 0.0  ;;  %v1391_v18 = vpop.f32.mrf.mxu0 }
 0x1c9   : > { %v1301_v60 = vpop.f32.mrf.mxu3 }
 0x1ca   : > { %v1460_v63 = vpack.c.bf16 %v1444_v4, %v1444_v4  ;;  %v1319_v57 = vadd.f32 %v1301_v60, %v1213_v16 }
 0x1cc   : > { %1477 = vst.msk [vmem:[%s2531_s28 + $0x38] sm:$0xf] %vm1462_vm8, %v1460_v63  ;;  %v1409_v61 = vadd.f32 %v1391_v18, %v1319_v57 }
 0x1ce   : > { %v1429_v8 = vadd.f32 %v2524_v59, %v1409_v61 }
 0x1d0   : > { %v1445_v26 = vmax.f32 %v1429_v8, 0.0 }
 0x1d2   : > { %v1461_v20 = vpack.c.bf16 %v1445_v26, %v1445_v26 }
 0x1d4   : > { %1478 = vst.msk [vmem:[%s2531_s28 + $0x3c] sm:$0xf] %vm1462_vm8, %v1461_v20 }
 0x1d5 PF: > { %s13_s16 = sadd.s32 1, %s1863_s16   ;;  %s2617_s12 = smov %s1855_s14 }
 0x1d6   : > { %p10_p7 = scmp.ge.s32.totalorder %s13_s16, 6   ;;  %s2618_s13 = smov %s1859_s15 }
 0x1d7   : > { %s2619_s14 = smov %s2622_s17  ;;  %s2620_s15 = smov %s2626_s18 }
 0x1d8   :  { %12 = sbr.rel (!%p10_p7) target bundleno = 3 (0x3), region = 71 }

// kernel: basic_rfb_forward.14
= control target key start
LH: loop header
LB: loop body
LE: loop exit
PB: predicated region body
PF: predicated region fallthrough
CT: control target
= control target key end

     0   :  { %s2150_s12 = smov 0   ;;  %s2152_s13 = smov 0   ;;  %s2927_s0 = inlined_call_operand.vmem [shape: bf16[2,22,22,16], index: 0, kind: input, shape index: {}]   ;;  %s2928_s1 = inlined_call_operand.vmem [shape: bf16[3,3,16,16], index: 1, kind: input, shape index: {}]   ;;  %s2929_s2 = inlined_call_operand.vmem [shape: f32[1,16], index: 2, kind: input, shape index: {}]   ;;  %s2930_s3 = inlined_call_operand.vmem [shape: bf16[2,16,16,16], index: 3, kind: output, shape index: {}]  }
   0x1   :  { %s2154_s14 = smov 0   ;;  %s2156_s15 = smov 0  }
   0x2   :  { %s2158_s16 = smov 0  }
   0x3 LB: > { %s22_s17 = sadd.s32 1, %s2120_s14  ;;  %s25_s18 = sadd.s32 1, %s2124_s15  ;;  %s2128_s16 = sphi %s2158_s16, %s13_s16   ;;  %s2124_s15 = sphi %s2156_s15, %s2938_s15   ;;  %s2120_s14 = sphi %s2154_s14, %s2937_s14   ;;  %s2116_s13 = sphi %s2152_s13, %s2936_s13   ;;  %s2112_s12 = sphi %s2150_s12, %s2935_s12  }
   0x4   : > { %p23_p0 = scmp.ge.s32.totalorder %s22_s17, 2  ;;  %p1816_p1 = scmp.ge.s32.totalorder %s2128_s16, 1 }
   0x5   : > { %p151_p2 = scmp.lt.s32.totalorder %s2128_s16, 5 }
   0x6   : > { %s2940_s17 = smov (%p23_p0, %s22_s17), 0  ;;  %s2942_s18 = smov (!%p23_p0, %s25_s18), %s2124_s15 }
   0x7   : > { %p152_p3 = pnand %p1816_p1, %p151_p2  ;;  %p27_p4 = scmp.ge.s32.totalorder %s2942_s18, 2 }
   0x8   : > { %p180_p5 = scmp.lt.s32.totalorder (!%p152_p3), %s2116_s13, 1  ;;  %s2021_s23 = smul.u32 (!%p152_p3), 96, %s2112_s12 }
   0x9   : > { %s2944_s18 = smov (%p27_p4, %s2942_s18), 0  ;;  %155 = sbr.rel (%p152_p3) target bundleno = 471 (0x1d7), region = 32 }
   0xe   : > { %v2037_v0 = vld [vmem:[%s2928_s1 + $0x8] sm:$0xff]  ;;  %v2038_v1 = vld [vmem:[%s2928_s1 + $0x10] sm:$0xff]  ;;  %s2946_s13 = smov (!%p180_p5, %s2116_s13), 1  ;;  %vm245_vm0 = vsmask.f32 2304  ;;  %v2039_v2 = vld [vmem:[%s2928_s1 + $0x18] sm:$0xff] }
   0xf   : > { %2045 = vmatpush.bf16.msra.mxu1 %v2037_v0  ;;  %2046 = vmatpush.bf16.msra.mxu2 %v2037_v0  ;;  %s2048_s24 = smul.u32 264, %s2946_s13  ;;  %v2036_v3 = vld [vmem:[%s2928_s1] sm:$0xff]  ;;  %vm246_vm1 = vsmask.f32 6416  ;;  %vm505_vm2 = vcmask 130048   ;;  %vm706_vm4 = vcmask 1040384  }
  0x10   : > { %2047 = vmatpush.bf16.msra.mxu3 %v2037_v0  ;;  %537 = vmatpush.bf16.msra.mxu0 %v2037_v0  ;;  %v2040_v4 = vld [vmem:[%s2928_s1 + $0x20] sm:$0xff]  ;;  %vm2239_vm3 = vmor %vm245_vm0, %vm246_vm1  ;;  %vm707_vm5 = vcmask 1044484   ;;  %vm1703_vm7 = vcmask 125952  }
  0x11   : > { %s184_s27 = scalar_lea.vmem %s2927_s0, %s2048_s24  ;;  %vm2391_vm6 = vmor %vm706_vm4, %vm707_vm5  ;;  %s1820_s24 = sshll.u32 %s2946_s13, 5 }
  0x12   : > { %s2195_s28 = scalar_lea.vmem %s184_s27, %s2021_s23  ;;  %s1818_s23 = sshll.u32 %s2112_s12, 3 }
  0x13   : > { %829 = vmatpush.bf16.msrb.mxu2 %v2038_v1  ;;  %v2207_v5 = vld [vmem:[%s2195_s28 + $0x18] sm:$0xf]  ;;  %v2210_v6 = vld [vmem:[%s2195_s28 + $0x1c] sm:$0xf]  ;;  %v2213_v7 = vld [vmem:[%s2195_s28 + $0x20] sm:$0x7]  ;;  %656 = vmatpush.bf16.msrb.mxu1 %v2036_v3 }
  0x14   : > { %v305_v8 = vshrl.u32 %v2207_v5, 16  ;;  %v308_v9 = vshll.u32 %v2207_v5, 16  ;;  %v314_v10 = vshrl.u32 %v2210_v6, 16  ;;  %v317_v11 = vshll.u32 %v2210_v6, 16  ;;  %v2220_v12 = vld [vmem:[%s2195_s28 + $0x30] sm:$0xf]  ;;  %927 = vmatpush.bf16.msrb.mxu3 %v2039_v2  ;;  %1103 = vmatpush.bf16.msrb.mxu0 %v2040_v4 }
  0x15   : > { %v324_v13 = vshrl.u32 %v2213_v7, 16  ;;  %v327_v14 = vshll.u32 %v2213_v7, 16  ;;  %v2225_v15 = vld [vmem:[%s2195_s28 + $0x34] sm:$0xf]  ;;  %v2228_v20 = vld [vmem:[%s2195_s28 + $0x38] sm:$0x7] }
  0x16   : > { %v307_v16 = vrot.slane %v305_v8, 5  ;;  %v310_v17 = vrot.slane %v308_v9, 6  ;;  %v316_v18 = vrot.slane %v314_v10, 5  ;;  %v319_v19 = vrot.slane %v317_v11, 6  ;;  %v2235_v29 = vld [vmem:[%s2195_s28 + $0x48] sm:$0xf] }
  0x17   : > { %v326_v21 = vrot.slane %v324_v13, 5  ;;  %v329_v22 = vrot.slane %v327_v14, 6  ;;  %v361_v23 = vshrl.u32 %v2220_v12, 16  ;;  %v364_v24 = vshll.u32 %v2220_v12, 16  ;;  %v2246_v42 = vld [vmem:[%s2195_s28 + $0x4c] sm:$0xf] }
  0x18   : > { %v311_v25 = vor.u32 %v310_v17, %v307_v16  ;;  %v320_v26 = vor.u32 %v319_v19, %v316_v18  ;;  %v370_v27 = vshrl.u32 %v2225_v15, 16  ;;  %v373_v28 = vshll.u32 %v2225_v15, 16  ;;  %v2255_v52 = vld [vmem:[%s2195_s28 + $0x50] sm:$0x7]  ;;  %v2259_v57 = vld [vmem:[%s2195_s28] sm:$0xf] }
  0x19   : > { %v330_v31 = vor.u32 %v329_v22, %v326_v21  ;;  %v363_v32 = vrot.slane %v361_v23, 5  ;;  %v366_v33 = vrot.slane %v364_v24, 6  ;;  %v380_v34 = vshrl.u32 %v2228_v20, 16  ;;  %v2266_v2 = vld [vmem:[%s2195_s28 + $0x4] sm:$0xf]  ;;  %p188_p6 = scmp.lt.s32.totalorder %s1818_s23, 15 }
  0x1a   : > { %v312_v35 = vrot.slane %v311_v25, 4  ;;  %v322_v36 = vrot.slane %v320_v26, 4  ;;  %v372_v37 = vrot.slane %v370_v27, 5  ;;  %v375_v38 = vrot.slane %v373_v28, 6  ;;  %v2273_v9 = vld [vmem:[%s2195_s28 + $0x8] sm:$0x7] }
  0x1b   : > { %v367_v39 = vor.u32 %v366_v33, %v363_v32  ;;  %v382_v40 = vrot.slane %v380_v34, 5  ;;  %v383_v41 = vshll.u32 %v2228_v20, 16  ;;  %v417_v43 = vshrl.u32 %v2235_v29, 16  ;;  %v2288_v33 = vld [vmem:[%s2195_s28 + $0x28] sm:$0xf]  ;;  %s2948_s23 = smov (!%p188_p6, %s1818_s23), 15 }
  0x1c   : > { %v321_v44 = vsel %vm2239_vm3, %v312_v35, %v320_v26  ;;  %v331_v45 = vsel %vm2239_vm3, %v322_v36, %v330_v31  ;;  %v376_v46 = vor.u32 %v375_v38, %v372_v37  ;;  %v420_v47 = vshll.u32 %v2235_v29, 16  ;;  %v2283_v26 = vld [vmem:[%s2195_s28 + $0x24] sm:$0xf]  ;;  %s1819_s12 = sshll.u32 %s2948_s23, 1 }
  0x1d   : > { %v479_v48 = vunpack.c.l.b16 %v321_v44  ;;  %v480_v49 = vunpack.c.l.b16 %v331_v45  ;;  %v368_v50 = vrot.slane %v367_v39, 4  ;;  %v385_v51 = vrot.slane %v383_v41, 6  ;;  %s192_s25 = sadd.s32 %s1820_s24, %s1819_s12 }
  0x1e   : > { %v378_v53 = vrot.slane %v376_v46, 4  ;;  %v419_v54 = vrot.slane %v417_v43, 5  ;;  %v422_v55 = vrot.slane %v420_v47, 6  ;;  %v426_v56 = vshrl.u32 %v2246_v42, 16 }
  0x1f   : > { %v493_v58 = vpack.c.b16 %v480_v49, %v479_v48  ;;  %v377_v59 = vsel %vm2239_vm3, %v368_v50, %v376_v46  ;;  %v386_v60 = vor.u32 %v385_v51, %v382_v40  ;;  %v429_v61 = vshll.u32 %v2246_v42, 16  ;;  %v2298_v46 = vld [vmem:[%s2195_s28 + $0x2c] sm:$0x7] }
  0x20   : > { %v483_v62 = vunpack.c.l.b16 %v377_v59  ;;  %v423_v63 = vor.u32 %v422_v55, %v419_v54  ;;  %v428_v0 = vrot.slane %v426_v56, 5  ;;  %v436_v1 = vshrl.u32 %v2255_v52, 16  ;;  %v2310_v59 = vld [vmem:[%s2195_s28 + $0x40] sm:$0xf] }
  0x21   : > { %1833 = vmatmul.msk.bf16.vlgmr.msra.gmra.mxu1 %vm505_vm2, %v493_v58  ;;  %v387_v3 = vsel %vm2239_vm3, %v378_v53, %v386_v60  ;;  %v431_v4 = vrot.slane %v429_v61, 6  ;;  %v439_v8 = vshll.u32 %v2255_v52, 16  ;;  %v249_v10 = vshrl.u32 %v2259_v57, 16  ;;  %v2303_v53 = vld [vmem:[%s2195_s28 + $0x3c] sm:$0xf] }
  0x22   : > { %v484_v11 = vunpack.c.l.b16 %v387_v3  ;;  %v424_v13 = vrot.slane %v423_v63, 4  ;;  %v438_v14 = vrot.slane %v436_v1, 5  ;;  %v252_v16 = vshll.u32 %v2259_v57, 16 }
  0x23   : > { %v432_v17 = vor.u32 %v431_v4, %v428_v0  ;;  %v441_v18 = vrot.slane %v439_v8, 6  ;;  %v251_v19 = vrot.slane %v249_v10, 5  ;;  %v258_v21 = vshrl.u32 %v2266_v2, 16 }
  0x24   : > { %v2278_v22 = vpack.c.b16 %v484_v11, %v483_v62  ;;  %v254_v23 = vrot.slane %v252_v16, 6  ;;  %v261_v24 = vshll.u32 %v2266_v2, 16  ;;  %v268_v25 = vshrl.u32 %v2273_v9, 16 }
  0x25   : > { %v433_v27 = vsel %vm2239_vm3, %v424_v13, %v432_v17  ;;  %v434_v28 = vrot.slane %v432_v17, 4  ;;  %v442_v31 = vor.u32 %v441_v18, %v438_v14  ;;  %v260_v32 = vrot.slane %v258_v21, 5  ;;  %v2321_v13 = vld [vmem:[%s2195_s28 + $0x44] sm:$0x7]  ;;  %v2325_v21 = vld [vmem:[%s2195_s28 + $0x54] sm:$0xf] }
  0x26   : > { %1835 = vmatmul.msk.bf16.vlgmr.msra.gmra.mxu2 %vm505_vm2, %v2278_v22  ;;  %v487_v34 = vunpack.c.l.b16 %v433_v27  ;;  %v255_v35 = vor.u32 %v254_v23, %v251_v19  ;;  %v263_v36 = vrot.slane %v261_v24, 6  ;;  %v270_v37 = vrot.slane %v268_v25, 5 }
  0x27   : > { %v443_v38 = vsel %vm2239_vm3, %v434_v28, %v442_v31  ;;  %v271_v39 = vshll.u32 %v2273_v9, 16  ;;  %v333_v40 = vshrl.u32 %v2283_v26, 16  ;;  %v336_v41 = vshll.u32 %v2283_v26, 16  ;;  %v2330_v28 = vld [vmem:[%s2195_s28 + $0x58] sm:$0xf] }
  0x28   : > { %v488_v43 = vunpack.c.l.b16 %v443_v38  ;;  %v256_v44 = vrot.slane %v255_v35, 4  ;;  %v264_v45 = vor.u32 %v263_v36, %v260_v32  ;;  %v342_v47 = vshrl.u32 %v2288_v33, 16 }
  0x29   : > { %v273_v48 = vrot.slane %v271_v39, 6  ;;  %v335_v49 = vrot.slane %v333_v40, 5  ;;  %v338_v50 = vrot.slane %v336_v41, 6  ;;  %v345_v51 = vshll.u32 %v2288_v33, 16 }
  0x2a   : > { %v2305_v54 = vpack.c.b16 %v488_v43, %v487_v34  ;;  %v265_v55 = vsel %vm2239_vm3, %v256_v44, %v264_v45  ;;  %v266_v56 = vrot.slane %v264_v45, 4  ;;  %v344_v58 = vrot.slane %v342_v47, 5  ;;  %v2340_v43 = vld [vmem:[%s2195_s28 + $0x5c] sm:$0x7]  ;;  %v2042_v47 = vld [vmem:[%s2928_s1 + $0x30] sm:$0xff] }
  0x2b   : > { %v274_v60 = vor.u32 %v273_v48, %v270_v37  ;;  %v475_v61 = vunpack.c.l.b16 %v265_v55  ;;  %v339_v62 = vor.u32 %v338_v50, %v335_v49  ;;  %v347_v63 = vrot.slane %v345_v51, 6  ;;  %1317 = vmatpush.bf16.msra.mxu2 %v2042_v47 }
  0x2c   : > { %1837 = vmatmul.msk.bf16.vlgmr.msra.gmra.mxu3 %vm505_vm2, %v2305_v54  ;;  %v352_v0 = vshrl.u32 %v2298_v46, 16  ;;  %v355_v1 = vshll.u32 %v2298_v46, 16  ;;  %v389_v3 = vshrl.u32 %v2303_v53, 16  ;;  %v392_v4 = vshll.u32 %v2303_v53, 16 }
  0x2d   : > { %v275_v8 = vsel %vm2239_vm3, %v266_v56, %v274_v60  ;;  %v340_v10 = vrot.slane %v339_v62, 4  ;;  %v348_v11 = vor.u32 %v347_v63, %v344_v58  ;;  %v398_v14 = vshrl.u32 %v2310_v59, 16 }
  0x2e   : > { %v476_v16 = vunpack.c.l.b16 %v275_v8  ;;  %v354_v17 = vrot.slane %v352_v0, 5  ;;  %v357_v18 = vrot.slane %v355_v1, 6  ;;  %v391_v19 = vrot.slane %v389_v3, 5 }
  0x2f   : > { %v349_v23 = vsel %vm2239_vm3, %v340_v10, %v348_v11  ;;  %v350_v24 = vrot.slane %v348_v11, 4  ;;  %v394_v25 = vrot.slane %v392_v4, 6  ;;  %v400_v27 = vrot.slane %v398_v14, 5  ;;  %v2358_v11 = vld [vmem:[%s2195_s28 + $0x10] sm:$0xf] }
  0x30   : > { %v491_v31 = vpack.c.b16 %v476_v16, %v475_v61  ;;  %v358_v32 = vor.u32 %v357_v18, %v354_v17  ;;  %v481_v34 = vunpack.c.l.b16 %v349_v23  ;;  %v401_v35 = vshll.u32 %v2310_v59, 16  ;;  %v2348_v61 = vld [vmem:[%s2195_s28 + $0xc] sm:$0xf]  ;;  %v2363_v18 = vld [vmem:[%s2195_s28 + $0x14] sm:$0x7] }
  0x31   : > { %v395_v36 = vor.u32 %v394_v25, %v391_v19  ;;  %v408_v37 = vshrl.u32 %v2321_v13, 16  ;;  %v411_v38 = vshll.u32 %v2321_v13, 16  ;;  %v445_v39 = vshrl.u32 %v2325_v21, 16 }
  0x32   : > { %1831 = vmatmul.msk.bf16.vlgmr.msra.gmra.mxu0 %vm505_vm2, %v491_v31  ;;  %v359_v40 = vsel %vm2239_vm3, %v350_v24, %v358_v32  ;;  %v403_v41 = vrot.slane %v401_v35, 6  ;;  %v448_v44 = vshll.u32 %v2325_v21, 16  ;;  %v454_v45 = vshrl.u32 %v2330_v28, 16  ;;  %v2043_v31 = vld [vmem:[%s2928_s1 + $0x38] sm:$0xff]  ;;  %v2041_v32 = vld [vmem:[%s2928_s1 + $0x28] sm:$0xff] }
  0x33   : > { %v482_v48 = vunpack.c.l.b16 %v359_v40  ;;  %v396_v49 = vrot.slane %v395_v36, 4  ;;  %v410_v50 = vrot.slane %v408_v37, 5  ;;  %v413_v51 = vrot.slane %v411_v38, 6  ;;  %1493 = vmatpush.bf16.msra.mxu3 %v2043_v31  ;;  %1219 = vmatpush.bf16.msra.mxu1 %v2041_v32 }
  0x34   : > { %v404_v55 = vor.u32 %v403_v41, %v400_v27  ;;  %v447_v56 = vrot.slane %v445_v39, 5  ;;  %v450_v58 = vrot.slane %v448_v44, 6  ;;  %v456_v60 = vrot.slane %v454_v45, 5 }
  0x35   : > { %v2350_v62 = vpack.c.b16 %v482_v48, %v481_v34  ;;  %v414_v63 = vor.u32 %v413_v51, %v410_v50  ;;  %v457_v0 = vshll.u32 %v2330_v28, 16  ;;  %v464_v1 = vshrl.u32 %v2340_v43, 16  ;;  %v2044_v34 = vld [vmem:[%s2928_s1 + $0x40] sm:$0xff] }
  0x36   : > { %v405_v3 = vsel %vm2239_vm3, %v396_v49, %v404_v55  ;;  %v406_v4 = vrot.slane %v404_v55, 4  ;;  %v451_v8 = vor.u32 %v450_v58, %v447_v56  ;;  %v467_v10 = vshll.u32 %v2340_v43, 16  ;;  %1609 = vmatpush.bf16.msra.mxu0 %v2044_v34 }
  0x37   : > { %1834 = vmatmul.msk.bf16.gmra.mxu1 %vm505_vm2, %v2350_v62  ;;  %v485_v14 = vunpack.c.l.b16 %v405_v3  ;;  %v459_v16 = vrot.slane %v457_v0, 6  ;;  %v466_v17 = vrot.slane %v464_v1, 5  ;;  %v277_v19 = vshrl.u32 %v2348_v61, 16 }
  0x38   : > { %v415_v23 = vsel %vm2239_vm3, %v406_v4, %v414_v63  ;;  %v452_v24 = vrot.slane %v451_v8, 4  ;;  %v469_v25 = vrot.slane %v467_v10, 6  ;;  %v280_v27 = vshll.u32 %v2348_v61, 16 }
  0x39   : > { %v486_v35 = vunpack.c.l.b16 %v415_v23  ;;  %v460_v36 = vor.u32 %v459_v16, %v456_v60  ;;  %v279_v37 = vrot.slane %v277_v19, 5  ;;  %v286_v38 = vshrl.u32 %v2358_v11, 16 }
  0x3a   : > { %v470_v39 = vor.u32 %v469_v25, %v466_v17  ;;  %v282_v40 = vrot.slane %v280_v27, 6  ;;  %v289_v41 = vshll.u32 %v2358_v11, 16  ;;  %v296_v44 = vshrl.u32 %v2363_v18, 16  ;;  %v2022_v27 = vld [vmem:[%s2195_s28] sm:$0xff] }
  0x3b   : > { %v2381_v45 = vpack.c.b16 %v486_v35, %v485_v14  ;;  %v461_v47 = vsel %vm2239_vm3, %v452_v24, %v460_v36  ;;  %v462_v48 = vrot.slane %v460_v36, 4  ;;  %v288_v49 = vrot.slane %v286_v38, 5 }
  0x3c   : > { %v489_v50 = vunpack.c.l.b16 %v461_v47  ;;  %v283_v51 = vor.u32 %v282_v40, %v279_v37  ;;  %v291_v55 = vrot.slane %v289_v41, 6  ;;  %v298_v56 = vrot.slane %v296_v44, 5 }
  0x3d   : > { %1836 = vmatmul.msk.bf16.gmra.mxu2 %vm505_vm2, %v2381_v45  ;;  %v471_v58 = vsel %vm2239_vm3, %v462_v48, %v470_v39  ;;  %v299_v60 = vshll.u32 %v2363_v18, 16  ;;  %v1883_v3 = vrot.slane %v2259_v57, 11  ;;  %v711_v10 = vrot.slane %v2266_v2, 7 }
  0x3e   : > { %v490_v63 = vunpack.c.l.b16 %v471_v58  ;;  %v284_v0 = vrot.slane %v283_v51, 4  ;;  %v292_v1 = vor.u32 %v291_v55, %v288_v49  ;;  %v714_v14 = vrot.slane %v2273_v9, 7 }
  0x3f   : > { %v301_v4 = vrot.slane %v299_v60, 6  ;;  %v713_v24 = vrot.slane %v711_v10, 4  ;;  %v712_v25 = vsel %vm2391_vm6, %v1883_v3, %v711_v10  ;;  %v1885_v36 = vrot.slane %v2207_v5, 11  ;;  %v2025_v5 = vld [vmem:[%s2195_s28 + $0x24] sm:$0xff] }
  0x40   : > { %v2397_v16 = vpack.c.b16 %v490_v63, %v489_v50  ;;  %v293_v17 = vsel %vm2239_vm3, %v284_v0, %v292_v1  ;;  %v294_v19 = vrot.slane %v292_v1, 4  ;;  %v768_v32 = vunpack.c.l.b16 %v712_v25 }
  0x41   : > { %v302_v23 = vor.u32 %v301_v4, %v298_v56  ;;  %v477_v57 = vunpack.c.l.b16 %v293_v17  ;;  %v715_v9 = vsel %vm2391_vm6, %v713_v24, %v714_v14  ;;  %v725_v37 = vrot.slane %v2210_v6, 7  ;;  %v2023_v56 = vld [vmem:[%s2195_s28 + $0xc] sm:$0xff] }
  0x42   : > { %1838 = vmatmul.msk.bf16.gmra.mxu3 %vm505_vm2, %v2397_v16  ;;  %v769_v34 = vunpack.c.l.b16 %v715_v9  ;;  %v728_v38 = vrot.slane %v2213_v7, 7  ;;  %v718_v40 = vrot.slane %v2358_v11, 7  ;;  %v1884_v6 = vrot.slane %v2348_v61, 11  ;;  %v2026_v14 = vld [vmem:[%s2195_s28 + $0x30] sm:$0xff] }
  0x43   : > { %v303_v2 = vsel %vm2239_vm3, %v294_v19, %v302_v23  ;;  %v726_v41 = vsel %vm2391_vm6, %v1885_v36, %v725_v37  ;;  %v727_v44 = vrot.slane %v725_v37, 4  ;;  %v721_v7 = vrot.slane %v2363_v18, 7  ;;  %v2459_v19 = vld [vmem:[%s2195_s28 + $0x48] sm:$0xff]  ;;  %v2490_v37 = vld [vmem:[%s2195_s28 + $0x54] sm:$0xff] }
  0x44   : > { %v478_v31 = vunpack.c.l.b16 %v303_v2  ;;  %v784_v39 = vpack.c.b16 %v769_v34, %v768_v32  ;;  %v772_v47 = vunpack.c.l.b16 %v726_v41  ;;  %v720_v50 = vrot.slane %v718_v40, 4  ;;  %v2476_v2 = vld [vmem:[%s2195_s28 + $0x60] sm:$0xf] }
  0x45   : > { %v729_v48 = vsel %vm2391_vm6, %v727_v44, %v728_v38  ;;  %v719_v11 = vsel %vm2391_vm6, %v1884_v6, %v718_v40  ;;  %v1886_v61 = vrot.slane %v2283_v26, 11  ;;  %v732_v18 = vrot.slane %v2288_v33, 7  ;;  %v2024_v33 = vld [vmem:[%s2195_s28 + $0x18] sm:$0xff]  ;;  %v2493_v38 = vld [vmem:[%s2195_s28 + $0x68] sm:$0x7] }
  0x46   : > { %v492_v35 = vpack.c.b16 %v478_v31, %v477_v57  ;;  %v773_v49 = vunpack.c.l.b16 %v729_v48  ;;  %v722_v55 = vsel %vm2391_vm6, %v720_v50, %v721_v7  ;;  %v770_v58 = vunpack.c.l.b16 %v719_v11  ;;  %v2504_v11 = vld [vmem:[%s2195_s28 + $0x6c] sm:$0xf] }
  0x47   : > { %1875 = vmatmul.msk.bf16.vlgmr.msrb.gmra.mxu1 %vm505_vm2, %v2022_v27  ;;  %v771_v60 = vunpack.c.l.b16 %v722_v55  ;;  %v735_v63 = vrot.slane %v2298_v46, 7  ;;  %v733_v1 = vsel %vm2391_vm6, %v1886_v61, %v732_v18  ;;  %v734_v3 = vrot.slane %v732_v18, 4  ;;  %v2027_v46 = vld [vmem:[%s2195_s28 + $0x3c] sm:$0xff]  ;;  %v2479_v27 = vld [vmem:[%s2195_s28 + $0x64] sm:$0xf] }
  0x48   : > { %1832 = vmatmul.msk.bf16.gmra.mxu0 %vm505_vm2, %v492_v35  ;;  %v786_v51 = vpack.c.b16 %v773_v49, %v772_v47  ;;  %v774_v4 = vunpack.c.l.b16 %v733_v1  ;;  %v739_v17 = vrot.slane %v2225_v15, 7  ;;  %v742_v24 = vrot.slane %v2228_v20, 7 }
  0x49   : > { %v785_v0 = vpack.c.b16 %v771_v60, %v770_v58  ;;  %v736_v10 = vsel %vm2391_vm6, %v734_v3, %v735_v63  ;;  %v1888_v9 = vrot.slane %v2303_v53, 11  ;;  %v749_v32 = vrot.slane %v2321_v13, 7 }
  0x4a   : > { %v741_v23 = vrot.slane %v739_v17, 4  ;;  %v986_v34 = vshrl.u32 %v2476_v2, 16  ;;  %v989_v35 = vshll.u32 %v2476_v2, 16  ;;  %v998_v36 = vshll.u32 %v2479_v27, 16 }
  0x4b   : > { %v1005_v47 = vshrl.u32 %v2493_v38, 16  ;;  %v1008_v48 = vshll.u32 %v2493_v38, 16  ;;  %v1014_v18 = vshrl.u32 %v2504_v11, 16  ;;  %v753_v63 = vrot.slane %v2246_v42, 7 }
  0x4c   : > { %v743_v15 = vsel %vm2391_vm6, %v741_v23, %v742_v24  ;;  %v991_v40 = vrot.slane %v989_v35, 6  ;;  %v1000_v44 = vrot.slane %v998_v36, 6  ;;  %v1889_v42 = vrot.slane %v2235_v29, 11 }
  0x4d   : > { %1897 = vmatmul.msk.bf16.vlgmr.msrb.gmra.mxu2 %vm505_vm2, %v784_v39  ;;  %v777_v25 = vunpack.c.l.b16 %v743_v15  ;;  %v988_v39 = vrot.slane %v986_v34, 5  ;;  %v1007_v7 = vrot.slane %v1005_v47, 5 }
  0x4e   : > { %v754_v29 = vsel %vm2391_vm6, %v1889_v42, %v753_v63 }
  0x4f   : > { %v992_v6 = vor.u32 %v991_v40, %v988_v39 }
  0x51   : > { %v993_v58 = vrot.slane %v992_v6, 4 }
  0x52   : > { %1923 = vmatmul.msk.bf16.vlgmr.msrb.gmra.mxu3 %vm505_vm2, %v2025_v5 }
  0x57   : > { %1876 = vmatmul.msk.bf16.gmra.mxu1 %vm505_vm2, %v2023_v56  ;;  %v2512_v56 = vld [vmem:[%s2195_s28 + $0x70] sm:$0xf] }
  0x58   : > { %1937 = vmatmul.msk.bf16.vlgmr.msrb.gmra.mxu0 %vm505_vm2, %v2350_v62  ;;  %v775_v62 = vunpack.c.l.b16 %v736_v10  ;;  %v1023_v1 = vshrl.u32 %v2512_v56, 16  ;;  %v1026_v3 = vshll.u32 %v2512_v56, 16 }
  0x5a   : > { %v2442_v26 = vpack.c.b16 %v775_v62, %v774_v4  ;;  %v2520_v4 = vld [vmem:[%s2195_s28 + $0x74] sm:$0x7]  ;;  %v1025_v23 = vrot.slane %v1023_v1, 5  ;;  %v1028_v24 = vrot.slane %v1026_v3, 6 }
  0x5b   : > { %v1036_v15 = vshll.u32 %v2520_v4, 16 }
  0x5d   : > { %1898 = vmatmul.msk.bf16.gmra.mxu2 %vm505_vm2, %v785_v0  ;;  %v1017_v0 = vshll.u32 %v2504_v11, 16  ;;  %v1038_v34 = vrot.slane %v1036_v15, 6 }
  0x62   : > { %1924 = vmatmul.msk.bf16.gmra.mxu3 %vm505_vm2, %v2026_v14 }
  0x67   : > { %1877 = vmatmul.msk.bf16.gmra.mxu1 %vm505_vm2, %v2024_v33  ;;  %v2529_v33 = vld [vmem:[%s2195_s28 + $0x60] sm:$0xff] }
  0x68   : > { %1938 = vmatmul.msk.bf16.gmra.mxu0 %vm505_vm2, %v2278_v22  ;;  %v1887_v22 = vrot.slane %v2220_v12, 11  ;;  %v746_v12 = vrot.slane %v2310_v59, 7  ;;  %v995_v59 = vshrl.u32 %v2479_v27, 16 }
  0x6a   : > { %v748_v31 = vrot.slane %v746_v12, 4  ;;  %v747_v53 = vsel %vm2391_vm6, %v1888_v9, %v746_v12  ;;  %v997_v41 = vrot.slane %v995_v59, 5  ;;  %v780_v59 = vunpack.c.l.b16 %v754_v29 }
  0x6b   : > { %v778_v49 = vunpack.c.l.b16 %v747_v53 }
  0x6c   : > { %v750_v13 = vsel %vm2391_vm6, %v748_v31, %v749_v32  ;;  %v1001_v50 = vor.u32 %v1000_v44, %v997_v41  ;;  %v1029_v31 = vor.u32 %v1028_v24, %v1025_v23  ;;  %v2552_v41 = vld [vmem:[%s2195_s28 + $0x78] sm:$0xf]  ;;  %v2555_v44 = vld [vmem:[%s2195_s28 + $0x7c] sm:$0xf] }
  0x6d   : > { %1899 = vmatmul.msk.bf16.gmra.mxu2 %vm505_vm2, %v786_v51  ;;  %v1010_v51 = vrot.slane %v1008_v48, 6  ;;  %v760_v48 = vrot.slane %v2330_v28, 7  ;;  %v2573_v28 = vld [vmem:[%s2195_s28 + $0x6c] sm:$0xff] }
  0x6e   : > { %v1003_v60 = vrot.slane %v1001_v50, 4  ;;  %v1002_v10 = vsel %vm2239_vm3, %v993_v58, %v1001_v50  ;;  %v1042_v50 = vshrl.u32 %v2552_v41, 16  ;;  %v1054_v58 = vshll.u32 %v2555_v44, 16 }
  0x6f   : > { %v1011_v61 = vor.u32 %v1010_v51, %v1007_v7  ;;  %v1045_v7 = vshll.u32 %v2552_v41, 16  ;;  %v1051_v51 = vshrl.u32 %v2555_v44, 16 }
  0x70   : > { %v1044_v3 = vrot.slane %v1042_v50, 5 }
  0x71   : > { %v1012_v62 = vsel %vm2239_vm3, %v1003_v60, %v1011_v61  ;;  %v1890_v60 = vrot.slane %v2325_v21, 11  ;;  %v762_v61 = vrot.slane %v760_v48, 4 }
  0x72   : > { %1925 = vmatmul.msk.bf16.gmra.mxu3 %vm505_vm2, %v2027_v46 }
  0x73   : > { %v761_v21 = vsel %vm2391_vm6, %v1890_v60, %v760_v48 }
  0x77   : > { %1878 = vmatmul.msk.bf16.gmra.mxu1 %vm505_vm2, %v2025_v5  ;;  %v779_v5 = vunpack.c.l.b16 %v750_v13  ;;  %v1031_v13 = vrot.slane %v1029_v31, 4 }
  0x78   : > { %1939 = vmatmul.msk.bf16.gmra.mxu0 %vm505_vm2, %v2381_v45  ;;  %v740_v45 = vsel %vm2391_vm6, %v1887_v22, %v739_v17  ;;  %v756_v17 = vrot.slane %v2255_v52, 7  ;;  %v1019_v22 = vrot.slane %v1017_v0, 6 }
  0x79   : > { %v776_v57 = vunpack.c.l.b16 %v740_v45  ;;  %v2509_v55 = vpack.c.b16 %v779_v5, %v778_v49  ;;  %v1033_v45 = vshrl.u32 %v2520_v4, 16 }
  0x7b   : > { %v2473_v20 = vpack.c.b16 %v777_v25, %v776_v57  ;;  %v1072_v57 = vunpack.c.l.b16 %v1002_v10  ;;  %v1073_v25 = vunpack.c.l.b16 %v1012_v62  ;;  %v1035_v32 = vrot.slane %v1033_v45, 5 }
  0x7c   : > { %v1047_v10 = vrot.slane %v1045_v7, 6  ;;  %v1053_v62 = vrot.slane %v1051_v51, 5 }
  0x7d   : > { %1900 = vmatmul.msk.bf16.gmra.mxu2 %vm505_vm2, %v2442_v26  ;;  %v2543_v35 = vpack.c.b16 %v1073_v25, %v1072_v57  ;;  %v1039_v39 = vor.u32 %v1038_v34, %v1035_v32  ;;  %v782_v57 = vunpack.c.l.b16 %v761_v21 }
  0x7e   : > { %v1048_v45 = vor.u32 %v1047_v10, %v1044_v3 }
  0x7f   : > { %v1040_v5 = vsel %vm2239_vm3, %v1031_v13, %v1039_v39 }
  0x80   : > { %v1075_v1 = vunpack.c.l.b16 %v1040_v5  ;;  %v1049_v32 = vrot.slane %v1048_v45, 4 }
  0x82   : > { %1926 = vmatmul.msk.bf16.gmra.mxu3 %vm505_vm2, %v2459_v19 }
  0x87   : > { %1879 = vmatmul.msk.bf16.gmra.mxu1 %vm505_vm2, %v2026_v14  ;;  %v1016_v14 = vrot.slane %v1014_v18, 5  ;;  %v763_v18 = vrot.slane %v2340_v43, 7 }
  0x88   : > { %1940 = vmatmul.msk.bf16.gmra.mxu0 %vm505_vm2, %v2305_v54 }
  0x89   : > { %v1020_v9 = vor.u32 %v1019_v22, %v1016_v14  ;;  %v1056_v14 = vrot.slane %v1054_v58, 6  ;;  %v764_v43 = vsel %vm2391_vm6, %v762_v61, %v763_v18 }
  0x8a   : > { %v783_v25 = vunpack.c.l.b16 %v764_v43 }
  0x8b   : > { %v1021_v53 = vrot.slane %v1020_v9, 4  ;;  %v1057_v15 = vor.u32 %v1056_v14, %v1053_v62 }
  0x8d   : > { %1901 = vmatmul.msk.bf16.gmra.mxu2 %vm505_vm2, %v2473_v20  ;;  %v1030_v49 = vsel %vm2239_vm3, %v1021_v53, %v1029_v31  ;;  %v2600_v31 = vpack.c.b16 %v783_v25, %v782_v57  ;;  %v1059_v34 = vrot.slane %v1057_v15, 4  ;;  %v1058_v39 = vsel %vm2239_vm3, %v1049_v32, %v1057_v15 }
  0x8e   : > { %v1074_v0 = vunpack.c.l.b16 %v1030_v49  ;;  %v2613_v49 = vld [vmem:[%s2195_s28 + $0x78] sm:$0xff]  ;;  %v1076_v5 = vunpack.c.l.b16 %v1058_v39 }
  0x90   : > { %v2590_v23 = vpack.c.b16 %v1075_v1, %v1074_v0 }
  0x92   : > { %1927 = vmatmul.msk.bf16.gmra.mxu3 %vm505_vm2, %v2490_v37 }
  0x97   : > { %1880 = vmatmul.msk.bf16.gmra.mxu1 %vm505_vm2, %v2027_v46  ;;  %v755_v46 = vrot.slane %v753_v63, 4  ;;  %v2578_v63 = vld [vmem:[%s2195_s28 + $0x80] sm:$0x7] }
  0x98   : > { %1941 = vmatmul.msk.bf16.gmra.mxu0 %vm505_vm2, %v2397_v16  ;;  %v1064_v22 = vshll.u32 %v2578_v63, 16 }
  0x99   : > { %v757_v52 = vsel %vm2391_vm6, %v755_v46, %v756_v17  ;;  %v1061_v17 = vshrl.u32 %v2578_v63, 16 }
  0x9a   : > { %v781_v36 = vunpack.c.l.b16 %v757_v52  ;;  %v1066_v52 = vrot.slane %v1064_v22, 6 }
  0x9b   : > { %v1063_v29 = vrot.slane %v1061_v17, 5 }
  0x9c   : > { %v2549_v40 = vpack.c.b16 %v781_v36, %v780_v59 }
  0x9d   : > { %1902 = vmatmul.msk.bf16.gmra.mxu2 %vm505_vm2, %v2509_v55  ;;  %v1067_v59 = vor.u32 %v1066_v52, %v1063_v29 }
  0x9e   : > { %v2535_v12 = vpop.f32.mrf.mxu1 }
  0x9f   : > { %v1068_v48 = vsel %vm2239_vm3, %v1059_v34, %v1067_v59 }
  0xa0   : > { %v1077_v50 = vunpack.c.l.b16 %v1068_v48 }
  0xa2   : > { %1928 = vmatmul.msk.bf16.gmra.mxu3 %vm505_vm2, %v2529_v33  ;;  %v2619_v51 = vpack.c.b16 %v1077_v50, %v1076_v5  ;;  %v1166_v5 = vrot.slane %v2479_v27, 7 }
  0xa6   : > { %v2557_v47 = vpop.f32.mrf.mxu1 }
  0xa7   : > { %1881 = vmatmul.msk.bf16.gmra.mxu1 %vm505_vm2, %v2459_v19 }
  0xa8   : > { %1942 = vmatmul.msk.bf16.gmra.mxu0 %vm505_vm2, %v2543_v35 }
  0xa9   : > { %v2564_v6 = vpop.f32.mrf.mxu2 }
  0xad   : > { %1903 = vmatmul.msk.bf16.gmra.mxu2 %vm505_vm2, %v2549_v40 }
  0xaf   : > { %v539_v42 = vpop.f32.mrf.mxu0  ;;  %v2580_v46 = vpop.f32.mrf.mxu3 }
  0xb1   : > { %v2594_v9 = vpop.f32.mrf.mxu2 }
  0xb2   : > { %1929 = vmatmul.msk.bf16.gmra.mxu3 %vm505_vm2, %v2573_v28 }
  0xb4   : > { %v2592_v24 = vpop.f32.mrf.mxu1 }
  0xb7   : > { %1882 = vmatmul.msk.bf16.gmra.mxu1 %vm505_vm2, %v2490_v37  ;;  %v541_v36 = vpop.f32.mrf.mxu0  ;;  %v2602_v53 = vpop.f32.mrf.mxu3 }
  0xb8   : > { %1943 = vmatmul.msk.bf16.gmra.mxu0 %vm505_vm2, %v2590_v23 }
  0xbc   : > { %v2604_v13 = vpop.f32.mrf.mxu1 }
  0xbd   : > { %1904 = vmatmul.msk.bf16.gmra.mxu2 %vm505_vm2, %v2600_v31 }
  0xc0   : > { %v2615_v7 = vpop.f32.mrf.mxu2 }
  0xc2   : > { %1930 = vmatmul.msk.bf16.gmra.mxu3 %vm505_vm2, %v2613_v49 }
  0xc4   : > { %v658_v58 = vpop.f32.mrf.mxu1 }
  0xc5   : > { %v544_v60 = vpop.f32.mrf.mxu0  ;;  %v2621_v61 = vpop.f32.mrf.mxu3  ;;  %v659_v18 = vadd.f32 %v658_v58, %v539_v42 }
  0xc7   : > { %1954 = vmatmul.msk.bf16.vlgmr.msra.gmra.mxu1 %vm505_vm2, %v2442_v26 }
  0xc8   : > { %1944 = vmatmul.msk.bf16.gmra.mxu0 %vm505_vm2, %v2619_v51  ;;  %v2627_v0 = vpop.f32.mrf.mxu2 }
  0xcc   : > { %v660_v1 = vpop.f32.mrf.mxu1 }
  0xcd   : > { %v546_v3 = vpop.f32.mrf.mxu0  ;;  %v2629_v10 = vpop.f32.mrf.mxu3  ;;  %1980 = vmatmul.msk.bf16.vlgmr.msra.gmra.mxu2 %vm505_vm2, %v2459_v19  ;;  %v661_v62 = vadd.f32 %v660_v1, %v541_v36  ;;  %v1169_v1 = vrot.slane %v2493_v38, 7 }
  0xd0   : > { %v831_v14 = vpop.f32.mrf.mxu2 }
  0xd1   : > { %v871_v17 = vadd.f32 %v831_v14, %v659_v18  ;;  %v1168_v18 = vrot.slane %v1166_v5, 4 }
  0xd2   : > { %1994 = vmatmul.msk.bf16.vlgmr.msra.gmra.mxu3 %vm505_vm2, %v2305_v54 }
  0xd4   : > { %v663_v42 = vpop.f32.mrf.mxu1 }
  0xd5   : > { %v1105_v26 = vpop.f32.mrf.mxu0  ;;  %v929_v22 = vpop.f32.mrf.mxu3  ;;  %v664_v21 = vadd.f32 %v663_v42, %v544_v60 }
  0xd6   : > { %v969_v43 = vadd.f32 %v929_v22, %v871_v17 }
  0xd7   : > { %1955 = vmatmul.msk.bf16.gmra.mxu1 %vm505_vm2, %v2473_v20 }
  0xd8   : > { %2011 = vmatmul.msk.bf16.vlgmr.msra.gmra.mxu0 %vm505_vm2, %v2549_v40  ;;  %v833_v45 = vpop.f32.mrf.mxu2  ;;  %v2639_v15 = vadd.f32 %v1105_v26, %v969_v43 }
  0xd9   : > { %v872_v19 = vadd.f32 %v833_v45, %v661_v62 }
  0xdc   : > { %v665_v57 = vpop.f32.mrf.mxu1 }
  0xdd   : > { %v1107_v25 = vpop.f32.mrf.mxu0  ;;  %v931_v29 = vpop.f32.mrf.mxu3  ;;  %1981 = vmatmul.msk.bf16.gmra.mxu2 %vm505_vm2, %v2490_v37  ;;  %v666_v54 = vadd.f32 %v665_v57, %v546_v3  ;;  %v1173_v57 = vrot.slane %v2512_v56, 7 }
  0xde   : > { %v970_v52 = vadd.f32 %v931_v29, %v872_v19 }
  0xe0   : > { %v836_v32 = vpop.f32.mrf.mxu2  ;;  %v2643_v34 = vadd.f32 %v1107_v25, %v970_v52  ;;  %v1175_v52 = vrot.slane %v1173_v57, 4 }
  0xe1   : > { %v873_v59 = vadd.f32 %v836_v32, %v664_v21  ;;  %v1176_v32 = vrot.slane %v2520_v4, 7 }
  0xe2   : > { %1995 = vmatmul.msk.bf16.gmra.mxu3 %vm505_vm2, %v2397_v16  ;;  %v1945_v16 = vrot.slane %v2476_v2, 11 }
  0xe4   : > { %v668_v20 = vpop.f32.mrf.mxu1  ;;  %v1167_v27 = vsel %vm2391_vm6, %v1945_v16, %v1166_v5  ;;  %v2697_v16 = vld [vmem:[%s2195_s28 + $0x88] sm:$0xf] }
  0xe5   : > { %v1110_v36 = vpop.f32.mrf.mxu0  ;;  %v934_v39 = vpop.f32.mrf.mxu3  ;;  %v669_v48 = vadd.f32 %v668_v20, %v2535_v12  ;;  %v1188_v42 = vunpack.c.l.b16 %v1167_v27  ;;  %v1177_v20 = vsel %vm2391_vm6, %v1175_v52, %v1176_v32  ;;  %v1388_v27 = vshll.u32 %v2697_v16, 16 }
  0xe6   : > { %v971_v50 = vadd.f32 %v934_v39, %v873_v59 }
  0xe7   : > { %1956 = vmatmul.msk.bf16.gmra.mxu1 %vm505_vm2, %v2509_v55  ;;  %v1170_v55 = vsel %vm2391_vm6, %v1168_v18, %v1169_v1  ;;  %v1180_v1 = vrot.slane %v2555_v44, 7 }
  0xe8   : > { %2012 = vmatmul.msk.bf16.gmra.mxu0 %vm505_vm2, %v2600_v31  ;;  %v838_v37 = vpop.f32.mrf.mxu2  ;;  %v2653_v58 = vadd.f32 %v1110_v36, %v971_v50  ;;  %v1189_v2 = vunpack.c.l.b16 %v1170_v55 }
  0xe9   : > { %v874_v60 = vadd.f32 %v838_v37, %v666_v54  ;;  %v1946_v54 = vrot.slane %v2504_v11, 11 }
  0xea   : > { %v2668_v21 = vpack.c.b16 %v1189_v2, %v1188_v42  ;;  %v1947_v42 = vrot.slane %v2552_v41, 11  ;;  %v1182_v2 = vrot.slane %v1180_v1, 4 }
  0xec   : > { %v670_v3 = vpop.f32.mrf.mxu1  ;;  %v1181_v41 = vsel %vm2391_vm6, %v1947_v42, %v1180_v1  ;;  %v1556_v1 = vrot.slane %v2697_v16, 7  ;;  %v2751_v42 = vld [vmem:[%s2195_s28 + $0x98] sm:$0x7] }
  0xed   : > { %v1112_v12 = vpop.f32.mrf.mxu0  ;;  %v936_v62 = vpop.f32.mrf.mxu3  ;;  %1982 = vmatmul.msk.bf16.gmra.mxu2 %vm505_vm2, %v2529_v33  ;;  %v671_v14 = vadd.f32 %v670_v3, %v2557_v47 }
  0xee   : > { %v972_v17 = vadd.f32 %v936_v62, %v874_v60 }
  0xf0   : > { %v841_v26 = vpop.f32.mrf.mxu2  ;;  %v2664_v22 = vadd.f32 %v1112_v12, %v972_v17 }
  0xf1   : > { %v875_v38 = vadd.f32 %v841_v26, %v669_v48  ;;  %v1191_v48 = vunpack.c.l.b16 %v1177_v20  ;;  %v1183_v26 = vrot.slane %v2578_v63, 7 }
  0xf2   : > { %1996 = vmatmul.msk.bf16.gmra.mxu3 %vm505_vm2, %v2543_v35 }
  0xf3   : > { %v1184_v63 = vsel %vm2391_vm6, %v1182_v2, %v1183_v26 }
  0xf4   : > { %v673_v33 = vpop.f32.mrf.mxu1 }
  0xf5   : > { %v1115_v43 = vpop.f32.mrf.mxu0  ;;  %v939_v45 = vpop.f32.mrf.mxu3  ;;  %v674_v19 = vadd.f32 %v673_v33, %v2592_v24 }
  0xf6   : > { %v973_v47 = vadd.f32 %v939_v45, %v875_v38 }
  0xf7   : > { %1957 = vmatmul.msk.bf16.gmra.mxu1 %vm505_vm2, %v2549_v40  ;;  %v1174_v40 = vsel %vm2391_vm6, %v1946_v54, %v1173_v57 }
  0xf8   : > { %2013 = vmatmul.msk.bf16.gmra.mxu0 %vm505_vm2, %v2668_v21  ;;  %v843_v25 = vpop.f32.mrf.mxu2  ;;  %v2676_v29 = vadd.f32 %v1115_v43, %v973_v47  ;;  %v1190_v39 = vunpack.c.l.b16 %v1174_v40  ;;  %v1390_v43 = vrot.slane %v1388_v27, 6  ;;  %v1193_v40 = vunpack.c.l.b16 %v1184_v63 }
  0xf9   : > { %v876_v35 = vadd.f32 %v843_v25, %v671_v14  ;;  %v2709_v14 = vld [vmem:[%s2195_s28 + $0x8c] sm:$0x7] }
  0xfa   : > { %v2694_v37 = vpack.c.b16 %v1191_v48, %v1190_v39  ;;  %v1395_v45 = vshrl.u32 %v2709_v14, 16 }
  0xfc   : > { %v675_v24 = vpop.f32.mrf.mxu1 }
  0xfd   : > { %v1117_v59 = vpop.f32.mrf.mxu0  ;;  %v941_v56 = vpop.f32.mrf.mxu3  ;;  %1983 = vmatmul.msk.bf16.gmra.mxu2 %vm505_vm2, %v2573_v28  ;;  %v676_v36 = vadd.f32 %v675_v24, %v2604_v13  ;;  %v2692_v28 = vld [vmem:[%s2195_s28 + $0x84] sm:$0xf]  ;;  %v1397_v24 = vrot.slane %v1395_v45, 5 }
  0xfe   : > { %v974_v11 = vadd.f32 %v941_v56, %v876_v35  ;;  %v1376_v12 = vshrl.u32 %v2692_v28, 16  ;;  %v1379_v62 = vshll.u32 %v2692_v28, 16  ;;  %v1192_v56 = vunpack.c.l.b16 %v1181_v41 }
  0xff   : > { %v1426_v41 = vshll.u32 %v2751_v42, 16 }
 0x100   : > { %v846_v5 = vpop.f32.mrf.mxu2  ;;  %v2687_v4 = vadd.f32 %v1117_v59, %v974_v11  ;;  %v1378_v38 = vrot.slane %v1376_v12, 5 }
 0x101   : > { %v877_v50 = vadd.f32 %v846_v5, %v674_v19  ;;  %v1398_v19 = vshll.u32 %v2709_v14, 16  ;;  %v2729_v5 = vld [vmem:[%s2195_s28 + $0x90] sm:$0xf] }
 0x102   : > { %1997 = vmatmul.msk.bf16.gmra.mxu3 %vm505_vm2, %v2590_v23  ;;  %v1385_v23 = vshrl.u32 %v2697_v16, 16  ;;  %v1404_v12 = vshrl.u32 %v2729_v5, 16 }
 0x103   : > { %v1400_v59 = vrot.slane %v1398_v19, 6 }
 0x104   : > { %v678_v60 = vpop.f32.mrf.mxu1  ;;  %v1387_v33 = vrot.slane %v1385_v23, 5  ;;  %v1406_v45 = vrot.slane %v1404_v12, 5 }
 0x105   : > { %v1120_v18 = vpop.f32.mrf.mxu0  ;;  %v944_v13 = vpop.f32.mrf.mxu3  ;;  %v679_v52 = vadd.f32 %v678_v60, %v2564_v6  ;;  %v1401_v48 = vor.u32 %v1400_v59, %v1397_v24  ;;  %v2734_v60 = vld [vmem:[%s2195_s28 + $0x94] sm:$0xf] }
 0x106   : > { %v975_v3 = vadd.f32 %v944_v13, %v877_v50  ;;  %v1391_v32 = vor.u32 %v1390_v43, %v1387_v33  ;;  %v2731_v50 = vpack.c.b16 %v1193_v40, %v1192_v56  ;;  %v1416_v16 = vshll.u32 %v2734_v60, 16 }
 0x107   : > { %1958 = vmatmul.msk.bf16.gmra.mxu1 %vm505_vm2, %v2600_v31  ;;  %v1381_v31 = vrot.slane %v1379_v62, 6  ;;  %v1407_v62 = vshll.u32 %v2729_v5, 16 }
 0x108   : > { %2014 = vmatmul.msk.bf16.gmra.mxu0 %vm505_vm2, %v2694_v37  ;;  %v848_v55 = vpop.f32.mrf.mxu2  ;;  %v2711_v17 = vadd.f32 %v1120_v18, %v975_v3  ;;  %v1393_v39 = vrot.slane %v1391_v32, 4 }
 0x109   : > { %v878_v44 = vadd.f32 %v848_v55, %v676_v36  ;;  %v1382_v54 = vor.u32 %v1381_v31, %v1378_v38  ;;  %v1413_v55 = vshrl.u32 %v2734_v60, 16  ;;  %v2002_v38 = vrot.slane %v2692_v28, 11 }
 0x10a   : > { %v1402_v27 = vsel %vm2239_vm3, %v1393_v39, %v1401_v48  ;;  %v1559_v31 = vrot.slane %v2709_v14, 7  ;;  %v1409_v19 = vrot.slane %v1407_v62, 6 }
 0x10b   : > { %v1383_v11 = vrot.slane %v1382_v54, 4  ;;  %v1463_v43 = vunpack.c.l.b16 %v1402_v27  ;;  %v1557_v28 = vsel %vm2391_vm6, %v2002_v38, %v1556_v1  ;;  %v1563_v27 = vrot.slane %v2734_v60, 7 }
 0x10c   : > { %v680_v57 = vpop.f32.mrf.mxu1  ;;  %v1410_v24 = vor.u32 %v1409_v19, %v1406_v45  ;;  %v2034_v19 = vld [vmem:[%s2195_s28 + $0x90] sm:$0xff] }
 0x10d   : > { %v1122_v47 = vpop.f32.mrf.mxu0  ;;  %v946_v25 = vpop.f32.mrf.mxu3  ;;  %1984 = vmatmul.msk.bf16.gmra.mxu2 %vm505_vm2, %v2613_v49  ;;  %v681_v23 = vadd.f32 %v680_v57, %v2594_v9  ;;  %v2033_v9 = vld [vmem:[%s2195_s28 + $0x84] sm:$0xff]  ;;  %v1415_v57 = vrot.slane %v1413_v55, 5 }
 0x10e   : > { %v976_v35 = vadd.f32 %v946_v25, %v878_v44  ;;  %v1423_v25 = vshrl.u32 %v2751_v42, 16 }
 0x110   : > { %v851_v20 = vpop.f32.mrf.mxu2  ;;  %v2724_v36 = vadd.f32 %v1122_v47, %v976_v35  ;;  %v1418_v47 = vrot.slane %v1416_v16, 6  ;;  %v1425_v40 = vrot.slane %v1423_v25, 5 }
 0x111   : > { %v879_v49 = vadd.f32 %v851_v20, %v679_v52  ;;  %v1428_v20 = vrot.slane %v1426_v41, 6 }
 0x112   : > { %1998 = vmatmul.msk.bf16.gmra.mxu3 %vm505_vm2, %v2619_v51  ;;  %v1392_v51 = vsel %vm2239_vm3, %v1383_v11, %v1391_v32  ;;  %v1419_v56 = vor.u32 %v1418_v47, %v1415_v57  ;;  %v1565_v57 = vrot.slane %v1563_v27, 4 }
 0x113   : > { %v1462_v33 = vunpack.c.l.b16 %v1392_v51  ;;  %v2770_v51 = vld [vmem:[%s2195_s28 + $0x9c] sm:$0xf] }
 0x114   : > { %v683_v6 = vpop.f32.mrf.mxu1 }
 0x115   : > { %v1125_v18 = vpop.f32.mrf.mxu0  ;;  %v949_v13 = vpop.f32.mrf.mxu3  ;;  %v1468_v32 = vpack.c.b16 %v1463_v43, %v1462_v33  ;;  %v684_v59 = vadd.f32 %v683_v6, %v2615_v7  ;;  %v2773_v7 = vld [vmem:[%s2195_s28 + $0xa0] sm:$0xf]  ;;  %v2789_v33 = vld [vmem:[%s2195_s28 + $0xa4] sm:$0x7] }
 0x116   : > { %v977_v3 = vadd.f32 %v949_v13, %v879_v49  ;;  %v1578_v49 = vunpack.c.l.b16 %v1557_v28  ;;  %v1411_v13 = vrot.slane %v1410_v24, 4  ;;  %v1444_v60 = vshll.u32 %v2773_v7, 16 }
 0x117   : > { %1959 = vmatmul.msk.bf16.gmra.mxu1 %vm505_vm2, %v2668_v21  ;;  %v1558_v21 = vrot.slane %v1556_v1, 4  ;;  %v1421_v1 = vrot.slane %v1419_v56, 4  ;;  %v1451_v28 = vshrl.u32 %v2789_v33, 16 }
 0x118   : > { %2015 = vmatmul.msk.bf16.gmra.mxu0 %vm505_vm2, %v2731_v50  ;;  %v853_v44 = vpop.f32.mrf.mxu2  ;;  %v2753_v2 = vadd.f32 %v1125_v18, %v977_v3  ;;  %v1429_v3 = vor.u32 %v1428_v20, %v1425_v40  ;;  %v1420_v16 = vsel %vm2239_vm3, %v1411_v13, %v1419_v56 }
 0x119   : > { %v880_v26 = vadd.f32 %v853_v44, %v681_v23  ;;  %v1560_v14 = vsel %vm2391_vm6, %v1558_v21, %v1559_v31  ;;  %v1432_v44 = vshrl.u32 %v2770_v51, 16  ;;  %v1441_v21 = vshrl.u32 %v2773_v7, 16 }
 0x11a   : > { %v1579_v11 = vunpack.c.l.b16 %v1560_v14  ;;  %v1430_v38 = vsel %vm2239_vm3, %v1421_v1, %v1429_v3  ;;  %v1464_v47 = vunpack.c.l.b16 %v1420_v16  ;;  %v1454_v14 = vshll.u32 %v2789_v33, 16 }
 0x11b   : > { %v1465_v25 = vunpack.c.l.b16 %v1430_v38  ;;  %v1434_v41 = vrot.slane %v1432_v44, 5 }
 0x11c   : > { %v685_v63 = vpop.f32.mrf.mxu1  ;;  %v1584_v12 = vpack.c.b16 %v1579_v11, %v1578_v49  ;;  %v1453_v11 = vrot.slane %v1451_v28, 5 }
 0x11d   : > { %v1127_v35 = vpop.f32.mrf.mxu0  ;;  %v951_v54 = vpop.f32.mrf.mxu3  ;;  %1985 = vmatmul.msk.bf16.gmra.mxu2 %vm505_vm2, %v2033_v9  ;;  %v686_v9 = vadd.f32 %v685_v63, %v2627_v0  ;;  %v2003_v0 = vrot.slane %v2729_v5, 11  ;;  %v1469_v56 = vpack.c.b16 %v1465_v25, %v1464_v47 }
 0x11e   : > { %v978_v52 = vadd.f32 %v951_v54, %v880_v26  ;;  %v1435_v26 = vshll.u32 %v2770_v51, 16  ;;  %v1446_v54 = vrot.slane %v1444_v60, 6 }
 0x11f   : > { %v1564_v5 = vsel %vm2391_vm6, %v2003_v0, %v1563_v27 }
 0x120   : > { %v856_v39 = vpop.f32.mrf.mxu2  ;;  %v2766_v48 = vadd.f32 %v1127_v35, %v978_v52  ;;  %v1437_v63 = vrot.slane %v1435_v26, 6  ;;  %v1443_v35 = vrot.slane %v1441_v21, 5 }
 0x121   : > { %v881_v18 = vadd.f32 %v856_v39, %v684_v59  ;;  %v1456_v39 = vrot.slane %v1454_v14, 6 }
 0x122   : > { %1999 = vmatmul.msk.bf16.gmra.mxu3 %vm505_vm2, %v1468_v32  ;;  %v1438_v40 = vor.u32 %v1437_v63, %v1434_v41  ;;  %v1447_v49 = vor.u32 %v1446_v54, %v1443_v35 }
 0x123   : > { %v1457_v27 = vor.u32 %v1456_v39, %v1453_v11 }
 0x124   : > { %v688_v62 = vpop.f32.mrf.mxu1 }
 0x125   : > { %v1130_v6 = vpop.f32.mrf.mxu0  ;;  %v954_v23 = vpop.f32.mrf.mxu3  ;;  %v689_v20 = vadd.f32 %v688_v62, %v2580_v46  ;;  %v1570_v46 = vrot.slane %v2773_v7, 7  ;;  %v2004_v7 = vrot.slane %v2770_v51, 11 }
 0x126   : > { %v979_v55 = vadd.f32 %v954_v23, %v881_v18  ;;  %v1580_v18 = vunpack.c.l.b16 %v1564_v5  ;;  %v1449_v23 = vrot.slane %v1447_v49, 4 }
 0x127   : > { %1960 = vmatmul.msk.bf16.gmra.mxu1 %vm505_vm2, %v2694_v37  ;;  %v1566_v37 = vrot.slane %v2751_v42, 7  ;;  %v1572_v0 = vrot.slane %v1570_v46, 4  ;;  %v1571_v30 = vsel %vm2391_vm6, %v2004_v7, %v1570_v46 }
 0x128   : > { %2016 = vmatmul.msk.bf16.gmra.mxu0 %vm505_vm2, %v1584_v12  ;;  %v858_v31 = vpop.f32.mrf.mxu2  ;;  %v2791_v43 = vadd.f32 %v1130_v6, %v979_v55  ;;  %v1439_v6 = vrot.slane %v1438_v40, 4  ;;  %v1458_v21 = vsel %vm2239_vm3, %v1449_v23, %v1457_v27  ;;  %v1582_v54 = vunpack.c.l.b16 %v1571_v30 }
 0x129   : > { %v882_v45 = vadd.f32 %v858_v31, %v686_v9  ;;  %v1567_v42 = vsel %vm2391_vm6, %v1565_v57, %v1566_v37 }
 0x12a   : > { %v1581_v13 = vunpack.c.l.b16 %v1567_v42  ;;  %v1448_v38 = vsel %vm2239_vm3, %v1439_v6, %v1447_v49 }
 0x12b   : > { %v1466_v57 = vunpack.c.l.b16 %v1448_v38 }
 0x12c   : > { %v690_v52 = vpop.f32.mrf.mxu1  ;;  %v1585_v55 = vpack.c.b16 %v1581_v13, %v1580_v18 }
 0x12d   : > { %v1132_v32 = vpop.f32.mrf.mxu0  ;;  %v956_v24 = vpop.f32.mrf.mxu3  ;;  %1986 = vmatmul.msk.bf16.gmra.mxu2 %vm505_vm2, %v2034_v19  ;;  %v691_v9 = vadd.f32 %v690_v52, %v2602_v53  ;;  %v2035_v19 = vld [vmem:[%s2195_s28 + $0x9c] sm:$0xff]  ;;  %v1573_v53 = vrot.slane %v2789_v33, 7  ;;  %s1821_s28 = sshll.u32 %s192_s25, 2 }
 0x12e   : > { %v980_v59 = vadd.f32 %v956_v24, %v882_v45  ;;  %s2849_s30 = scalar_lea.vmem %s2930_s3, %s1821_s28 }
 0x12f   : > { %v1574_v41 = vsel %vm2391_vm6, %v1572_v0, %v1573_v53 }
 0x130   : > { %v861_v1 = vpop.f32.mrf.mxu2  ;;  %v2804_v3 = vadd.f32 %v1132_v32, %v980_v59  ;;  %v1583_v33 = vunpack.c.l.b16 %v1574_v41 }
 0x131   : > { %v883_v12 = vadd.f32 %v861_v1, %v689_v20 }
 0x132   : > { %2000 = vmatmul.msk.bf16.gmra.mxu3 %vm505_vm2, %v1469_v56  ;;  %v1586_v32 = vpack.c.b16 %v1583_v33, %v1582_v54 }
 0x134   : > { %v693_v16 = vpop.f32.mrf.mxu1 }
 0x135   : > { %v1135_v44 = vpop.f32.mrf.mxu0  ;;  %v959_v26 = vpop.f32.mrf.mxu3  ;;  %v694_v51 = vadd.f32 %v693_v16, %v2621_v61 }
 0x136   : > { %v981_v62 = vadd.f32 %v959_v26, %v883_v12 }
 0x137   : > { %1961 = vmatmul.msk.bf16.gmra.mxu1 %vm505_vm2, %v2731_v50  ;;  %v1467_v50 = vunpack.c.l.b16 %v1458_v21 }
 0x138   : > { %2017 = vmatmul.msk.bf16.gmra.mxu0 %vm505_vm2, %v1585_v55  ;;  %v863_v60 = vpop.f32.mrf.mxu2  ;;  %v2816_v31 = vadd.f32 %v1135_v44, %v981_v62  ;;  %v2842_v55 = vld [vmem:[%s2929_s2] ss:$0 sm:$0xff] }
 0x139   : > { %v884_v45 = vadd.f32 %v863_v60, %v691_v9  ;;  %v1470_v35 = vpack.c.b16 %v1467_v50, %v1466_v57 }
 0x13c   : > { %v695_v37 = vpop.f32.mrf.mxu1 }
 0x13d   : > { %v1137_v47 = vpop.f32.mrf.mxu0  ;;  %v961_v25 = vpop.f32.mrf.mxu3  ;;  %1987 = vmatmul.msk.bf16.gmra.mxu2 %vm505_vm2, %v2035_v19  ;;  %v696_v8 = vadd.f32 %v695_v37, %v2629_v10 }
 0x13e   : > { %v982_v63 = vadd.f32 %v961_v25, %v884_v45 }
 0x140   : > { %v866_v28 = vpop.f32.mrf.mxu2  ;;  %v2827_v14 = vadd.f32 %v1137_v47, %v982_v63 }
 0x141   : > { %v885_v52 = vadd.f32 %v866_v28, %v694_v51 }
 0x142   : > { %2001 = vmatmul.msk.bf16.gmra.mxu3 %vm505_vm2, %v1470_v35 }
 0x144   : > { %v1221_v24 = vpop.f32.mrf.mxu1 }
 0x145   : > { %v1140_v5 = vpop.f32.mrf.mxu0  ;;  %v964_v42 = vpop.f32.mrf.mxu3  ;;  %v1261_v18 = vadd.f32 %v1221_v24, %v2639_v15 }
 0x146   : > { %v983_v59 = vadd.f32 %v964_v42, %v885_v52 }
 0x148   : > { %2018 = vmatmul.msk.bf16.gmra.mxu0 %vm505_vm2, %v1586_v32  ;;  %v868_v61 = vpop.f32.mrf.mxu2  ;;  %v2833_v56 = vadd.f32 %v1140_v5, %v983_v59 }
 0x149   : > { %v886_v40 = vadd.f32 %v868_v61, %v696_v8 }
 0x14c   : > { %v1223_v20 = vpop.f32.mrf.mxu1 }
 0x14d   : > { %v1142_v49 = vpop.f32.mrf.mxu0  ;;  %v966_v11 = vpop.f32.mrf.mxu3  ;;  %v1262_v15 = vadd.f32 %v1223_v20, %v2643_v34 }
 0x14e   : > { %v984_v39 = vadd.f32 %v966_v11, %v886_v40 }
 0x150   : > { %v1319_v13 = vpop.f32.mrf.mxu2  ;;  %v2836_v1 = vadd.f32 %v1142_v49, %v984_v39 }
 0x151   : > { %v1359_v10 = vadd.f32 %v1319_v13, %v1261_v18 }
 0x154   : > { %v1226_v12 = vpop.f32.mrf.mxu1 }
 0x155   : > { %v1611_v6 = vpop.f32.mrf.mxu0  ;;  %v1495_v23 = vpop.f32.mrf.mxu3  ;;  %v1263_v45 = vadd.f32 %v1226_v12, %v2653_v58 }
 0x156   : > { %v1535_v27 = vadd.f32 %v1495_v23, %v1359_v10 }
 0x158   : > { %v1651_v16 = vadd.f32 %v1611_v6, %v1535_v27  ;;  %v1321_v44 = vpop.f32.mrf.mxu2 }
 0x159   : > { %v1360_v46 = vadd.f32 %v1321_v44, %v1262_v15 }
 0x15a   : > { %v1671_v26 = vadd.f32 %v2842_v55, %v1651_v16 }
 0x15c   : > { %v1687_v62 = vpack.c.bf16 %v1671_v26, %v1671_v26  ;;  %v1228_v9 = vpop.f32.mrf.mxu1 }
 0x15d   : > { %v1613_v38 = vpop.f32.mrf.mxu0  ;;  %v1497_v21 = vpop.f32.mrf.mxu3  ;;  %v1264_v30 = vadd.f32 %v1228_v9, %v2664_v22 }
 0x15e   : > { %1704 = vst.msk [vmem:[%s2849_s30] sm:$0xf] %vm1703_vm7, %v1687_v62  ;;  %v1536_v60 = vadd.f32 %v1497_v21, %v1360_v46 }
 0x160   : > { %v1652_v34 = vadd.f32 %v1613_v38, %v1536_v60  ;;  %v1324_v19 = vpop.f32.mrf.mxu2 }
 0x161   : > { %v1361_v0 = vadd.f32 %v1324_v19, %v1263_v45 }
 0x162   : > { %v1672_v7 = vadd.f32 %v2842_v55, %v1652_v34 }
 0x164   : > { %v1688_v53 = vpack.c.bf16 %v1672_v7, %v1672_v7  ;;  %v1231_v57 = vpop.f32.mrf.mxu1 }
 0x165   : > { %v1616_v50 = vpop.f32.mrf.mxu0  ;;  %v1500_v37 = vpop.f32.mrf.mxu3  ;;  %v1265_v32 = vadd.f32 %v1231_v57, %v2676_v29 }
 0x166   : > { %1705 = vst.msk [vmem:[%s2849_s30 + $0x4] sm:$0xf] %vm1703_vm7, %v1688_v53  ;;  %v1537_v47 = vadd.f32 %v1500_v37, %v1361_v0 }
 0x168   : > { %v1653_v25 = vadd.f32 %v1616_v50, %v1537_v47  ;;  %v1326_v41 = vpop.f32.mrf.mxu2 }
 0x169   : > { %v1362_v35 = vadd.f32 %v1326_v41, %v1264_v30 }
 0x16a   : > { %v1673_v63 = vadd.f32 %v2842_v55, %v1653_v25 }
 0x16c   : > { %v1689_v58 = vpack.c.bf16 %v1673_v63, %v1673_v63  ;;  %v1233_v51 = vpop.f32.mrf.mxu1 }
 0x16d   : > { %v1618_v54 = vpop.f32.mrf.mxu0  ;;  %v1502_v33 = vpop.f32.mrf.mxu3  ;;  %v1266_v49 = vadd.f32 %v1233_v51, %v2687_v4 }
 0x16e   : > { %1706 = vst.msk [vmem:[%s2849_s30 + $0x8] sm:$0xf] %vm1703_vm7, %v1689_v58  ;;  %v1538_v28 = vadd.f32 %v1502_v33, %v1362_v35 }
 0x170   : > { %v1654_v52 = vadd.f32 %v1618_v54, %v1538_v28  ;;  %v1329_v24 = vpop.f32.mrf.mxu2 }
 0x171   : > { %v1363_v42 = vadd.f32 %v1329_v24, %v1265_v32 }
 0x172   : > { %v1674_v5 = vadd.f32 %v2842_v55, %v1654_v52 }
 0x174   : > { %v1690_v22 = vpack.c.bf16 %v1674_v5, %v1674_v5  ;;  %v1236_v59 = vpop.f32.mrf.mxu1 }
 0x175   : > { %v1621_v8 = vpop.f32.mrf.mxu0  ;;  %v1505_v61 = vpop.f32.mrf.mxu3  ;;  %v1267_v27 = vadd.f32 %v1236_v59, %v2711_v17 }
 0x176   : > { %1707 = vst.msk [vmem:[%s2849_s30 + $0xc] sm:$0xf] %vm1703_vm7, %v1690_v22  ;;  %v1539_v40 = vadd.f32 %v1505_v61, %v1363_v42 }
 0x178   : > { %v1655_v20 = vadd.f32 %v1621_v8, %v1539_v40  ;;  %v1331_v11 = vpop.f32.mrf.mxu2 }
 0x179   : > { %v1364_v18 = vadd.f32 %v1331_v11, %v1266_v49 }
 0x17a   : > { %v1675_v39 = vadd.f32 %v2842_v55, %v1655_v20 }
 0x17c   : > { %v1691_v29 = vpack.c.bf16 %v1675_v39, %v1675_v39  ;;  %v1238_v13 = vpop.f32.mrf.mxu1 }
 0x17d   : > { %v1623_v10 = vpop.f32.mrf.mxu0  ;;  %v1507_v12 = vpop.f32.mrf.mxu3  ;;  %v1268_v21 = vadd.f32 %v1238_v13, %v2724_v36 }
 0x17e   : > { %1708 = vst.msk [vmem:[%s2849_s30 + $0x10] sm:$0xf] %vm1703_vm7, %v1691_v29  ;;  %v1540_v6 = vadd.f32 %v1507_v12, %v1364_v18 }
 0x180   : > { %v1656_v23 = vadd.f32 %v1623_v10, %v1540_v6  ;;  %v1334_v16 = vpop.f32.mrf.mxu2 }
 0x181   : > { %v1365_v44 = vadd.f32 %v1334_v16, %v1267_v27 }
 0x182   : > { %v1676_v15 = vadd.f32 %v2842_v55, %v1656_v23 }
 0x184   : > { %v1692_v4 = vpack.c.bf16 %v1676_v15, %v1676_v15  ;;  %v1241_v26 = vpop.f32.mrf.mxu1 }
 0x185   : > { %v1626_v46 = vpop.f32.mrf.mxu0  ;;  %v1510_v62 = vpop.f32.mrf.mxu3  ;;  %v1269_v50 = vadd.f32 %v1241_v26, %v2753_v2 }
 0x186   : > { %1709 = vst.msk [vmem:[%s2849_s30 + $0x14] sm:$0xf] %vm1703_vm7, %v1692_v4  ;;  %v1541_v9 = vadd.f32 %v1510_v62, %v1365_v44 }
 0x188   : > { %v1657_v38 = vadd.f32 %v1626_v46, %v1541_v9  ;;  %v1336_v60 = vpop.f32.mrf.mxu2 }
 0x189   : > { %v1366_v45 = vadd.f32 %v1336_v60, %v1268_v21 }
 0x18a   : > { %v1677_v34 = vadd.f32 %v2842_v55, %v1657_v38 }
 0x18c   : > { %v1693_v17 = vpack.c.bf16 %v1677_v34, %v1677_v34  ;;  %v1243_v19 = vpop.f32.mrf.mxu1 }
 0x18d   : > { %v1628_v7 = vpop.f32.mrf.mxu0  ;;  %v1512_v0 = vpop.f32.mrf.mxu3  ;;  %v1270_v51 = vadd.f32 %v1243_v19, %v2766_v48 }
 0x18e   : > { %1710 = vst.msk [vmem:[%s2849_s30 + $0x18] sm:$0xf] %vm1703_vm7, %v1693_v17  ;;  %v1542_v53 = vadd.f32 %v1512_v0, %v1366_v45 }
 0x190   : > { %v1658_v57 = vadd.f32 %v1628_v7, %v1542_v53  ;;  %v1339_v37 = vpop.f32.mrf.mxu2 }
 0x191   : > { %v1367_v25 = vadd.f32 %v1339_v37, %v1269_v50 }
 0x192   : > { %v1678_v47 = vadd.f32 %v2842_v55, %v1658_v57 }
 0x194   : > { %v1694_v36 = vpack.c.bf16 %v1678_v47, %v1678_v47  ;;  %v1246_v30 = vpop.f32.mrf.mxu1 }
 0x195   : > { %v1631_v41 = vpop.f32.mrf.mxu0  ;;  %v1515_v63 = vpop.f32.mrf.mxu3  ;;  %v1271_v22 = vadd.f32 %v1246_v30, %v2791_v43 }
 0x196   : > { %1711 = vst.msk [vmem:[%s2849_s30 + $0x1c] sm:$0xf] %vm1703_vm7, %v1694_v36  ;;  %v1543_v35 = vadd.f32 %v1515_v63, %v1367_v25 }
 0x198   : > { %v1659_v58 = vadd.f32 %v1631_v41, %v1543_v35  ;;  %v1341_v54 = vpop.f32.mrf.mxu2 }
 0x199   : > { %v1368_v2 = vadd.f32 %v1341_v54, %v1270_v51 }
 0x19a   : > { %v1679_v33 = vadd.f32 %v2842_v55, %v1659_v58 }
 0x19c   : > { %v1695_v28 = vpack.c.bf16 %v1679_v33, %v1679_v33  ;;  %v1248_v52 = vpop.f32.mrf.mxu1 }
 0x19d   : > { %v1633_v32 = vpop.f32.mrf.mxu0  ;;  %v1517_v24 = vpop.f32.mrf.mxu3  ;;  %v1272_v18 = vadd.f32 %v1248_v52, %v2804_v3 }
 0x19e   : > { %1712 = vst.msk [vmem:[%s2849_s30 + $0x20] sm:$0xf] %vm1703_vm7, %v1695_v28  ;;  %v1544_v5 = vadd.f32 %v1517_v24, %v1368_v2 }
 0x1a0   : > { %v1660_v42 = vadd.f32 %v1633_v32, %v1544_v5  ;;  %v1344_v59 = vpop.f32.mrf.mxu2 }
 0x1a1   : > { %v1369_v48 = vadd.f32 %v1344_v59, %v1271_v22 }
 0x1a2   : > { %v1680_v8 = vadd.f32 %v2842_v55, %v1660_v42 }
 0x1a4   : > { %v1696_v61 = vpack.c.bf16 %v1680_v8, %v1680_v8  ;;  %v1251_v11 = vpop.f32.mrf.mxu1 }
 0x1a5   : > { %v1636_v40 = vpop.f32.mrf.mxu0  ;;  %v1520_v20 = vpop.f32.mrf.mxu3  ;;  %v1273_v16 = vadd.f32 %v1251_v11, %v2816_v31 }
 0x1a6   : > { %1713 = vst.msk [vmem:[%s2849_s30 + $0x24] sm:$0xf] %vm1703_vm7, %v1696_v61  ;;  %v1545_v49 = vadd.f32 %v1520_v20, %v1369_v48 }
 0x1a8   : > { %v1661_v39 = vadd.f32 %v1636_v40, %v1545_v49  ;;  %v1346_v29 = vpop.f32.mrf.mxu2 }
 0x1a9   : > { %v1370_v43 = vadd.f32 %v1346_v29, %v1272_v18 }
 0x1aa   : > { %v1681_v13 = vadd.f32 %v2842_v55, %v1661_v39 }
 0x1ac   : > { %v1697_v10 = vpack.c.bf16 %v1681_v13, %v1681_v13  ;;  %v1253_v44 = vpop.f32.mrf.mxu1 }
 0x1ad   : > { %v1638_v12 = vpop.f32.mrf.mxu0  ;;  %v1522_v6 = vpop.f32.mrf.mxu3  ;;  %v1274_v21 = vadd.f32 %v1253_v44, %v2827_v14 }
 0x1ae   : > { %1714 = vst.msk [vmem:[%s2849_s30 + $0x28] sm:$0xf] %vm1703_vm7, %v1697_v10  ;;  %v1546_v23 = vadd.f32 %v1522_v6, %v1370_v43 }
 0x1b0   : > { %v1662_v27 = vadd.f32 %v1638_v12, %v1546_v23  ;;  %v1349_v15 = vpop.f32.mrf.mxu2 }
 0x1b1   : > { %v1371_v3 = vadd.f32 %v1349_v15, %v1273_v16 }
 0x1b2   : > { %v1682_v4 = vadd.f32 %v2842_v55, %v1662_v27 }
 0x1b4   : > { %v1698_v26 = vpack.c.bf16 %v1682_v4, %v1682_v4  ;;  %v1256_v31 = vpop.f32.mrf.mxu1 }
 0x1b5   : > { %v1641_v46 = vpop.f32.mrf.mxu0  ;;  %v1525_v62 = vpop.f32.mrf.mxu3  ;;  %v1275_v57 = vadd.f32 %v1256_v31, %v2833_v56 }
 0x1b6   : > { %1715 = vst.msk [vmem:[%s2849_s30 + $0x2c] sm:$0xf] %vm1703_vm7, %v1698_v26  ;;  %v1547_v9 = vadd.f32 %v1525_v62, %v1371_v3 }
 0x1b8   : > { %v1663_v38 = vadd.f32 %v1641_v46, %v1547_v9  ;;  %v1351_v60 = vpop.f32.mrf.mxu2 }
 0x1b9   : > { %v1372_v45 = vadd.f32 %v1351_v60, %v1274_v21 }
 0x1ba   : > { %v1683_v34 = vadd.f32 %v2842_v55, %v1663_v38 }
 0x1bc   : > { %v1699_v17 = vpack.c.bf16 %v1683_v34, %v1683_v34  ;;  %v1258_v25 = vpop.f32.mrf.mxu1 }
 0x1bd   : > { %v1643_v19 = vpop.f32.mrf.mxu0  ;;  %v1527_v7 = vpop.f32.mrf.mxu3  ;;  %v1276_v35 = vadd.f32 %v1258_v25, %v2836_v1 }
 0x1be   : > { %1716 = vst.msk [vmem:[%s2849_s30 + $0x30] sm:$0xf] %vm1703_vm7, %v1699_v17  ;;  %v1548_v0 = vadd.f32 %v1527_v7, %v1372_v45 }
 0x1c0   : > { %v1664_v53 = vadd.f32 %v1643_v19, %v1548_v0  ;;  %v1354_v50 = vpop.f32.mrf.mxu2 }
 0x1c1   : > { %v1373_v14 = vadd.f32 %v1354_v50, %v1275_v57 }
 0x1c2   : > { %v1684_v37 = vadd.f32 %v2842_v55, %v1664_v53 }
 0x1c4   : > { %v1700_v47 = vpack.c.bf16 %v1684_v37, %v1684_v37 }
 0x1c5   : > { %v1646_v36 = vpop.f32.mrf.mxu0  ;;  %v1530_v30 = vpop.f32.mrf.mxu3 }
 0x1c6   : > { %1717 = vst.msk [vmem:[%s2849_s30 + $0x34] sm:$0xf] %vm1703_vm7, %v1700_v47  ;;  %v1549_v41 = vadd.f32 %v1530_v30, %v1373_v14 }
 0x1c8   : > { %v1665_v63 = vadd.f32 %v1646_v36, %v1549_v41  ;;  %v1356_v58 = vpop.f32.mrf.mxu2 }
 0x1c9   : > { %v1374_v56 = vadd.f32 %v1356_v58, %v1276_v35 }
 0x1ca   : > { %v1685_v51 = vadd.f32 %v2842_v55, %v1665_v63 }
 0x1cc   : > { %v1701_v54 = vpack.c.bf16 %v1685_v51, %v1685_v51 }
 0x1cd   : > { %v1532_v33 = vpop.f32.mrf.mxu3  ;;  %v1648_v28 = vpop.f32.mrf.mxu0 }
 0x1ce   : > { %1718 = vst.msk [vmem:[%s2849_s30 + $0x38] sm:$0xf] %vm1703_vm7, %v1701_v54  ;;  %v1550_v2 = vadd.f32 %v1532_v33, %v1374_v56 }
 0x1d0   : > { %v1666_v52 = vadd.f32 %v1648_v28, %v1550_v2 }
 0x1d2   : > { %v1686_v32 = vadd.f32 %v2842_v55, %v1666_v52 }
 0x1d4   : > { %v1702_v24 = vpack.c.bf16 %v1686_v32, %v1686_v32 }
 0x1d6   : > { %1719 = vst.msk [vmem:[%s2849_s30 + $0x3c] sm:$0xf] %vm1703_vm7, %v1702_v24 }
 0x1d7 PF: > { %s13_s16 = sadd.s32 1, %s2128_s16   ;;  %s2935_s12 = smov %s2120_s14 }
 0x1d8   : > { %p10_p7 = scmp.ge.s32.totalorder %s13_s16, 6   ;;  %s2936_s13 = smov %s2124_s15 }
 0x1d9   : > { %s2937_s14 = smov %s2940_s17  ;;  %s2938_s15 = smov %s2944_s18 }
 0x1da   :  { %12 = sbr.rel (!%p10_p7) target bundleno = 3 (0x3), region = 71 }

// kernel: basic_rfb_forward.10
= control target key start
LH: loop header
LB: loop body
LE: loop exit
PB: predicated region body
PF: predicated region fallthrough
CT: control target
= control target key end

     0   :  { %s1778_s12 = smov 0   ;;  %s1780_s13 = smov 0   ;;  %s2457_s0 = inlined_call_operand.vmem [shape: bf16[2,18,18,8], index: 0, kind: input, shape index: {}]   ;;  %s2458_s1 = inlined_call_operand.vmem [shape: bf16[3,3,8,16], index: 1, kind: input, shape index: {}]   ;;  %s2459_s2 = inlined_call_operand.vmem [shape: f32[1,16], index: 2, kind: input, shape index: {}]   ;;  %s2460_s3 = inlined_call_operand.vmem [shape: bf16[2,16,16,16], index: 3, kind: output, shape index: {}]  }
   0x1   :  { %s1782_s14 = smov 0   ;;  %s1784_s15 = smov 0  }
   0x2   :  { %s1786_s16 = smov 0  }
   0x3 LB: > { %s22_s17 = sadd.s32 1, %s1748_s14  ;;  %s25_s18 = sadd.s32 1, %s1752_s15  ;;  %s1756_s16 = sphi %s1786_s16, %s13_s16   ;;  %s1752_s15 = sphi %s1784_s15, %s2468_s15   ;;  %s1748_s14 = sphi %s1782_s14, %s2467_s14   ;;  %s1744_s13 = sphi %s1780_s13, %s2466_s13   ;;  %s1740_s12 = sphi %s1778_s12, %s2465_s12  }
   0x4   : > { %p23_p0 = scmp.ge.s32.totalorder %s22_s17, 2  ;;  %p1521_p1 = scmp.ge.s32.totalorder %s1756_s16, 1 }
   0x5   : > { %p151_p2 = scmp.lt.s32.totalorder %s1756_s16, 5 }
   0x6   : > { %s2470_s17 = smov (%p23_p0, %s22_s17), 0  ;;  %s2472_s18 = smov (!%p23_p0, %s25_s18), %s1752_s15 }
   0x7   : > { %p152_p3 = pnand %p1521_p1, %p151_p2  ;;  %p27_p4 = scmp.ge.s32.totalorder %s2472_s18, 2 }
   0x8   : > { %p180_p5 = scmp.lt.s32.totalorder (!%p152_p3), %s1744_s13, 1  ;;  %s1662_s23 = smul.u32 (!%p152_p3), 96, %s1740_s12 }
   0x9   : > { %s2474_s18 = smov (%p27_p4, %s2472_s18), 0  ;;  %155 = sbr.rel (%p152_p3) target bundleno = 468 (0x1d4), region = 32 }
   0xe   : > { %v1530_v0 = vld [vmem:[%s2458_s1 + $0x4] sm:$0xf]  ;;  %vm478_vm0 = vcmask 1043456   ;;  %s2476_s13 = smov (!%p180_p5, %s1744_s13), 1  ;;  %v1587_v2 = vld [vmem:[%s2458_s1 + $0x8] sm:$0xf] }
   0xf   : > { %v480_v1 = vsel %vm478_vm0, %v1530_v0, 0  ;;  %v765_v3 = vsel %vm478_vm0, %v1587_v2, 0  ;;  %s1676_s24 = smul.u32 216, %s2476_s13  ;;  %v1596_v4 = vld [vmem:[%s2458_s1 + $0xc] sm:$0xf]  ;;  %vm453_vm3 = vcmask 64512  }
  0x10   : > { %1673 = vmatpush.bf16.msra.mxu1 %v480_v1  ;;  %1674 = vmatpush.bf16.msra.mxu2 %v480_v1  ;;  %v231_v5 = vld [vmem:[%s2458_s1] sm:$0xf]  ;;  %v843_v6 = vsel %vm478_vm0, %v1596_v4, 0  ;;  %v1609_v8 = vld [vmem:[%s2458_s1 + $0x10] sm:$0xf]  ;;  %vm655_vm5 = vcmask 1042432  }
  0x11   : > { %1675 = vmatpush.bf16.msra.mxu3 %v480_v1  ;;  %489 = vmatpush.bf16.msra.mxu0 %v480_v1  ;;  %v596_v7 = vsel %vm478_vm0, %v231_v5, 0  ;;  %s184_s6 = scalar_lea.vmem %s2457_s0, %s1676_s24  ;;  %v943_v9 = vsel %vm478_vm0, %v1609_v8, 0  ;;  %vm232_vm1 = vsmask.f32 3328  ;;  %vm233_vm2 = vsmask.f32 7440 }
  0x12   : > { %s1837_s7 = scalar_lea.vmem %s184_s6, %s1662_s23  ;;  %vm1875_vm4 = vmor %vm232_vm1, %vm233_vm2  ;;  %vm656_vm6 = vcmask 1046532   ;;  %s1523_s23 = sshll.u32 %s1740_s12, 3  ;;  %vm1408_vm8 = vcmask 125952  }
  0x13   : > { %v1840_v10 = vld [vmem:[%s1837_s7 + $0x18] sm:$0xf]  ;;  %v1843_v11 = vld [vmem:[%s1837_s7 + $0x1c] sm:$0xf]  ;;  %v1846_v12 = vld [vmem:[%s1837_s7 + $0x20] sm:$0x1] }
  0x14   : > { %774 = vmatpush.bf16.msrb.mxu2 %v765_v3  ;;  %605 = vmatpush.bf16.msrb.mxu1 %v596_v7  ;;  %v284_v13 = vshrl.u32 %v1840_v10, 16  ;;  %v287_v14 = vshll.u32 %v1840_v10, 16  ;;  %v293_v15 = vshll.u32 %v1843_v11, 16  ;;  %v297_v16 = vshrl.u32 %v1843_v11, 16  ;;  %v1853_v17 = vld [vmem:[%s1837_s7 + $0x30] sm:$0xf]  ;;  %vm2029_vm7 = vmor %vm655_vm5, %vm656_vm6 }
  0x15   : > { %852 = vmatpush.bf16.msrb.mxu3 %v843_v6  ;;  %952 = vmatpush.bf16.msrb.mxu0 %v943_v9  ;;  %v303_v18 = vshll.u32 %v1846_v12, 16  ;;  %v1857_v19 = vld [vmem:[%s1837_s7 + $0x34] sm:$0xf]  ;;  %v1860_v20 = vld [vmem:[%s1837_s7 + $0x38] sm:$0x1]  ;;  %v332_v21 = vshrl.u32 %v1853_v17, 16 }
  0x16   : > { %v286_v22 = vrot.slane %v284_v13, 4  ;;  %v289_v23 = vrot.slane %v287_v14, 5  ;;  %v295_v24 = vrot.slane %v293_v15, 5  ;;  %v299_v25 = vrot.slane %v297_v16, 4  ;;  %v1864_v26 = vld [vmem:[%s1837_s7 + $0x48] sm:$0xf] }
  0x17   : > { %v305_v27 = vrot.slane %v303_v18, 5  ;;  %v334_v28 = vrot.slane %v332_v21, 4  ;;  %v335_v29 = vshll.u32 %v1853_v17, 16  ;;  %v341_v30 = vshll.u32 %v1857_v19, 16  ;;  %v1871_v35 = vld [vmem:[%s1837_s7 + $0x4c] sm:$0xf] }
  0x18   : > { %v290_v31 = vor.u32 %v289_v23, %v286_v22  ;;  %v300_v32 = vor.u32 %v299_v25, %v295_v24  ;;  %v345_v33 = vshrl.u32 %v1857_v19, 16  ;;  %v351_v34 = vshll.u32 %v1860_v20, 16  ;;  %v1882_v46 = vld [vmem:[%s1837_s7 + $0x50] sm:$0x1]  ;;  %v1891_v54 = vld [vmem:[%s1837_s7] sm:$0xf] }
  0x19   : > { %v337_v37 = vrot.slane %v335_v29, 5  ;;  %v343_v38 = vrot.slane %v341_v30, 5  ;;  %v380_v39 = vshrl.u32 %v1864_v26, 16  ;;  %v383_v40 = vshll.u32 %v1864_v26, 16  ;;  %v1899_v2 = vld [vmem:[%s1837_s7 + $0x4] sm:$0xf] }
  0x1a   : > { %v291_v41 = vrot.slane %v290_v31, 4  ;;  %v301_v42 = vrot.slane %v300_v32, 4  ;;  %v347_v43 = vrot.slane %v345_v33, 4  ;;  %v353_v44 = vrot.slane %v351_v34, 5  ;;  %v1905_v8 = vld [vmem:[%s1837_s7 + $0x8] sm:$0x1] }
  0x1b   : > { %v338_v45 = vor.u32 %v337_v37, %v334_v28  ;;  %v382_v47 = vrot.slane %v380_v39, 4  ;;  %v385_v48 = vrot.slane %v383_v40, 5  ;;  %v389_v49 = vshll.u32 %v1871_v35, 16  ;;  %v1913_v16 = vld [vmem:[%s1837_s7 + $0x24] sm:$0xf]  ;;  %p188_p6 = scmp.lt.s32.totalorder %s1523_s23, 15 }
  0x1c   : > { %v296_v50 = vsel %vm1875_vm4, %v291_v41, %v295_v24  ;;  %v306_v51 = vsel %vm1875_vm4, %v301_v42, %v305_v27  ;;  %v348_v52 = vor.u32 %v347_v43, %v343_v38  ;;  %v393_v53 = vshrl.u32 %v1871_v35, 16  ;;  %v1922_v29 = vld [vmem:[%s1837_s7 + $0x28] sm:$0xf]  ;;  %v1927_v33 = vld [vmem:[%s1837_s7 + $0x2c] sm:$0x1]  ;;  %s1525_s25 = sshll.u32 %s2476_s13, 5 }
  0x1d   : > { %v433_v55 = vunpack.c.l.b16 %v296_v50  ;;  %v434_v56 = vunpack.c.l.b16 %v306_v51  ;;  %v339_v57 = vrot.slane %v338_v45, 4  ;;  %v386_v58 = vor.u32 %v385_v48, %v382_v47  ;;  %v1934_v41 = vld [vmem:[%s1837_s7 + $0x3c] sm:$0xf]  ;;  %s2478_s23 = smov (!%p188_p6, %s1523_s23), 15 }
  0x1e   : > { %v349_v59 = vrot.slane %v348_v52, 4  ;;  %v391_v60 = vrot.slane %v389_v49, 5  ;;  %v395_v61 = vrot.slane %v393_v53, 4  ;;  %v399_v62 = vshll.u32 %v1882_v46, 16  ;;  %s1524_s24 = sshll.u32 %s2478_s23, 1 }
  0x1f   : > { %v1894_v63 = vpack.c.b16 %v434_v56, %v433_v55  ;;  %v344_v0 = vsel %vm1875_vm4, %v339_v57, %v343_v38  ;;  %v387_v1 = vrot.slane %v386_v58, 4  ;;  %v236_v3 = vshrl.u32 %v1891_v54, 16  ;;  %v1942_v55 = vld [vmem:[%s1837_s7 + $0x40] sm:$0xf]  ;;  %s192_s27 = sadd.s32 %s1525_s25, %s1524_s24 }
  0x20   : > { %v354_v4 = vsel %vm1875_vm4, %v349_v59, %v353_v44  ;;  %v437_v5 = vunpack.c.l.b16 %v344_v0  ;;  %v396_v6 = vor.u32 %v395_v61, %v391_v60  ;;  %v401_v7 = vrot.slane %v399_v62, 5  ;;  %v1954_v62 = vld [vmem:[%s1837_s7 + $0x54] sm:$0xf]  ;;  %s1526_s28 = sshll.u32 %s192_s27, 2 }
  0x21   : > { %1533 = vmatmul.msk.bf16.vlgmr.msra.gmra.mxu1 %vm453_vm3, %v1894_v63  ;;  %v438_v9 = vunpack.c.l.b16 %v354_v4  ;;  %v392_v13 = vsel %vm1875_vm4, %v387_v1, %v391_v60  ;;  %v238_v14 = vrot.slane %v236_v3, 4  ;;  %v239_v15 = vshll.u32 %v1891_v54, 16  ;;  %v1950_v60 = vld [vmem:[%s1837_s7 + $0x44] sm:$0x1]  ;;  %s2379_s30 = scalar_lea.vmem %s2460_s3, %s1526_s28 }
  0x22   : > { %v397_v18 = vrot.slane %v396_v6, 4  ;;  %v441_v21 = vunpack.c.l.b16 %v392_v13  ;;  %v245_v22 = vshll.u32 %v1899_v2, 16  ;;  %v249_v23 = vshrl.u32 %v1899_v2, 16 }
  0x23   : > { %v1917_v24 = vpack.c.b16 %v438_v9, %v437_v5  ;;  %v241_v25 = vrot.slane %v239_v15, 5  ;;  %v255_v27 = vshll.u32 %v1905_v8, 16  ;;  %v663_v28 = vrot.slane %v1905_v8, 5 }
  0x24   : > { %v402_v30 = vsel %vm1875_vm4, %v397_v18, %v401_v7  ;;  %v247_v31 = vrot.slane %v245_v22, 5  ;;  %v251_v32 = vrot.slane %v249_v23, 4  ;;  %v308_v34 = vshrl.u32 %v1913_v16, 16 }
  0x25   : > { %1535 = vmatmul.msk.bf16.vlgmr.msra.gmra.mxu2 %vm453_vm3, %v1917_v24  ;;  %v442_v37 = vunpack.c.l.b16 %v402_v30  ;;  %v242_v38 = vor.u32 %v241_v25, %v238_v14  ;;  %v257_v39 = vrot.slane %v255_v27, 5  ;;  %v311_v40 = vshll.u32 %v1913_v16, 16  ;;  %v1965_v27 = vld [vmem:[%s1837_s7 + $0x58] sm:$0xf]  ;;  %v1968_v30 = vld [vmem:[%s1837_s7 + $0x5c] sm:$0x1] }
  0x26   : > { %v252_v42 = vor.u32 %v251_v32, %v247_v31  ;;  %v310_v43 = vrot.slane %v308_v34, 4  ;;  %v317_v44 = vshll.u32 %v1922_v29, 16  ;;  %v321_v45 = vshrl.u32 %v1922_v29, 16 }
  0x27   : > { %v1938_v47 = vpack.c.b16 %v442_v37, %v441_v21  ;;  %v243_v48 = vrot.slane %v242_v38, 4  ;;  %v313_v49 = vrot.slane %v311_v40, 5  ;;  %v327_v50 = vshll.u32 %v1927_v33, 16  ;;  %v1973_v38 = vld [vmem:[%s1837_s7 + $0xc] sm:$0xf] }
  0x28   : > { %v253_v51 = vrot.slane %v252_v42, 4  ;;  %v319_v52 = vrot.slane %v317_v44, 5  ;;  %v323_v53 = vrot.slane %v321_v45, 4  ;;  %v356_v56 = vshrl.u32 %v1934_v41, 16 }
  0x29   : > { %1537 = vmatmul.msk.bf16.vlgmr.msra.gmra.mxu3 %vm453_vm3, %v1938_v47  ;;  %v248_v57 = vsel %vm1875_vm4, %v243_v48, %v247_v31  ;;  %v314_v58 = vor.u32 %v313_v49, %v310_v43  ;;  %v329_v59 = vrot.slane %v327_v50, 5  ;;  %v359_v61 = vshll.u32 %v1934_v41, 16 }
  0x2a   : > { %v258_v0 = vsel %vm1875_vm4, %v253_v51, %v257_v39  ;;  %v429_v1 = vunpack.c.l.b16 %v248_v57  ;;  %v324_v3 = vor.u32 %v323_v53, %v319_v52  ;;  %v358_v4 = vrot.slane %v356_v56, 4  ;;  %v1985_v53 = vld [vmem:[%s1837_s7 + $0x10] sm:$0xf] }
  0x2b   : > { %v430_v5 = vunpack.c.l.b16 %v258_v0  ;;  %v315_v6 = vrot.slane %v314_v58, 4  ;;  %v361_v7 = vrot.slane %v359_v61, 5  ;;  %v365_v9 = vshll.u32 %v1942_v55, 16  ;;  %v1989_v0 = vld [vmem:[%s1837_s7 + $0x14] sm:$0x1] }
  0x2c   : > { %v325_v13 = vrot.slane %v324_v3, 4  ;;  %v369_v14 = vshrl.u32 %v1942_v55, 16  ;;  %v375_v15 = vshll.u32 %v1950_v60, 16  ;;  %v404_v18 = vshrl.u32 %v1954_v62, 16 }
  0x2d   : > { %v445_v21 = vpack.c.b16 %v430_v5, %v429_v1  ;;  %v320_v22 = vsel %vm1875_vm4, %v315_v6, %v319_v52  ;;  %v362_v23 = vor.u32 %v361_v7, %v358_v4  ;;  %v367_v25 = vrot.slane %v365_v9, 5 }
  0x2e   : > { %v330_v31 = vsel %vm1875_vm4, %v325_v13, %v329_v59  ;;  %v435_v32 = vunpack.c.l.b16 %v320_v22  ;;  %v371_v34 = vrot.slane %v369_v14, 4  ;;  %v377_v37 = vrot.slane %v375_v15, 5 }
  0x2f   : > { %1531 = vmatmul.msk.bf16.vlgmr.msra.gmra.mxu0 %vm453_vm3, %v445_v21  ;;  %v436_v39 = vunpack.c.l.b16 %v330_v31  ;;  %v363_v40 = vrot.slane %v362_v23, 4  ;;  %v406_v42 = vrot.slane %v404_v18, 4  ;;  %v407_v43 = vshll.u32 %v1954_v62, 16  ;;  %v1628_v31 = vld [vmem:[%s2458_s1 + $0x18] sm:$0xf] }
  0x30   : > { %v372_v44 = vor.u32 %v371_v34, %v367_v25  ;;  %v413_v45 = vshll.u32 %v1965_v27, 16  ;;  %v417_v48 = vshrl.u32 %v1965_v27, 16  ;;  %v423_v49 = vshll.u32 %v1968_v30, 16 }
  0x31   : > { %v1980_v50 = vpack.c.b16 %v436_v39, %v435_v32  ;;  %v368_v51 = vsel %vm1875_vm4, %v363_v40, %v367_v25  ;;  %v409_v52 = vrot.slane %v407_v43, 5  ;;  %v260_v56 = vshrl.u32 %v1973_v38, 16  ;;  %v1641_v40 = vld [vmem:[%s2458_s1 + $0x1c] sm:$0xf] }
  0x32   : > { %v373_v57 = vrot.slane %v372_v44, 4  ;;  %v439_v58 = vunpack.c.l.b16 %v368_v51  ;;  %v415_v59 = vrot.slane %v413_v45, 5  ;;  %v419_v61 = vrot.slane %v417_v48, 4 }
  0x33   : > { %1534 = vmatmul.msk.bf16.gmra.mxu1 %vm453_vm3, %v1980_v50  ;;  %v410_v1 = vor.u32 %v409_v52, %v406_v42  ;;  %v425_v3 = vrot.slane %v423_v49, 5  ;;  %v262_v4 = vrot.slane %v260_v56, 4  ;;  %v263_v5 = vshll.u32 %v1973_v38, 16  ;;  %v1619_v42 = vld [vmem:[%s2458_s1 + $0x14] sm:$0xf] }
  0x34   : > { %v378_v6 = vsel %vm1875_vm4, %v373_v57, %v377_v37  ;;  %v420_v7 = vor.u32 %v419_v61, %v415_v59  ;;  %v269_v9 = vshll.u32 %v1985_v53, 16  ;;  %v273_v13 = vshrl.u32 %v1985_v53, 16  ;;  %v1651_v56 = vld [vmem:[%s2458_s1 + $0x20] sm:$0xf] }
  0x35   : > { %v440_v14 = vunpack.c.l.b16 %v378_v6  ;;  %v411_v15 = vrot.slane %v410_v1, 4  ;;  %v265_v18 = vrot.slane %v263_v5, 5  ;;  %v279_v21 = vshll.u32 %v1989_v0, 16 }
  0x36   : > { %v421_v22 = vrot.slane %v420_v7, 4  ;;  %v271_v23 = vrot.slane %v269_v9, 5  ;;  %v275_v25 = vrot.slane %v273_v13, 4  ;;  %v1579_v51 = vrot.slane %v1891_v54, 9 }
  0x37   : > { %v2002_v32 = vpack.c.b16 %v440_v14, %v439_v58  ;;  %v416_v34 = vsel %vm1875_vm4, %v411_v15, %v415_v59  ;;  %v266_v37 = vor.u32 %v265_v18, %v262_v4  ;;  %v281_v39 = vrot.slane %v279_v21, 5  ;;  %v1663_v15 = vld [vmem:[%s1837_s7] sm:$0xff] }
  0x38   : > { %v426_v43 = vsel %vm1875_vm4, %v421_v22, %v425_v3  ;;  %v443_v44 = vunpack.c.l.b16 %v416_v34  ;;  %v276_v45 = vor.u32 %v275_v25, %v271_v23  ;;  %v660_v52 = vrot.slane %v1899_v2, 5 }
  0x39   : > { %1536 = vmatmul.msk.bf16.gmra.mxu2 %vm453_vm3, %v2002_v32  ;;  %v444_v48 = vunpack.c.l.b16 %v426_v43  ;;  %v267_v49 = vrot.slane %v266_v37, 4  ;;  %v1105_v58 = vsel %vm478_vm0, %v1628_v31, 0  ;;  %v1205_v59 = vsel %vm478_vm0, %v1641_v40, 0 }
  0x3a   : > { %v277_v57 = vrot.slane %v276_v45, 4  ;;  %v1027_v61 = vsel %vm478_vm0, %v1619_v42, 0  ;;  %v662_v2 = vrot.slane %v660_v52, 4  ;;  %1114 = vmatpush.bf16.msra.mxu2 %v1105_v58  ;;  %1214 = vmatpush.bf16.msra.mxu3 %v1205_v59  ;;  %v1289_v6 = vsel %vm478_vm0, %v1651_v56, 0  ;;  %v1664_v42 = vld [vmem:[%s1837_s7 + $0xc] sm:$0xff] }
  0x3b   : > { %v2024_v1 = vpack.c.b16 %v444_v48, %v443_v44  ;;  %v272_v3 = vsel %vm1875_vm4, %v267_v49, %v271_v23  ;;  %1036 = vmatpush.bf16.msra.mxu1 %v1027_v61  ;;  %1298 = vmatpush.bf16.msra.mxu0 %v1289_v6  ;;  %v661_v9 = vsel %vm2029_vm7, %v1579_v51, %v660_v52  ;;  %v1581_v22 = vrot.slane %v1840_v10, 9 }
  0x3c   : > { %v282_v4 = vsel %vm1875_vm4, %v277_v57, %v281_v39  ;;  %v431_v5 = vunpack.c.l.b16 %v272_v3  ;;  %v664_v13 = vsel %vm2029_vm7, %v662_v2, %v663_v28  ;;  %v716_v18 = vunpack.c.l.b16 %v661_v9  ;;  %v2105_v3 = vld [vmem:[%s1837_s7 + $0x30] sm:$0xff] }
  0x3d   : > { %1538 = vmatmul.msk.bf16.gmra.mxu3 %vm453_vm3, %v2024_v1  ;;  %v432_v7 = vunpack.c.l.b16 %v282_v4  ;;  %v717_v21 = vunpack.c.l.b16 %v664_v13  ;;  %v674_v23 = vrot.slane %v1843_v11, 5  ;;  %v677_v25 = vrot.slane %v1846_v12, 5  ;;  %v2125_v13 = vld [vmem:[%s1837_s7 + $0x3c] sm:$0xff] }
  0x3e   : > { %v667_v34 = vrot.slane %v1985_v53, 5  ;;  %v1580_v10 = vrot.slane %v1973_v38, 9  ;;  %v670_v12 = vrot.slane %v1989_v0, 5  ;;  %v1582_v38 = vrot.slane %v1913_v16, 9  ;;  %v2080_v16 = vld [vmem:[%s1837_s7 + $0x18] sm:$0xff] }
  0x3f   : > { %v446_v14 = vpack.c.b16 %v432_v7, %v431_v5  ;;  %v732_v31 = vpack.c.b16 %v717_v21, %v716_v18  ;;  %v675_v8 = vsel %vm2029_vm7, %v1581_v22, %v674_v23  ;;  %v676_v28 = vrot.slane %v674_v23, 4 }
  0x40   : > { %v720_v37 = vunpack.c.l.b16 %v675_v8  ;;  %v669_v11 = vrot.slane %v667_v34, 4  ;;  %v668_v53 = vsel %vm2029_vm7, %v1580_v10, %v667_v34  ;;  %v681_v0 = vrot.slane %v1922_v29, 5 }
  0x41   : > { %1532 = vmatmul.msk.bf16.gmra.mxu0 %vm453_vm3, %v446_v14  ;;  %v678_v39 = vsel %vm2029_vm7, %v676_v28, %v677_v25  ;;  %v718_v45 = vunpack.c.l.b16 %v668_v53  ;;  %v684_v49 = vrot.slane %v1927_v33, 5  ;;  %v2093_v33 = vld [vmem:[%s1837_s7 + $0x24] sm:$0xff]  ;;  %v688_v61 = vrot.slane %v1857_v19, 5 }
  0x42   : > { %v721_v40 = vunpack.c.l.b16 %v678_v39  ;;  %v671_v44 = vsel %vm2029_vm7, %v669_v11, %v670_v12  ;;  %v682_v52 = vsel %vm2029_vm7, %v1582_v38, %v681_v0  ;;  %v683_v56 = vrot.slane %v681_v0, 4  ;;  %v2145_v25 = vld [vmem:[%s1837_s7 + $0x48] sm:$0xff]  ;;  %v2181_v38 = vld [vmem:[%s1837_s7 + $0x54] sm:$0xff] }
  0x43   : > { %1571 = vmatmul.msk.bf16.vlgmr.msrb.gmra.mxu1 %vm453_vm3, %v1663_v15  ;;  %v719_v48 = vunpack.c.l.b16 %v671_v44  ;;  %v722_v57 = vunpack.c.l.b16 %v682_v52  ;;  %v1583_v2 = vrot.slane %v1853_v17, 9  ;;  %v690_v4 = vrot.slane %v688_v61, 4 }
  0x44   : > { %v2059_v43 = vpack.c.b16 %v721_v40, %v720_v37  ;;  %v685_v58 = vsel %vm2029_vm7, %v683_v56, %v684_v49  ;;  %v691_v5 = vrot.slane %v1860_v20, 5  ;;  %v695_v20 = vrot.slane %v1942_v55, 5  ;;  %v2160_v40 = vld [vmem:[%s1837_s7 + $0x60] sm:$0xf] }
  0x45   : > { %v2071_v51 = vpack.c.b16 %v719_v48, %v718_v45  ;;  %v723_v59 = vunpack.c.l.b16 %v685_v58  ;;  %v689_v6 = vsel %vm2029_vm7, %v1583_v2, %v688_v61  ;;  %v698_v18 = vrot.slane %v1950_v60, 5  ;;  %v2186_v61 = vld [vmem:[%s1837_s7 + $0x68] sm:$0x1] }
  0x46   : > { %v692_v19 = vsel %vm2029_vm7, %v690_v4, %v691_v5  ;;  %v724_v7 = vunpack.c.l.b16 %v689_v6  ;;  %v697_v15 = vrot.slane %v695_v20, 4  ;;  %v702_v60 = vrot.slane %v1871_v35, 5 }
  0x47   : > { %v2082_v29 = vpack.c.b16 %v723_v59, %v722_v57  ;;  %v725_v9 = vunpack.c.l.b16 %v692_v19  ;;  %v705_v28 = vrot.slane %v1882_v46, 5  ;;  %v2163_v46 = vld [vmem:[%s1837_s7 + $0x64] sm:$0xf]  ;;  %v911_v10 = vshrl.u32 %v2160_v40, 16 }
  0x48   : > { %v699_v55 = vsel %vm2029_vm7, %v697_v15, %v698_v18  ;;  %v704_v8 = vrot.slane %v702_v60, 4  ;;  %v914_v11 = vshll.u32 %v2160_v40, 16  ;;  %v920_v12 = vshll.u32 %v2163_v46, 16 }
  0x49   : > { %1588 = vmatmul.msk.bf16.vlgmr.msrb.gmra.mxu2 %vm453_vm3, %v732_v31  ;;  %v2119_v17 = vpack.c.b16 %v725_v9, %v724_v7  ;;  %v727_v23 = vunpack.c.l.b16 %v699_v55  ;;  %v1585_v31 = vrot.slane %v1864_v26, 9  ;;  %v709_v44 = vrot.slane %v1965_v27, 5 }
  0x4a   : > { %v706_v35 = vsel %vm2029_vm7, %v704_v8, %v705_v28  ;;  %v924_v45 = vshrl.u32 %v2163_v46, 16  ;;  %v913_v0 = vrot.slane %v911_v10, 4  ;;  %v916_v49 = vrot.slane %v914_v11, 5  ;;  %v2218_v8 = vld [vmem:[%s1837_s7 + $0x60] sm:$0xff] }
  0x4b   : > { %v703_v37 = vsel %vm2029_vm7, %v1585_v31, %v702_v60  ;;  %v729_v26 = vunpack.c.l.b16 %v706_v35  ;;  %v922_v52 = vrot.slane %v920_v12, 5  ;;  %v1586_v56 = vrot.slane %v1954_v62, 9 }
  0x4c   : > { %v728_v39 = vunpack.c.l.b16 %v703_v37  ;;  %v711_v57 = vrot.slane %v709_v44, 4  ;;  %v712_v58 = vrot.slane %v1968_v30, 5  ;;  %v926_v59 = vrot.slane %v924_v45, 4 }
  0x4d   : > { %1601 = vmatmul.msk.bf16.vlgmr.msrb.gmra.mxu3 %vm453_vm3, %v1664_v42  ;;  %v917_v4 = vor.u32 %v916_v49, %v913_v0  ;;  %v710_v5 = vsel %vm2029_vm7, %v1586_v56, %v709_v44  ;;  %v930_v19 = vshll.u32 %v2186_v61, 16 }
  0x4e   : > { %v713_v6 = vsel %vm2029_vm7, %v711_v57, %v712_v58  ;;  %v927_v62 = vor.u32 %v926_v59, %v922_v52  ;;  %v730_v7 = vunpack.c.l.b16 %v710_v5 }
  0x4f   : > { %v731_v9 = vunpack.c.l.b16 %v713_v6  ;;  %v932_v18 = vrot.slane %v930_v19, 5 }
  0x50   : > { %v928_v15 = vrot.slane %v927_v62, 4 }
  0x51   : > { %1610 = vmatmul.msk.bf16.vlgmr.msrb.gmra.mxu0 %vm453_vm3, %v446_v14  ;;  %v1584_v14 = vrot.slane %v1934_v41, 9  ;;  %v2205_v55 = vpack.c.b16 %v731_v9, %v730_v7 }
  0x52   : > { %v933_v60 = vsel %vm1875_vm4, %v928_v15, %v932_v18 }
  0x53   : > { %1572 = vmatmul.msk.bf16.gmra.mxu1 %vm453_vm3, %v1664_v42  ;;  %v696_v21 = vsel %vm2029_vm7, %v1584_v14, %v695_v20  ;;  %v2167_v42 = vpack.c.b16 %v729_v26, %v728_v39  ;;  %v918_v14 = vrot.slane %v917_v4, 4  ;;  %v937_v37 = vunpack.c.l.b16 %v933_v60 }
  0x54   : > { %v726_v22 = vunpack.c.l.b16 %v696_v21 }
  0x56   : > { %v2139_v41 = vpack.c.b16 %v727_v23, %v726_v22  ;;  %v923_v23 = vsel %vm1875_vm4, %v918_v14, %v922_v52 }
  0x57   : > { %v936_v28 = vunpack.c.l.b16 %v923_v23 }
  0x59   : > { %1589 = vmatmul.msk.bf16.gmra.mxu2 %vm453_vm3, %v2071_v51  ;;  %v2224_v39 = vpack.c.b16 %v937_v37, %v936_v28 }
  0x5d   : > { %1602 = vmatmul.msk.bf16.gmra.mxu3 %vm453_vm3, %v2080_v16 }
  0x61   : > { %1611 = vmatmul.msk.bf16.gmra.mxu0 %vm453_vm3, %v1894_v63 }
  0x63   : > { %1573 = vmatmul.msk.bf16.gmra.mxu1 %vm453_vm3, %v2080_v16 }
  0x69   : > { %1590 = vmatmul.msk.bf16.gmra.mxu2 %vm453_vm3, %v2059_v43 }
  0x6d   : > { %1603 = vmatmul.msk.bf16.gmra.mxu3 %vm453_vm3, %v2093_v33 }
  0x71   : > { %1612 = vmatmul.msk.bf16.gmra.mxu0 %vm453_vm3, %v1980_v50 }
  0x73   : > { %1574 = vmatmul.msk.bf16.gmra.mxu1 %vm453_vm3, %v2093_v33 }
  0x79   : > { %1591 = vmatmul.msk.bf16.gmra.mxu2 %vm453_vm3, %v2082_v29 }
  0x7d   : > { %1604 = vmatmul.msk.bf16.gmra.mxu3 %vm453_vm3, %v2105_v3 }
  0x81   : > { %1613 = vmatmul.msk.bf16.gmra.mxu0 %vm453_vm3, %v1917_v24 }
  0x83   : > { %1575 = vmatmul.msk.bf16.gmra.mxu1 %vm453_vm3, %v2105_v3 }
  0x89   : > { %1592 = vmatmul.msk.bf16.gmra.mxu2 %vm453_vm3, %v2119_v17 }
  0x8d   : > { %1605 = vmatmul.msk.bf16.gmra.mxu3 %vm453_vm3, %v2125_v13 }
  0x91   : > { %1614 = vmatmul.msk.bf16.gmra.mxu0 %vm453_vm3, %v2002_v32 }
  0x93   : > { %1576 = vmatmul.msk.bf16.gmra.mxu1 %vm453_vm3, %v2125_v13 }
  0x99   : > { %1593 = vmatmul.msk.bf16.gmra.mxu2 %vm453_vm3, %v2139_v41 }
  0x9d   : > { %1606 = vmatmul.msk.bf16.gmra.mxu3 %vm453_vm3, %v2145_v25 }
  0x9e   : > { %v2151_v34 = vpop.f32.mrf.mxu1 }
  0xa1   : > { %1615 = vmatmul.msk.bf16.gmra.mxu0 %vm453_vm3, %v1938_v47 }
  0xa3   : > { %1577 = vmatmul.msk.bf16.gmra.mxu1 %vm453_vm3, %v2145_v25 }
  0xa6   : > { %v2172_v53 = vpop.f32.mrf.mxu1 }
  0xa8   : > { %v2176_v48 = vpop.f32.mrf.mxu2 }
  0xa9   : > { %1594 = vmatmul.msk.bf16.gmra.mxu2 %vm453_vm3, %v2167_v42 }
  0xac   : > { %v491_v27 = vpop.f32.mrf.mxu0  ;;  %v2188_v2 = vpop.f32.mrf.mxu3 }
  0xad   : > { %1607 = vmatmul.msk.bf16.gmra.mxu3 %vm453_vm3, %v2181_v38 }
  0xb0   : > { %v2197_v30 = vpop.f32.mrf.mxu1  ;;  %v2201_v20 = vpop.f32.mrf.mxu2 }
  0xb1   : > { %1616 = vmatmul.msk.bf16.gmra.mxu0 %vm453_vm3, %v2024_v1 }
  0xb3   : > { %1578 = vmatmul.msk.bf16.gmra.mxu1 %vm453_vm3, %v2181_v38 }
  0xb4   : > { %v493_v21 = vpop.f32.mrf.mxu0  ;;  %v2207_v22 = vpop.f32.mrf.mxu3 }
  0xb8   : > { %v2213_v31 = vpop.f32.mrf.mxu1 }
  0xb9   : > { %1595 = vmatmul.msk.bf16.gmra.mxu2 %vm453_vm3, %v2205_v55 }
  0xbc   : > { %v2220_v35 = vpop.f32.mrf.mxu2 }
  0xbd   : > { %1608 = vmatmul.msk.bf16.gmra.mxu3 %vm453_vm3, %v2218_v8 }
  0xbe   : > { %v496_v26 = vpop.f32.mrf.mxu0 }
  0xc0   : > { %v2226_v10 = vpop.f32.mrf.mxu3  ;;  %v607_v11 = vpop.f32.mrf.mxu1 }
  0xc1   : > { %1617 = vmatmul.msk.bf16.gmra.mxu0 %vm453_vm3, %v2224_v39  ;;  %v608_v12 = vadd.f32 %v607_v11, %v491_v27 }
  0xc3   : > { %1620 = vmatmul.msk.bf16.vlgmr.msra.gmra.mxu1 %vm453_vm3, %v2071_v51 }
  0xc4   : > { %v2232_v44 = vpop.f32.mrf.mxu2 }
  0xc6   : > { %v498_v45 = vpop.f32.mrf.mxu0 }
  0xc8   : > { %v2234_v0 = vpop.f32.mrf.mxu3  ;;  %v609_v49 = vpop.f32.mrf.mxu1 }
  0xc9   : > { %1633 = vmatmul.msk.bf16.vlgmr.msra.gmra.mxu2 %vm453_vm3, %v2080_v16  ;;  %v610_v52 = vadd.f32 %v609_v49, %v493_v21 }
  0xcc   : > { %v776_v56 = vpop.f32.mrf.mxu2 }
  0xcd   : > { %1642 = vmatmul.msk.bf16.vlgmr.msra.gmra.mxu3 %vm453_vm3, %v1894_v63  ;;  %v816_v57 = vadd.f32 %v776_v56, %v608_v12 }
  0xce   : > { %v954_v58 = vpop.f32.mrf.mxu0 }
  0xd0   : > { %v854_v59 = vpop.f32.mrf.mxu3  ;;  %v612_v27 = vpop.f32.mrf.mxu1 }
  0xd1   : > { %1652 = vmatmul.msk.bf16.vlgmr.msra.gmra.mxu0 %vm453_vm3, %v2059_v43  ;;  %v894_v51 = vadd.f32 %v854_v59, %v816_v57  ;;  %v613_v4 = vadd.f32 %v612_v27, %v496_v26 }
  0xd3   : > { %1621 = vmatmul.msk.bf16.gmra.mxu1 %vm453_vm3, %v2059_v43  ;;  %v2244_v5 = vadd.f32 %v954_v58, %v894_v51 }
  0xd4   : > { %v778_v16 = vpop.f32.mrf.mxu2 }
  0xd5   : > { %v817_v6 = vadd.f32 %v778_v16, %v610_v52 }
  0xd6   : > { %v956_v62 = vpop.f32.mrf.mxu0 }
  0xd8   : > { %v856_v19 = vpop.f32.mrf.mxu3  ;;  %v614_v7 = vpop.f32.mrf.mxu1 }
  0xd9   : > { %v895_v63 = vadd.f32 %v856_v19, %v817_v6  ;;  %1634 = vmatmul.msk.bf16.gmra.mxu2 %vm453_vm3, %v2093_v33  ;;  %v615_v9 = vadd.f32 %v614_v7, %v498_v45 }
  0xdb   : > { %v2248_v14 = vadd.f32 %v956_v62, %v895_v63 }
  0xdc   : > { %v781_v15 = vpop.f32.mrf.mxu2 }
  0xdd   : > { %1643 = vmatmul.msk.bf16.gmra.mxu3 %vm453_vm3, %v1980_v50  ;;  %v818_v18 = vadd.f32 %v781_v15, %v613_v4 }
  0xde   : > { %v959_v43 = vpop.f32.mrf.mxu0 }
  0xe0   : > { %v859_v21 = vpop.f32.mrf.mxu3  ;;  %v617_v23 = vpop.f32.mrf.mxu1 }
  0xe1   : > { %1653 = vmatmul.msk.bf16.gmra.mxu0 %vm453_vm3, %v2082_v29  ;;  %v896_v60 = vadd.f32 %v859_v21, %v818_v18  ;;  %v618_v28 = vadd.f32 %v617_v23, %v2151_v34 }
  0xe3   : > { %1622 = vmatmul.msk.bf16.gmra.mxu1 %vm453_vm3, %v2082_v29  ;;  %v2257_v33 = vadd.f32 %v959_v43, %v896_v60 }
  0xe4   : > { %v783_v37 = vpop.f32.mrf.mxu2 }
  0xe5   : > { %v819_v26 = vadd.f32 %v783_v37, %v615_v9 }
  0xe6   : > { %v961_v11 = vpop.f32.mrf.mxu0 }
  0xe8   : > { %v861_v12 = vpop.f32.mrf.mxu3  ;;  %v619_v50 = vpop.f32.mrf.mxu1 }
  0xe9   : > { %v897_v45 = vadd.f32 %v861_v12, %v819_v26  ;;  %1635 = vmatmul.msk.bf16.gmra.mxu2 %vm453_vm3, %v2105_v3  ;;  %v620_v49 = vadd.f32 %v619_v50, %v2172_v53 }
  0xeb   : > { %v2262_v52 = vadd.f32 %v961_v11, %v897_v45 }
  0xec   : > { %v786_v56 = vpop.f32.mrf.mxu2 }
  0xed   : > { %1644 = vmatmul.msk.bf16.gmra.mxu3 %vm453_vm3, %v1917_v24  ;;  %v820_v29 = vadd.f32 %v786_v56, %v618_v28 }
  0xee   : > { %v964_v34 = vpop.f32.mrf.mxu0 }
  0xf0   : > { %v864_v57 = vpop.f32.mrf.mxu3  ;;  %v622_v58 = vpop.f32.mrf.mxu1 }
  0xf1   : > { %1654 = vmatmul.msk.bf16.gmra.mxu0 %vm453_vm3, %v2119_v17  ;;  %v898_v59 = vadd.f32 %v864_v57, %v820_v29  ;;  %v623_v27 = vadd.f32 %v622_v58, %v2197_v30 }
  0xf3   : > { %1623 = vmatmul.msk.bf16.gmra.mxu1 %vm453_vm3, %v2119_v17  ;;  %v2271_v3 = vadd.f32 %v964_v34, %v898_v59 }
  0xf4   : > { %v788_v53 = vpop.f32.mrf.mxu2 }
  0xf5   : > { %v821_v51 = vadd.f32 %v788_v53, %v620_v49  ;;  %v2309_v53 = vld [vmem:[%s1837_s7 + $0x6c] sm:$0xf] }
  0xf6   : > { %v966_v4 = vpop.f32.mrf.mxu0 }
  0xf8   : > { %v866_v16 = vpop.f32.mrf.mxu3  ;;  %v624_v24 = vpop.f32.mrf.mxu1 }
  0xf9   : > { %v899_v6 = vadd.f32 %v866_v16, %v821_v51  ;;  %1636 = vmatmul.msk.bf16.gmra.mxu2 %vm453_vm3, %v2125_v13  ;;  %v625_v62 = vadd.f32 %v624_v24, %v2213_v31  ;;  %v2312_v51 = vld [vmem:[%s1837_s7 + $0x70] sm:$0xf]  ;;  %v1173_v24 = vshrl.u32 %v2309_v53, 16 }
  0xfb   : > { %v2276_v19 = vadd.f32 %v966_v4, %v899_v6  ;;  %v1618_v6 = vrot.slane %v2160_v40, 9 }
  0xfc   : > { %v791_v7 = vpop.f32.mrf.mxu2 }
  0xfd   : > { %1645 = vmatmul.msk.bf16.gmra.mxu3 %vm453_vm3, %v2002_v32  ;;  %v822_v17 = vadd.f32 %v791_v7, %v623_v27  ;;  %v1013_v27 = vrot.slane %v2163_v46, 5  ;;  %v1186_v7 = vshrl.u32 %v2312_v51, 16 }
  0xfe   : > { %v969_v30 = vpop.f32.mrf.mxu0 }
  0xff   : > { %v1015_v46 = vrot.slane %v1013_v27, 4  ;;  %v1014_v40 = vsel %vm2029_vm7, %v1618_v6, %v1013_v27 }
 0x100   : > { %v869_v63 = vpop.f32.mrf.mxu3  ;;  %v627_v9 = vpop.f32.mrf.mxu1 }
 0x101   : > { %1655 = vmatmul.msk.bf16.gmra.mxu0 %vm453_vm3, %v2139_v41  ;;  %v900_v15 = vadd.f32 %v869_v63, %v822_v17  ;;  %v628_v32 = vadd.f32 %v627_v9, %v2176_v48  ;;  %v1175_v9 = vrot.slane %v1173_v24, 4  ;;  %v1672_v24 = vld [vmem:[%s1837_s7 + $0x6c] sm:$0xff] }
 0x103   : > { %1624 = vmatmul.msk.bf16.gmra.mxu1 %vm453_vm3, %v2139_v41  ;;  %v2284_v13 = vadd.f32 %v969_v30, %v900_v15 }
 0x104   : > { %v793_v31 = vpop.f32.mrf.mxu2 }
 0x105   : > { %v823_v18 = vadd.f32 %v793_v31, %v625_v62  ;;  %v1182_v62 = vshll.u32 %v2312_v51, 16 }
 0x106   : > { %v971_v43 = vpop.f32.mrf.mxu0 }
 0x108   : > { %v871_v21 = vpop.f32.mrf.mxu3  ;;  %v629_v23 = vpop.f32.mrf.mxu1 }
 0x109   : > { %v901_v60 = vadd.f32 %v871_v21, %v823_v18  ;;  %1637 = vmatmul.msk.bf16.gmra.mxu2 %vm453_vm3, %v2145_v25  ;;  %v630_v45 = vadd.f32 %v629_v23, %v2201_v20  ;;  %v1188_v21 = vrot.slane %v1186_v7, 4  ;;  %v230_v23 = vld [vmem:[%s1837_s7 + $0x74] sm:$0x1] }
 0x10b   : > { %v2289_v28 = vadd.f32 %v971_v43, %v901_v60  ;;  %v1184_v43 = vrot.slane %v1182_v62, 5 }
 0x10c   : > { %v796_v37 = vpop.f32.mrf.mxu2 }
 0x10d   : > { %1646 = vmatmul.msk.bf16.gmra.mxu3 %vm453_vm3, %v1938_v47  ;;  %v824_v41 = vadd.f32 %v796_v37, %v628_v32 }
 0x10e   : > { %v974_v26 = vpop.f32.mrf.mxu0 }
 0x110   : > { %v874_v11 = vpop.f32.mrf.mxu3  ;;  %v632_v12 = vpop.f32.mrf.mxu1 }
 0x111   : > { %1656 = vmatmul.msk.bf16.gmra.mxu0 %vm453_vm3, %v2167_v42  ;;  %v902_v50 = vadd.f32 %v874_v11, %v824_v41  ;;  %v633_v57 = vadd.f32 %v632_v12, %v2220_v35  ;;  %v1192_v11 = vshll.u32 %v230_v23, 16 }
 0x113   : > { %1625 = vmatmul.msk.bf16.gmra.mxu1 %vm453_vm3, %v2167_v42  ;;  %v2298_v25 = vadd.f32 %v974_v26, %v902_v50  ;;  %v1189_v26 = vor.u32 %v1188_v21, %v1184_v43 }
 0x114   : > { %v798_v48 = vpop.f32.mrf.mxu2 }
 0x115   : > { %v825_v49 = vadd.f32 %v798_v48, %v630_v45 }
 0x116   : > { %v976_v47 = vpop.f32.mrf.mxu0 }
 0x118   : > { %v876_v56 = vpop.f32.mrf.mxu3  ;;  %v634_v29 = vpop.f32.mrf.mxu1 }
 0x119   : > { %v903_v34 = vadd.f32 %v876_v56, %v825_v49  ;;  %1638 = vmatmul.msk.bf16.gmra.mxu2 %vm453_vm3, %v2181_v38  ;;  %v1016_v38 = vrot.slane %v2186_v61, 5  ;;  %v635_v17 = vadd.f32 %v634_v29, %v2232_v44  ;;  %v1190_v29 = vrot.slane %v1189_v26, 4 }
 0x11b   : > { %v2303_v58 = vadd.f32 %v976_v47, %v903_v34  ;;  %v1017_v18 = vsel %vm2029_vm7, %v1015_v46, %v1016_v38  ;;  %v1194_v34 = vrot.slane %v1192_v11, 5 }
 0x11c   : > { %v801_v20 = vpop.f32.mrf.mxu2  ;;  %v1021_v37 = vunpack.c.l.b16 %v1017_v18 }
 0x11d   : > { %1647 = vmatmul.msk.bf16.gmra.mxu3 %vm453_vm3, %v2024_v1  ;;  %v826_v42 = vadd.f32 %v801_v20, %v633_v57  ;;  %v1176_v1 = vshll.u32 %v2309_v53, 16 }
 0x11e   : > { %v979_v59 = vpop.f32.mrf.mxu0 }
 0x11f   : > { %v1178_v15 = vrot.slane %v1176_v1, 5 }
 0x120   : > { %v879_v4 = vpop.f32.mrf.mxu3  ;;  %v637_v16 = vpop.f32.mrf.mxu1 }
 0x121   : > { %1657 = vmatmul.msk.bf16.gmra.mxu0 %vm453_vm3, %v2205_v55  ;;  %v904_v35 = vadd.f32 %v879_v4, %v826_v42  ;;  %v1179_v41 = vor.u32 %v1178_v15, %v1175_v9  ;;  %v638_v12 = vadd.f32 %v637_v16, %v2188_v2  ;;  %v1278_v4 = vrot.slane %v230_v23, 5 }
 0x123   : > { %1626 = vmatmul.msk.bf16.gmra.mxu1 %vm453_vm3, %v2205_v55  ;;  %v2325_v61 = vadd.f32 %v979_v59, %v904_v35  ;;  %v1020_v55 = vunpack.c.l.b16 %v1014_v40  ;;  %v1180_v47 = vrot.slane %v1179_v41, 4  ;;  %v1650_v59 = vrot.slane %v2309_v53, 9 }
 0x124   : > { %v803_v30 = vpop.f32.mrf.mxu2 }
 0x125   : > { %v827_v63 = vadd.f32 %v803_v30, %v635_v17  ;;  %v1022_v48 = vpack.c.b16 %v1021_v37, %v1020_v55  ;;  %v1185_v42 = vsel %vm1875_vm4, %v1180_v47, %v1184_v43 }
 0x126   : > { %v981_v31 = vpop.f32.mrf.mxu0  ;;  %v1198_v1 = vunpack.c.l.b16 %v1185_v42 }
 0x128   : > { %v881_v44 = vpop.f32.mrf.mxu3  ;;  %v639_v60 = vpop.f32.mrf.mxu1 }
 0x129   : > { %v905_v32 = vadd.f32 %v881_v44, %v827_v63  ;;  %1639 = vmatmul.msk.bf16.gmra.mxu2 %vm453_vm3, %v2218_v8  ;;  %v1275_v8 = vrot.slane %v2312_v51, 5  ;;  %v640_v16 = vadd.f32 %v639_v60, %v2207_v22 }
 0x12b   : > { %v2335_v50 = vadd.f32 %v981_v31, %v905_v32  ;;  %v1277_v27 = vrot.slane %v1275_v8, 4  ;;  %v1276_v36 = vsel %vm2029_vm7, %v1650_v59, %v1275_v8 }
 0x12c   : > { %v806_v45 = vpop.f32.mrf.mxu2  ;;  %v1282_v30 = vunpack.c.l.b16 %v1276_v36 }
 0x12d   : > { %1648 = vmatmul.msk.bf16.gmra.mxu3 %vm453_vm3, %v2224_v39  ;;  %v828_v49 = vadd.f32 %v806_v45, %v638_v12  ;;  %v1195_v39 = vsel %vm1875_vm4, %v1190_v29, %v1194_v34  ;;  %v1279_v53 = vsel %vm2029_vm7, %v1277_v27, %v1278_v4  ;;  %v2372_v29 = vld [vmem:[%s2459_s2] ss:$0 sm:$0xff] }
 0x12e   : > { %v984_v56 = vpop.f32.mrf.mxu0  ;;  %v1199_v6 = vunpack.c.l.b16 %v1195_v39  ;;  %v1283_v63 = vunpack.c.l.b16 %v1279_v53 }
 0x130   : > { %v884_v57 = vpop.f32.mrf.mxu3  ;;  %v642_v20 = vpop.f32.mrf.mxu1  ;;  %v1200_v22 = vpack.c.b16 %v1199_v6, %v1198_v1  ;;  %v1284_v40 = vpack.c.b16 %v1283_v63, %v1282_v30 }
 0x131   : > { %1658 = vmatmul.msk.bf16.gmra.mxu0 %vm453_vm3, %v1022_v48  ;;  %v906_v2 = vadd.f32 %v884_v57, %v828_v49  ;;  %v643_v9 = vadd.f32 %v642_v20, %v2226_v10 }
 0x133   : > { %1627 = vmatmul.msk.bf16.gmra.mxu1 %vm453_vm3, %v1022_v48  ;;  %v2348_v51 = vadd.f32 %v984_v56, %v906_v2 }
 0x134   : > { %v808_v38 = vpop.f32.mrf.mxu2 }
 0x135   : > { %v829_v35 = vadd.f32 %v808_v38, %v640_v16 }
 0x136   : > { %v986_v46 = vpop.f32.mrf.mxu0 }
 0x138   : > { %v886_v62 = vpop.f32.mrf.mxu3  ;;  %v644_v7 = vpop.f32.mrf.mxu1 }
 0x139   : > { %v907_v17 = vadd.f32 %v886_v62, %v829_v35  ;;  %1640 = vmatmul.msk.bf16.gmra.mxu2 %vm453_vm3, %v1672_v24  ;;  %v645_v44 = vadd.f32 %v644_v7, %v2234_v0 }
 0x13b   : > { %v2357_v15 = vadd.f32 %v986_v46, %v907_v17 }
 0x13c   : > { %v811_v31 = vpop.f32.mrf.mxu2 }
 0x13d   : > { %1649 = vmatmul.msk.bf16.gmra.mxu3 %vm453_vm3, %v1200_v22  ;;  %v830_v18 = vadd.f32 %v811_v31, %v643_v9 }
 0x13e   : > { %v989_v54 = vpop.f32.mrf.mxu0 }
 0x140   : > { %v889_v43 = vpop.f32.mrf.mxu3  ;;  %v1038_v21 = vpop.f32.mrf.mxu1 }
 0x141   : > { %1659 = vmatmul.msk.bf16.gmra.mxu0 %vm453_vm3, %v1284_v40  ;;  %v908_v23 = vadd.f32 %v889_v43, %v830_v18  ;;  %v1078_v11 = vadd.f32 %v1038_v21, %v2244_v5 }
 0x143   : > { %v2362_v60 = vadd.f32 %v989_v54, %v908_v23 }
 0x144   : > { %v813_v32 = vpop.f32.mrf.mxu2 }
 0x145   : > { %v831_v10 = vadd.f32 %v813_v32, %v645_v44 }
 0x146   : > { %v991_v55 = vpop.f32.mrf.mxu0 }
 0x148   : > { %v891_v37 = vpop.f32.mrf.mxu3  ;;  %v1040_v41 = vpop.f32.mrf.mxu1 }
 0x149   : > { %v909_v26 = vadd.f32 %v891_v37, %v831_v10  ;;  %v1079_v5 = vadd.f32 %v1040_v41, %v2248_v14 }
 0x14b   : > { %v2366_v12 = vadd.f32 %v991_v55, %v909_v26 }
 0x14c   : > { %v1116_v45 = vpop.f32.mrf.mxu2 }
 0x14d   : > { %v1156_v48 = vadd.f32 %v1116_v45, %v1078_v11 }
 0x14e   : > { %v1300_v49 = vpop.f32.mrf.mxu0 }
 0x150   : > { %v1216_v0 = vpop.f32.mrf.mxu3  ;;  %v1043_v47 = vpop.f32.mrf.mxu1 }
 0x151   : > { %v1256_v56 = vadd.f32 %v1216_v0, %v1156_v48  ;;  %v1080_v16 = vadd.f32 %v1043_v47, %v2257_v33 }
 0x153   : > { %v1340_v34 = vadd.f32 %v1300_v49, %v1256_v56 }
 0x154   : > { %v1118_v8 = vpop.f32.mrf.mxu2 }
 0x155   : > { %v1360_v57 = vadd.f32 %v2372_v29, %v1340_v34  ;;  %v1157_v20 = vadd.f32 %v1118_v8, %v1079_v5 }
 0x156   : > { %v1302_v2 = vpop.f32.mrf.mxu0 }
 0x157   : > { %v1376_v42 = vmax.f32 %v1360_v57, 0.0 }
 0x158   : > { %v1218_v39 = vpop.f32.mrf.mxu3  ;;  %v1045_v59 = vpop.f32.mrf.mxu1 }
 0x159   : > { %v1392_v27 = vpack.c.bf16 %v1376_v42, %v1376_v42  ;;  %v1257_v4 = vadd.f32 %v1218_v39, %v1157_v20  ;;  %v1081_v17 = vadd.f32 %v1045_v59, %v2262_v52 }
 0x15b   : > { %1409 = vst.msk [vmem:[%s2379_s30] sm:$0xf] %vm1408_vm8, %v1392_v27  ;;  %v1341_v14 = vadd.f32 %v1302_v2, %v1257_v4 }
 0x15c   : > { %v1121_v38 = vpop.f32.mrf.mxu2 }
 0x15d   : > { %v1361_v35 = vadd.f32 %v2372_v29, %v1341_v14  ;;  %v1158_v24 = vadd.f32 %v1121_v38, %v1080_v16 }
 0x15e   : > { %v1305_v1 = vpop.f32.mrf.mxu0 }
 0x15f   : > { %v1377_v6 = vmax.f32 %v1361_v35, 0.0 }
 0x160   : > { %v1221_v46 = vpop.f32.mrf.mxu3  ;;  %v1048_v36 = vpop.f32.mrf.mxu1 }
 0x161   : > { %v1393_v53 = vpack.c.bf16 %v1377_v6, %v1377_v6  ;;  %v1258_v62 = vadd.f32 %v1221_v46, %v1158_v24  ;;  %v1082_v21 = vadd.f32 %v1048_v36, %v2271_v3 }
 0x163   : > { %1410 = vst.msk [vmem:[%s2379_s30 + $0x4] sm:$0xf] %vm1408_vm8, %v1393_v53  ;;  %v1342_v7 = vadd.f32 %v1305_v1, %v1258_v62 }
 0x164   : > { %v1123_v22 = vpop.f32.mrf.mxu2 }
 0x165   : > { %v1362_v30 = vadd.f32 %v2372_v29, %v1342_v7  ;;  %v1159_v33 = vadd.f32 %v1123_v22, %v1081_v17 }
 0x166   : > { %v1307_v63 = vpop.f32.mrf.mxu0 }
 0x167   : > { %v1378_v9 = vmax.f32 %v1362_v30, 0.0 }
 0x168   : > { %v1223_v31 = vpop.f32.mrf.mxu3  ;;  %v1050_v40 = vpop.f32.mrf.mxu1 }
 0x169   : > { %v1394_v18 = vpack.c.bf16 %v1378_v9, %v1378_v9  ;;  %v1259_v54 = vadd.f32 %v1223_v31, %v1159_v33  ;;  %v1083_v45 = vadd.f32 %v1050_v40, %v2276_v19 }
 0x16b   : > { %1411 = vst.msk [vmem:[%s2379_s30 + $0x8] sm:$0xf] %vm1408_vm8, %v1394_v18  ;;  %v1343_v43 = vadd.f32 %v1307_v63, %v1259_v54 }
 0x16c   : > { %v1126_v23 = vpop.f32.mrf.mxu2 }
 0x16d   : > { %v1363_v44 = vadd.f32 %v2372_v29, %v1343_v43  ;;  %v1160_v52 = vadd.f32 %v1126_v23, %v1082_v21 }
 0x16e   : > { %v1310_v32 = vpop.f32.mrf.mxu0 }
 0x16f   : > { %v1379_v10 = vmax.f32 %v1363_v44, 0.0 }
 0x170   : > { %v1226_v55 = vpop.f32.mrf.mxu3  ;;  %v1053_v37 = vpop.f32.mrf.mxu1 }
 0x171   : > { %v1395_v41 = vpack.c.bf16 %v1379_v10, %v1379_v10  ;;  %v1260_v26 = vadd.f32 %v1226_v55, %v1160_v52  ;;  %v1084_v20 = vadd.f32 %v1053_v37, %v2284_v13 }
 0x173   : > { %1412 = vst.msk [vmem:[%s2379_s30 + $0xc] sm:$0xf] %vm1408_vm8, %v1395_v41  ;;  %v1344_v11 = vadd.f32 %v1310_v32, %v1260_v26 }
 0x174   : > { %v1128_v48 = vpop.f32.mrf.mxu2 }
 0x175   : > { %v1364_v49 = vadd.f32 %v2372_v29, %v1344_v11  ;;  %v1161_v3 = vadd.f32 %v1128_v48, %v1083_v45 }
 0x176   : > { %v1312_v0 = vpop.f32.mrf.mxu0 }
 0x177   : > { %v1380_v47 = vmax.f32 %v1364_v49, 0.0 }
 0x178   : > { %v1228_v56 = vpop.f32.mrf.mxu3  ;;  %v1055_v34 = vpop.f32.mrf.mxu1 }
 0x179   : > { %v1396_v5 = vpack.c.bf16 %v1380_v47, %v1380_v47  ;;  %v1261_v8 = vadd.f32 %v1228_v56, %v1161_v3  ;;  %v1085_v35 = vadd.f32 %v1055_v34, %v2289_v28 }
 0x17b   : > { %1413 = vst.msk [vmem:[%s2379_s30 + $0x10] sm:$0xf] %vm1408_vm8, %v1396_v5  ;;  %v1345_v57 = vadd.f32 %v1312_v0, %v1261_v8 }
 0x17c   : > { %v1131_v2 = vpop.f32.mrf.mxu2 }
 0x17d   : > { %v1365_v42 = vadd.f32 %v2372_v29, %v1345_v57  ;;  %v1162_v19 = vadd.f32 %v1131_v2, %v1084_v20 }
 0x17e   : > { %v1315_v39 = vpop.f32.mrf.mxu0 }
 0x17f   : > { %v1381_v59 = vmax.f32 %v1365_v42, 0.0 }
 0x180   : > { %v1231_v27 = vpop.f32.mrf.mxu3  ;;  %v1058_v4 = vpop.f32.mrf.mxu1 }
 0x181   : > { %v1397_v14 = vpack.c.bf16 %v1381_v59, %v1381_v59  ;;  %v1262_v16 = vadd.f32 %v1231_v27, %v1162_v19  ;;  %v1086_v22 = vadd.f32 %v1058_v4, %v2298_v25 }
 0x183   : > { %1414 = vst.msk [vmem:[%s2379_s30 + $0x14] sm:$0xf] %vm1408_vm8, %v1397_v14  ;;  %v1346_v38 = vadd.f32 %v1315_v39, %v1262_v16 }
 0x184   : > { %v1133_v24 = vpop.f32.mrf.mxu2 }
 0x185   : > { %v1366_v1 = vadd.f32 %v2372_v29, %v1346_v38  ;;  %v1163_v13 = vadd.f32 %v1133_v24, %v1085_v35 }
 0x186   : > { %v1317_v6 = vpop.f32.mrf.mxu0 }
 0x187   : > { %v1382_v46 = vmax.f32 %v1366_v1, 0.0 }
 0x188   : > { %v1233_v36 = vpop.f32.mrf.mxu3  ;;  %v1060_v53 = vpop.f32.mrf.mxu1 }
 0x189   : > { %v1398_v62 = vpack.c.bf16 %v1382_v46, %v1382_v46  ;;  %v1263_v7 = vadd.f32 %v1233_v36, %v1163_v13  ;;  %v1087_v21 = vadd.f32 %v1060_v53, %v2303_v58 }
 0x18b   : > { %1415 = vst.msk [vmem:[%s2379_s30 + $0x18] sm:$0xf] %vm1408_vm8, %v1398_v62  ;;  %v1347_v17 = vadd.f32 %v1317_v6, %v1263_v7 }
 0x18c   : > { %v1136_v30 = vpop.f32.mrf.mxu2 }
 0x18d   : > { %v1367_v33 = vadd.f32 %v2372_v29, %v1347_v17  ;;  %v1164_v28 = vadd.f32 %v1136_v30, %v1086_v22 }
 0x18e   : > { %v1320_v63 = vpop.f32.mrf.mxu0 }
 0x18f   : > { %v1383_v9 = vmax.f32 %v1367_v33, 0.0 }
 0x190   : > { %v1236_v31 = vpop.f32.mrf.mxu3  ;;  %v1063_v40 = vpop.f32.mrf.mxu1 }
 0x191   : > { %v1399_v18 = vpack.c.bf16 %v1383_v9, %v1383_v9  ;;  %v1264_v54 = vadd.f32 %v1236_v31, %v1164_v28  ;;  %v1088_v11 = vadd.f32 %v1063_v40, %v2325_v61 }
 0x193   : > { %1416 = vst.msk [vmem:[%s2379_s30 + $0x1c] sm:$0xf] %vm1408_vm8, %v1399_v18  ;;  %v1348_v43 = vadd.f32 %v1320_v63, %v1264_v54 }
 0x194   : > { %v1138_v23 = vpop.f32.mrf.mxu2 }
 0x195   : > { %v1368_v44 = vadd.f32 %v2372_v29, %v1348_v43  ;;  %v1165_v25 = vadd.f32 %v1138_v23, %v1087_v21 }
 0x196   : > { %v1322_v52 = vpop.f32.mrf.mxu0 }
 0x197   : > { %v1384_v32 = vmax.f32 %v1368_v44, 0.0 }
 0x198   : > { %v1238_v10 = vpop.f32.mrf.mxu3  ;;  %v1065_v55 = vpop.f32.mrf.mxu1 }
 0x199   : > { %v1400_v37 = vpack.c.bf16 %v1384_v32, %v1384_v32  ;;  %v1265_v41 = vadd.f32 %v1238_v10, %v1165_v25  ;;  %v1089_v8 = vadd.f32 %v1065_v55, %v2335_v50 }
 0x19b   : > { %1417 = vst.msk [vmem:[%s2379_s30 + $0x20] sm:$0xf] %vm1408_vm8, %v1400_v37  ;;  %v1349_v26 = vadd.f32 %v1322_v52, %v1265_v41 }
 0x19c   : > { %v1141_v45 = vpop.f32.mrf.mxu2 }
 0x19d   : > { %v1369_v48 = vadd.f32 %v2372_v29, %v1349_v26  ;;  %v1166_v58 = vadd.f32 %v1141_v45, %v1088_v11 }
 0x19e   : > { %v1325_v49 = vpop.f32.mrf.mxu0 }
 0x19f   : > { %v1385_v3 = vmax.f32 %v1369_v48, 0.0 }
 0x1a0   : > { %v1241_v0 = vpop.f32.mrf.mxu3  ;;  %v1068_v34 = vpop.f32.mrf.mxu1 }
 0x1a1   : > { %v1401_v47 = vpack.c.bf16 %v1385_v3, %v1385_v3  ;;  %v1266_v56 = vadd.f32 %v1241_v0, %v1166_v58  ;;  %v1090_v4 = vadd.f32 %v1068_v34, %v2348_v51 }
 0x1a3   : > { %1418 = vst.msk [vmem:[%s2379_s30 + $0x24] sm:$0xf] %vm1408_vm8, %v1401_v47  ;;  %v1350_v5 = vadd.f32 %v1325_v49, %v1266_v56 }
 0x1a4   : > { %v1143_v57 = vpop.f32.mrf.mxu2 }
 0x1a5   : > { %v1370_v20 = vadd.f32 %v2372_v29, %v1350_v5  ;;  %v1167_v61 = vadd.f32 %v1143_v57, %v1089_v8 }
 0x1a6   : > { %v1327_v2 = vpop.f32.mrf.mxu0 }
 0x1a7   : > { %v1386_v42 = vmax.f32 %v1370_v20, 0.0 }
 0x1a8   : > { %v1243_v19 = vpop.f32.mrf.mxu3  ;;  %v1070_v14 = vpop.f32.mrf.mxu1 }
 0x1a9   : > { %v1402_v39 = vpack.c.bf16 %v1386_v42, %v1386_v42  ;;  %v1267_v59 = vadd.f32 %v1243_v19, %v1167_v61  ;;  %v1091_v36 = vadd.f32 %v1070_v14, %v2357_v15 }
 0x1ab   : > { %1419 = vst.msk [vmem:[%s2379_s30 + $0x28] sm:$0xf] %vm1408_vm8, %v1402_v39  ;;  %v1351_v27 = vadd.f32 %v1327_v2, %v1267_v59 }
 0x1ac   : > { %v1146_v16 = vpop.f32.mrf.mxu2 }
 0x1ad   : > { %v1371_v38 = vadd.f32 %v2372_v29, %v1351_v27  ;;  %v1168_v50 = vadd.f32 %v1146_v16, %v1090_v4 }
 0x1ae   : > { %v1330_v35 = vpop.f32.mrf.mxu0 }
 0x1af   : > { %v1387_v24 = vmax.f32 %v1371_v38, 0.0 }
 0x1b0   : > { %v1246_v1 = vpop.f32.mrf.mxu3  ;;  %v1073_v7 = vpop.f32.mrf.mxu1 }
 0x1b1   : > { %v1403_v13 = vpack.c.bf16 %v1387_v24, %v1387_v24  ;;  %v1268_v6 = vadd.f32 %v1246_v1, %v1168_v50  ;;  %v1092_v9 = vadd.f32 %v1073_v7, %v2362_v60 }
 0x1b3   : > { %1420 = vst.msk [vmem:[%s2379_s30 + $0x2c] sm:$0xf] %vm1408_vm8, %v1403_v13  ;;  %v1352_v46 = vadd.f32 %v1330_v35, %v1268_v6 }
 0x1b4   : > { %v1148_v53 = vpop.f32.mrf.mxu2 }
 0x1b5   : > { %v1372_v62 = vadd.f32 %v2372_v29, %v1352_v46  ;;  %v1169_v51 = vadd.f32 %v1148_v53, %v1091_v36 }
 0x1b6   : > { %v1332_v17 = vpop.f32.mrf.mxu0 }
 0x1b7   : > { %v1388_v22 = vmax.f32 %v1372_v62, 0.0 }
 0x1b8   : > { %v1248_v30 = vpop.f32.mrf.mxu3  ;;  %v1075_v54 = vpop.f32.mrf.mxu1 }
 0x1b9   : > { %v1404_v33 = vpack.c.bf16 %v1388_v22, %v1388_v22  ;;  %v1269_v28 = vadd.f32 %v1248_v30, %v1169_v51  ;;  %v1093_v52 = vadd.f32 %v1075_v54, %v2366_v12 }
 0x1bb   : > { %1421 = vst.msk [vmem:[%s2379_s30 + $0x30] sm:$0xf] %vm1408_vm8, %v1404_v33  ;;  %v1353_v63 = vadd.f32 %v1332_v17, %v1269_v28 }
 0x1bc   : > { %v1151_v31 = vpop.f32.mrf.mxu2 }
 0x1bd   : > { %v1373_v40 = vadd.f32 %v2372_v29, %v1353_v63  ;;  %v1170_v15 = vadd.f32 %v1151_v31, %v1092_v9 }
 0x1be   : > { %v1335_v43 = vpop.f32.mrf.mxu0 }
 0x1bf   : > { %v1389_v18 = vmax.f32 %v1373_v40, 0.0 }
 0x1c0   : > { %v1251_v21 = vpop.f32.mrf.mxu3 }
 0x1c1   : > { %v1405_v23 = vpack.c.bf16 %v1389_v18, %v1389_v18  ;;  %v1270_v44 = vadd.f32 %v1251_v21, %v1170_v15 }
 0x1c3   : > { %1422 = vst.msk [vmem:[%s2379_s30 + $0x34] sm:$0xf] %vm1408_vm8, %v1405_v23  ;;  %v1354_v25 = vadd.f32 %v1335_v43, %v1270_v44 }
 0x1c4   : > { %v1153_v32 = vpop.f32.mrf.mxu2 }
 0x1c5   : > { %v1374_v60 = vadd.f32 %v2372_v29, %v1354_v25  ;;  %v1171_v10 = vadd.f32 %v1153_v32, %v1093_v52 }
 0x1c6   : > { %v1337_v11 = vpop.f32.mrf.mxu0 }
 0x1c7   : > { %v1390_v55 = vmax.f32 %v1374_v60, 0.0 }
 0x1c8   : > { %v1253_v37 = vpop.f32.mrf.mxu3 }
 0x1c9   : > { %v1406_v41 = vpack.c.bf16 %v1390_v55, %v1390_v55  ;;  %v1271_v26 = vadd.f32 %v1253_v37, %v1171_v10 }
 0x1cb   : > { %1423 = vst.msk [vmem:[%s2379_s30 + $0x38] sm:$0xf] %vm1408_vm8, %v1406_v41  ;;  %v1355_v45 = vadd.f32 %v1337_v11, %v1271_v26 }
 0x1cd   : > { %v1375_v48 = vadd.f32 %v2372_v29, %v1355_v45 }
 0x1cf   : > { %v1391_v58 = vmax.f32 %v1375_v48, 0.0 }
 0x1d1   : > { %v1407_v49 = vpack.c.bf16 %v1391_v58, %v1391_v58 }
 0x1d3   : > { %1424 = vst.msk [vmem:[%s2379_s30 + $0x3c] sm:$0xf] %vm1408_vm8, %v1407_v49 }
 0x1d4 PF: > { %s13_s16 = sadd.s32 1, %s1756_s16   ;;  %s2465_s12 = smov %s1748_s14 }
 0x1d5   : > { %p10_p7 = scmp.ge.s32.totalorder %s13_s16, 6   ;;  %s2466_s13 = smov %s1752_s15 }
 0x1d6   : > { %s2467_s14 = smov %s2470_s17  ;;  %s2468_s15 = smov %s2474_s18 }
 0x1d7   :  { %12 = sbr.rel (!%p10_p7) target bundleno = 3 (0x3), region = 71 }

// kernel: basic_rfb_forward.11
= control target key start
LH: loop header
LB: loop body
LE: loop exit
PB: predicated region body
PF: predicated region fallthrough
CT: control target
= control target key end

     0   :  { %s1780_s12 = smov 0   ;;  %s1782_s13 = smov 0   ;;  %s2447_s0 = inlined_call_operand.vmem [shape: bf16[2,20,20,16], index: 0, kind: input, shape index: {}]   ;;  %s2448_s1 = inlined_call_operand.vmem [shape: bf16[3,3,16,16], index: 1, kind: input, shape index: {}]   ;;  %s2449_s2 = inlined_call_operand.vmem [shape: f32[1,16], index: 2, kind: input, shape index: {}]   ;;  %s2450_s3 = inlined_call_operand.vmem [shape: bf16[2,16,16,16], index: 3, kind: output, shape index: {}]  }
   0x1   :  { %s1784_s14 = smov 0   ;;  %s1786_s15 = smov 0  }
   0x2   :  { %s1788_s16 = smov 0  }
   0x3 LB: > { %s22_s17 = sadd.s32 1, %s1750_s14  ;;  %s25_s18 = sadd.s32 1, %s1754_s15  ;;  %s1758_s16 = sphi %s1788_s16, %s13_s16   ;;  %s1754_s15 = sphi %s1786_s15, %s2458_s15   ;;  %s1750_s14 = sphi %s1784_s14, %s2457_s14   ;;  %s1746_s13 = sphi %s1782_s13, %s2456_s13   ;;  %s1742_s12 = sphi %s1780_s12, %s2455_s12  }
   0x4   : > { %p23_p0 = scmp.ge.s32.totalorder %s22_s17, 2  ;;  %p1446_p1 = scmp.ge.s32.totalorder %s1758_s16, 1 }
   0x5   : > { %p151_p2 = scmp.lt.s32.totalorder %s1758_s16, 5 }
   0x6   : > { %s2460_s17 = smov (%p23_p0, %s22_s17), 0  ;;  %s2462_s18 = smov (!%p23_p0, %s25_s18), %s1754_s15 }
   0x7   : > { %p152_p3 = pnand %p1446_p1, %p151_p2  ;;  %p27_p4 = scmp.ge.s32.totalorder %s2462_s18, 2 }
   0x8   : > { %p180_p5 = scmp.lt.s32.totalorder (!%p152_p3), %s1746_s13, 1  ;;  %s1653_s29 = smul.u32 (!%p152_p3), 96, %s1742_s12 }
   0x9   : > { %s2464_s18 = smov (%p27_p4, %s2462_s18), 0  ;;  %155 = sbr.rel (%p152_p3) target bundleno = 454 (0x1c6), region = 32 }
   0xa   : > { %s1448_s23 = sshll.u32 (!%p152_p3), %s1742_s12, 3 }
   0xb   : > { %p188_p6 = scmp.lt.s32.totalorder (!%p152_p3), %s1448_s23, 15 }
   0xe   : > { %v1667_v0 = vld [vmem:[%s2448_s1 + $0x8] sm:$0xff]  ;;  %v1668_v1 = vld [vmem:[%s2448_s1 + $0x10] sm:$0xff]  ;;  %v1669_v2 = vld [vmem:[%s2448_s1 + $0x18] sm:$0xff]  ;;  %s2466_s13 = smov (!%p180_p5, %s1746_s13), 1  ;;  %vm263_vm0 = vcmask 1042432   ;;  %vm264_vm1 = vcmask 1046532  }
   0xf   : > { %1675 = vmatpush.bf16.msra.mxu1 %v1667_v0  ;;  %1676 = vmatpush.bf16.msra.mxu2 %v1667_v0  ;;  %v1666_v3 = vld [vmem:[%s2448_s1] sm:$0xff]  ;;  %s1678_s30 = smul.u32 240, %s2466_s13  ;;  %vm1836_vm2 = vmor %vm263_vm0, %vm264_vm1  ;;  %vm355_vm3 = vcmask 130048   ;;  %vm532_vm4 = vcmask 1041408   ;;  %vm533_vm5 = vcmask 1045508   ;;  %s2468_s23 = smov (!%p188_p6, %s1448_s23), 15 }
  0x10   : > { %v1670_v4 = vld [vmem:[%s2448_s1 + $0x20] sm:$0xff]  ;;  %1677 = vmatpush.bf16.msra.mxu3 %v1667_v0  ;;  %387 = vmatpush.bf16.msra.mxu0 %v1667_v0  ;;  %vm2005_vm6 = vmor %vm532_vm4, %vm533_vm5  ;;  %s1449_s24 = sshll.u32 %s2468_s23, 1  ;;  %s1450_s25 = sshll.u32 %s2466_s13, 5  ;;  %vm1333_vm7 = vcmask 125952  }
  0x11   : > { %s184_s6 = scalar_lea.vmem %s2447_s0, %s1678_s30  ;;  %s192_s12 = sadd.s32 %s1450_s25, %s1449_s24 }
  0x12   : > { %s1834_s7 = scalar_lea.vmem %s184_s6, %s1653_s29  ;;  %s1451_s28 = sshll.u32 %s192_s12, 2 }
  0x13   : > { %655 = vmatpush.bf16.msrb.mxu2 %v1668_v1  ;;  %490 = vmatpush.bf16.msrb.mxu1 %v1666_v3  ;;  %v1841_v6 = vld [vmem:[%s1834_s7 + $0x18] sm:$0xf]  ;;  %v1844_v7 = vld [vmem:[%s1834_s7 + $0x1c] sm:$0xf]  ;;  %v1847_v8 = vld [vmem:[%s1834_s7 + $0x20] sm:$0x3]  ;;  %s2369_s30 = scalar_lea.vmem %s2450_s3, %s1451_s28 }
  0x14   : > { %745 = vmatpush.bf16.msrb.mxu3 %v1669_v2  ;;  %847 = vmatpush.bf16.msrb.mxu0 %v1670_v4  ;;  %v1457_v9 = vrot.slane %v1841_v6, 9  ;;  %v282_v10 = vrot.slane %v1844_v7, 5  ;;  %v285_v11 = vrot.slane %v1847_v8, 5  ;;  %v1853_v12 = vld [vmem:[%s1834_s7 + $0x30] sm:$0xf] }
  0x15   : > { %v1856_v13 = vld [vmem:[%s1834_s7 + $0x34] sm:$0xf]  ;;  %v1859_v14 = vld [vmem:[%s1834_s7 + $0x38] sm:$0x3]  ;;  %v1459_v15 = vrot.slane %v1853_v12, 9 }
  0x16   : > { %v283_v16 = vsel %vm1836_vm2, %v1457_v9, %v282_v10  ;;  %v284_v17 = vrot.slane %v282_v10, 4  ;;  %v296_v18 = vrot.slane %v1856_v13, 5  ;;  %v299_v19 = vrot.slane %v1859_v14, 5  ;;  %v1867_v20 = vld [vmem:[%s1834_s7 + $0x48] sm:$0xf] }
  0x17   : > { %v329_v21 = vunpack.c.l.b16 %v283_v16  ;;  %v1870_v22 = vld [vmem:[%s1834_s7 + $0x4c] sm:$0xf]  ;;  %v1873_v23 = vld [vmem:[%s1834_s7 + $0x50] sm:$0x3]  ;;  %v1461_v24 = vrot.slane %v1867_v20, 9 }
  0x18   : > { %v286_v25 = vsel %vm1836_vm2, %v284_v17, %v285_v11  ;;  %v297_v26 = vsel %vm1836_vm2, %v1459_v15, %v296_v18  ;;  %v298_v27 = vrot.slane %v296_v18, 4  ;;  %v310_v28 = vrot.slane %v1870_v22, 5  ;;  %v1882_v29 = vld [vmem:[%s1834_s7] sm:$0xf]  ;;  %v1885_v30 = vld [vmem:[%s1834_s7 + $0x4] sm:$0xf] }
  0x19   : > { %v330_v31 = vunpack.c.l.b16 %v286_v25  ;;  %v333_v32 = vunpack.c.l.b16 %v297_v26  ;;  %v313_v33 = vrot.slane %v1873_v23, 5  ;;  %v1889_v34 = vld [vmem:[%s1834_s7 + $0x8] sm:$0x3]  ;;  %v1455_v35 = vrot.slane %v1882_v29, 9  ;;  %v1901_v44 = vld [vmem:[%s1834_s7 + $0x24] sm:$0xf] }
  0x1a   : > { %v300_v36 = vsel %vm1836_vm2, %v298_v27, %v299_v19  ;;  %v311_v37 = vsel %vm1836_vm2, %v1461_v24, %v310_v28  ;;  %v312_v38 = vrot.slane %v310_v28, 4  ;;  %v268_v39 = vrot.slane %v1885_v30, 5  ;;  %v1904_v45 = vld [vmem:[%s1834_s7 + $0x28] sm:$0xf]  ;;  %v1911_v49 = vld [vmem:[%s1834_s7 + $0x2c] sm:$0x3] }
  0x1b   : > { %v1897_v40 = vpack.c.b16 %v330_v31, %v329_v21  ;;  %v334_v41 = vunpack.c.l.b16 %v300_v36  ;;  %v337_v42 = vunpack.c.l.b16 %v311_v37  ;;  %v271_v43 = vrot.slane %v1889_v34, 5  ;;  %v1918_v53 = vld [vmem:[%s1834_s7 + $0x3c] sm:$0xf]  ;;  %v1921_v54 = vld [vmem:[%s1834_s7 + $0x40] sm:$0xf]  ;;  %v1672_v17 = vld [vmem:[%s2448_s1 + $0x30] sm:$0xff] }
  0x1c   : > { %v314_v46 = vsel %vm1836_vm2, %v312_v38, %v313_v33  ;;  %v269_v47 = vsel %vm1836_vm2, %v1455_v35, %v268_v39  ;;  %v270_v48 = vrot.slane %v268_v39, 4  ;;  %v1924_v55 = vld [vmem:[%s1834_s7 + $0x44] sm:$0x3]  ;;  %v1458_v57 = vrot.slane %v1901_v44, 9  ;;  %v1931_v59 = vld [vmem:[%s1834_s7 + $0x58] sm:$0xf] }
  0x1d   : > { %1471 = vmatmul.msk.bf16.vlgmr.msra.gmra.mxu1 %vm355_vm3, %v1897_v40  ;;  %v1915_v50 = vpack.c.b16 %v334_v41, %v333_v32  ;;  %v338_v51 = vunpack.c.l.b16 %v314_v46  ;;  %v325_v52 = vunpack.c.l.b16 %v269_v47  ;;  %v289_v58 = vrot.slane %v1904_v45, 5  ;;  %v1939_v63 = vld [vmem:[%s1834_s7 + $0x54] sm:$0xf]  ;;  %v1942_v0 = vld [vmem:[%s1834_s7 + $0x5c] sm:$0x3]  ;;  %v1671_v28 = vld [vmem:[%s2448_s1 + $0x28] sm:$0xff] }
  0x1e   : > { %v272_v56 = vsel %vm1836_vm2, %v270_v48, %v271_v43  ;;  %v292_v62 = vrot.slane %v1911_v49, 5  ;;  %v1460_v2 = vrot.slane %v1918_v53, 9  ;;  %v303_v3 = vrot.slane %v1921_v54, 5  ;;  %v1953_v15 = vld [vmem:[%s1834_s7 + $0xc] sm:$0xf]  ;;  %v1673_v27 = vld [vmem:[%s2448_s1 + $0x38] sm:$0xff]  ;;  %947 = vmatpush.bf16.msra.mxu1 %v1671_v28 }
  0x1f   : > { %1473 = vmatmul.msk.bf16.vlgmr.msra.gmra.mxu2 %vm355_vm3, %v1915_v50  ;;  %v1935_v60 = vpack.c.b16 %v338_v51, %v337_v42  ;;  %v326_v61 = vunpack.c.l.b16 %v272_v56  ;;  %v291_v1 = vrot.slane %v289_v58, 4  ;;  %v306_v4 = vrot.slane %v1924_v55, 5  ;;  %v1956_v16 = vld [vmem:[%s1834_s7 + $0x10] sm:$0xf]  ;;  %v1966_v25 = vld [vmem:[%s1834_s7 + $0x14] sm:$0x3] }
  0x20   : > { %v290_v10 = vsel %vm1836_vm2, %v1458_v57, %v289_v58  ;;  %v317_v11 = vrot.slane %v1931_v59, 5  ;;  %v305_v19 = vrot.slane %v303_v3, 4  ;;  %v1462_v21 = vrot.slane %v1939_v63, 9  ;;  %1037 = vmatpush.bf16.msra.mxu2 %v1672_v17  ;;  %v1674_v31 = vld [vmem:[%s2448_s1 + $0x40] sm:$0xff] }
  0x21   : > { %1475 = vmatmul.msk.bf16.vlgmr.msra.gmra.mxu3 %vm355_vm3, %v1935_v60  ;;  %v341_v9 = vpack.c.b16 %v326_v61, %v325_v52  ;;  %v293_v18 = vsel %vm1836_vm2, %v291_v1, %v292_v62  ;;  %v320_v24 = vrot.slane %v1942_v0, 5  ;;  %v304_v32 = vsel %vm1836_vm2, %v1460_v2, %v303_v3 }
  0x22   : > { %v319_v26 = vrot.slane %v317_v11, 4  ;;  %v307_v33 = vsel %vm1836_vm2, %v305_v19, %v306_v4  ;;  %v1456_v35 = vrot.slane %v1953_v15, 9  ;;  %v275_v36 = vrot.slane %v1956_v16, 5  ;;  %1139 = vmatpush.bf16.msra.mxu3 %v1673_v27  ;;  %v1654_v19 = vld [vmem:[%s1834_s7] sm:$0xff] }
  0x23   : > { %1469 = vmatmul.msk.bf16.vlgmr.msra.gmra.mxu0 %vm355_vm3, %v341_v9  ;;  %v331_v37 = vunpack.c.l.b16 %v290_v10  ;;  %v332_v38 = vunpack.c.l.b16 %v293_v18  ;;  %v278_v39 = vrot.slane %v1966_v25, 5  ;;  %v318_v41 = vsel %vm1836_vm2, %v1462_v21, %v317_v11 }
  0x24   : > { %v321_v42 = vsel %vm1836_vm2, %v319_v26, %v320_v24  ;;  %v277_v43 = vrot.slane %v275_v36, 4  ;;  %1239 = vmatpush.bf16.msra.mxu0 %v1674_v31  ;;  %v335_v46 = vunpack.c.l.b16 %v304_v32  ;;  %v336_v47 = vunpack.c.l.b16 %v307_v33  ;;  %v1656_v33 = vld [vmem:[%s1834_s7 + $0x18] sm:$0xff] }
  0x25   : > { %v276_v48 = vsel %vm1836_vm2, %v1456_v35, %v275_v36  ;;  %v344_v52 = vpack.c.b16 %v332_v38, %v331_v37  ;;  %v339_v56 = vunpack.c.l.b16 %v318_v41  ;;  %v340_v57 = vunpack.c.l.b16 %v321_v42 }
  0x26   : > { %v279_v51 = vsel %vm1836_vm2, %v277_v43, %v278_v39  ;;  %v1993_v58 = vpack.c.b16 %v336_v47, %v335_v46  ;;  %v327_v61 = vunpack.c.l.b16 %v276_v48  ;;  %v537_v1 = vrot.slane %v1885_v30, 6 }
  0x27   : > { %v328_v62 = vunpack.c.l.b16 %v279_v51  ;;  %v1997_v2 = vpack.c.b16 %v340_v57, %v339_v56  ;;  %v1521_v4 = vrot.slane %v1882_v29, 10  ;;  %v540_v9 = vrot.slane %v1889_v34, 6  ;;  %v1657_v51 = vld [vmem:[%s1834_s7 + $0x24] sm:$0xff] }
  0x28   : > { %v539_v10 = vrot.slane %v537_v1, 4  ;;  %v551_v34 = vrot.slane %v1844_v7, 6  ;;  %v1523_v21 = vrot.slane %v1841_v6, 10  ;;  %v554_v26 = vrot.slane %v1847_v8, 6 }
  0x29   : > { %v342_v3 = vpack.c.b16 %v328_v62, %v327_v61  ;;  %v538_v11 = vsel %vm2005_vm6, %v1521_v4, %v537_v1  ;;  %v544_v28 = vrot.slane %v1956_v16, 6  ;;  %v1522_v8 = vrot.slane %v1953_v15, 10  ;;  %v1655_v15 = vld [vmem:[%s1834_s7 + $0xc] sm:$0xff]  ;;  %v2065_v61 = vld [vmem:[%s1834_s7 + $0x3c] sm:$0xff] }
  0x2a   : > { %v541_v17 = vsel %vm2005_vm6, %v539_v10, %v540_v9  ;;  %v594_v29 = vunpack.c.l.b16 %v538_v11  ;;  %v553_v24 = vrot.slane %v551_v34, 4  ;;  %v552_v31 = vsel %vm2005_vm6, %v1523_v21, %v551_v34  ;;  %v2105_v21 = vld [vmem:[%s1834_s7 + $0x54] sm:$0xff] }
  0x2b   : > { %v595_v18 = vunpack.c.l.b16 %v541_v17  ;;  %v598_v7 = vunpack.c.l.b16 %v552_v31  ;;  %v546_v36 = vrot.slane %v544_v28, 4  ;;  %v547_v16 = vrot.slane %v1966_v25, 6 }
  0x2c   : > { %v555_v32 = vsel %vm2005_vm6, %v553_v24, %v554_v26  ;;  %v545_v37 = vsel %vm2005_vm6, %v1522_v8, %v544_v28  ;;  %v558_v42 = vrot.slane %v1904_v45, 6  ;;  %v1524_v25 = vrot.slane %v1901_v44, 10  ;;  %v2054_v44 = vld [vmem:[%s1834_s7 + $0x30] sm:$0xff]  ;;  %v2108_v24 = vld [vmem:[%s1834_s7 + $0x64] sm:$0xf] }
  0x2d   : > { %1472 = vmatmul.msk.bf16.gmra.mxu1 %vm355_vm3, %v344_v52  ;;  %v610_v27 = vpack.c.b16 %v595_v18, %v594_v29  ;;  %v599_v35 = vunpack.c.l.b16 %v555_v32  ;;  %v548_v38 = vsel %vm2005_vm6, %v546_v36, %v547_v16  ;;  %v596_v39 = vunpack.c.l.b16 %v545_v37  ;;  %v2121_v32 = vld [vmem:[%s1834_s7 + $0x68] sm:$0x3] }
  0x2e   : > { %v597_v41 = vunpack.c.l.b16 %v548_v38  ;;  %v560_v43 = vrot.slane %v558_v42, 4  ;;  %v561_v46 = vrot.slane %v1911_v49, 6  ;;  %v565_v49 = vrot.slane %v1856_v13, 6 }
  0x2f   : > { %1474 = vmatmul.msk.bf16.gmra.mxu2 %vm355_vm3, %v1993_v58  ;;  %v2026_v6 = vpack.c.b16 %v599_v35, %v598_v7  ;;  %v568_v1 = vrot.slane %v1859_v14, 6  ;;  %v2085_v14 = vld [vmem:[%s1834_s7 + $0x48] sm:$0xff]  ;;  %v1526_v11 = vrot.slane %v1918_v53, 10  ;;  %v575_v29 = vrot.slane %v1924_v55, 6 }
  0x30   : > { %v611_v47 = vpack.c.b16 %v597_v41, %v596_v39  ;;  %v562_v48 = vsel %vm2005_vm6, %v560_v43, %v561_v46  ;;  %v567_v62 = vrot.slane %v565_v49, 4  ;;  %v579_v55 = vrot.slane %v1870_v22, 6  ;;  %v2118_v22 = vld [vmem:[%s1834_s7 + $0x60] sm:$0xf]  ;;  %v2146_v43 = vld [vmem:[%s1834_s7 + $0x70] sm:$0xf] }
  0x31   : > { %1476 = vmatmul.msk.bf16.gmra.mxu3 %vm355_vm3, %v1997_v2  ;;  %v601_v45 = vunpack.c.l.b16 %v562_v48  ;;  %v1527_v26 = vrot.slane %v1867_v20, 10  ;;  %v582_v28 = vrot.slane %v1873_v23, 6  ;;  %v807_v31 = vrot.slane %v2108_v24, 5 }
  0x32   : > { %v1565_v23 = vrot.slane %v2118_v22, 9  ;;  %v810_v35 = vrot.slane %v2121_v32, 5 }
  0x33   : > { %1470 = vmatmul.msk.bf16.gmra.mxu0 %vm355_vm3, %v342_v3  ;;  %v569_v3 = vsel %vm2005_vm6, %v567_v62, %v568_v1  ;;  %v809_v7 = vrot.slane %v807_v31, 4 }
  0x34   : > { %v603_v9 = vunpack.c.l.b16 %v569_v3  ;;  %v808_v16 = vsel %vm1836_vm2, %v1565_v23, %v807_v31 }
  0x35   : > { %v811_v37 = vsel %vm1836_vm2, %v809_v7, %v810_v35  ;;  %v822_v41 = vunpack.c.l.b16 %v808_v16 }
  0x3d   : > { %1513 = vmatmul.msk.bf16.vlgmr.msrb.gmra.mxu1 %vm355_vm3, %v1654_v19 }
  0x3f   : > { %1535 = vmatmul.msk.bf16.vlgmr.msrb.gmra.mxu2 %vm355_vm3, %v610_v27  ;;  %v581_v27 = vrot.slane %v579_v55, 4 }
  0x41   : > { %1557 = vmatmul.msk.bf16.vlgmr.msrb.gmra.mxu3 %vm355_vm3, %v1656_v33  ;;  %v583_v20 = vsel %vm2005_vm6, %v581_v27, %v582_v28 }
  0x42   : > { %v607_v36 = vunpack.c.l.b16 %v583_v20 }
  0x43   : > { %1573 = vmatmul.msk.bf16.vlgmr.msrb.gmra.mxu0 %vm355_vm3, %v1897_v40  ;;  %v559_v40 = vsel %vm2005_vm6, %v1524_v25, %v558_v42  ;;  %v823_v42 = vunpack.c.l.b16 %v811_v37  ;;  %v2143_v25 = vld [vmem:[%s1834_s7 + $0x60] sm:$0xff] }
  0x44   : > { %v600_v56 = vunpack.c.l.b16 %v559_v40 }
  0x45   : > { %v2150_v46 = vpack.c.b16 %v823_v42, %v822_v41 }
  0x46   : > { %v2048_v57 = vpack.c.b16 %v601_v45, %v600_v56  ;;  %v2158_v56 = vld [vmem:[%s1834_s7 + $0x6c] sm:$0xf]  ;;  %v2161_v45 = vld [vmem:[%s1834_s7 + $0x74] sm:$0x3] }
  0x47   : > { %v1566_v1 = vrot.slane %v2158_v56, 9  ;;  %v817_v3 = vrot.slane %v2161_v45, 5 }
  0x4d   : > { %1514 = vmatmul.msk.bf16.gmra.mxu1 %vm355_vm3, %v1655_v15  ;;  %v586_v15 = vrot.slane %v1931_v59, 6  ;;  %v814_v59 = vrot.slane %v2146_v43, 5 }
  0x4f   : > { %1536 = vmatmul.msk.bf16.gmra.mxu2 %vm355_vm3, %v611_v47  ;;  %v1528_v47 = vrot.slane %v1939_v63, 10  ;;  %v588_v48 = vrot.slane %v586_v15, 4 }
  0x51   : > { %1558 = vmatmul.msk.bf16.gmra.mxu3 %vm355_vm3, %v1657_v51  ;;  %v587_v63 = vsel %vm2005_vm6, %v1528_v47, %v586_v15 }
  0x53   : > { %1574 = vmatmul.msk.bf16.gmra.mxu0 %vm355_vm3, %v344_v52  ;;  %v1525_v52 = vrot.slane %v1853_v12, 10  ;;  %v572_v12 = vrot.slane %v1921_v54, 6 }
  0x55   : > { %v566_v13 = vsel %vm2005_vm6, %v1525_v52, %v565_v49  ;;  %v574_v17 = vrot.slane %v572_v12, 4  ;;  %v573_v54 = vsel %vm2005_vm6, %v1526_v11, %v572_v12  ;;  %v815_v11 = vsel %vm1836_vm2, %v1566_v1, %v814_v59 }
  0x56   : > { %v602_v4 = vunpack.c.l.b16 %v566_v13  ;;  %v604_v34 = vunpack.c.l.b16 %v573_v54  ;;  %v816_v13 = vrot.slane %v814_v59, 4 }
  0x57   : > { %v576_v18 = vsel %vm2005_vm6, %v574_v17, %v575_v29 }
  0x58   : > { %v2079_v10 = vpack.c.b16 %v603_v9, %v602_v4  ;;  %v605_v19 = vunpack.c.l.b16 %v576_v18  ;;  %v608_v4 = vunpack.c.l.b16 %v587_v63  ;;  %v818_v17 = vsel %vm1836_vm2, %v816_v13, %v817_v3 }
  0x5a   : > { %v2099_v53 = vpack.c.b16 %v605_v19, %v604_v34  ;;  %v824_v34 = vunpack.c.l.b16 %v815_v11  ;;  %v825_v19 = vunpack.c.l.b16 %v818_v17 }
  0x5c   : > { %v2196_v27 = vpack.c.b16 %v825_v19, %v824_v34  ;;  %v1581_v19 = vrot.slane %v2118_v22, 10 }
  0x5d   : > { %1515 = vmatmul.msk.bf16.gmra.mxu1 %vm355_vm3, %v1656_v33  ;;  %v580_v33 = vsel %vm2005_vm6, %v1527_v26, %v579_v55  ;;  %v2192_v26 = vld [vmem:[%s1834_s7 + $0x6c] sm:$0xff] }
  0x5e   : > { %v606_v8 = vunpack.c.l.b16 %v580_v33 }
  0x5f   : > { %1537 = vmatmul.msk.bf16.gmra.mxu2 %vm355_vm3, %v2026_v6 }
  0x60   : > { %v2137_v39 = vpack.c.b16 %v607_v36, %v606_v8 }
  0x61   : > { %1559 = vmatmul.msk.bf16.gmra.mxu3 %vm355_vm3, %v2054_v44 }
  0x63   : > { %1575 = vmatmul.msk.bf16.gmra.mxu0 %vm355_vm3, %v1915_v50 }
  0x6d   : > { %1516 = vmatmul.msk.bf16.gmra.mxu1 %vm355_vm3, %v1657_v51  ;;  %v589_v51 = vrot.slane %v1942_v0, 6 }
  0x6f   : > { %1538 = vmatmul.msk.bf16.gmra.mxu2 %vm355_vm3, %v2048_v57  ;;  %v590_v62 = vsel %vm2005_vm6, %v588_v48, %v589_v51 }
  0x70   : > { %v609_v9 = vunpack.c.l.b16 %v590_v62 }
  0x71   : > { %1560 = vmatmul.msk.bf16.gmra.mxu3 %vm355_vm3, %v2065_v61 }
  0x72   : > { %v2185_v18 = vpack.c.b16 %v609_v9, %v608_v4 }
  0x73   : > { %1576 = vmatmul.msk.bf16.gmra.mxu0 %vm355_vm3, %v1993_v58 }
  0x7d   : > { %1517 = vmatmul.msk.bf16.gmra.mxu1 %vm355_vm3, %v2054_v44 }
  0x7f   : > { %1539 = vmatmul.msk.bf16.gmra.mxu2 %vm355_vm3, %v2079_v10 }
  0x81   : > { %1561 = vmatmul.msk.bf16.gmra.mxu3 %vm355_vm3, %v2085_v14 }
  0x83   : > { %1577 = vmatmul.msk.bf16.gmra.mxu0 %vm355_vm3, %v1935_v60 }
  0x8d   : > { %1518 = vmatmul.msk.bf16.gmra.mxu1 %vm355_vm3, %v2065_v61 }
  0x8f   : > { %1540 = vmatmul.msk.bf16.gmra.mxu2 %vm355_vm3, %v2099_v53 }
  0x91   : > { %1562 = vmatmul.msk.bf16.gmra.mxu3 %vm355_vm3, %v2105_v21 }
  0x93   : > { %1578 = vmatmul.msk.bf16.gmra.mxu0 %vm355_vm3, %v1997_v2 }
  0x9a   : > { %v2135_v38 = vpop.f32.mrf.mxu1 }
  0x9d   : > { %1519 = vmatmul.msk.bf16.gmra.mxu1 %vm355_vm3, %v2085_v14 }
  0x9f   : > { %1541 = vmatmul.msk.bf16.gmra.mxu2 %vm355_vm3, %v2137_v39 }
  0xa0   : > { %v389_v40 = vpop.f32.mrf.mxu0 }
  0xa1   : > { %1563 = vmatmul.msk.bf16.gmra.mxu3 %vm355_vm3, %v2143_v25 }
  0xa2   : > { %v2163_v49 = vpop.f32.mrf.mxu2  ;;  %v2165_v52 = vpop.f32.mrf.mxu1 }
  0xa3   : > { %1579 = vmatmul.msk.bf16.gmra.mxu0 %vm355_vm3, %v2150_v46 }
  0xa4   : > { %v2171_v0 = vpop.f32.mrf.mxu3 }
  0xa8   : > { %v391_v12 = vpop.f32.mrf.mxu0 }
  0xaa   : > { %v2181_v29 = vpop.f32.mrf.mxu2  ;;  %v2183_v54 = vpop.f32.mrf.mxu1 }
  0xac   : > { %v2187_v55 = vpop.f32.mrf.mxu3 }
  0xad   : > { %1520 = vmatmul.msk.bf16.gmra.mxu1 %vm355_vm3, %v2105_v21 }
  0xaf   : > { %1542 = vmatmul.msk.bf16.gmra.mxu2 %vm355_vm3, %v2185_v18 }
  0xb0   : > { %v394_v28 = vpop.f32.mrf.mxu0 }
  0xb1   : > { %1564 = vmatmul.msk.bf16.gmra.mxu3 %vm355_vm3, %v2192_v26 }
  0xb2   : > { %v2200_v31 = vpop.f32.mrf.mxu2  ;;  %v2202_v33 = vpop.f32.mrf.mxu1 }
  0xb3   : > { %1580 = vmatmul.msk.bf16.gmra.mxu0 %vm355_vm3, %v2196_v27 }
  0xb4   : > { %v2206_v20 = vpop.f32.mrf.mxu3 }
  0xb8   : > { %v396_v23 = vpop.f32.mrf.mxu0 }
  0xba   : > { %v2208_v7 = vpop.f32.mrf.mxu2  ;;  %v492_v35 = vpop.f32.mrf.mxu1 }
  0xbb   : > { %v493_v8 = vadd.f32 %v492_v35, %v389_v40 }
  0xbc   : > { %v2210_v36 = vpop.f32.mrf.mxu3 }
  0xbd   : > { %1589 = vmatmul.msk.bf16.vlgmr.msra.gmra.mxu1 %vm355_vm3, %v2026_v6 }
  0xbf   : > { %1611 = vmatmul.msk.bf16.vlgmr.msra.gmra.mxu2 %vm355_vm3, %v2054_v44 }
  0xc0   : > { %v849_v16 = vpop.f32.mrf.mxu0 }
  0xc1   : > { %1627 = vmatmul.msk.bf16.vlgmr.msra.gmra.mxu3 %vm355_vm3, %v1915_v50 }
  0xc2   : > { %v657_v37 = vpop.f32.mrf.mxu2  ;;  %v494_v41 = vpop.f32.mrf.mxu1 }
  0xc3   : > { %1643 = vmatmul.msk.bf16.vlgmr.msra.gmra.mxu0 %vm355_vm3, %v2079_v10  ;;  %v697_v42 = vadd.f32 %v657_v37, %v493_v8  ;;  %v495_v15 = vadd.f32 %v494_v41, %v391_v12 }
  0xc4   : > { %v747_v47 = vpop.f32.mrf.mxu3 }
  0xc5   : > { %v787_v40 = vadd.f32 %v747_v47, %v697_v42 }
  0xc7   : > { %v2220_v48 = vadd.f32 %v849_v16, %v787_v40 }
  0xc8   : > { %v851_v51 = vpop.f32.mrf.mxu0 }
  0xca   : > { %v659_v6 = vpop.f32.mrf.mxu2  ;;  %v497_v59 = vpop.f32.mrf.mxu1 }
  0xcb   : > { %v698_v63 = vadd.f32 %v659_v6, %v495_v15  ;;  %v498_v44 = vadd.f32 %v497_v59, %v394_v28  ;;  %v910_v28 = vrot.slane %v2121_v32, 6 }
  0xcc   : > { %v749_v62 = vpop.f32.mrf.mxu3 }
  0xcd   : > { %v788_v1 = vadd.f32 %v749_v62, %v698_v63  ;;  %1590 = vmatmul.msk.bf16.gmra.mxu1 %vm355_vm3, %v2048_v57  ;;  %v907_v57 = vrot.slane %v2108_v24, 6 }
  0xcf   : > { %1612 = vmatmul.msk.bf16.gmra.mxu2 %vm355_vm3, %v2065_v61  ;;  %v2226_v50 = vadd.f32 %v851_v51, %v788_v1  ;;  %v909_v41 = vrot.slane %v907_v57, 4  ;;  %v1582_v1 = vrot.slane %v2158_v56, 10 }
  0xd0   : > { %v854_v13 = vpop.f32.mrf.mxu0 }
  0xd1   : > { %1628 = vmatmul.msk.bf16.gmra.mxu3 %vm355_vm3, %v1993_v58  ;;  %v911_v24 = vsel %vm2005_vm6, %v909_v41, %v910_v28 }
  0xd2   : > { %v662_v3 = vpop.f32.mrf.mxu2  ;;  %v499_v4 = vpop.f32.mrf.mxu1  ;;  %v923_v32 = vunpack.c.l.b16 %v911_v24 }
  0xd3   : > { %1644 = vmatmul.msk.bf16.gmra.mxu0 %vm355_vm3, %v2099_v53  ;;  %v699_v9 = vadd.f32 %v662_v3, %v498_v44  ;;  %v500_v12 = vadd.f32 %v499_v4, %v396_v23  ;;  %v908_v23 = vsel %vm2005_vm6, %v1581_v19, %v907_v57  ;;  %v914_v44 = vrot.slane %v2146_v43, 6 }
  0xd4   : > { %v752_v11 = vpop.f32.mrf.mxu3  ;;  %v922_v22 = vunpack.c.l.b16 %v908_v23 }
  0xd5   : > { %v789_v17 = vadd.f32 %v752_v11, %v699_v9  ;;  %v916_v11 = vrot.slane %v914_v44, 4 }
  0xd6   : > { %v2250_v47 = vpack.c.b16 %v923_v32, %v922_v22 }
  0xd7   : > { %v2232_v34 = vadd.f32 %v854_v13, %v789_v17 }
  0xd8   : > { %v856_v61 = vpop.f32.mrf.mxu0 }
  0xda   : > { %v664_v35 = vpop.f32.mrf.mxu2  ;;  %v502_v58 = vpop.f32.mrf.mxu1 }
  0xdb   : > { %v700_v8 = vadd.f32 %v664_v35, %v500_v12  ;;  %v503_v16 = vadd.f32 %v502_v58, %v2135_v38 }
  0xdc   : > { %v754_v37 = vpop.f32.mrf.mxu3 }
  0xdd   : > { %v790_v42 = vadd.f32 %v754_v37, %v700_v8  ;;  %1591 = vmatmul.msk.bf16.gmra.mxu1 %vm355_vm3, %v2079_v10 }
  0xdf   : > { %1613 = vmatmul.msk.bf16.gmra.mxu2 %vm355_vm3, %v2085_v14  ;;  %v2246_v15 = vadd.f32 %v856_v61, %v790_v42 }
  0xe0   : > { %v859_v38 = vpop.f32.mrf.mxu0 }
  0xe1   : > { %1629 = vmatmul.msk.bf16.gmra.mxu3 %vm355_vm3, %v1935_v60  ;;  %v917_v60 = vrot.slane %v2161_v45, 6 }
  0xe2   : > { %v667_v10 = vpop.f32.mrf.mxu2  ;;  %v504_v40 = vpop.f32.mrf.mxu1 }
  0xe3   : > { %1645 = vmatmul.msk.bf16.gmra.mxu0 %vm355_vm3, %v2137_v39  ;;  %v701_v51 = vadd.f32 %v667_v10, %v503_v16  ;;  %v505_v6 = vadd.f32 %v504_v40, %v2165_v52  ;;  %v915_v52 = vsel %vm2005_vm6, %v1582_v1, %v914_v44  ;;  %v918_v43 = vsel %vm2005_vm6, %v916_v11, %v917_v60  ;;  %v232_v44 = vld [vmem:[%s1834_s7 + $0x7c] sm:$0xf]  ;;  %v231_v60 = vld [vmem:[%s1834_s7 + $0x78] sm:$0xf] }
  0xe4   : > { %v757_v59 = vpop.f32.mrf.mxu3  ;;  %v924_v56 = vunpack.c.l.b16 %v915_v52  ;;  %v925_v45 = vunpack.c.l.b16 %v918_v43  ;;  %v1099_v1 = vrot.slane %v232_v44, 5 }
  0xe5   : > { %v791_v14 = vadd.f32 %v757_v59, %v701_v51 }
  0xe6   : > { %v2273_v61 = vpack.c.b16 %v925_v45, %v924_v56  ;;  %v1101_v52 = vrot.slane %v1099_v1, 4  ;;  %v1635_v56 = vrot.slane %v231_v60, 10 }
  0xe7   : > { %v2255_v63 = vadd.f32 %v859_v38, %v791_v14 }
  0xe8   : > { %v861_v62 = vpop.f32.mrf.mxu0 }
  0xea   : > { %v669_v13 = vpop.f32.mrf.mxu2  ;;  %v507_v3 = vpop.f32.mrf.mxu1 }
  0xeb   : > { %v702_v4 = vadd.f32 %v669_v13, %v505_v6  ;;  %v508_v9 = vadd.f32 %v507_v3, %v2183_v54  ;;  %v233_v13 = vld [vmem:[%s1834_s7 + $0x80] sm:$0x3] }
  0xec   : > { %v759_v12 = vpop.f32.mrf.mxu3 }
  0xed   : > { %v792_v17 = vadd.f32 %v759_v12, %v702_v4  ;;  %1592 = vmatmul.msk.bf16.gmra.mxu1 %vm355_vm3, %v2099_v53 }
  0xef   : > { %1614 = vmatmul.msk.bf16.gmra.mxu2 %vm355_vm3, %v2105_v21  ;;  %v2269_v57 = vadd.f32 %v861_v62, %v792_v17  ;;  %v1619_v17 = vrot.slane %v231_v60, 9 }
  0xf0   : > { %v864_v54 = vpop.f32.mrf.mxu0 }
  0xf1   : > { %1630 = vmatmul.msk.bf16.gmra.mxu3 %vm355_vm3, %v1997_v2 }
  0xf2   : > { %v672_v53 = vpop.f32.mrf.mxu2  ;;  %v509_v19 = vpop.f32.mrf.mxu1 }
  0xf3   : > { %1646 = vmatmul.msk.bf16.gmra.mxu0 %vm355_vm3, %v2185_v18  ;;  %v703_v28 = vadd.f32 %v672_v53, %v508_v9  ;;  %v510_v35 = vadd.f32 %v509_v19, %v2202_v33  ;;  %v1199_v9 = vrot.slane %v232_v44, 6 }
  0xf4   : > { %v762_v58 = vpop.f32.mrf.mxu3 }
  0xf5   : > { %v793_v21 = vadd.f32 %v762_v58, %v703_v28  ;;  %v1201_v45 = vrot.slane %v1199_v9, 4 }
  0xf7   : > { %v2278_v8 = vadd.f32 %v864_v54, %v793_v21  ;;  %v1202_v54 = vrot.slane %v233_v13, 6 }
  0xf8   : > { %v866_v16 = vpop.f32.mrf.mxu0 }
  0xf9   : > { %v1203_v58 = vsel %vm2005_vm6, %v1201_v45, %v1202_v54 }
  0xfa   : > { %v674_v37 = vpop.f32.mrf.mxu2  ;;  %v512_v41 = vpop.f32.mrf.mxu1 }
  0xfb   : > { %v704_v42 = vadd.f32 %v674_v37, %v510_v35  ;;  %v513_v22 = vadd.f32 %v512_v41, %v2163_v49  ;;  %v1200_v35 = vsel %vm2005_vm6, %v1635_v56, %v1199_v9 }
  0xfc   : > { %v764_v23 = vpop.f32.mrf.mxu3 }
  0xfd   : > { %v794_v2 = vadd.f32 %v764_v23, %v704_v42  ;;  %1593 = vmatmul.msk.bf16.gmra.mxu1 %vm355_vm3, %v2137_v39 }
  0xff   : > { %1615 = vmatmul.msk.bf16.gmra.mxu2 %vm355_vm3, %v2143_v25  ;;  %v2284_v24 = vadd.f32 %v866_v16, %v794_v2  ;;  %v1664_v2 = vld [vmem:[%s1834_s7 + $0x78] sm:$0xff] }
 0x100   : > { %v869_v33 = vpop.f32.mrf.mxu0 }
 0x101   : > { %1631 = vmatmul.msk.bf16.gmra.mxu3 %vm355_vm3, %v2150_v46 }
 0x102   : > { %v677_v32 = vpop.f32.mrf.mxu2  ;;  %v514_v38 = vpop.f32.mrf.mxu1 }
 0x103   : > { %1647 = vmatmul.msk.bf16.gmra.mxu0 %vm355_vm3, %v2250_v47  ;;  %v705_v10 = vadd.f32 %v677_v32, %v513_v22  ;;  %v515_v6 = vadd.f32 %v514_v38, %v2181_v29  ;;  %v1215_v22 = vunpack.c.l.b16 %v1203_v58  ;;  %v235_v32 = vld [vmem:[%s1834_s7 + $0x88] sm:$0xf] }
 0x104   : > { %v767_v39 = vpop.f32.mrf.mxu3 }
 0x105   : > { %v795_v40 = vadd.f32 %v767_v39, %v705_v10 }
 0x107   : > { %v2291_v25 = vadd.f32 %v869_v33, %v795_v40  ;;  %v1214_v33 = vunpack.c.l.b16 %v1200_v35  ;;  %v1106_v40 = vrot.slane %v235_v32, 5 }
 0x108   : > { %v871_v51 = vpop.f32.mrf.mxu0 }
 0x109   : > { %v1108_v60 = vrot.slane %v1106_v40, 4 }
 0x10a   : > { %v679_v59 = vpop.f32.mrf.mxu2  ;;  %v517_v49 = vpop.f32.mrf.mxu1 }
 0x10b   : > { %v706_v14 = vadd.f32 %v679_v59, %v515_v6  ;;  %v518_v29 = vadd.f32 %v517_v49, %v2200_v31  ;;  %v1100_v31 = vsel %vm1836_vm2, %v1619_v17, %v1099_v1  ;;  %v236_v6 = vld [vmem:[%s1834_s7 + $0x8c] sm:$0x3] }
 0x10c   : > { %v769_v46 = vpop.f32.mrf.mxu3  ;;  %v1114_v16 = vunpack.c.l.b16 %v1100_v31 }
 0x10d   : > { %v796_v62 = vadd.f32 %v769_v46, %v706_v14  ;;  %1594 = vmatmul.msk.bf16.gmra.mxu1 %vm355_vm3, %v2185_v18  ;;  %v1102_v18 = vrot.slane %v233_v13, 5  ;;  %v1206_v14 = vrot.slane %v235_v32, 6 }
 0x10f   : > { %1616 = vmatmul.msk.bf16.gmra.mxu2 %vm355_vm3, %v2192_v26  ;;  %v2301_v3 = vadd.f32 %v871_v51, %v796_v62  ;;  %v234_v51 = vld [vmem:[%s1834_s7 + $0x84] sm:$0xf] }
 0x110   : > { %v874_v4 = vpop.f32.mrf.mxu0  ;;  %v1620_v1 = vrot.slane %v234_v51, 9  ;;  %v1636_v9 = vrot.slane %v234_v51, 10 }
 0x111   : > { %1632 = vmatmul.msk.bf16.gmra.mxu3 %vm355_vm3, %v2196_v27  ;;  %v1103_v27 = vsel %vm1836_vm2, %v1101_v52, %v1102_v18 }
 0x112   : > { %v682_v12 = vpop.f32.mrf.mxu2  ;;  %v519_v11 = vpop.f32.mrf.mxu1  ;;  %v1115_v37 = vunpack.c.l.b16 %v1103_v27  ;;  %v1107_v17 = vsel %vm1836_vm2, %v1620_v1, %v1106_v40  ;;  %v2362_v1 = vld [vmem:[%s2449_s2] ss:$0 sm:$0xff] }
 0x113   : > { %1648 = vmatmul.msk.bf16.gmra.mxu0 %vm355_vm3, %v2273_v61  ;;  %v707_v26 = vadd.f32 %v682_v12, %v518_v29  ;;  %v520_v21 = vadd.f32 %v519_v11, %v2208_v7  ;;  %v1218_v7 = vpack.c.b16 %v1215_v22, %v1214_v33  ;;  %v1208_v29 = vrot.slane %v1206_v14, 4 }
 0x114   : > { %v772_v43 = vpop.f32.mrf.mxu3  ;;  %v1118_v39 = vpack.c.b16 %v1115_v37, %v1114_v16  ;;  %v1209_v12 = vrot.slane %v236_v6, 6  ;;  %v1116_v45 = vunpack.c.l.b16 %v1107_v17 }
 0x115   : > { %v797_v53 = vadd.f32 %v772_v43, %v707_v26  ;;  %v1207_v26 = vsel %vm2005_vm6, %v1636_v9, %v1206_v14 }
 0x116   : > { %v1210_v43 = vsel %vm2005_vm6, %v1208_v29, %v1209_v12  ;;  %v1216_v35 = vunpack.c.l.b16 %v1207_v26 }
 0x117   : > { %v2312_v19 = vadd.f32 %v874_v4, %v797_v53  ;;  %v1217_v5 = vunpack.c.l.b16 %v1210_v43 }
 0x118   : > { %v876_v28 = vpop.f32.mrf.mxu0 }
 0x119   : > { %v1219_v30 = vpack.c.b16 %v1217_v5, %v1216_v35 }
 0x11a   : > { %v684_v41 = vpop.f32.mrf.mxu2  ;;  %v522_v42 = vpop.f32.mrf.mxu1 }
 0x11b   : > { %v708_v23 = vadd.f32 %v684_v41, %v520_v21  ;;  %v523_v44 = vadd.f32 %v522_v42, %v2171_v0 }
 0x11c   : > { %v774_v38 = vpop.f32.mrf.mxu3 }
 0x11d   : > { %v798_v10 = vadd.f32 %v774_v38, %v708_v23  ;;  %1595 = vmatmul.msk.bf16.gmra.mxu1 %vm355_vm3, %v2250_v47  ;;  %v1109_v47 = vrot.slane %v236_v6, 5 }
 0x11f   : > { %1617 = vmatmul.msk.bf16.gmra.mxu2 %vm355_vm3, %v1664_v2  ;;  %v2326_v59 = vadd.f32 %v876_v28, %v798_v10  ;;  %v1110_v0 = vsel %vm1836_vm2, %v1108_v60, %v1109_v47  ;;  %v1665_v28 = vld [vmem:[%s1834_s7 + $0x84] sm:$0xff] }
 0x120   : > { %v879_v49 = vpop.f32.mrf.mxu0  ;;  %v1117_v54 = vunpack.c.l.b16 %v1110_v0 }
 0x121   : > { %1633 = vmatmul.msk.bf16.gmra.mxu3 %vm355_vm3, %v1118_v39 }
 0x122   : > { %v687_v46 = vpop.f32.mrf.mxu2  ;;  %v524_v62 = vpop.f32.mrf.mxu1  ;;  %v1119_v16 = vpack.c.b16 %v1117_v54, %v1116_v45 }
 0x123   : > { %1649 = vmatmul.msk.bf16.gmra.mxu0 %vm355_vm3, %v1218_v7  ;;  %v709_v13 = vadd.f32 %v687_v46, %v523_v44  ;;  %v525_v56 = vadd.f32 %v524_v62, %v2187_v55 }
 0x124   : > { %v777_v4 = vpop.f32.mrf.mxu3 }
 0x125   : > { %v799_v11 = vadd.f32 %v777_v4, %v709_v13 }
 0x127   : > { %v2335_v52 = vadd.f32 %v879_v49, %v799_v11 }
 0x128   : > { %v881_v18 = vpop.f32.mrf.mxu0 }
 0x12a   : > { %v689_v53 = vpop.f32.mrf.mxu2  ;;  %v527_v31 = vpop.f32.mrf.mxu1 }
 0x12b   : > { %v710_v27 = vadd.f32 %v689_v53, %v525_v56  ;;  %v528_v41 = vadd.f32 %v527_v31, %v2206_v20 }
 0x12c   : > { %v779_v58 = vpop.f32.mrf.mxu3 }
 0x12d   : > { %v800_v21 = vadd.f32 %v779_v58, %v710_v27  ;;  %1596 = vmatmul.msk.bf16.gmra.mxu1 %vm355_vm3, %v2273_v61 }
 0x12f   : > { %1618 = vmatmul.msk.bf16.gmra.mxu2 %vm355_vm3, %v1665_v28  ;;  %v2346_v37 = vadd.f32 %v881_v18, %v800_v21 }
 0x130   : > { %v884_v55 = vpop.f32.mrf.mxu0 }
 0x131   : > { %1634 = vmatmul.msk.bf16.gmra.mxu3 %vm355_vm3, %v1119_v16 }
 0x132   : > { %v692_v42 = vpop.f32.mrf.mxu2  ;;  %v529_v23 = vpop.f32.mrf.mxu1 }
 0x133   : > { %1650 = vmatmul.msk.bf16.gmra.mxu0 %vm355_vm3, %v1219_v30  ;;  %v711_v2 = vadd.f32 %v692_v42, %v528_v41  ;;  %v530_v38 = vadd.f32 %v529_v23, %v2210_v36 }
 0x134   : > { %v782_v33 = vpop.f32.mrf.mxu3 }
 0x135   : > { %v801_v22 = vadd.f32 %v782_v33, %v711_v2 }
 0x137   : > { %v2352_v61 = vadd.f32 %v884_v55, %v801_v22 }
 0x138   : > { %v886_v32 = vpop.f32.mrf.mxu0 }
 0x13a   : > { %v694_v10 = vpop.f32.mrf.mxu2  ;;  %v949_v39 = vpop.f32.mrf.mxu1 }
 0x13b   : > { %v712_v20 = vadd.f32 %v694_v10, %v530_v38  ;;  %v989_v49 = vadd.f32 %v949_v39, %v2220_v48 }
 0x13c   : > { %v784_v40 = vpop.f32.mrf.mxu3 }
 0x13d   : > { %v802_v7 = vadd.f32 %v784_v40, %v712_v20 }
 0x13f   : > { %v2355_v51 = vadd.f32 %v886_v32, %v802_v7 }
 0x140   : > { %v1241_v6 = vpop.f32.mrf.mxu0 }
 0x142   : > { %v1039_v14 = vpop.f32.mrf.mxu2  ;;  %v951_v44 = vpop.f32.mrf.mxu1 }
 0x143   : > { %v1079_v46 = vadd.f32 %v1039_v14, %v989_v49  ;;  %v990_v48 = vadd.f32 %v951_v44, %v2226_v50 }
 0x144   : > { %v1141_v62 = vpop.f32.mrf.mxu3 }
 0x145   : > { %v1181_v36 = vadd.f32 %v1141_v62, %v1079_v46 }
 0x147   : > { %v1281_v60 = vadd.f32 %v1241_v6, %v1181_v36 }
 0x148   : > { %v1243_v47 = vpop.f32.mrf.mxu0 }
 0x149   : > { %v1301_v13 = vadd.f32 %v2362_v1, %v1281_v60 }
 0x14a   : > { %v1041_v4 = vpop.f32.mrf.mxu2  ;;  %v954_v9 = vpop.f32.mrf.mxu1 }
 0x14b   : > { %v1317_v29 = vpack.c.bf16 %v1301_v13, %v1301_v13  ;;  %v1080_v12 = vadd.f32 %v1041_v4, %v990_v48  ;;  %v991_v26 = vadd.f32 %v954_v9, %v2232_v34 }
 0x14c   : > { %v1143_v11 = vpop.f32.mrf.mxu3 }
 0x14d   : > { %1334 = vst.msk [vmem:[%s2369_s30] sm:$0xf] %vm1333_vm7, %v1317_v29  ;;  %v1182_v17 = vadd.f32 %v1143_v11, %v1080_v12 }
 0x14f   : > { %v1282_v0 = vadd.f32 %v1243_v47, %v1182_v17 }
 0x150   : > { %v1246_v18 = vpop.f32.mrf.mxu0 }
 0x151   : > { %v1302_v50 = vadd.f32 %v2362_v1, %v1282_v0 }
 0x152   : > { %v1044_v43 = vpop.f32.mrf.mxu2  ;;  %v956_v56 = vpop.f32.mrf.mxu1 }
 0x153   : > { %v1318_v45 = vpack.c.bf16 %v1302_v50, %v1302_v50  ;;  %v1081_v54 = vadd.f32 %v1044_v43, %v991_v26  ;;  %v992_v5 = vadd.f32 %v956_v56, %v2246_v15 }
 0x154   : > { %v1146_v53 = vpop.f32.mrf.mxu3 }
 0x155   : > { %1335 = vst.msk [vmem:[%s2369_s30 + $0x4] sm:$0xf] %vm1333_vm7, %v1318_v45  ;;  %v1183_v31 = vadd.f32 %v1146_v53, %v1081_v54 }
 0x157   : > { %v1283_v27 = vadd.f32 %v1246_v18, %v1183_v31 }
 0x158   : > { %v1248_v28 = vpop.f32.mrf.mxu0 }
 0x159   : > { %v1303_v35 = vadd.f32 %v2362_v1, %v1283_v27 }
 0x15a   : > { %v1046_v58 = vpop.f32.mrf.mxu2  ;;  %v959_v21 = vpop.f32.mrf.mxu1 }
 0x15b   : > { %v1319_v16 = vpack.c.bf16 %v1303_v35, %v1303_v35  ;;  %v1082_v34 = vadd.f32 %v1046_v58, %v992_v5  ;;  %v993_v2 = vadd.f32 %v959_v21, %v2255_v63 }
 0x15c   : > { %v1148_v30 = vpop.f32.mrf.mxu3 }
 0x15d   : > { %1336 = vst.msk [vmem:[%s2369_s30 + $0x8] sm:$0xf] %vm1333_vm7, %v1319_v16  ;;  %v1184_v55 = vadd.f32 %v1148_v30, %v1082_v34 }
 0x15f   : > { %v1284_v41 = vadd.f32 %v1248_v28, %v1184_v55 }
 0x160   : > { %v1251_v42 = vpop.f32.mrf.mxu0 }
 0x161   : > { %v1304_v23 = vadd.f32 %v2362_v1, %v1284_v41 }
 0x162   : > { %v1049_v33 = vpop.f32.mrf.mxu2  ;;  %v961_v22 = vpop.f32.mrf.mxu1 }
 0x163   : > { %v1320_v32 = vpack.c.bf16 %v1304_v23, %v1304_v23  ;;  %v1083_v15 = vadd.f32 %v1049_v33, %v993_v2  ;;  %v994_v7 = vadd.f32 %v961_v22, %v2269_v57 }
 0x164   : > { %v1151_v38 = vpop.f32.mrf.mxu3 }
 0x165   : > { %1337 = vst.msk [vmem:[%s2369_s30 + $0xc] sm:$0xf] %vm1333_vm7, %v1320_v32  ;;  %v1185_v10 = vadd.f32 %v1151_v38, %v1083_v15 }
 0x167   : > { %v1285_v39 = vadd.f32 %v1251_v42, %v1185_v10 }
 0x168   : > { %v1253_v20 = vpop.f32.mrf.mxu0 }
 0x169   : > { %v1305_v40 = vadd.f32 %v2362_v1, %v1285_v39 }
 0x16a   : > { %v1051_v6 = vpop.f32.mrf.mxu2  ;;  %v964_v49 = vpop.f32.mrf.mxu1 }
 0x16b   : > { %v1321_v14 = vpack.c.bf16 %v1305_v40, %v1305_v40  ;;  %v1084_v63 = vadd.f32 %v1051_v6, %v994_v7  ;;  %v995_v47 = vadd.f32 %v964_v49, %v2278_v8 }
 0x16c   : > { %v1153_v44 = vpop.f32.mrf.mxu3 }
 0x16d   : > { %1338 = vst.msk [vmem:[%s2369_s30 + $0x10] sm:$0xf] %vm1333_vm7, %v1321_v14  ;;  %v1186_v46 = vadd.f32 %v1153_v44, %v1084_v63 }
 0x16f   : > { %v1286_v62 = vadd.f32 %v1253_v20, %v1186_v46 }
 0x170   : > { %v1256_v36 = vpop.f32.mrf.mxu0 }
 0x171   : > { %v1306_v60 = vadd.f32 %v2362_v1, %v1286_v62 }
 0x172   : > { %v1054_v13 = vpop.f32.mrf.mxu2  ;;  %v966_v48 = vpop.f32.mrf.mxu1 }
 0x173   : > { %v1322_v4 = vpack.c.bf16 %v1306_v60, %v1306_v60  ;;  %v1085_v57 = vadd.f32 %v1054_v13, %v995_v47  ;;  %v996_v0 = vadd.f32 %v966_v48, %v2284_v24 }
 0x174   : > { %v1156_v9 = vpop.f32.mrf.mxu3 }
 0x175   : > { %1339 = vst.msk [vmem:[%s2369_s30 + $0x14] sm:$0xf] %vm1333_vm7, %v1322_v4  ;;  %v1187_v29 = vadd.f32 %v1156_v9, %v1085_v57 }
 0x177   : > { %v1287_v12 = vadd.f32 %v1256_v36, %v1187_v29 }
 0x178   : > { %v1258_v11 = vpop.f32.mrf.mxu0 }
 0x179   : > { %v1307_v17 = vadd.f32 %v2362_v1, %v1287_v12 }
 0x17a   : > { %v1056_v18 = vpop.f32.mrf.mxu2  ;;  %v969_v50 = vpop.f32.mrf.mxu1 }
 0x17b   : > { %v1323_v26 = vpack.c.bf16 %v1307_v17, %v1307_v17  ;;  %v1086_v8 = vadd.f32 %v1056_v18, %v996_v0  ;;  %v997_v31 = vadd.f32 %v969_v50, %v2291_v25 }
 0x17c   : > { %v1158_v43 = vpop.f32.mrf.mxu3 }
 0x17d   : > { %1340 = vst.msk [vmem:[%s2369_s30 + $0x18] sm:$0xf] %vm1333_vm7, %v1323_v26  ;;  %v1188_v56 = vadd.f32 %v1158_v43, %v1086_v8 }
 0x17f   : > { %v1288_v45 = vadd.f32 %v1258_v11, %v1188_v56 }
 0x180   : > { %v1261_v54 = vpop.f32.mrf.mxu0 }
 0x181   : > { %v1308_v53 = vadd.f32 %v2362_v1, %v1288_v45 }
 0x182   : > { %v1059_v27 = vpop.f32.mrf.mxu2  ;;  %v971_v28 = vpop.f32.mrf.mxu1 }
 0x183   : > { %v1324_v35 = vpack.c.bf16 %v1308_v53, %v1308_v53  ;;  %v1087_v24 = vadd.f32 %v1059_v27, %v997_v31  ;;  %v998_v30 = vadd.f32 %v971_v28, %v2301_v3 }
 0x184   : > { %v1161_v5 = vpop.f32.mrf.mxu3 }
 0x185   : > { %1341 = vst.msk [vmem:[%s2369_s30 + $0x1c] sm:$0xf] %vm1333_vm7, %v1324_v35  ;;  %v1189_v58 = vadd.f32 %v1161_v5, %v1087_v24 }
 0x187   : > { %v1289_v21 = vadd.f32 %v1261_v54, %v1189_v58 }
 0x188   : > { %v1263_v16 = vpop.f32.mrf.mxu0 }
 0x189   : > { %v1309_v34 = vadd.f32 %v2362_v1, %v1289_v21 }
 0x18a   : > { %v1061_v55 = vpop.f32.mrf.mxu2  ;;  %v974_v41 = vpop.f32.mrf.mxu1 }
 0x18b   : > { %v1325_v42 = vpack.c.bf16 %v1309_v34, %v1309_v34  ;;  %v1088_v25 = vadd.f32 %v1061_v55, %v998_v30  ;;  %v999_v15 = vadd.f32 %v974_v41, %v2312_v19 }
 0x18c   : > { %v1163_v23 = vpop.f32.mrf.mxu3 }
 0x18d   : > { %1342 = vst.msk [vmem:[%s2369_s30 + $0x20] sm:$0xf] %vm1333_vm7, %v1325_v42  ;;  %v1190_v2 = vadd.f32 %v1163_v23, %v1088_v25 }
 0x18f   : > { %v1290_v33 = vadd.f32 %v1263_v16, %v1190_v2 }
 0x190   : > { %v1266_v22 = vpop.f32.mrf.mxu0 }
 0x191   : > { %v1310_v32 = vadd.f32 %v2362_v1, %v1290_v33 }
 0x192   : > { %v1064_v38 = vpop.f32.mrf.mxu2  ;;  %v976_v10 = vpop.f32.mrf.mxu1 }
 0x193   : > { %v1326_v39 = vpack.c.bf16 %v1310_v32, %v1310_v32  ;;  %v1089_v3 = vadd.f32 %v1064_v38, %v999_v15  ;;  %v1000_v14 = vadd.f32 %v976_v10, %v2326_v59 }
 0x194   : > { %v1166_v20 = vpop.f32.mrf.mxu3 }
 0x195   : > { %1343 = vst.msk [vmem:[%s2369_s30 + $0x24] sm:$0xf] %vm1333_vm7, %v1326_v39  ;;  %v1191_v40 = vadd.f32 %v1166_v20, %v1089_v3 }
 0x197   : > { %v1291_v7 = vadd.f32 %v1266_v22, %v1191_v40 }
 0x198   : > { %v1268_v6 = vpop.f32.mrf.mxu0 }
 0x199   : > { %v1311_v49 = vadd.f32 %v2362_v1, %v1291_v7 }
 0x19a   : > { %v1066_v63 = vpop.f32.mrf.mxu2  ;;  %v979_v44 = vpop.f32.mrf.mxu1 }
 0x19b   : > { %v1327_v46 = vpack.c.bf16 %v1311_v49, %v1311_v49  ;;  %v1090_v19 = vadd.f32 %v1066_v63, %v1000_v14  ;;  %v1001_v48 = vadd.f32 %v979_v44, %v2335_v52 }
 0x19c   : > { %v1168_v62 = vpop.f32.mrf.mxu3 }
 0x19d   : > { %1344 = vst.msk [vmem:[%s2369_s30 + $0x28] sm:$0xf] %vm1333_vm7, %v1327_v46  ;;  %v1192_v36 = vadd.f32 %v1168_v62, %v1090_v19 }
 0x19f   : > { %v1292_v60 = vadd.f32 %v1268_v6, %v1192_v36 }
 0x1a0   : > { %v1271_v47 = vpop.f32.mrf.mxu0 }
 0x1a1   : > { %v1312_v13 = vadd.f32 %v2362_v1, %v1292_v60 }
 0x1a2   : > { %v1069_v4 = vpop.f32.mrf.mxu2  ;;  %v981_v57 = vpop.f32.mrf.mxu1 }
 0x1a3   : > { %v1328_v9 = vpack.c.bf16 %v1312_v13, %v1312_v13  ;;  %v1091_v59 = vadd.f32 %v1069_v4, %v1001_v48  ;;  %v1002_v0 = vadd.f32 %v981_v57, %v2346_v37 }
 0x1a4   : > { %v1171_v29 = vpop.f32.mrf.mxu3 }
 0x1a5   : > { %1345 = vst.msk [vmem:[%s2369_s30 + $0x2c] sm:$0xf] %vm1333_vm7, %v1328_v9  ;;  %v1193_v12 = vadd.f32 %v1171_v29, %v1091_v59 }
 0x1a7   : > { %v1293_v11 = vadd.f32 %v1271_v47, %v1193_v12 }
 0x1a8   : > { %v1273_v18 = vpop.f32.mrf.mxu0 }
 0x1a9   : > { %v1313_v17 = vadd.f32 %v2362_v1, %v1293_v11 }
 0x1aa   : > { %v1071_v50 = vpop.f32.mrf.mxu2  ;;  %v984_v43 = vpop.f32.mrf.mxu1 }
 0x1ab   : > { %v1329_v26 = vpack.c.bf16 %v1313_v17, %v1313_v17  ;;  %v1092_v8 = vadd.f32 %v1071_v50, %v1002_v0  ;;  %v1003_v53 = vadd.f32 %v984_v43, %v2352_v61 }
 0x1ac   : > { %v1173_v52 = vpop.f32.mrf.mxu3 }
 0x1ad   : > { %1346 = vst.msk [vmem:[%s2369_s30 + $0x30] sm:$0xf] %vm1333_vm7, %v1329_v26  ;;  %v1194_v56 = vadd.f32 %v1173_v52, %v1092_v8 }
 0x1af   : > { %v1294_v45 = vadd.f32 %v1273_v18, %v1194_v56 }
 0x1b0   : > { %v1276_v37 = vpop.f32.mrf.mxu0 }
 0x1b1   : > { %v1314_v54 = vadd.f32 %v2362_v1, %v1294_v45 }
 0x1b2   : > { %v1074_v31 = vpop.f32.mrf.mxu2  ;;  %v986_v5 = vpop.f32.mrf.mxu1 }
 0x1b3   : > { %v1330_v27 = vpack.c.bf16 %v1314_v54, %v1314_v54  ;;  %v1093_v28 = vadd.f32 %v1074_v31, %v1003_v53  ;;  %v1004_v16 = vadd.f32 %v986_v5, %v2355_v51 }
 0x1b4   : > { %v1176_v35 = vpop.f32.mrf.mxu3 }
 0x1b5   : > { %1347 = vst.msk [vmem:[%s2369_s30 + $0x34] sm:$0xf] %vm1333_vm7, %v1330_v27  ;;  %v1195_v24 = vadd.f32 %v1176_v35, %v1093_v28 }
 0x1b7   : > { %v1295_v58 = vadd.f32 %v1276_v37, %v1195_v24 }
 0x1b8   : > { %v1278_v42 = vpop.f32.mrf.mxu0 }
 0x1b9   : > { %v1315_v21 = vadd.f32 %v2362_v1, %v1295_v58 }
 0x1ba   : > { %v1076_v34 = vpop.f32.mrf.mxu2 }
 0x1bb   : > { %v1331_v30 = vpack.c.bf16 %v1315_v21, %v1315_v21  ;;  %v1094_v55 = vadd.f32 %v1076_v34, %v1004_v16 }
 0x1bc   : > { %v1178_v61 = vpop.f32.mrf.mxu3 }
 0x1bd   : > { %1348 = vst.msk [vmem:[%s2369_s30 + $0x38] sm:$0xf] %vm1333_vm7, %v1331_v30  ;;  %v1196_v41 = vadd.f32 %v1178_v61, %v1094_v55 }
 0x1bf   : > { %v1296_v25 = vadd.f32 %v1278_v42, %v1196_v41 }
 0x1c1   : > { %v1316_v23 = vadd.f32 %v2362_v1, %v1296_v25 }
 0x1c3   : > { %v1332_v2 = vpack.c.bf16 %v1316_v23, %v1316_v23 }
 0x1c5   : > { %1349 = vst.msk [vmem:[%s2369_s30 + $0x3c] sm:$0xf] %vm1333_vm7, %v1332_v2 }
 0x1c6 PF: > { %s13_s16 = sadd.s32 1, %s1758_s16   ;;  %s2455_s12 = smov %s1750_s14 }
 0x1c7   : > { %p10_p7 = scmp.ge.s32.totalorder %s13_s16, 6   ;;  %s2456_s13 = smov %s1754_s15 }
 0x1c8   : > { %s2457_s14 = smov %s2460_s17  ;;  %s2458_s15 = smov %s2464_s18 }
 0x1c9   :  { %12 = sbr.rel (!%p10_p7) target bundleno = 3 (0x3), region = 71 }

// kernel: basic_rfb_forward.9
= control target key start
LH: loop header
LB: loop body
LE: loop exit
PB: predicated region body
PF: predicated region fallthrough
CT: control target
= control target key end

     0   :  { %s1850_s12 = smov 0   ;;  %s1852_s13 = smov 0   ;;  %s2518_s0 = inlined_call_operand.vmem [shape: bf16[2,18,18,16], index: 0, kind: input, shape index: {}]   ;;  %s2519_s1 = inlined_call_operand.vmem [shape: bf16[3,3,16,16], index: 1, kind: input, shape index: {}]   ;;  %s2520_s2 = inlined_call_operand.vmem [shape: f32[1,16], index: 2, kind: input, shape index: {}]   ;;  %s2521_s3 = inlined_call_operand.vmem [shape: bf16[2,16,16,16], index: 3, kind: output, shape index: {}]  }
   0x1   :  { %s1854_s14 = smov 0   ;;  %s1856_s15 = smov 0  }
   0x2   :  { %s1858_s16 = smov 0  }
   0x3 LB: > { %s22_s17 = sadd.s32 1, %s1820_s14  ;;  %s25_s18 = sadd.s32 1, %s1824_s15  ;;  %s1828_s16 = sphi %s1858_s16, %s13_s16   ;;  %s1824_s15 = sphi %s1856_s15, %s2529_s15   ;;  %s1820_s14 = sphi %s1854_s14, %s2528_s14   ;;  %s1816_s13 = sphi %s1852_s13, %s2527_s13   ;;  %s1812_s12 = sphi %s1850_s12, %s2526_s12  }
   0x4   : > { %p23_p0 = scmp.ge.s32.totalorder %s22_s17, 2  ;;  %p1540_p1 = scmp.ge.s32.totalorder %s1828_s16, 1 }
   0x5   : > { %p151_p2 = scmp.lt.s32.totalorder %s1828_s16, 5 }
   0x6   : > { %s2531_s17 = smov (%p23_p0, %s22_s17), 0  ;;  %s2533_s18 = smov (!%p23_p0, %s25_s18), %s1824_s15 }
   0x7   : > { %p152_p3 = pnand %p1540_p1, %p151_p2  ;;  %p27_p4 = scmp.ge.s32.totalorder %s2533_s18, 2 }
   0x8   : > { %p180_p5 = scmp.lt.s32.totalorder (!%p152_p3), %s1816_s13, 1  ;;  %s1725_s23 = smul.u32 (!%p152_p3), 96, %s1812_s12 }
   0x9   : > { %s2535_s18 = smov (%p27_p4, %s2533_s18), 0  ;;  %155 = sbr.rel (%p152_p3) target bundleno = 466 (0x1d2), region = 32 }
   0xe   : > { %v1737_v0 = vld [vmem:[%s2519_s1 + $0x8] sm:$0xff]  ;;  %v1738_v1 = vld [vmem:[%s2519_s1 + $0x10] sm:$0xff]  ;;  %s2537_s13 = smov (!%p180_p5, %s1816_s13), 1  ;;  %v1739_v2 = vld [vmem:[%s2519_s1 + $0x18] sm:$0xff]  ;;  %vm233_vm0 = vsmask.f32 3328 }
   0xf   : > { %1745 = vmatpush.bf16.msra.mxu1 %v1737_v0  ;;  %1746 = vmatpush.bf16.msra.mxu2 %v1737_v0  ;;  %s1748_s24 = smul.u32 216, %s2537_s13  ;;  %v1736_v3 = vld [vmem:[%s2519_s1] sm:$0xff]  ;;  %vm234_vm1 = vsmask.f32 7440  ;;  %vm461_vm2 = vcmask 130048   ;;  %vm662_vm4 = vcmask 1042432  }
  0x10   : > { %1747 = vmatpush.bf16.msra.mxu3 %v1737_v0  ;;  %493 = vmatpush.bf16.msra.mxu0 %v1737_v0  ;;  %v1740_v4 = vld [vmem:[%s2519_s1 + $0x20] sm:$0xff]  ;;  %vm1942_vm3 = vmor %vm233_vm0, %vm234_vm1  ;;  %vm663_vm5 = vcmask 1046532   ;;  %vm1427_vm7 = vcmask 125952  }
  0x11   : > { %s184_s6 = scalar_lea.vmem %s2518_s0, %s1748_s24  ;;  %vm2093_vm6 = vmor %vm662_vm4, %vm663_vm5  ;;  %s1544_s24 = sshll.u32 %s2537_s13, 5 }
  0x12   : > { %s1904_s7 = scalar_lea.vmem %s184_s6, %s1725_s23  ;;  %s1542_s23 = sshll.u32 %s1812_s12, 3 }
  0x13   : > { %785 = vmatpush.bf16.msrb.mxu2 %v1738_v1  ;;  %612 = vmatpush.bf16.msrb.mxu1 %v1736_v3  ;;  %v1907_v5 = vld [vmem:[%s1904_s7 + $0x18] sm:$0xf]  ;;  %v1910_v6 = vld [vmem:[%s1904_s7 + $0x1c] sm:$0xf]  ;;  %v1913_v7 = vld [vmem:[%s1904_s7 + $0x20] sm:$0x1] }
  0x14   : > { %867 = vmatpush.bf16.msrb.mxu3 %v1739_v2  ;;  %971 = vmatpush.bf16.msrb.mxu0 %v1740_v4  ;;  %v285_v8 = vshrl.u32 %v1907_v5, 16  ;;  %v288_v9 = vshll.u32 %v1907_v5, 16  ;;  %v294_v10 = vshll.u32 %v1910_v6, 16  ;;  %v298_v11 = vshrl.u32 %v1910_v6, 16  ;;  %v1920_v12 = vld [vmem:[%s1904_s7 + $0x30] sm:$0xf] }
  0x15   : > { %v304_v13 = vshll.u32 %v1913_v7, 16  ;;  %v1924_v14 = vld [vmem:[%s1904_s7 + $0x34] sm:$0xf]  ;;  %v1927_v15 = vld [vmem:[%s1904_s7 + $0x38] sm:$0x1]  ;;  %v333_v16 = vshrl.u32 %v1920_v12, 16 }
  0x16   : > { %v287_v17 = vrot.slane %v285_v8, 4  ;;  %v290_v18 = vrot.slane %v288_v9, 5  ;;  %v296_v19 = vrot.slane %v294_v10, 5  ;;  %v300_v20 = vrot.slane %v298_v11, 4  ;;  %v1931_v21 = vld [vmem:[%s1904_s7 + $0x48] sm:$0xf] }
  0x17   : > { %v306_v22 = vrot.slane %v304_v13, 5  ;;  %v335_v23 = vrot.slane %v333_v16, 4  ;;  %v336_v24 = vshll.u32 %v1920_v12, 16  ;;  %v342_v25 = vshll.u32 %v1924_v14, 16  ;;  %v1938_v30 = vld [vmem:[%s1904_s7 + $0x4c] sm:$0xf] }
  0x18   : > { %v291_v26 = vor.u32 %v290_v18, %v287_v17  ;;  %v301_v27 = vor.u32 %v300_v20, %v296_v19  ;;  %v346_v28 = vshrl.u32 %v1924_v14, 16  ;;  %v352_v29 = vshll.u32 %v1927_v15, 16  ;;  %v1949_v41 = vld [vmem:[%s1904_s7 + $0x50] sm:$0x1]  ;;  %v1958_v49 = vld [vmem:[%s1904_s7] sm:$0xf] }
  0x19   : > { %v338_v32 = vrot.slane %v336_v24, 5  ;;  %v344_v33 = vrot.slane %v342_v25, 5  ;;  %v381_v34 = vshrl.u32 %v1931_v21, 16  ;;  %v384_v35 = vshll.u32 %v1931_v21, 16  ;;  %v1966_v61 = vld [vmem:[%s1904_s7 + $0x4] sm:$0xf] }
  0x1a   : > { %v292_v36 = vrot.slane %v291_v26, 4  ;;  %v302_v37 = vrot.slane %v301_v27, 4  ;;  %v348_v38 = vrot.slane %v346_v28, 4  ;;  %v354_v39 = vrot.slane %v352_v29, 5  ;;  %v1972_v3 = vld [vmem:[%s1904_s7 + $0x8] sm:$0x1] }
  0x1b   : > { %v339_v40 = vor.u32 %v338_v32, %v335_v23  ;;  %v383_v42 = vrot.slane %v381_v34, 4  ;;  %v386_v43 = vrot.slane %v384_v35, 5  ;;  %v390_v44 = vshll.u32 %v1938_v30, 16  ;;  %v1980_v11 = vld [vmem:[%s1904_s7 + $0x24] sm:$0xf]  ;;  %p188_p6 = scmp.lt.s32.totalorder %s1542_s23, 15 }
  0x1c   : > { %v297_v45 = vsel %vm1942_vm3, %v292_v36, %v296_v19  ;;  %v307_v46 = vsel %vm1942_vm3, %v302_v37, %v306_v22  ;;  %v349_v47 = vor.u32 %v348_v38, %v344_v33  ;;  %v394_v48 = vshrl.u32 %v1938_v30, 16  ;;  %v1988_v23 = vld [vmem:[%s1904_s7 + $0x28] sm:$0xf]  ;;  %v1993_v27 = vld [vmem:[%s1904_s7 + $0x2c] sm:$0x1] }
  0x1d   : > { %v435_v50 = vunpack.c.l.b16 %v297_v45  ;;  %v436_v51 = vunpack.c.l.b16 %v307_v46  ;;  %v340_v52 = vrot.slane %v339_v40, 4  ;;  %v387_v53 = vor.u32 %v386_v43, %v383_v42  ;;  %v2000_v35 = vld [vmem:[%s1904_s7 + $0x3c] sm:$0xf]  ;;  %s2539_s23 = smov (!%p188_p6, %s1542_s23), 15 }
  0x1e   : > { %v350_v54 = vrot.slane %v349_v47, 4  ;;  %v392_v55 = vrot.slane %v390_v44, 5  ;;  %v396_v56 = vrot.slane %v394_v48, 4  ;;  %v400_v57 = vshll.u32 %v1949_v41, 16  ;;  %v2008_v48 = vld [vmem:[%s1904_s7 + $0x40] sm:$0xf] }
  0x1f   : > { %v1961_v58 = vpack.c.b16 %v436_v51, %v435_v50  ;;  %v345_v59 = vsel %vm1942_vm3, %v340_v52, %v344_v33  ;;  %v388_v60 = vrot.slane %v387_v53, 4  ;;  %v237_v62 = vshrl.u32 %v1958_v49, 16  ;;  %s1543_s12 = sshll.u32 %s2539_s23, 1 }
  0x20   : > { %v355_v63 = vsel %vm1942_vm3, %v350_v54, %v354_v39  ;;  %v439_v0 = vunpack.c.l.b16 %v345_v59  ;;  %v397_v1 = vor.u32 %v396_v56, %v392_v55  ;;  %v402_v2 = vrot.slane %v400_v57, 5  ;;  %v2016_v54 = vld [vmem:[%s1904_s7 + $0x44] sm:$0x1]  ;;  %v2020_v56 = vld [vmem:[%s1904_s7 + $0x54] sm:$0xf]  ;;  %s192_s25 = sadd.s32 %s1544_s24, %s1543_s12 }
  0x21   : > { %1557 = vmatmul.msk.bf16.vlgmr.msra.gmra.mxu1 %vm461_vm2, %v1961_v58  ;;  %v440_v4 = vunpack.c.l.b16 %v355_v63  ;;  %v393_v8 = vsel %vm1942_vm3, %v388_v60, %v392_v55  ;;  %v239_v9 = vrot.slane %v237_v62, 4  ;;  %v240_v10 = vshll.u32 %v1958_v49, 16  ;;  %s1545_s28 = sshll.u32 %s192_s25, 2 }
  0x22   : > { %v398_v13 = vrot.slane %v397_v1, 4  ;;  %v246_v16 = vshll.u32 %v1966_v61, 16  ;;  %v250_v17 = vshrl.u32 %v1966_v61, 16  ;;  %v443_v19 = vunpack.c.l.b16 %v393_v8  ;;  %s2440_s30 = scalar_lea.vmem %s2521_s3, %s1545_s28 }
  0x23   : > { %v1984_v18 = vpack.c.b16 %v440_v4, %v439_v0  ;;  %v242_v20 = vrot.slane %v240_v10, 5  ;;  %v256_v22 = vshll.u32 %v1972_v3, 16  ;;  %v309_v28 = vshrl.u32 %v1980_v11, 16 }
  0x24   : > { %v403_v24 = vsel %vm1942_vm3, %v398_v13, %v402_v2  ;;  %v248_v25 = vrot.slane %v246_v16, 5  ;;  %v252_v26 = vrot.slane %v250_v17, 4  ;;  %v312_v34 = vshll.u32 %v1980_v11, 16 }
  0x25   : > { %1559 = vmatmul.msk.bf16.vlgmr.msra.gmra.mxu2 %vm461_vm2, %v1984_v18  ;;  %v444_v29 = vunpack.c.l.b16 %v403_v24  ;;  %v243_v32 = vor.u32 %v242_v20, %v239_v9  ;;  %v258_v33 = vrot.slane %v256_v22, 5  ;;  %v311_v37 = vrot.slane %v309_v28, 4  ;;  %v2031_v20 = vld [vmem:[%s1904_s7 + $0x58] sm:$0xf]  ;;  %v2034_v22 = vld [vmem:[%s1904_s7 + $0x5c] sm:$0x1] }
  0x26   : > { %v253_v36 = vor.u32 %v252_v26, %v248_v25  ;;  %v318_v38 = vshll.u32 %v1988_v23, 16  ;;  %v322_v39 = vshrl.u32 %v1988_v23, 16  ;;  %v314_v43 = vrot.slane %v312_v34, 5  ;;  %v1742_v24 = vld [vmem:[%s2519_s1 + $0x30] sm:$0xff] }
  0x27   : > { %v2004_v40 = vpack.c.b16 %v444_v29, %v443_v19  ;;  %v244_v42 = vrot.slane %v243_v32, 4  ;;  %v328_v44 = vshll.u32 %v1993_v27, 16  ;;  %v357_v50 = vshrl.u32 %v2000_v35, 16  ;;  %v2042_v32 = vld [vmem:[%s1904_s7 + $0xc] sm:$0xf]  ;;  %1141 = vmatpush.bf16.msra.mxu2 %v1742_v24 }
  0x28   : > { %v254_v45 = vrot.slane %v253_v36, 4  ;;  %v320_v46 = vrot.slane %v318_v38, 5  ;;  %v324_v47 = vrot.slane %v322_v39, 4  ;;  %v315_v52 = vor.u32 %v314_v43, %v311_v37 }
  0x29   : > { %1561 = vmatmul.msk.bf16.vlgmr.msra.gmra.mxu3 %vm461_vm2, %v2004_v40  ;;  %v249_v51 = vsel %vm1942_vm3, %v244_v42, %v248_v25  ;;  %v330_v53 = vrot.slane %v328_v44, 5  ;;  %v360_v55 = vshll.u32 %v2000_v35, 16  ;;  %v359_v62 = vrot.slane %v357_v50, 4  ;;  %v2050_v44 = vld [vmem:[%s1904_s7 + $0x10] sm:$0xf] }
  0x2a   : > { %v259_v57 = vsel %vm1942_vm3, %v254_v45, %v258_v33  ;;  %v431_v59 = vunpack.c.l.b16 %v249_v51  ;;  %v325_v60 = vor.u32 %v324_v47, %v320_v46  ;;  %v316_v0 = vrot.slane %v315_v52, 4  ;;  %v1743_v51 = vld [vmem:[%s2519_s1 + $0x38] sm:$0xff]  ;;  %v1741_v52 = vld [vmem:[%s2519_s1 + $0x28] sm:$0xff] }
  0x2b   : > { %v432_v63 = vunpack.c.l.b16 %v259_v57  ;;  %v362_v1 = vrot.slane %v360_v55, 5  ;;  %v366_v2 = vshll.u32 %v2008_v48, 16  ;;  %v370_v8 = vshrl.u32 %v2008_v48, 16  ;;  %1245 = vmatpush.bf16.msra.mxu3 %v1743_v51  ;;  %1059 = vmatpush.bf16.msra.mxu1 %v1741_v52 }
  0x2c   : > { %v326_v4 = vrot.slane %v325_v60, 4  ;;  %v376_v9 = vshll.u32 %v2016_v54, 16  ;;  %v405_v10 = vshrl.u32 %v2020_v56, 16  ;;  %v321_v16 = vsel %vm1942_vm3, %v316_v0, %v320_v46 }
  0x2d   : > { %v447_v13 = vpack.c.b16 %v432_v63, %v431_v59  ;;  %v363_v17 = vor.u32 %v362_v1, %v359_v62  ;;  %v368_v19 = vrot.slane %v366_v2, 5  ;;  %v437_v26 = vunpack.c.l.b16 %v321_v16  ;;  %v2067_v62 = vld [vmem:[%s1904_s7 + $0x14] sm:$0x1] }
  0x2e   : > { %v331_v25 = vsel %vm1942_vm3, %v326_v4, %v330_v53  ;;  %v372_v28 = vrot.slane %v370_v8, 4  ;;  %v378_v29 = vrot.slane %v376_v9, 5  ;;  %v407_v36 = vrot.slane %v405_v10, 4  ;;  %v1744_v53 = vld [vmem:[%s2519_s1 + $0x40] sm:$0xff] }
  0x2f   : > { %1555 = vmatmul.msk.bf16.vlgmr.msra.gmra.mxu0 %vm461_vm2, %v447_v13  ;;  %v438_v33 = vunpack.c.l.b16 %v331_v25  ;;  %v364_v34 = vrot.slane %v363_v17, 4  ;;  %v408_v37 = vshll.u32 %v2020_v56, 16  ;;  %v414_v39 = vshll.u32 %v2031_v20, 16 }
  0x30   : > { %v373_v38 = vor.u32 %v372_v28, %v368_v19  ;;  %v418_v42 = vshrl.u32 %v2031_v20, 16  ;;  %v424_v43 = vshll.u32 %v2034_v22, 16  ;;  %v261_v50 = vshrl.u32 %v2042_v32, 16  ;;  %1333 = vmatpush.bf16.msra.mxu0 %v1744_v53 }
  0x31   : > { %v2052_v45 = vpack.c.b16 %v438_v33, %v437_v26  ;;  %v369_v46 = vsel %vm1942_vm3, %v364_v34, %v368_v19  ;;  %v410_v47 = vrot.slane %v408_v37, 5  ;;  %v416_v59 = vrot.slane %v414_v39, 5 }
  0x32   : > { %v374_v55 = vrot.slane %v373_v38, 4  ;;  %v441_v57 = vunpack.c.l.b16 %v369_v46  ;;  %v420_v60 = vrot.slane %v418_v42, 4  ;;  %v426_v0 = vrot.slane %v424_v43, 5 }
  0x33   : > { %1558 = vmatmul.msk.bf16.gmra.mxu1 %vm461_vm2, %v2052_v45  ;;  %v411_v63 = vor.u32 %v410_v47, %v407_v36  ;;  %v263_v1 = vrot.slane %v261_v50, 4  ;;  %v264_v2 = vshll.u32 %v2042_v32, 16  ;;  %v270_v9 = vshll.u32 %v2050_v44, 16 }
  0x34   : > { %v379_v4 = vsel %vm1942_vm3, %v374_v55, %v378_v29  ;;  %v421_v8 = vor.u32 %v420_v60, %v416_v59  ;;  %v274_v10 = vshrl.u32 %v2050_v44, 16  ;;  %v280_v19 = vshll.u32 %v2067_v62, 16 }
  0x35   : > { %v442_v13 = vunpack.c.l.b16 %v379_v4  ;;  %v412_v16 = vrot.slane %v411_v63, 4  ;;  %v266_v17 = vrot.slane %v264_v2, 5  ;;  %v272_v25 = vrot.slane %v270_v9, 5  ;;  %v1726_v63 = vld [vmem:[%s1904_s7] sm:$0xff] }
  0x36   : > { %v422_v24 = vrot.slane %v421_v8, 4  ;;  %v276_v26 = vrot.slane %v274_v10, 4  ;;  %v282_v34 = vrot.slane %v280_v19, 5  ;;  %v667_v43 = vrot.slane %v1966_v61, 5 }
  0x37   : > { %v2077_v28 = vpack.c.b16 %v442_v13, %v441_v57  ;;  %v417_v29 = vsel %vm1942_vm3, %v412_v16, %v416_v59  ;;  %v267_v33 = vor.u32 %v266_v17, %v263_v1  ;;  %v670_v46 = vrot.slane %v1972_v3, 5 }
  0x38   : > { %v427_v36 = vsel %vm1942_vm3, %v422_v24, %v426_v0  ;;  %v445_v37 = vunpack.c.l.b16 %v417_v29  ;;  %v277_v38 = vor.u32 %v276_v26, %v272_v25  ;;  %v1607_v50 = vrot.slane %v1958_v49, 9 }
  0x39   : > { %1560 = vmatmul.msk.bf16.gmra.mxu2 %vm461_vm2, %v2077_v28  ;;  %v446_v39 = vunpack.c.l.b16 %v427_v36  ;;  %v268_v42 = vrot.slane %v267_v33, 4  ;;  %v669_v55 = vrot.slane %v667_v43, 4  ;;  %v1609_v2 = vrot.slane %v1907_v5, 9 }
  0x3a   : > { %v278_v47 = vrot.slane %v277_v38, 4  ;;  %v668_v49 = vsel %vm2093_vm6, %v1607_v50, %v667_v43  ;;  %v681_v4 = vrot.slane %v1910_v6, 5  ;;  %v684_v8 = vrot.slane %v1913_v7, 5  ;;  %v2166_v50 = vld [vmem:[%s1904_s7 + $0x30] sm:$0xff] }
  0x3b   : > { %v2088_v51 = vpack.c.b16 %v446_v39, %v445_v37  ;;  %v273_v52 = vsel %vm1942_vm3, %v268_v42, %v272_v25  ;;  %v671_v59 = vsel %vm2093_vm6, %v669_v55, %v670_v46  ;;  %v724_v0 = vunpack.c.l.b16 %v668_v49  ;;  %v1727_v25 = vld [vmem:[%s1904_s7 + $0xc] sm:$0xff] }
  0x3c   : > { %v283_v57 = vsel %vm1942_vm3, %v278_v47, %v282_v34  ;;  %v433_v61 = vunpack.c.l.b16 %v273_v52  ;;  %v725_v1 = vunpack.c.l.b16 %v671_v59  ;;  %v682_v10 = vsel %vm2093_vm6, %v1609_v2, %v681_v4  ;;  %v2186_v59 = vld [vmem:[%s1904_s7 + $0x3c] sm:$0xff] }
  0x3d   : > { %1562 = vmatmul.msk.bf16.gmra.mxu3 %vm461_vm2, %v2088_v51  ;;  %v434_v3 = vunpack.c.l.b16 %v283_v57  ;;  %v683_v13 = vrot.slane %v681_v4, 4  ;;  %v674_v16 = vrot.slane %v2050_v44, 5  ;;  %v728_v17 = vunpack.c.l.b16 %v682_v10 }
  0x3e   : > { %v740_v9 = vpack.c.b16 %v725_v1, %v724_v0  ;;  %v1608_v5 = vrot.slane %v2042_v32, 9  ;;  %v677_v7 = vrot.slane %v2067_v62, 5  ;;  %v1610_v32 = vrot.slane %v1980_v11, 9  ;;  %v2141_v11 = vld [vmem:[%s1904_s7 + $0x18] sm:$0xff] }
  0x3f   : > { %v448_v60 = vpack.c.b16 %v434_v3, %v433_v61  ;;  %v685_v19 = vsel %vm2093_vm6, %v683_v13, %v684_v8  ;;  %v676_v6 = vrot.slane %v674_v16, 4  ;;  %v688_v62 = vrot.slane %v1988_v23, 5  ;;  %v2206_v8 = vld [vmem:[%s1904_s7 + $0x48] sm:$0xff] }
  0x40   : > { %v729_v24 = vunpack.c.l.b16 %v685_v19  ;;  %v675_v44 = vsel %vm2093_vm6, %v1608_v5, %v674_v16  ;;  %v691_v36 = vrot.slane %v1993_v27, 5  ;;  %v2154_v27 = vld [vmem:[%s1904_s7 + $0x24] sm:$0xff]  ;;  %v695_v47 = vrot.slane %v1924_v14, 5 }
  0x41   : > { %1556 = vmatmul.msk.bf16.gmra.mxu0 %vm461_vm2, %v448_v60  ;;  %v678_v29 = vsel %vm2093_vm6, %v676_v6, %v677_v7  ;;  %v726_v33 = vunpack.c.l.b16 %v675_v44  ;;  %v689_v38 = vsel %vm2093_vm6, %v1610_v32, %v688_v62  ;;  %v690_v39 = vrot.slane %v688_v62, 4  ;;  %v2242_v32 = vld [vmem:[%s1904_s7 + $0x54] sm:$0xff] }
  0x42   : > { %v2120_v26 = vpack.c.b16 %v729_v24, %v728_v17  ;;  %v727_v34 = vunpack.c.l.b16 %v678_v29  ;;  %v730_v42 = vunpack.c.l.b16 %v689_v38  ;;  %v1611_v52 = vrot.slane %v1920_v12, 9  ;;  %v2221_v24 = vld [vmem:[%s1904_s7 + $0x60] sm:$0xf] }
  0x43   : > { %1599 = vmatmul.msk.bf16.vlgmr.msrb.gmra.mxu1 %vm461_vm2, %v1726_v63  ;;  %v692_v43 = vsel %vm2093_vm6, %v690_v39, %v691_v36  ;;  %v697_v55 = vrot.slane %v695_v47, 4  ;;  %v698_v57 = vrot.slane %v1927_v15, 5  ;;  %v702_v15 = vrot.slane %v2008_v48, 5 }
  0x44   : > { %v2132_v37 = vpack.c.b16 %v727_v34, %v726_v33  ;;  %v731_v46 = vunpack.c.l.b16 %v692_v43  ;;  %v696_v61 = vsel %vm2093_vm6, %v1611_v52, %v695_v47  ;;  %v705_v0 = vrot.slane %v2016_v54, 5  ;;  %v2247_v47 = vld [vmem:[%s1904_s7 + $0x68] sm:$0x1] }
  0x45   : > { %v699_v14 = vsel %vm2093_vm6, %v697_v55, %v698_v57  ;;  %v732_v3 = vunpack.c.l.b16 %v696_v61  ;;  %v704_v63 = vrot.slane %v702_v15, 4  ;;  %v709_v54 = vrot.slane %v1938_v30, 5 }
  0x46   : > { %v2143_v23 = vpack.c.b16 %v731_v46, %v730_v42  ;;  %v733_v49 = vunpack.c.l.b16 %v699_v14  ;;  %v712_v13 = vrot.slane %v1949_v41, 5  ;;  %v2224_v41 = vld [vmem:[%s1904_s7 + $0x64] sm:$0xf]  ;;  %v926_v5 = vshrl.u32 %v2221_v24, 16 }
  0x47   : > { %v706_v48 = vsel %vm2093_vm6, %v704_v63, %v705_v0  ;;  %v711_v10 = vrot.slane %v709_v54, 4  ;;  %v929_v6 = vshll.u32 %v2221_v24, 16  ;;  %v935_v7 = vshll.u32 %v2224_v41, 16 }
  0x48   : > { %v2180_v12 = vpack.c.b16 %v733_v49, %v732_v3  ;;  %v735_v4 = vunpack.c.l.b16 %v706_v48  ;;  %v716_v29 = vrot.slane %v2031_v20, 5  ;;  %v939_v33 = vshrl.u32 %v2224_v41, 16 }
  0x49   : > { %1621 = vmatmul.msk.bf16.vlgmr.msrb.gmra.mxu2 %vm461_vm2, %v740_v9  ;;  %v1613_v9 = vrot.slane %v1931_v21, 9  ;;  %v713_v30 = vsel %vm2093_vm6, %v711_v10, %v712_v13  ;;  %v928_v62 = vrot.slane %v926_v5, 4  ;;  %v931_v36 = vrot.slane %v929_v6, 5  ;;  %v2279_v10 = vld [vmem:[%s1904_s7 + $0x60] sm:$0xff] }
  0x4a   : > { %v737_v21 = vunpack.c.l.b16 %v713_v30  ;;  %v937_v38 = vrot.slane %v935_v7, 5  ;;  %v1614_v39 = vrot.slane %v2020_v56, 9  ;;  %v718_v42 = vrot.slane %v716_v29, 4 }
  0x4b   : > { %v710_v17 = vsel %vm2093_vm6, %v1613_v9, %v709_v54  ;;  %v719_v43 = vrot.slane %v2034_v22, 5  ;;  %v941_v46 = vrot.slane %v939_v33, 4  ;;  %v932_v55 = vor.u32 %v931_v36, %v928_v62 }
  0x4c   : > { %v736_v19 = vunpack.c.l.b16 %v710_v17  ;;  %v717_v57 = vsel %vm2093_vm6, %v1614_v39, %v716_v29  ;;  %v945_v14 = vshll.u32 %v2247_v47, 16 }
  0x4d   : > { %1639 = vmatmul.msk.bf16.vlgmr.msrb.gmra.mxu3 %vm461_vm2, %v1727_v25  ;;  %v720_v61 = vsel %vm2093_vm6, %v718_v42, %v719_v43  ;;  %v942_v56 = vor.u32 %v941_v46, %v937_v38  ;;  %v738_v3 = vunpack.c.l.b16 %v717_v57 }
  0x4e   : > { %v739_v49 = vunpack.c.l.b16 %v720_v61  ;;  %v947_v0 = vrot.slane %v945_v14, 5 }
  0x4f   : > { %v943_v63 = vrot.slane %v942_v56, 4 }
  0x50   : > { %v2266_v48 = vpack.c.b16 %v739_v49, %v738_v3 }
  0x51   : > { %1653 = vmatmul.msk.bf16.vlgmr.msrb.gmra.mxu0 %vm461_vm2, %v448_v60  ;;  %v1612_v60 = vrot.slane %v2000_v35, 9  ;;  %v948_v54 = vsel %vm1942_vm3, %v943_v63, %v947_v0 }
  0x52   : > { %v953_v17 = vunpack.c.l.b16 %v948_v54 }
  0x53   : > { %1600 = vmatmul.msk.bf16.gmra.mxu1 %vm461_vm2, %v1727_v25  ;;  %v703_v1 = vsel %vm2093_vm6, %v1612_v60, %v702_v15  ;;  %v2228_v25 = vpack.c.b16 %v737_v21, %v736_v19  ;;  %v933_v60 = vrot.slane %v932_v55, 4 }
  0x54   : > { %v734_v2 = vunpack.c.l.b16 %v703_v1 }
  0x56   : > { %v2200_v35 = vpack.c.b16 %v735_v4, %v734_v2  ;;  %v938_v4 = vsel %vm1942_vm3, %v933_v60, %v937_v38 }
  0x57   : > { %v952_v13 = vunpack.c.l.b16 %v938_v4 }
  0x59   : > { %1622 = vmatmul.msk.bf16.gmra.mxu2 %vm461_vm2, %v2132_v37  ;;  %v2285_v19 = vpack.c.b16 %v953_v17, %v952_v13 }
  0x5d   : > { %1640 = vmatmul.msk.bf16.gmra.mxu3 %vm461_vm2, %v2141_v11 }
  0x61   : > { %1654 = vmatmul.msk.bf16.gmra.mxu0 %vm461_vm2, %v1961_v58 }
  0x63   : > { %1601 = vmatmul.msk.bf16.gmra.mxu1 %vm461_vm2, %v2141_v11 }
  0x69   : > { %1623 = vmatmul.msk.bf16.gmra.mxu2 %vm461_vm2, %v2120_v26 }
  0x6d   : > { %1641 = vmatmul.msk.bf16.gmra.mxu3 %vm461_vm2, %v2154_v27 }
  0x71   : > { %1655 = vmatmul.msk.bf16.gmra.mxu0 %vm461_vm2, %v2052_v45 }
  0x73   : > { %1602 = vmatmul.msk.bf16.gmra.mxu1 %vm461_vm2, %v2154_v27 }
  0x79   : > { %1624 = vmatmul.msk.bf16.gmra.mxu2 %vm461_vm2, %v2143_v23 }
  0x7d   : > { %1642 = vmatmul.msk.bf16.gmra.mxu3 %vm461_vm2, %v2166_v50 }
  0x81   : > { %1656 = vmatmul.msk.bf16.gmra.mxu0 %vm461_vm2, %v1984_v18 }
  0x83   : > { %1603 = vmatmul.msk.bf16.gmra.mxu1 %vm461_vm2, %v2166_v50 }
  0x89   : > { %1625 = vmatmul.msk.bf16.gmra.mxu2 %vm461_vm2, %v2180_v12 }
  0x8d   : > { %1643 = vmatmul.msk.bf16.gmra.mxu3 %vm461_vm2, %v2186_v59 }
  0x91   : > { %1657 = vmatmul.msk.bf16.gmra.mxu0 %vm461_vm2, %v2077_v28 }
  0x93   : > { %1604 = vmatmul.msk.bf16.gmra.mxu1 %vm461_vm2, %v2186_v59 }
  0x99   : > { %1626 = vmatmul.msk.bf16.gmra.mxu2 %vm461_vm2, %v2200_v35 }
  0x9d   : > { %1644 = vmatmul.msk.bf16.gmra.mxu3 %vm461_vm2, %v2206_v8 }
  0x9e   : > { %v2212_v16 = vpop.f32.mrf.mxu1 }
  0xa1   : > { %1658 = vmatmul.msk.bf16.gmra.mxu0 %vm461_vm2, %v2004_v40 }
  0xa3   : > { %1605 = vmatmul.msk.bf16.gmra.mxu1 %vm461_vm2, %v2206_v8 }
  0xa6   : > { %v2233_v44 = vpop.f32.mrf.mxu1 }
  0xa8   : > { %v2237_v34 = vpop.f32.mrf.mxu2 }
  0xa9   : > { %1627 = vmatmul.msk.bf16.gmra.mxu2 %vm461_vm2, %v2228_v25 }
  0xac   : > { %v495_v20 = vpop.f32.mrf.mxu0  ;;  %v2249_v52 = vpop.f32.mrf.mxu3 }
  0xad   : > { %1645 = vmatmul.msk.bf16.gmra.mxu3 %vm461_vm2, %v2242_v32 }
  0xb0   : > { %v2258_v22 = vpop.f32.mrf.mxu1  ;;  %v2262_v15 = vpop.f32.mrf.mxu2 }
  0xb1   : > { %1659 = vmatmul.msk.bf16.gmra.mxu0 %vm461_vm2, %v2088_v51 }
  0xb3   : > { %1606 = vmatmul.msk.bf16.gmra.mxu1 %vm461_vm2, %v2242_v32 }
  0xb4   : > { %v497_v1 = vpop.f32.mrf.mxu0  ;;  %v2268_v2 = vpop.f32.mrf.mxu3 }
  0xb8   : > { %v2274_v9 = vpop.f32.mrf.mxu1 }
  0xb9   : > { %1628 = vmatmul.msk.bf16.gmra.mxu2 %vm461_vm2, %v2266_v48 }
  0xbc   : > { %v2281_v30 = vpop.f32.mrf.mxu2 }
  0xbd   : > { %1646 = vmatmul.msk.bf16.gmra.mxu3 %vm461_vm2, %v2279_v10 }
  0xbe   : > { %v500_v21 = vpop.f32.mrf.mxu0 }
  0xc0   : > { %v2287_v5 = vpop.f32.mrf.mxu3  ;;  %v614_v6 = vpop.f32.mrf.mxu1 }
  0xc1   : > { %1660 = vmatmul.msk.bf16.gmra.mxu0 %vm461_vm2, %v2285_v19  ;;  %v615_v7 = vadd.f32 %v614_v6, %v495_v20 }
  0xc3   : > { %1668 = vmatmul.msk.bf16.vlgmr.msra.gmra.mxu1 %vm461_vm2, %v2132_v37 }
  0xc4   : > { %v2293_v29 = vpop.f32.mrf.mxu2 }
  0xc6   : > { %v502_v33 = vpop.f32.mrf.mxu0 }
  0xc8   : > { %v2295_v62 = vpop.f32.mrf.mxu3  ;;  %v616_v36 = vpop.f32.mrf.mxu1 }
  0xc9   : > { %1686 = vmatmul.msk.bf16.vlgmr.msra.gmra.mxu2 %vm461_vm2, %v2141_v11  ;;  %v617_v38 = vadd.f32 %v616_v36, %v497_v1 }
  0xcc   : > { %v787_v39 = vpop.f32.mrf.mxu2 }
  0xcd   : > { %1700 = vmatmul.msk.bf16.vlgmr.msra.gmra.mxu3 %vm461_vm2, %v1961_v58  ;;  %v827_v42 = vadd.f32 %v787_v39, %v615_v7 }
  0xce   : > { %v973_v43 = vpop.f32.mrf.mxu0 }
  0xd0   : > { %v869_v46 = vpop.f32.mrf.mxu3  ;;  %v619_v20 = vpop.f32.mrf.mxu1 }
  0xd1   : > { %1715 = vmatmul.msk.bf16.vlgmr.msra.gmra.mxu0 %vm461_vm2, %v2120_v26  ;;  %v909_v37 = vadd.f32 %v869_v46, %v827_v42  ;;  %v620_v55 = vadd.f32 %v619_v20, %v500_v21 }
  0xd3   : > { %1669 = vmatmul.msk.bf16.gmra.mxu1 %vm461_vm2, %v2120_v26  ;;  %v2305_v57 = vadd.f32 %v973_v43, %v909_v37 }
  0xd4   : > { %v789_v11 = vpop.f32.mrf.mxu2 }
  0xd5   : > { %v828_v61 = vadd.f32 %v789_v11, %v617_v38 }
  0xd6   : > { %v975_v56 = vpop.f32.mrf.mxu0 }
  0xd8   : > { %v871_v14 = vpop.f32.mrf.mxu3  ;;  %v621_v3 = vpop.f32.mrf.mxu1 }
  0xd9   : > { %v910_v58 = vadd.f32 %v871_v14, %v828_v61  ;;  %1687 = vmatmul.msk.bf16.gmra.mxu2 %vm461_vm2, %v2154_v27  ;;  %v622_v49 = vadd.f32 %v621_v3, %v502_v33 }
  0xdb   : > { %v2309_v60 = vadd.f32 %v975_v56, %v910_v58 }
  0xdc   : > { %v792_v63 = vpop.f32.mrf.mxu2 }
  0xdd   : > { %1701 = vmatmul.msk.bf16.gmra.mxu3 %vm461_vm2, %v2052_v45  ;;  %v829_v0 = vadd.f32 %v792_v63, %v620_v55 }
  0xde   : > { %v978_v26 = vpop.f32.mrf.mxu0 }
  0xe0   : > { %v874_v1 = vpop.f32.mrf.mxu3  ;;  %v624_v4 = vpop.f32.mrf.mxu1 }
  0xe1   : > { %1716 = vmatmul.msk.bf16.gmra.mxu0 %vm461_vm2, %v2143_v23  ;;  %v911_v54 = vadd.f32 %v874_v1, %v829_v0  ;;  %v625_v13 = vadd.f32 %v624_v4, %v2212_v16 }
  0xe3   : > { %1670 = vmatmul.msk.bf16.gmra.mxu1 %vm461_vm2, %v2143_v23  ;;  %v2318_v27 = vadd.f32 %v978_v26, %v911_v54 }
  0xe4   : > { %v794_v17 = vpop.f32.mrf.mxu2 }
  0xe5   : > { %v830_v21 = vadd.f32 %v794_v17, %v622_v49 }
  0xe6   : > { %v980_v6 = vpop.f32.mrf.mxu0 }
  0xe8   : > { %v876_v7 = vpop.f32.mrf.mxu3  ;;  %v626_v45 = vpop.f32.mrf.mxu1 }
  0xe9   : > { %v912_v33 = vadd.f32 %v876_v7, %v830_v21  ;;  %1688 = vmatmul.msk.bf16.gmra.mxu2 %vm461_vm2, %v2166_v50  ;;  %v627_v36 = vadd.f32 %v626_v45, %v2233_v44 }
  0xeb   : > { %v2323_v38 = vadd.f32 %v980_v6, %v912_v33 }
  0xec   : > { %v797_v39 = vpop.f32.mrf.mxu2 }
  0xed   : > { %1702 = vmatmul.msk.bf16.gmra.mxu3 %vm461_vm2, %v1984_v18  ;;  %v831_v23 = vadd.f32 %v797_v39, %v625_v13 }
  0xee   : > { %v983_v16 = vpop.f32.mrf.mxu0 }
  0xf0   : > { %v879_v42 = vpop.f32.mrf.mxu3  ;;  %v629_v43 = vpop.f32.mrf.mxu1 }
  0xf1   : > { %1717 = vmatmul.msk.bf16.gmra.mxu0 %vm461_vm2, %v2180_v12  ;;  %v913_v46 = vadd.f32 %v879_v42, %v831_v23  ;;  %v630_v20 = vadd.f32 %v629_v43, %v2258_v22 }
  0xf3   : > { %1671 = vmatmul.msk.bf16.gmra.mxu1 %vm461_vm2, %v2180_v12  ;;  %v2332_v50 = vadd.f32 %v983_v16, %v913_v46 }
  0xf4   : > { %v799_v44 = vpop.f32.mrf.mxu2 }
  0xf5   : > { %v832_v37 = vadd.f32 %v799_v44, %v627_v36  ;;  %v2370_v44 = vld [vmem:[%s1904_s7 + $0x6c] sm:$0xf] }
  0xf6   : > { %v985_v55 = vpop.f32.mrf.mxu0 }
  0xf8   : > { %v881_v11 = vpop.f32.mrf.mxu3  ;;  %v631_v18 = vpop.f32.mrf.mxu1 }
  0xf9   : > { %v914_v61 = vadd.f32 %v881_v11, %v832_v37  ;;  %1689 = vmatmul.msk.bf16.gmra.mxu2 %vm461_vm2, %v2186_v59  ;;  %v632_v56 = vadd.f32 %v631_v18, %v2274_v9  ;;  %v2373_v37 = vld [vmem:[%s1904_s7 + $0x70] sm:$0xf]  ;;  %v1200_v18 = vshrl.u32 %v2370_v44, 16 }
  0xfb   : > { %v2337_v14 = vadd.f32 %v985_v55, %v914_v61  ;;  %v1661_v61 = vrot.slane %v2221_v24, 9 }
  0xfc   : > { %v802_v3 = vpop.f32.mrf.mxu2 }
  0xfd   : > { %1703 = vmatmul.msk.bf16.gmra.mxu3 %vm461_vm2, %v2077_v28  ;;  %v833_v12 = vadd.f32 %v802_v3, %v630_v20  ;;  %v1032_v20 = vrot.slane %v2224_v41, 5  ;;  %v1213_v3 = vshrl.u32 %v2373_v37, 16 }
  0xfe   : > { %v988_v22 = vpop.f32.mrf.mxu0 }
  0xff   : > { %v1034_v41 = vrot.slane %v1032_v20, 4  ;;  %v1033_v24 = vsel %vm2093_vm6, %v1661_v61, %v1032_v20 }
 0x100   : > { %v884_v58 = vpop.f32.mrf.mxu3  ;;  %v634_v49 = vpop.f32.mrf.mxu1 }
 0x101   : > { %1718 = vmatmul.msk.bf16.gmra.mxu0 %vm461_vm2, %v2200_v35  ;;  %v915_v63 = vadd.f32 %v884_v58, %v833_v12  ;;  %v635_v28 = vadd.f32 %v634_v49, %v2237_v34  ;;  %v1202_v49 = vrot.slane %v1200_v18, 4  ;;  %v1735_v18 = vld [vmem:[%s1904_s7 + $0x6c] sm:$0xff] }
 0x103   : > { %1672 = vmatmul.msk.bf16.gmra.mxu1 %vm461_vm2, %v2200_v35  ;;  %v2345_v59 = vadd.f32 %v988_v22, %v915_v63 }
 0x104   : > { %v804_v9 = vpop.f32.mrf.mxu2 }
 0x105   : > { %v834_v0 = vadd.f32 %v804_v9, %v632_v56  ;;  %v1209_v56 = vshll.u32 %v2373_v37, 16 }
 0x106   : > { %v990_v26 = vpop.f32.mrf.mxu0 }
 0x108   : > { %v886_v1 = vpop.f32.mrf.mxu3  ;;  %v636_v4 = vpop.f32.mrf.mxu1 }
 0x109   : > { %v916_v54 = vadd.f32 %v886_v1, %v834_v0  ;;  %1690 = vmatmul.msk.bf16.gmra.mxu2 %vm461_vm2, %v2206_v8  ;;  %v637_v33 = vadd.f32 %v636_v4, %v2262_v15  ;;  %v1215_v1 = vrot.slane %v1213_v3, 4  ;;  %v230_v4 = vld [vmem:[%s1904_s7 + $0x74] sm:$0x1] }
 0x10b   : > { %v2350_v13 = vadd.f32 %v990_v26, %v916_v54  ;;  %v1211_v26 = vrot.slane %v1209_v56, 5 }
 0x10c   : > { %v807_v17 = vpop.f32.mrf.mxu2 }
 0x10d   : > { %1704 = vmatmul.msk.bf16.gmra.mxu3 %vm461_vm2, %v2004_v40  ;;  %v835_v35 = vadd.f32 %v807_v17, %v635_v28 }
 0x10e   : > { %v993_v21 = vpop.f32.mrf.mxu0 }
 0x110   : > { %v889_v6 = vpop.f32.mrf.mxu3  ;;  %v639_v7 = vpop.f32.mrf.mxu1 }
 0x111   : > { %1719 = vmatmul.msk.bf16.gmra.mxu0 %vm461_vm2, %v2228_v25  ;;  %v917_v45 = vadd.f32 %v889_v6, %v835_v35  ;;  %v640_v42 = vadd.f32 %v639_v7, %v2281_v30  ;;  %v1219_v6 = vshll.u32 %v230_v4, 16 }
 0x113   : > { %1673 = vmatmul.msk.bf16.gmra.mxu1 %vm461_vm2, %v2228_v25  ;;  %v2359_v8 = vadd.f32 %v993_v21, %v917_v45  ;;  %v1216_v21 = vor.u32 %v1215_v1, %v1211_v26 }
 0x114   : > { %v809_v34 = vpop.f32.mrf.mxu2 }
 0x115   : > { %v836_v36 = vadd.f32 %v809_v34, %v637_v33 }
 0x116   : > { %v995_v40 = vpop.f32.mrf.mxu0 }
 0x118   : > { %v891_v39 = vpop.f32.mrf.mxu3  ;;  %v641_v23 = vpop.f32.mrf.mxu1 }
 0x119   : > { %v918_v16 = vadd.f32 %v891_v39, %v836_v36  ;;  %1691 = vmatmul.msk.bf16.gmra.mxu2 %vm461_vm2, %v2242_v32  ;;  %v1035_v32 = vrot.slane %v2247_v47, 5  ;;  %v642_v12 = vadd.f32 %v641_v23, %v2293_v29  ;;  %v1217_v23 = vrot.slane %v1216_v21, 4 }
 0x11b   : > { %v2364_v43 = vadd.f32 %v995_v40, %v918_v16  ;;  %v1036_v0 = vsel %vm2093_vm6, %v1034_v41, %v1035_v32  ;;  %v1221_v16 = vrot.slane %v1219_v6, 5 }
 0x11c   : > { %v812_v15 = vpop.f32.mrf.mxu2  ;;  %v1041_v17 = vunpack.c.l.b16 %v1036_v0 }
 0x11d   : > { %1705 = vmatmul.msk.bf16.gmra.mxu3 %vm461_vm2, %v2088_v51  ;;  %v837_v25 = vadd.f32 %v812_v15, %v640_v42  ;;  %v1203_v51 = vshll.u32 %v2370_v44, 16 }
 0x11e   : > { %v998_v46 = vpop.f32.mrf.mxu0 }
 0x11f   : > { %v1205_v63 = vrot.slane %v1203_v51, 5 }
 0x120   : > { %v894_v55 = vpop.f32.mrf.mxu3  ;;  %v644_v11 = vpop.f32.mrf.mxu1 }
 0x121   : > { %1720 = vmatmul.msk.bf16.gmra.mxu0 %vm461_vm2, %v2266_v48  ;;  %v919_v30 = vadd.f32 %v894_v55, %v837_v25  ;;  %v1206_v35 = vor.u32 %v1205_v63, %v1202_v49  ;;  %v645_v7 = vadd.f32 %v644_v11, %v2249_v52  ;;  %v1309_v55 = vrot.slane %v230_v4, 5 }
 0x123   : > { %1674 = vmatmul.msk.bf16.gmra.mxu1 %vm461_vm2, %v2266_v48  ;;  %v2386_v47 = vadd.f32 %v998_v46, %v919_v30  ;;  %v1040_v48 = vunpack.c.l.b16 %v1033_v24  ;;  %v1207_v40 = vrot.slane %v1206_v35, 4  ;;  %v1708_v46 = vrot.slane %v2370_v44, 9 }
 0x124   : > { %v814_v22 = vpop.f32.mrf.mxu2 }
 0x125   : > { %v838_v58 = vadd.f32 %v814_v22, %v642_v12  ;;  %v1042_v34 = vpack.c.b16 %v1041_v17, %v1040_v48  ;;  %v1212_v25 = vsel %vm1942_vm3, %v1207_v40, %v1211_v26 }
 0x126   : > { %v1000_v9 = vpop.f32.mrf.mxu0  ;;  %v1226_v51 = vunpack.c.l.b16 %v1212_v25 }
 0x128   : > { %v896_v29 = vpop.f32.mrf.mxu3  ;;  %v646_v54 = vpop.f32.mrf.mxu1 }
 0x129   : > { %v920_v28 = vadd.f32 %v896_v29, %v838_v58  ;;  %1692 = vmatmul.msk.bf16.gmra.mxu2 %vm461_vm2, %v2279_v10  ;;  %v1306_v10 = vrot.slane %v2373_v37, 5  ;;  %v647_v11 = vadd.f32 %v646_v54, %v2268_v2 }
 0x12b   : > { %v2396_v45 = vadd.f32 %v1000_v9, %v920_v28  ;;  %v1308_v20 = vrot.slane %v1306_v10, 4  ;;  %v1307_v31 = vsel %vm2093_vm6, %v1708_v46, %v1306_v10 }
 0x12c   : > { %v817_v33 = vpop.f32.mrf.mxu2  ;;  %v1314_v22 = vunpack.c.l.b16 %v1307_v31 }
 0x12d   : > { %1706 = vmatmul.msk.bf16.gmra.mxu3 %vm461_vm2, %v2285_v19  ;;  %v839_v36 = vadd.f32 %v817_v33, %v645_v7  ;;  %v1222_v19 = vsel %vm1942_vm3, %v1217_v23, %v1221_v16  ;;  %v1310_v44 = vsel %vm2093_vm6, %v1308_v20, %v1309_v55  ;;  %v2433_v23 = vld [vmem:[%s2520_s2] ss:$0 sm:$0xff] }
 0x12e   : > { %v1003_v39 = vpop.f32.mrf.mxu0  ;;  %v1227_v61 = vunpack.c.l.b16 %v1222_v19  ;;  %v1315_v58 = vunpack.c.l.b16 %v1310_v44 }
 0x130   : > { %v899_v42 = vpop.f32.mrf.mxu3  ;;  %v649_v15 = vpop.f32.mrf.mxu1  ;;  %v1228_v2 = vpack.c.b16 %v1227_v61, %v1226_v51  ;;  %v1316_v24 = vpack.c.b16 %v1315_v58, %v1314_v22 }
 0x131   : > { %1721 = vmatmul.msk.bf16.gmra.mxu0 %vm461_vm2, %v1042_v34  ;;  %v921_v52 = vadd.f32 %v899_v42, %v839_v36  ;;  %v650_v49 = vadd.f32 %v649_v15, %v2287_v5 }
 0x133   : > { %1675 = vmatmul.msk.bf16.gmra.mxu1 %vm461_vm2, %v1042_v34  ;;  %v2409_v37 = vadd.f32 %v1003_v39, %v921_v52 }
 0x134   : > { %v819_v32 = vpop.f32.mrf.mxu2 }
 0x135   : > { %v840_v30 = vadd.f32 %v819_v32, %v647_v11 }
 0x136   : > { %v1005_v41 = vpop.f32.mrf.mxu0 }
 0x138   : > { %v901_v56 = vpop.f32.mrf.mxu3  ;;  %v651_v3 = vpop.f32.mrf.mxu1 }
 0x139   : > { %v922_v12 = vadd.f32 %v901_v56, %v840_v30  ;;  %1693 = vmatmul.msk.bf16.gmra.mxu2 %vm461_vm2, %v1735_v18  ;;  %v652_v29 = vadd.f32 %v651_v3, %v2295_v62 }
 0x13b   : > { %v2418_v63 = vadd.f32 %v1005_v41, %v922_v12 }
 0x13c   : > { %v822_v9 = vpop.f32.mrf.mxu2 }
 0x13d   : > { %1707 = vmatmul.msk.bf16.gmra.mxu3 %vm461_vm2, %v1228_v2  ;;  %v841_v0 = vadd.f32 %v822_v9, %v650_v49 }
 0x13e   : > { %v1008_v53 = vpop.f32.mrf.mxu0 }
 0x140   : > { %v904_v26 = vpop.f32.mrf.mxu3  ;;  %v1061_v1 = vpop.f32.mrf.mxu1 }
 0x141   : > { %1722 = vmatmul.msk.bf16.gmra.mxu0 %vm461_vm2, %v1316_v24  ;;  %v923_v4 = vadd.f32 %v904_v26, %v841_v0  ;;  %v1101_v6 = vadd.f32 %v1061_v1, %v2305_v57 }
 0x143   : > { %v2424_v54 = vadd.f32 %v1008_v53, %v923_v4 }
 0x144   : > { %v824_v5 = vpop.f32.mrf.mxu2 }
 0x145   : > { %v842_v28 = vadd.f32 %v824_v5, %v652_v29 }
 0x146   : > { %v1010_v48 = vpop.f32.mrf.mxu0 }
 0x148   : > { %v906_v17 = vpop.f32.mrf.mxu3  ;;  %v1063_v35 = vpop.f32.mrf.mxu1 }
 0x149   : > { %v924_v21 = vadd.f32 %v906_v17, %v842_v28  ;;  %v1102_v57 = vadd.f32 %v1063_v35, %v2309_v60 }
 0x14b   : > { %v2427_v7 = vadd.f32 %v1010_v48, %v924_v21 }
 0x14c   : > { %v1143_v33 = vpop.f32.mrf.mxu2 }
 0x14d   : > { %v1183_v34 = vadd.f32 %v1143_v33, %v1101_v6 }
 0x14e   : > { %v1335_v36 = vpop.f32.mrf.mxu0 }
 0x150   : > { %v1247_v62 = vpop.f32.mrf.mxu3  ;;  %v1066_v40 = vpop.f32.mrf.mxu1 }
 0x151   : > { %v1287_v39 = vadd.f32 %v1247_v62, %v1183_v34  ;;  %v1103_v55 = vadd.f32 %v1066_v40, %v2318_v27 }
 0x153   : > { %v1375_v16 = vadd.f32 %v1335_v36, %v1287_v39 }
 0x154   : > { %v1145_v10 = vpop.f32.mrf.mxu2 }
 0x155   : > { %v1395_v42 = vadd.f32 %v2433_v23, %v1375_v16  ;;  %v1184_v15 = vadd.f32 %v1145_v10, %v1102_v57 }
 0x156   : > { %v1337_v52 = vpop.f32.mrf.mxu0 }
 0x157   : > { %v1411_v25 = vpack.c.bf16 %v1395_v42, %v1395_v42 }
 0x158   : > { %v1249_v19 = vpop.f32.mrf.mxu3  ;;  %v1068_v46 = vpop.f32.mrf.mxu1 }
 0x159   : > { %1428 = vst.msk [vmem:[%s2440_s30] sm:$0xf] %vm1427_vm7, %v1411_v25  ;;  %v1288_v20 = vadd.f32 %v1249_v19, %v1184_v15  ;;  %v1104_v56 = vadd.f32 %v1068_v46, %v2323_v38 }
 0x15b   : > { %v1376_v60 = vadd.f32 %v1337_v52, %v1288_v20 }
 0x15c   : > { %v1148_v11 = vpop.f32.mrf.mxu2 }
 0x15d   : > { %v1396_v32 = vadd.f32 %v2433_v23, %v1376_v60  ;;  %v1185_v30 = vadd.f32 %v1148_v11, %v1103_v55 }
 0x15e   : > { %v1340_v18 = vpop.f32.mrf.mxu0 }
 0x15f   : > { %v1412_v51 = vpack.c.bf16 %v1396_v32, %v1396_v32 }
 0x160   : > { %v1252_v61 = vpop.f32.mrf.mxu3  ;;  %v1071_v41 = vpop.f32.mrf.mxu1 }
 0x161   : > { %1429 = vst.msk [vmem:[%s2440_s30 + $0x4] sm:$0xf] %vm1427_vm7, %v1412_v51  ;;  %v1289_v31 = vadd.f32 %v1252_v61, %v1185_v30  ;;  %v1105_v0 = vadd.f32 %v1071_v41, %v2332_v50 }
 0x163   : > { %v1377_v44 = vadd.f32 %v1340_v18, %v1289_v31 }
 0x164   : > { %v1150_v3 = vpop.f32.mrf.mxu2 }
 0x165   : > { %v1397_v12 = vadd.f32 %v2433_v23, %v1377_v44  ;;  %v1186_v2 = vadd.f32 %v1150_v3, %v1104_v56 }
 0x166   : > { %v1342_v27 = vpop.f32.mrf.mxu0 }
 0x167   : > { %v1413_v22 = vpack.c.bf16 %v1397_v12, %v1397_v12 }
 0x168   : > { %v1254_v58 = vpop.f32.mrf.mxu3  ;;  %v1073_v49 = vpop.f32.mrf.mxu1 }
 0x169   : > { %1430 = vst.msk [vmem:[%s2440_s30 + $0x8] sm:$0xf] %vm1427_vm7, %v1413_v22  ;;  %v1290_v9 = vadd.f32 %v1254_v58, %v1186_v2  ;;  %v1106_v17 = vadd.f32 %v1073_v49, %v2337_v14 }
 0x16b   : > { %v1378_v24 = vadd.f32 %v1342_v27, %v1290_v9 }
 0x16c   : > { %v1153_v53 = vpop.f32.mrf.mxu2 }
 0x16d   : > { %v1398_v26 = vadd.f32 %v2433_v23, %v1378_v24  ;;  %v1187_v1 = vadd.f32 %v1153_v53, %v1105_v0 }
 0x16e   : > { %v1345_v38 = vpop.f32.mrf.mxu0 }
 0x16f   : > { %v1414_v4 = vpack.c.bf16 %v1398_v26, %v1398_v26 }
 0x170   : > { %v1257_v29 = vpop.f32.mrf.mxu3  ;;  %v1076_v5 = vpop.f32.mrf.mxu1 }
 0x171   : > { %1431 = vst.msk [vmem:[%s2440_s30 + $0xc] sm:$0xf] %vm1427_vm7, %v1414_v4  ;;  %v1291_v28 = vadd.f32 %v1257_v29, %v1187_v1  ;;  %v1107_v39 = vadd.f32 %v1076_v5, %v2345_v59 }
 0x173   : > { %v1379_v48 = vadd.f32 %v1345_v38, %v1291_v28 }
 0x174   : > { %v1155_v35 = vpop.f32.mrf.mxu2 }
 0x175   : > { %v1399_v21 = vadd.f32 %v2433_v23, %v1379_v48  ;;  %v1188_v6 = vadd.f32 %v1155_v35, %v1106_v17 }
 0x176   : > { %v1347_v50 = vpop.f32.mrf.mxu0 }
 0x177   : > { %v1415_v33 = vpack.c.bf16 %v1399_v21, %v1399_v21 }
 0x178   : > { %v1259_v34 = vpop.f32.mrf.mxu3  ;;  %v1078_v36 = vpop.f32.mrf.mxu1 }
 0x179   : > { %1432 = vst.msk [vmem:[%s2440_s30 + $0x10] sm:$0xf] %vm1427_vm7, %v1415_v33  ;;  %v1292_v62 = vadd.f32 %v1259_v34, %v1188_v6  ;;  %v1108_v46 = vadd.f32 %v1078_v36, %v2350_v13 }
 0x17b   : > { %v1380_v40 = vadd.f32 %v1347_v50, %v1292_v62 }
 0x17c   : > { %v1158_v16 = vpop.f32.mrf.mxu2 }
 0x17d   : > { %v1400_v57 = vadd.f32 %v2433_v23, %v1380_v40  ;;  %v1189_v10 = vadd.f32 %v1158_v16, %v1107_v39 }
 0x17e   : > { %v1350_v14 = vpop.f32.mrf.mxu0 }
 0x17f   : > { %v1416_v42 = vpack.c.bf16 %v1400_v57, %v1400_v57 }
 0x180   : > { %v1262_v15 = vpop.f32.mrf.mxu3  ;;  %v1081_v52 = vpop.f32.mrf.mxu1 }
 0x181   : > { %1433 = vst.msk [vmem:[%s2440_s30 + $0x14] sm:$0xf] %vm1427_vm7, %v1416_v42  ;;  %v1293_v25 = vadd.f32 %v1262_v15, %v1189_v10  ;;  %v1109_v61 = vadd.f32 %v1081_v52, %v2359_v8 }
 0x183   : > { %v1381_v19 = vadd.f32 %v1350_v14, %v1293_v25 }
 0x184   : > { %v1160_v20 = vpop.f32.mrf.mxu2 }
 0x185   : > { %v1401_v60 = vadd.f32 %v2433_v23, %v1381_v19  ;;  %v1190_v55 = vadd.f32 %v1160_v20, %v1108_v46 }
 0x186   : > { %v1352_v59 = vpop.f32.mrf.mxu0 }
 0x187   : > { %v1417_v11 = vpack.c.bf16 %v1401_v60, %v1401_v60 }
 0x188   : > { %v1264_v32 = vpop.f32.mrf.mxu3  ;;  %v1083_v30 = vpop.f32.mrf.mxu1 }
 0x189   : > { %1434 = vst.msk [vmem:[%s2440_s30 + $0x18] sm:$0xf] %vm1427_vm7, %v1417_v11  ;;  %v1294_v18 = vadd.f32 %v1264_v32, %v1190_v55  ;;  %v1110_v22 = vadd.f32 %v1083_v30, %v2364_v43 }
 0x18b   : > { %v1382_v51 = vadd.f32 %v1352_v59, %v1294_v18 }
 0x18c   : > { %v1163_v41 = vpop.f32.mrf.mxu2 }
 0x18d   : > { %v1402_v31 = vadd.f32 %v2433_v23, %v1382_v51  ;;  %v1191_v44 = vadd.f32 %v1163_v41, %v1109_v61 }
 0x18e   : > { %v1355_v13 = vpop.f32.mrf.mxu0 }
 0x18f   : > { %v1418_v56 = vpack.c.bf16 %v1402_v31, %v1402_v31 }
 0x190   : > { %v1267_v3 = vpop.f32.mrf.mxu3  ;;  %v1086_v12 = vpop.f32.mrf.mxu1 }
 0x191   : > { %1435 = vst.msk [vmem:[%s2440_s30 + $0x1c] sm:$0xf] %vm1427_vm7, %v1418_v56  ;;  %v1295_v2 = vadd.f32 %v1267_v3, %v1191_v44  ;;  %v1111_v38 = vadd.f32 %v1086_v12, %v2386_v47 }
 0x193   : > { %v1383_v27 = vadd.f32 %v1355_v13, %v1295_v2 }
 0x194   : > { %v1165_v58 = vpop.f32.mrf.mxu2 }
 0x195   : > { %v1403_v49 = vadd.f32 %v2433_v23, %v1383_v27  ;;  %v1192_v8 = vadd.f32 %v1165_v58, %v1110_v22 }
 0x196   : > { %v1357_v9 = vpop.f32.mrf.mxu0 }
 0x197   : > { %v1419_v24 = vpack.c.bf16 %v1403_v49, %v1403_v49 }
 0x198   : > { %v1269_v0 = vpop.f32.mrf.mxu3  ;;  %v1088_v53 = vpop.f32.mrf.mxu1 }
 0x199   : > { %1436 = vst.msk [vmem:[%s2440_s30 + $0x20] sm:$0xf] %vm1427_vm7, %v1419_v24  ;;  %v1296_v26 = vadd.f32 %v1269_v0, %v1192_v8  ;;  %v1112_v6 = vadd.f32 %v1088_v53, %v2396_v45 }
 0x19b   : > { %v1384_v1 = vadd.f32 %v1357_v9, %v1296_v26 }
 0x19c   : > { %v1168_v4 = vpop.f32.mrf.mxu2 }
 0x19d   : > { %v1404_v29 = vadd.f32 %v2433_v23, %v1384_v1  ;;  %v1193_v43 = vadd.f32 %v1168_v4, %v1111_v38 }
 0x19e   : > { %v1360_v5 = vpop.f32.mrf.mxu0 }
 0x19f   : > { %v1420_v28 = vpack.c.bf16 %v1404_v29, %v1404_v29 }
 0x1a0   : > { %v1272_v48 = vpop.f32.mrf.mxu3  ;;  %v1091_v35 = vpop.f32.mrf.mxu1 }
 0x1a1   : > { %1437 = vst.msk [vmem:[%s2440_s30 + $0x24] sm:$0xf] %vm1427_vm7, %v1420_v28  ;;  %v1297_v17 = vadd.f32 %v1272_v48, %v1193_v43  ;;  %v1113_v16 = vadd.f32 %v1091_v35, %v2409_v37 }
 0x1a3   : > { %v1385_v21 = vadd.f32 %v1360_v5, %v1297_v17 }
 0x1a4   : > { %v1170_v50 = vpop.f32.mrf.mxu2 }
 0x1a5   : > { %v1405_v33 = vadd.f32 %v2433_v23, %v1385_v21  ;;  %v1194_v47 = vadd.f32 %v1170_v50, %v1112_v6 }
 0x1a6   : > { %v1362_v34 = vpop.f32.mrf.mxu0 }
 0x1a7   : > { %v1421_v36 = vpack.c.bf16 %v1405_v33, %v1405_v33 }
 0x1a8   : > { %v1274_v62 = vpop.f32.mrf.mxu3  ;;  %v1093_v57 = vpop.f32.mrf.mxu1 }
 0x1a9   : > { %1438 = vst.msk [vmem:[%s2440_s30 + $0x28] sm:$0xf] %vm1427_vm7, %v1421_v36  ;;  %v1298_v40 = vadd.f32 %v1274_v62, %v1194_v47  ;;  %v1114_v46 = vadd.f32 %v1093_v57, %v2418_v63 }
 0x1ab   : > { %v1386_v39 = vadd.f32 %v1362_v34, %v1298_v40 }
 0x1ac   : > { %v1173_v10 = vpop.f32.mrf.mxu2 }
 0x1ad   : > { %v1406_v14 = vadd.f32 %v2433_v23, %v1386_v39  ;;  %v1195_v45 = vadd.f32 %v1173_v10, %v1113_v16 }
 0x1ae   : > { %v1365_v42 = vpop.f32.mrf.mxu0 }
 0x1af   : > { %v1422_v15 = vpack.c.bf16 %v1406_v14, %v1406_v14 }
 0x1b0   : > { %v1277_v52 = vpop.f32.mrf.mxu3  ;;  %v1096_v37 = vpop.f32.mrf.mxu1 }
 0x1b1   : > { %1439 = vst.msk [vmem:[%s2440_s30 + $0x2c] sm:$0xf] %vm1427_vm7, %v1422_v15  ;;  %v1299_v25 = vadd.f32 %v1277_v52, %v1195_v45  ;;  %v1115_v51 = vadd.f32 %v1096_v37, %v2424_v54 }
 0x1b3   : > { %v1387_v19 = vadd.f32 %v1365_v42, %v1299_v25 }
 0x1b4   : > { %v1175_v20 = vpop.f32.mrf.mxu2 }
 0x1b5   : > { %v1407_v60 = vadd.f32 %v2433_v23, %v1387_v19  ;;  %v1196_v55 = vadd.f32 %v1175_v20, %v1114_v46 }
 0x1b6   : > { %v1367_v59 = vpop.f32.mrf.mxu0 }
 0x1b7   : > { %v1423_v11 = vpack.c.bf16 %v1407_v60, %v1407_v60 }
 0x1b8   : > { %v1279_v32 = vpop.f32.mrf.mxu3  ;;  %v1098_v44 = vpop.f32.mrf.mxu1 }
 0x1b9   : > { %1440 = vst.msk [vmem:[%s2440_s30 + $0x30] sm:$0xf] %vm1427_vm7, %v1423_v11  ;;  %v1300_v30 = vadd.f32 %v1279_v32, %v1196_v55  ;;  %v1116_v2 = vadd.f32 %v1098_v44, %v2427_v7 }
 0x1bb   : > { %v1388_v18 = vadd.f32 %v1367_v59, %v1300_v30 }
 0x1bc   : > { %v1178_v61 = vpop.f32.mrf.mxu2 }
 0x1bd   : > { %v1408_v41 = vadd.f32 %v2433_v23, %v1388_v18  ;;  %v1197_v63 = vadd.f32 %v1178_v61, %v1115_v51 }
 0x1be   : > { %v1370_v13 = vpop.f32.mrf.mxu0 }
 0x1bf   : > { %v1424_v31 = vpack.c.bf16 %v1408_v41, %v1408_v41 }
 0x1c0   : > { %v1282_v56 = vpop.f32.mrf.mxu3 }
 0x1c1   : > { %1441 = vst.msk [vmem:[%s2440_s30 + $0x34] sm:$0xf] %vm1427_vm7, %v1424_v31  ;;  %v1301_v3 = vadd.f32 %v1282_v56, %v1197_v63 }
 0x1c3   : > { %v1389_v12 = vadd.f32 %v1370_v13, %v1301_v3 }
 0x1c4   : > { %v1180_v27 = vpop.f32.mrf.mxu2 }
 0x1c5   : > { %v1409_v22 = vadd.f32 %v2433_v23, %v1389_v12  ;;  %v1198_v54 = vadd.f32 %v1180_v27, %v1116_v2 }
 0x1c6   : > { %v1372_v9 = vpop.f32.mrf.mxu0 }
 0x1c7   : > { %v1425_v58 = vpack.c.bf16 %v1409_v22, %v1409_v22 }
 0x1c8   : > { %v1284_v49 = vpop.f32.mrf.mxu3 }
 0x1c9   : > { %1442 = vst.msk [vmem:[%s2440_s30 + $0x38] sm:$0xf] %vm1427_vm7, %v1425_v58  ;;  %v1302_v8 = vadd.f32 %v1284_v49, %v1198_v54 }
 0x1cb   : > { %v1390_v24 = vadd.f32 %v1372_v9, %v1302_v8 }
 0x1cd   : > { %v1410_v0 = vadd.f32 %v2433_v23, %v1390_v24 }
 0x1cf   : > { %v1426_v53 = vpack.c.bf16 %v1410_v0, %v1410_v0 }
 0x1d1   : > { %1443 = vst.msk [vmem:[%s2440_s30 + $0x3c] sm:$0xf] %vm1427_vm7, %v1426_v53 }
 0x1d2 PF: > { %s13_s16 = sadd.s32 1, %s1828_s16   ;;  %s2526_s12 = smov %s1820_s14 }
 0x1d3   : > { %p10_p7 = scmp.ge.s32.totalorder %s13_s16, 6   ;;  %s2527_s13 = smov %s1824_s15 }
 0x1d4   : > { %s2528_s14 = smov %s2531_s17  ;;  %s2529_s15 = smov %s2535_s18 }
 0x1d5   :  { %12 = sbr.rel (!%p10_p7) target bundleno = 3 (0x3), region = 71 }

// kernel: basic_rfb_forward.15
= control target key start
LH: loop header
LB: loop body
LE: loop exit
PB: predicated region body
PF: predicated region fallthrough
CT: control target
= control target key end

     0   :  { %s2064_s0 = inlined_call_operand.vmem [shape: bf16[2,16,16,16], index: 0, kind: input, shape index: {}]   ;;  %s2065_s1 = inlined_call_operand.vmem [shape: bf16[2,16,16,16], index: 1, kind: input, shape index: {}]   ;;  %s2066_s2 = inlined_call_operand.vmem [shape: bf16[2,16,16,16], index: 2, kind: input, shape index: {}]   ;;  %s2067_s3 = inlined_call_operand.vmem [shape: f32[2,16,16,64], index: 3, kind: input, shape index: {}]   ;;  %s2068_s4 = inlined_call_operand.vmem [shape: bf16[16,64], index: 4, kind: input, shape index: {}]   ;;  %s2069_s5 = inlined_call_operand.vmem [shape: bf16[16,64], index: 5, kind: input, shape index: {}]   ;;  %s2070_s6 = inlined_call_operand.vmem [shape: bf16[16,64], index: 6, kind: input, shape index: {}]   ;;  %s2071_s7 = inlined_call_operand.vmem [shape: bf16[64,64], index: 7, kind: input, shape index: {}]   ;;  %s2072_s8 = inlined_call_operand.vmem [shape: f32[1,64], index: 8, kind: input, shape index: {}]   ;;  %s2073_s9 = inlined_call_operand.vmem [shape: f32[1,64], index: 9, kind: input, shape index: {}]   ;;  %s2074_s10 = inlined_call_operand.hbm [shape: f32[2,16,16,64], index: 10, kind: output, shape index: {}]  }
   0x1   :  { %2079 = sst [smem:[#allocation9_spill]] %s2068_s4 }
   0x2   :  { %2080 = sst [smem:[#allocation10_spill]] %s2069_s5 }
   0x3   :  { %2081 = sst [smem:[#allocation11_spill]] %s2070_s6 }
   0x4   :  { %15 = vsyncpa [#allocation3], 0 }
   0x5   :  { %17 = vsyncpa [#allocation3 + $0x1], 0  ;;  %s1752_s13 = smov 0   ;;  %s1754_s14 = smov 0  }
   0x6   :  { %s1756_s15 = smov 0   ;;  %s1758_s16 = smov 0  }
   0x7   :  { %s1760_s17 = smov 0   ;;  %s1762_s18 = smov 0  }
   0x8   :  { %s1764_s19 = smov 0   ;;  %s1766_s20 = smov 0  }
   0x9 LB: > { %2082 = sst [smem:[#allocation5_spill]] %s1685_s18  ;;  %s1307_s21 = sadd.s32 4294967295, %s1693_s20   ;;  %s1693_s20 = sphi %s1766_s20, %s23_s20   ;;  %s1689_s19 = sphi %s1764_s19, %s2094_s19   ;;  %s1685_s18 = sphi %s1762_s18, %s2093_s18   ;;  %s1681_s17 = sphi %s1760_s17, %s2092_s17   ;;  %s1677_s16 = sphi %s1758_s16, %s2091_s16   ;;  %s1673_s15 = sphi %s1756_s15, %s2097_s15   ;;  %s1669_s14 = sphi %s1754_s14, %s2096_s14   ;;  %s1665_s13 = sphi %s1752_s13, %s2095_s13  }
   0xa   : > { %2083 = sst [smem:[#allocation6_spill]] %s1689_s19  ;;  %s1308_s22 = sadd.s32 4294967294, %s1693_s20  }
   0xb   : > { %s32_s23 = sadd.s32 1, %s1685_s18  ;;  %s35_s24 = sadd.s32 1, %s1689_s19 }
   0xc   : > { %p33_p0 = scmp.ge.s32.totalorder %s32_s23, 2  ;;  %p292_p1 = scmp.ne.s32.totalorder %s1673_s15, %s1669_s14 }
   0xd   : > { %p293_p2 = scmp.eq.s32.totalorder %s1307_s21, 3  ;;  %p298_p5 = scmp.ne.s32.totalorder %s1669_s14, %s1665_s13 }
   0xe   : > { %s2099_s23 = smov (%p33_p0, %s32_s23), 0  ;;  %s2101_s24 = smov (!%p33_p0, %s35_s24), %s1689_s19 }
   0xf   : > { %2084 = sst [smem:[#allocation7_spill]] %s2099_s23  ;;  %s278_s25 = ssub.s32 %s1685_s18, %s2099_s23 }
  0x10   : > { %p1803_p3 = por %p293_p2, %p292_p1  ;;  %p37_p4 = scmp.ge.s32.totalorder %s2101_s24, 2 }
  0x11   : > { %p299_p6 = scmp.eq.s32.totalorder %s1308_s22, 3  ;;  %p1311_p7 = scmp.ge.s32.totalorder %s1693_s20, 1 }
  0x12   : > { %s2103_s24 = smov (%p37_p4, %s2101_s24), 0  ;;  %p391_p9 = scmp.lt.s32.totalorder %s1693_s20, 5 }
  0x13   : > { %2086 = sst [smem:[#allocation8_spill]] %s2103_s24  ;;  %p1812_p8 = por %p299_p6, %p298_p5 }
  0x14   : > { %s277_s28 = ssub.s32 %s1689_s19, %s2103_s24  ;;  %s282_s29 = sadd.s32 1, %s1673_s15 }
  0x15   : > { %s279_s30 = sor.u32 %s278_s25, %s277_s28  ;;  %p392_p10 = pnand %p1311_p7, %p391_p9 }
  0x16   : > { %p280_p11 = scmp.eq.s32.totalorder %s279_s30, 0  ;;  %s2088_s5 = sld [smem:[#allocation10_spill]] (!%p392_p10) }
  0x17   : > { %395 = sbr.rel (%p392_p10) target bundleno = 306 (0x132), region = 60  ;;  %s1313_s18 = sshll.u32 (!%p392_p10), %s1677_s16, 3 }
  0x18   : > { %s1821_s11 = scalar_select %p280_p11, %s1673_s15, %s282_s29  }
  0x19   : > { %p465_p12 = scmp.lt.s32.totalorder (!%p392_p10), %s1681_s17, 1  ;;  %s2089_s4 = sld [smem:[#allocation9_spill]] (!%p392_p10) }
  0x1a   : > { %s2090_s6 = sld [smem:[#allocation11_spill]] (!%p392_p10)  ;;  %p467_p13 = scmp.lt.s32.totalorder (!%p392_p10), %s1313_s18, 15 }
  0x1b   : > { %s461_s12 = sand.u32 (!%p392_p10), 1, %s1669_s14  }
  0x1c   : > { %v1522_v0 = vld [vmem:[%s2071_s7 + $0x18] sm:$0xff]  ;;  %v1509_v1 = vld [vmem:[%s2088_s5] sm:$0xff]  ;;  %v1521_v4 = vld [vmem:[%s2071_s7 + $0x10] sm:$0xff]  ;;  %s466_s21 = scalar_select %p465_p12, %s1681_s17, 1  ;;  %vm592_vm0 = vcmask 130048   ;;  %vm1018_vm1 = vcmask 523264  }
  0x1d   : > { %1047 = vmatpush.bf16.msra.mxu3 %v1522_v0  ;;  %624 = vmatpush.bf16.msra.mxu0 %v1509_v1  ;;  %s2105_s18 = smov (!%p467_p13, %s1313_s18), 15  ;;  %v1520_v5 = vld [vmem:[%s2071_s7 + $0x8] sm:$0xff]  ;;  %v1519_v8 = vld [vmem:[%s2071_s7] sm:$0xff] }
  0x1e   : > { %s1315_s23 = sshll.u32 %s466_s21, 5  ;;  %s1314_s22 = sshll.u32 %s2105_s18, 1  ;;  %v1942_v59 = vld [vmem:[%s2072_s8] ss:$0 sm:$0xff] }
  0x1f   : > { %v1500_v2 = vld [vmem:[%s2089_s4] sm:$0xff]  ;;  %s471_s28 = sadd.s32 %s1315_s23, %s1314_s22  ;;  %s1523_s23 = sshll.u32 %s1677_s16, 4 }
  0x20   : > { %v1518_v3 = vld [vmem:[%s2090_s6] sm:$0xff]  ;;  %743 = vmatpush.bf16.msra.mxu1 %v1500_v2  ;;  %s1316_s29 = sshll.u32 %s471_s28, 2  ;;  %s1328_s4 = sshll.u32 %s471_s28, 3 }
  0x21   : > { %880 = vmatpush.bf16.msra.mxu2 %v1518_v3  ;;  %1048 = vmatpush.bf16.msra.mxu3 %v1521_v4  ;;  %s1847_s30 = scalar_lea.vmem %s2065_s1, %s1316_s29  ;;  %s1852_s21 = scalar_lea.vmem %s2064_s0, %s1316_s29  ;;  %v1947_v63 = vld [vmem:[%s2073_s9] ss:$0 sm:$0xff] }
  0x22   : > { %v1501_v6 = vld [vmem:[%s1847_s30] sm:$0xff]  ;;  %s1859_s22 = scalar_lea.vmem %s2066_s2, %s1316_s29  ;;  %s1867_s25 = scalar_lea.vmem %s2067_s3, %s1328_s4  ;;  %v1502_v13 = vld [vmem:[%s1847_s30 + $0x8] sm:$0xff]  ;;  %v1503_v19 = vld [vmem:[%s1847_s30 + $0x10] sm:$0xff] }
  0x23   : > { %v1492_v7 = vld [vmem:[%s1852_s21] sm:$0xff]  ;;  %v959_v11 = vld [vmem:[%s1867_s25 + $0x8] sm:$0xff]  ;;  %1365 = vmatmul.msk.bf16.vlgmr.msra.gmra.mxu0 %vm592_vm0, %v1501_v6  ;;  %v960_v16 = vld [vmem:[%s1867_s25 + $0x10] sm:$0xff]  ;;  %s1141_s4 = scalar_lea.sflag [#allocation3], %s461_s12 }
  0x24   : > { %v1510_v9 = vld [vmem:[%s1859_s22] sm:$0xff]  ;;  %1409 = vmatmul.msk.bf16.vlgmr.msra.gmra.mxu1 %vm592_vm0, %v1492_v7  ;;  %v1493_v14 = vld [vmem:[%s1852_s21 + $0x8] sm:$0xff]  ;;  %v961_v17 = vld [vmem:[%s1867_s25 + $0x18] sm:$0xff] }
  0x25   : > { %1049 = vmatpush.bf16.msra.mxu3 %v1520_v5  ;;  %v958_v10 = vld [vmem:[%s1867_s25] sm:$0xff]  ;;  %1453 = vmatmul.msk.bf16.vlgmr.msra.gmra.mxu2 %vm592_vm0, %v1510_v9  ;;  %v1511_v15 = vld [vmem:[%s1859_s22 + $0x8] sm:$0xff]  ;;  %v975_v18 = vpack.c.bf16 %v961_v17, %v960_v16  ;;  %v1494_v20 = vld [vmem:[%s1852_s21 + $0x10] sm:$0xff] }
  0x26   : > { %v974_v12 = vpack.c.bf16 %v959_v11, %v958_v10  ;;  %v1512_v21 = vld [vmem:[%s1859_s22 + $0x10] sm:$0xff]  ;;  %v962_v22 = vld [vmem:[%s1867_s25 + $0x20] sm:$0xff]  ;;  %v963_v23 = vld [vmem:[%s1867_s25 + $0x28] sm:$0xff] }
  0x27   : > { %v976_v24 = vpack.c.bf16 %v963_v23, %v962_v22  ;;  %v1504_v25 = vld [vmem:[%s1847_s30 + $0x18] sm:$0xff]  ;;  %v964_v28 = vld [vmem:[%s1867_s25 + $0x30] sm:$0xff]  ;;  %v1505_v31 = vld [vmem:[%s1847_s30 + $0x20] sm:$0xff] }
  0x28   : > { %v1495_v26 = vld [vmem:[%s1852_s21 + $0x18] sm:$0xff]  ;;  %v1496_v32 = vld [vmem:[%s1852_s21 + $0x20] sm:$0xff]  ;;  %v967_v35 = vld [vmem:[%s1867_s25 + $0x48] sm:$0xff] }
  0x29   : > { %1050 = vmatpush.bf16.msra.mxu3 %v1519_v8  ;;  %v1513_v27 = vld [vmem:[%s1859_s22 + $0x18] sm:$0xff]  ;;  %v1514_v33 = vld [vmem:[%s1859_s22 + $0x20] sm:$0xff]  ;;  %v1506_v37 = vld [vmem:[%s1847_s30 + $0x28] sm:$0xff] }
  0x2a   : > { %v965_v29 = vld [vmem:[%s1867_s25 + $0x38] sm:$0xff]  ;;  %v966_v34 = vld [vmem:[%s1867_s25 + $0x40] sm:$0xff]  ;;  %v1497_v38 = vld [vmem:[%s1852_s21 + $0x28] sm:$0xff] }
  0x2b   : > { %v977_v30 = vpack.c.bf16 %v965_v29, %v964_v28  ;;  %v978_v36 = vpack.c.bf16 %v967_v35, %v966_v34  ;;  %v1515_v39 = vld [vmem:[%s1859_s22 + $0x28] sm:$0xff]  ;;  %v968_v40 = vld [vmem:[%s1867_s25 + $0x50] sm:$0xff]  ;;  %v969_v41 = vld [vmem:[%s1867_s25 + $0x58] sm:$0xff] }
  0x2c   : > { %1477 = vmatmul.msk.bf16.vlgmr.msra.gmra.mxu3 %vm1018_vm1, %v974_v12  ;;  %v979_v42 = vpack.c.bf16 %v969_v41, %v968_v40  ;;  %v1507_v43 = vld [vmem:[%s1847_s30 + $0x30] sm:$0xff]  ;;  %v970_v46 = vld [vmem:[%s1867_s25 + $0x60] sm:$0xff]  ;;  %v971_v47 = vld [vmem:[%s1867_s25 + $0x68] sm:$0xff] }
  0x2d   : > { %v1498_v44 = vld [vmem:[%s1852_s21 + $0x30] sm:$0xff]  ;;  %v980_v48 = vpack.c.bf16 %v971_v47, %v970_v46  ;;  %v1508_v49 = vld [vmem:[%s1847_s30 + $0x38] sm:$0xff] }
  0x2e   : > { %v1516_v45 = vld [vmem:[%s1859_s22 + $0x30] sm:$0xff]  ;;  %v1499_v50 = vld [vmem:[%s1852_s21 + $0x38] sm:$0xff]  ;;  %s1312_s21 = sshll.u32 %s461_s12, 7 }
  0x2f   : > { %v1517_v51 = vld [vmem:[%s1859_s22 + $0x38] sm:$0xff]  ;;  %v972_v52 = vld [vmem:[%s1867_s25 + $0x70] sm:$0xff]  ;;  %s1954_s18 = scalar_lea.vmem [#allocation2], %s1312_s21  ;;  %s1488_s22 = sshll.u32 %s1681_s17, 5 }
  0x30   : > { %v973_v53 = vld [vmem:[%s1867_s25 + $0x78] sm:$0xff]  ;;  %s1153_s5 = sadd.s32 %s1523_s23, %s1488_s22  ;;  %s1156_s19 = sshll.u32 %s1954_s18, 4  ;;  %s1157_s19 = int_to_ptr.vmem [resolvable:$true] %s1156_s19 }
  0x31   : > { %v981_v54 = vpack.c.bf16 %v973_v53, %v972_v52  ;;  %s1489_s6 = sshll.u32 %s1153_s5, 3  ;;  %s1619_s23 = scalar_lea.hbm %s2074_s10, 512 }
  0x32   : > { %s1155_s24 = scalar_lea.hbm %s2074_s10, %s1489_s6 }
  0x33   : > { %1366 = vmatmul.msk.bf16.gmra.mxu0 %vm592_vm0, %v1502_v13  ;;  %s1158_s25 = sshll.u32 %s1155_s24, 4  ;;  %s1159_s25 = int_to_ptr.hbm [resolvable:$true] %s1158_s25 }
  0x34   : > { %1410 = vmatmul.msk.bf16.gmra.mxu1 %vm592_vm0, %v1493_v14  ;;  %s1613_s28 = sshra.s32 %s1159_s25, 4  ;;  %s1614_s28 = int_to_ptr.hbm [resolvable:$true] %s1613_s28 }
  0x35   : > { %1454 = vmatmul.msk.bf16.gmra.mxu2 %vm592_vm0, %v1511_v15  ;;  %s1615_s29 = scalar_lea.hbm %s1614_s28, 128  ;;  %p1620_p4 = scmp.lt.s32.totalorder %s1614_s28, %s2074_s10 }
  0x36   : > { %p1616_p0 = scmp.ne.s32.totalorder %s1614_s28, %s1615_s29  ;;  %p1621_p5 = scmp.lt.s32.totalorder %s1619_s23, %s1615_s29 }
  0x38   : > { %p1617_p1 = pnand %p1616_p0, %p1803_p3  ;;  %p1622_p6 = por %p1621_p5, %p1620_p4 }
  0x3a   : > { %p1618_p2 = pneg %p1617_p1 }
  0x3c   : > { %1478 = vmatmul.msk.bf16.gmra.mxu3 %vm1018_vm1, %v975_v18  ;;  %p1623_p7 = pnand %p1622_p6, %p1618_p2 }
  0x43   : > { %1367 = vmatmul.msk.bf16.gmra.mxu0 %vm592_vm0, %v1503_v19 }
  0x44   : > { %1411 = vmatmul.msk.bf16.gmra.mxu1 %vm592_vm0, %v1494_v20 }
  0x45   : > { %1455 = vmatmul.msk.bf16.gmra.mxu2 %vm592_vm0, %v1512_v21 }
  0x4c   : > { %1479 = vmatmul.msk.bf16.gmra.mxu3 %vm1018_vm1, %v976_v24 }
  0x53   : > { %1368 = vmatmul.msk.bf16.gmra.mxu0 %vm592_vm0, %v1504_v25 }
  0x54   : > { %1412 = vmatmul.msk.bf16.gmra.mxu1 %vm592_vm0, %v1495_v26 }
  0x55   : > { %1456 = vmatmul.msk.bf16.gmra.mxu2 %vm592_vm0, %v1513_v27 }
  0x5c   : > { %1480 = vmatmul.msk.bf16.gmra.mxu3 %vm1018_vm1, %v977_v30 }
  0x63   : > { %1369 = vmatmul.msk.bf16.gmra.mxu0 %vm592_vm0, %v1505_v31 }
  0x64   : > { %1413 = vmatmul.msk.bf16.gmra.mxu1 %vm592_vm0, %v1496_v32 }
  0x65   : > { %1457 = vmatmul.msk.bf16.gmra.mxu2 %vm592_vm0, %v1514_v33 }
  0x6c   : > { %1481 = vmatmul.msk.bf16.gmra.mxu3 %vm1018_vm1, %v978_v36 }
  0x73   : > { %1370 = vmatmul.msk.bf16.gmra.mxu0 %vm592_vm0, %v1506_v37 }
  0x74   : > { %1414 = vmatmul.msk.bf16.gmra.mxu1 %vm592_vm0, %v1497_v38 }
  0x75   : > { %1458 = vmatmul.msk.bf16.gmra.mxu2 %vm592_vm0, %v1515_v39 }
  0x7c   : > { %1482 = vmatmul.msk.bf16.gmra.mxu3 %vm1018_vm1, %v979_v42 }
  0x83   : > { %1371 = vmatmul.msk.bf16.gmra.mxu0 %vm592_vm0, %v1507_v43 }
  0x84   : > { %1415 = vmatmul.msk.bf16.gmra.mxu1 %vm592_vm0, %v1498_v44 }
  0x85   : > { %1459 = vmatmul.msk.bf16.gmra.mxu2 %vm592_vm0, %v1516_v45 }
  0x8c   : > { %1483 = vmatmul.msk.bf16.gmra.mxu3 %vm1018_vm1, %v980_v48 }
  0x93   : > { %1372 = vmatmul.msk.bf16.gmra.mxu0 %vm592_vm0, %v1508_v49 }
  0x94   : > { %1416 = vmatmul.msk.bf16.gmra.mxu1 %vm592_vm0, %v1499_v50 }
  0x95   : > { %1460 = vmatmul.msk.bf16.gmra.mxu2 %vm592_vm0, %v1517_v51 }
  0x9c   : > { %1484 = vmatmul.msk.bf16.gmra.mxu3 %vm1018_vm1, %v981_v54 }
  0xa0   : > { %v626_v55 = vpop.f32.mrf.mxu0 }
  0xa1   : > { %v745_v56 = vpop.f32.mrf.mxu1 }
  0xa2   : > { %v746_v57 = vadd.f32 %v745_v56, %v626_v55 }
  0xa8   : > { %v882_v58 = vpop.f32.mrf.mxu2  ;;  %v628_v61 = vpop.f32.mrf.mxu0 }
  0xa9   : > { %v922_v60 = vadd.f32 %v882_v58, %v746_v57  ;;  %v747_v62 = vpop.f32.mrf.mxu1 }
  0xaa   : > { %v748_v3 = vadd.f32 %v747_v62, %v628_v61 }
  0xab   : > { %v942_v0 = vadd.f32 %v1942_v59, %v922_v60 }
  0xaf   : > { %v1052_v1 = vpop.f32.mrf.mxu3 }
  0xb0   : > { %v1053_v2 = vadd.f32 %v1947_v63, %v1052_v1  ;;  %v884_v5 = vpop.f32.mrf.mxu2  ;;  %v631_v6 = vpop.f32.mrf.mxu0 }
  0xb1   : > { %v750_v7 = vpop.f32.mrf.mxu1  ;;  %v923_v9 = vadd.f32 %v884_v5, %v748_v3 }
  0xb2   : > { %v1092_v4 = vadd.f32 %v1053_v2, %v942_v0  ;;  %v751_v10 = vadd.f32 %v750_v7, %v631_v6 }
  0xb3   : > { %v943_v12 = vadd.f32 %v1942_v59, %v923_v9 }
  0xb4   : > { %v1108_v8 = vmax.f32 %v1092_v4, 0.0 }
  0xb6   : > { %1124 = vst.msk [vmem:[%s1954_s18] sm:$0xff] %vm1018_vm1, %v1108_v8 }
  0xb7   : > { %v1054_v11 = vpop.f32.mrf.mxu3 }
  0xb8   : > { %v1055_v13 = vadd.f32 %v1947_v63, %v1054_v11  ;;  %v887_v15 = vpop.f32.mrf.mxu2  ;;  %v633_v17 = vpop.f32.mrf.mxu0 }
  0xb9   : > { %v924_v16 = vadd.f32 %v887_v15, %v751_v10  ;;  %v752_v18 = vpop.f32.mrf.mxu1 }
  0xba   : > { %v1093_v14 = vadd.f32 %v1055_v13, %v943_v12  ;;  %v753_v23 = vadd.f32 %v752_v18, %v633_v17 }
  0xbb   : > { %v944_v20 = vadd.f32 %v1942_v59, %v924_v16 }
  0xbc   : > { %v1109_v19 = vmax.f32 %v1093_v14, 0.0 }
  0xbe   : > { %1125 = vst.msk [vmem:[%s1954_s18 + $0x8] sm:$0xff] %vm1018_vm1, %v1109_v19 }
  0xbf   : > { %v1057_v21 = vpop.f32.mrf.mxu3 }
  0xc0   : > { %v1058_v22 = vadd.f32 %v1947_v63, %v1057_v21  ;;  %v889_v25 = vpop.f32.mrf.mxu2  ;;  %v636_v26 = vpop.f32.mrf.mxu0 }
  0xc1   : > { %v755_v27 = vpop.f32.mrf.mxu1  ;;  %v925_v29 = vadd.f32 %v889_v25, %v753_v23 }
  0xc2   : > { %v1094_v24 = vadd.f32 %v1058_v22, %v944_v20  ;;  %v756_v30 = vadd.f32 %v755_v27, %v636_v26 }
  0xc3   : > { %v945_v32 = vadd.f32 %v1942_v59, %v925_v29 }
  0xc4   : > { %v1110_v28 = vmax.f32 %v1094_v24, 0.0 }
  0xc6   : > { %1126 = vst.msk [vmem:[%s1954_s18 + $0x10] sm:$0xff] %vm1018_vm1, %v1110_v28 }
  0xc7   : > { %v1059_v31 = vpop.f32.mrf.mxu3 }
  0xc8   : > { %v1060_v33 = vadd.f32 %v1947_v63, %v1059_v31  ;;  %v892_v35 = vpop.f32.mrf.mxu2  ;;  %v638_v37 = vpop.f32.mrf.mxu0 }
  0xc9   : > { %v926_v36 = vadd.f32 %v892_v35, %v756_v30  ;;  %v757_v38 = vpop.f32.mrf.mxu1 }
  0xca   : > { %v1095_v34 = vadd.f32 %v1060_v33, %v945_v32  ;;  %v758_v43 = vadd.f32 %v757_v38, %v638_v37 }
  0xcb   : > { %v946_v40 = vadd.f32 %v1942_v59, %v926_v36 }
  0xcc   : > { %v1111_v39 = vmax.f32 %v1095_v34, 0.0 }
  0xce   : > { %1127 = vst.msk [vmem:[%s1954_s18 + $0x18] sm:$0xff] %vm1018_vm1, %v1111_v39 }
  0xcf   : > { %v1062_v41 = vpop.f32.mrf.mxu3 }
  0xd0   : > { %v1063_v42 = vadd.f32 %v1947_v63, %v1062_v41  ;;  %v894_v45 = vpop.f32.mrf.mxu2  ;;  %v641_v46 = vpop.f32.mrf.mxu0 }
  0xd1   : > { %v760_v47 = vpop.f32.mrf.mxu1  ;;  %v927_v49 = vadd.f32 %v894_v45, %v758_v43 }
  0xd2   : > { %v1096_v44 = vadd.f32 %v1063_v42, %v946_v40  ;;  %v761_v50 = vadd.f32 %v760_v47, %v641_v46 }
  0xd3   : > { %v947_v52 = vadd.f32 %v1942_v59, %v927_v49 }
  0xd4   : > { %v1112_v48 = vmax.f32 %v1096_v44, 0.0 }
  0xd6   : > { %1128 = vst.msk [vmem:[%s1954_s18 + $0x20] sm:$0xff] %vm1018_vm1, %v1112_v48 }
  0xd7   : > { %v1064_v51 = vpop.f32.mrf.mxu3 }
  0xd8   : > { %v1065_v53 = vadd.f32 %v1947_v63, %v1064_v51  ;;  %v897_v55 = vpop.f32.mrf.mxu2  ;;  %v643_v57 = vpop.f32.mrf.mxu0 }
  0xd9   : > { %v928_v56 = vadd.f32 %v897_v55, %v761_v50  ;;  %v762_v58 = vpop.f32.mrf.mxu1 }
  0xda   : > { %v1097_v54 = vadd.f32 %v1065_v53, %v947_v52  ;;  %v763_v1 = vadd.f32 %v762_v58, %v643_v57 }
  0xdb   : > { %v948_v61 = vadd.f32 %v1942_v59, %v928_v56 }
  0xdc   : > { %v1113_v60 = vmax.f32 %v1097_v54, 0.0 }
  0xde   : > { %1129 = vst.msk [vmem:[%s1954_s18 + $0x28] sm:$0xff] %vm1018_vm1, %v1113_v60 }
  0xdf   : > { %v1067_v62 = vpop.f32.mrf.mxu3 }
  0xe0   : > { %v1068_v0 = vadd.f32 %v1947_v63, %v1067_v62  ;;  %v899_v3 = vpop.f32.mrf.mxu2  ;;  %v646_v4 = vpop.f32.mrf.mxu0 }
  0xe1   : > { %v765_v5 = vpop.f32.mrf.mxu1  ;;  %v929_v7 = vadd.f32 %v899_v3, %v763_v1 }
  0xe2   : > { %v1098_v2 = vadd.f32 %v1068_v0, %v948_v61  ;;  %v766_v8 = vadd.f32 %v765_v5, %v646_v4 }
  0xe3   : > { %v949_v10 = vadd.f32 %v1942_v59, %v929_v7 }
  0xe4   : > { %v1114_v6 = vmax.f32 %v1098_v2, 0.0 }
  0xe6   : > { %1130 = vst.msk [vmem:[%s1954_s18 + $0x30] sm:$0xff] %vm1018_vm1, %v1114_v6 }
  0xe7   : > { %v1069_v9 = vpop.f32.mrf.mxu3 }
  0xe8   : > { %v1070_v11 = vadd.f32 %v1947_v63, %v1069_v9  ;;  %v902_v13 = vpop.f32.mrf.mxu2  ;;  %v648_v15 = vpop.f32.mrf.mxu0 }
  0xe9   : > { %v930_v14 = vadd.f32 %v902_v13, %v766_v8  ;;  %v767_v16 = vpop.f32.mrf.mxu1 }
  0xea   : > { %v1099_v12 = vadd.f32 %v1070_v11, %v949_v10  ;;  %v768_v21 = vadd.f32 %v767_v16, %v648_v15 }
  0xeb   : > { %v950_v18 = vadd.f32 %v1942_v59, %v930_v14 }
  0xec   : > { %v1115_v17 = vmax.f32 %v1099_v12, 0.0 }
  0xee   : > { %1131 = vst.msk [vmem:[%s1954_s18 + $0x38] sm:$0xff] %vm1018_vm1, %v1115_v17 }
  0xef   : > { %v1072_v19 = vpop.f32.mrf.mxu3 }
  0xf0   : > { %v1073_v20 = vadd.f32 %v1947_v63, %v1072_v19  ;;  %v904_v23 = vpop.f32.mrf.mxu2  ;;  %v651_v24 = vpop.f32.mrf.mxu0 }
  0xf1   : > { %v770_v25 = vpop.f32.mrf.mxu1  ;;  %v931_v27 = vadd.f32 %v904_v23, %v768_v21 }
  0xf2   : > { %v1100_v22 = vadd.f32 %v1073_v20, %v950_v18  ;;  %v771_v28 = vadd.f32 %v770_v25, %v651_v24 }
  0xf3   : > { %v951_v30 = vadd.f32 %v1942_v59, %v931_v27 }
  0xf4   : > { %v1116_v26 = vmax.f32 %v1100_v22, 0.0 }
  0xf6   : > { %1132 = vst.msk [vmem:[%s1954_s18 + $0x40] sm:$0xff] %vm1018_vm1, %v1116_v26 }
  0xf7   : > { %v1074_v29 = vpop.f32.mrf.mxu3 }
  0xf8   : > { %v1075_v31 = vadd.f32 %v1947_v63, %v1074_v29  ;;  %v907_v33 = vpop.f32.mrf.mxu2  ;;  %v653_v35 = vpop.f32.mrf.mxu0 }
  0xf9   : > { %v932_v34 = vadd.f32 %v907_v33, %v771_v28  ;;  %v772_v36 = vpop.f32.mrf.mxu1 }
  0xfa   : > { %v1101_v32 = vadd.f32 %v1075_v31, %v951_v30  ;;  %v773_v41 = vadd.f32 %v772_v36, %v653_v35 }
  0xfb   : > { %v952_v38 = vadd.f32 %v1942_v59, %v932_v34 }
  0xfc   : > { %v1117_v37 = vmax.f32 %v1101_v32, 0.0 }
  0xfe   : > { %1133 = vst.msk [vmem:[%s1954_s18 + $0x48] sm:$0xff] %vm1018_vm1, %v1117_v37 }
  0xff   : > { %v1077_v39 = vpop.f32.mrf.mxu3 }
 0x100   : > { %v1078_v40 = vadd.f32 %v1947_v63, %v1077_v39  ;;  %v909_v43 = vpop.f32.mrf.mxu2  ;;  %v656_v44 = vpop.f32.mrf.mxu0 }
 0x101   : > { %v775_v45 = vpop.f32.mrf.mxu1  ;;  %v933_v47 = vadd.f32 %v909_v43, %v773_v41 }
 0x102   : > { %v1102_v42 = vadd.f32 %v1078_v40, %v952_v38  ;;  %v776_v48 = vadd.f32 %v775_v45, %v656_v44 }
 0x103   : > { %v953_v50 = vadd.f32 %v1942_v59, %v933_v47 }
 0x104   : > { %v1118_v46 = vmax.f32 %v1102_v42, 0.0 }
 0x106   : > { %1134 = vst.msk [vmem:[%s1954_s18 + $0x50] sm:$0xff] %vm1018_vm1, %v1118_v46 }
 0x107   : > { %v1079_v49 = vpop.f32.mrf.mxu3 }
 0x108   : > { %v1080_v51 = vadd.f32 %v1947_v63, %v1079_v49  ;;  %v912_v53 = vpop.f32.mrf.mxu2  ;;  %v658_v55 = vpop.f32.mrf.mxu0 }
 0x109   : > { %v934_v54 = vadd.f32 %v912_v53, %v776_v48  ;;  %v777_v56 = vpop.f32.mrf.mxu1 }
 0x10a   : > { %v1103_v52 = vadd.f32 %v1080_v51, %v953_v50  ;;  %v778_v62 = vadd.f32 %v777_v56, %v658_v55 }
 0x10b   : > { %v954_v58 = vadd.f32 %v1942_v59, %v934_v54 }
 0x10c   : > { %v1119_v57 = vmax.f32 %v1103_v52, 0.0 }
 0x10e   : > { %1135 = vst.msk [vmem:[%s1954_s18 + $0x58] sm:$0xff] %vm1018_vm1, %v1119_v57 }
 0x10f   : > { %v1082_v60 = vpop.f32.mrf.mxu3 }
 0x110   : > { %v1083_v61 = vadd.f32 %v1947_v63, %v1082_v60  ;;  %v914_v1 = vpop.f32.mrf.mxu2  ;;  %v661_v4 = vpop.f32.mrf.mxu0 }
 0x111   : > { %v935_v3 = vadd.f32 %v914_v1, %v778_v62  ;;  %v780_v5 = vpop.f32.mrf.mxu1 }
 0x112   : > { %v1104_v0 = vadd.f32 %v1083_v61, %v954_v58  ;;  %v781_v6 = vadd.f32 %v780_v5, %v661_v4 }
 0x113   : > { %v955_v8 = vadd.f32 %v1942_v59, %v935_v3 }
 0x114   : > { %v1120_v2 = vmax.f32 %v1104_v0, 0.0 }
 0x116   : > { %1136 = vst.msk [vmem:[%s1954_s18 + $0x60] sm:$0xff] %vm1018_vm1, %v1120_v2 }
 0x117   : > { %v1084_v7 = vpop.f32.mrf.mxu3 }
 0x118   : > { %v1085_v9 = vadd.f32 %v1947_v63, %v1084_v7  ;;  %v917_v11 = vpop.f32.mrf.mxu2  ;;  %v663_v15 = vpop.f32.mrf.mxu0 }
 0x119   : > { %v936_v12 = vadd.f32 %v917_v11, %v781_v6  ;;  %v782_v16 = vpop.f32.mrf.mxu1 }
 0x11a   : > { %v1105_v10 = vadd.f32 %v1085_v9, %v955_v8  ;;  %v783_v19 = vadd.f32 %v782_v16, %v663_v15 }
 0x11b   : > { %v956_v14 = vadd.f32 %v1942_v59, %v936_v12 }
 0x11c   : > { %v1121_v13 = vmax.f32 %v1105_v10, 0.0 }
 0x11e   : > { %1137 = vst.msk [vmem:[%s1954_s18 + $0x68] sm:$0xff] %vm1018_vm1, %v1121_v13 }
 0x11f   : > { %v1087_v17 = vpop.f32.mrf.mxu3 }
 0x120   : > { %v1088_v18 = vadd.f32 %v1947_v63, %v1087_v17  ;;  %v919_v21 = vpop.f32.mrf.mxu2 }
 0x121   : > { %v937_v23 = vadd.f32 %v919_v21, %v783_v19 }
 0x122   : > { %v1106_v20 = vadd.f32 %v1088_v18, %v956_v14 }
 0x123   : > { %v957_v25 = vadd.f32 %v1942_v59, %v937_v23 }
 0x124   : > { %v1122_v22 = vmax.f32 %v1106_v20, 0.0 }
 0x126   : > { %1138 = vst.msk [vmem:[%s1954_s18 + $0x70] sm:$0xff] %vm1018_vm1, %v1122_v22 }
 0x127   : > { %v1089_v24 = vpop.f32.mrf.mxu3 }
 0x128   : > { %v1090_v26 = vadd.f32 %v1947_v63, %v1089_v24 }
 0x12a   : > { %v1107_v27 = vadd.f32 %v1090_v26, %v957_v25 }
 0x12c   : > { %v1123_v28 = vmax.f32 %v1107_v27, 0.0 }
 0x12e   : > { %1139 = vst.msk [vmem:[%s1954_s18 + $0x78] sm:$0xff] %vm1018_vm1, %v1123_v28 }
 0x12f   : > { %1626 = shalt.err (!%p1623_p7)
}
 0x130   : > { %s1695_s12 = smov 128   ;;  %s1696_s18 = smov 8  }
 0x131   : > { %1524 = dma.vmem_to_hbm [thread:$0]  (%p1803_p3), %s1157_s19, 2048, %s1159_s25, %s1141_s4, %s1695_s12, %s1695_s12, %s1696_s18  }
 0x132 PF: > { %p1530_p9 = scmp.ge.s32.totalorder %s1693_s20, 2  ;;  %s1173_s6 = sand.u32 1, %s1665_s13  }
 0x133   : > { %s1174_s16 = scalar_lea.sflag [#allocation3], %s1173_s6 }
 0x134   : > { %p1527_p10 = pnand %p1530_p9, %p1812_p8 }
 0x136   : > { %p1528_p11 = pneg %p1527_p10 }
 0x138   : > { %1660 = dma.done.wait (%p1528_p11), %s1174_s16, 2048  }
 0x139   : > { %1662 = vsyncadd (%p1528_p11), %s1174_s16, 4294965248  ;;  %s23_s20 = sadd.s32 1, %s1693_s20   ;;  %s2091_s16 = sld [smem:[#allocation5_spill]] }
 0x13a   : > { %p20_p12 = scmp.ge.s32.totalorder %s23_s20, 6   ;;  %s2092_s17 = sld [smem:[#allocation6_spill]] }
 0x13b   : > { %s2093_s18 = sld [smem:[#allocation7_spill]]  ;;  %s2095_s13 = smov %s1669_s14 }
 0x13c   : > { %s2094_s19 = sld [smem:[#allocation8_spill]]  ;;  %s2096_s14 = smov %s1673_s15 }
 0x13d   : > { %s2097_s15 = smov %s1821_s11  ;;  %22 = sbr.rel (!%p20_p12) target bundleno = 9 (0x9), region = 104 }
 0x142   :  { %1180 = vsyncpa [#allocation3], 1 }
 0x143   :  { %1182 = vsyncpa [#allocation3 + $0x1], 1 }

</bundles_post_ra>
